<compile_context>
chip_gen: v5e
topology: v5e:2x2
jax: 0.10.0
libtpu: 0.0.40
codegen_flags: <defaults>
</compile_context>

<pallas_src>
import math

import jax
import jax.numpy as jnp
from jax.experimental import pallas as pl
from jax.experimental.pallas import tpu as pltpu


# ----------------------------- fused Pallas kernel -----------------------------

def _lenet_kernel(x_ref,                       # (B*32, 96)  row-stacked images
                  w1_ref, b1_ref, r1_ref, c1_ref,
                  w2_ref, b2_ref, r2_ref, c2_ref,
                  g_ref, fc1w_ref, fc1b_ref, fc2w_ref, fc2b_ref,
                  fc3w_ref, fc3b_ref,
                  o_ref,                       # (B, 128) padded logits
                  y1_scr, p1_scr, y2_scr):     # VMEM staging buffers
    f32 = jnp.float32
    nr1 = y1_scr.shape[0]        # B*32 - 4  (conv1 output rows, whole sub-batch)
    nr2 = y2_scr.shape[0]        # B*14 - 4  (conv2 output rows, whole sub-batch)

    # ---- conv1 (3->6, 5x5 VALID) + bias + ReLU : one matmul per tap, whole batch
    y1 = b1_ref[...] + jnp.dot(x_ref[0:nr1, :], w1_ref[0],
                               preferred_element_type=f32)
    for i in range(1, 5):
        y1 = y1 + jnp.dot(x_ref[i:i + nr1, :], w1_ref[i],
                          preferred_element_type=f32)
    y1_scr[...] = jnp.maximum(y1, 0.0)                       # (B*32-4, 168)

    # ---- maxpool 2x2 (rows via block-diag selectors, cols via shared selectors)
    y1 = y1_scr[...]
    rmax1 = jnp.maximum(jnp.dot(r1_ref[0], y1, preferred_element_type=f32),
                        jnp.dot(r1_ref[1], y1, preferred_element_type=f32))
    p1_scr[...] = jnp.maximum(jnp.dot(rmax1, c1_ref[0], preferred_element_type=f32),
                              jnp.dot(rmax1, c1_ref[1], preferred_element_type=f32))

    # ---- conv2 (6->16, 5x5 VALID) + bias + ReLU ----
    y2 = b2_ref[...] + jnp.dot(p1_scr[0:nr2, :], w2_ref[0],
                               preferred_element_type=f32)
    for i in range(1, 5):
        y2 = y2 + jnp.dot(p1_scr[i:i + nr2, :], w2_ref[i],
                          preferred_element_type=f32)
    y2_scr[...] = jnp.maximum(y2, 0.0)                       # (B*14-4, 160)

    # ---- maxpool 2x2 : (B*5, 80) ----
    y2 = y2_scr[...]
    rmax2 = jnp.maximum(jnp.dot(r2_ref[0], y2, preferred_element_type=f32),
                        jnp.dot(r2_ref[1], y2, preferred_element_type=f32))
    p2 = jnp.maximum(jnp.dot(rmax2, c2_ref[0], preferred_element_type=f32),
                     jnp.dot(rmax2, c2_ref[1], preferred_element_type=f32))

    # ---- classifier, batched with M = B ----
    # fc1 weights were pre-permuted so block r consumes pool2 row r (lanes w*16+c).
    h = fc1b_ref[...]                                        # (1, 120) broadcast
    for r in range(5):
        rows = jnp.dot(g_ref[r], p2, preferred_element_type=f32)   # (B, 80)
        h = h + jnp.dot(rows, fc1w_ref[r], preferred_element_type=f32)
    h = jnp.maximum(h, 0.0)
    h = jnp.maximum(jnp.dot(h, fc2w_ref[...], preferred_element_type=f32)
                    + fc2b_ref[...], 0.0)
    # fc3 weights/bias are zero-padded to 128 lanes -> unmasked lane-dense store.
    o_ref[...] = (jnp.dot(h, fc3w_ref[...], preferred_element_type=f32)
                  + fc3b_ref[...]).astype(o_ref.dtype)


# ----------------------------- one-time parameter prep -----------------------------

def prepare_params(p, block_b=8):
    """Repack PyTorch-layout params once (outside the forward hot path)."""
    f32 = jnp.float32
    B = block_b

    def conv_as_shifted_matmuls(w_oihw, w_in, w_out):
        # For an input slab laid out (rows, W*Cin) the VALID conv is
        #   sum_i  slab[i : i + rows - 4, :] @ mats[i]
        # producing an output slab laid out (rows - 4, OW*Cout).
        w_hwio = jnp.transpose(w_oihw, (2, 3, 1, 0)).astype(f32)  # (KH,KW,Cin,Cout)
        kh, kw, _, _ = w_hwio.shape
        mats = []
        for i in range(kh):
            m = None
            for j in range(kw):
                shift = jnp.eye(w_in, w_out, k=-j, dtype=f32)     # [win,ow]=1 iff win==ow+j
                term = jnp.kron(shift, w_hwio[i, j])
                m = term if m is None else m + term
            mats.append(m)
        return jnp.stack(mats)

    def pool_row_select(h_out, rows_per_img, slab_rows):
        # (2, B*h_out, slab_rows) block-diagonal even/odd row selectors.
        oi = jnp.arange(B * h_out)
        src_even = (oi // h_out) * rows_per_img + 2 * (oi % h_out)
        cols = jnp.arange(slab_rows)[None, :]
        even = (cols == src_even[:, None]).astype(f32)
        odd = (cols == (src_even + 1)[:, None]).astype(f32)
        return jnp.stack([even, odd])

    def pool_col_select(w_out, c):
        ow = jnp.arange(2 * w_out)[:, None]
        pw = jnp.arange(w_out)[None, :]
        even = (ow == 2 * pw).astype(f32)
        odd = (ow == 2 * pw + 1).astype(f32)
        eye_c = jnp.eye(c, dtype=f32)
        return jnp.stack([jnp.kron(even, eye_c),
                          jnp.kron(odd, eye_c)])                  # (2, 2*w_out*c, w_out*c)

    def regroup_select():
        # (5, B, B*5): g[r, b, 5*b + r] = 1  -> gathers pool2 row r of every image.
        r = jnp.arange(5)[:, None, None]
        b = jnp.arange(B)[None, :, None]
        cols = jnp.arange(B * 5)[None, None, :]
        return (cols == 5 * b + r).astype(f32)

    # fc1 rows in PyTorch flatten order c*25+h*5+w -> our (h, w*16+c) order.
    fc1w = jnp.transpose(p["fc1_w"].reshape(16, 5, 5, 120),
                         (1, 2, 0, 3)).reshape(5, 80, 120)
    fc3w = jnp.zeros((84, 128), f32).at[:, :10].set(p["fc3_w"].astype(f32))
    fc3b = jnp.zeros((1, 128), f32).at[:, :10].set(p["fc3_b"].reshape(1, 10))

    return {
        "w1": conv_as_shifted_matmuls(p["conv1_w"], 32, 28),      # (5, 96, 168)
        "b1": jnp.tile(p["conv1_b"], 28).reshape(1, 168),
        "r1": pool_row_select(14, 32, B * 32 - 4),                # (2, B*14, B*32-4)
        "c1": pool_col_select(14, 6),                             # (2, 168, 84)
        "w2": conv_as_shifted_matmuls(p["conv2_w"], 14, 10),      # (5, 84, 160)
        "b2": jnp.tile(p["conv2_b"], 10).reshape(1, 160),
        "r2": pool_row_select(5, 14, B * 14 - 4),                 # (2, B*5, B*14-4)
        "c2": pool_col_select(5, 16),                             # (2, 160, 80)
        "g": regroup_select(),                                    # (5, B, B*5)
        "fc1w": fc1w,
        "fc1b": p["fc1_b"].reshape(1, 120),
        "fc2w": p["fc2_w"],
        "fc2b": p["fc2_b"].reshape(1, 84),
        "fc3w": fc3w,
        "fc3b": fc3b,
    }


# ----------------------------- forward -----------------------------

def lenet_forward(x_nchw, pp):
    n = x_nchw.shape[0]
    B = pp["g"].shape[1]                      # images per grid step (static shape)
    n_pad = -(-n // B) * B
    if n_pad != n:
        x_nchw = jnp.pad(x_nchw, ((0, n_pad - n), (0, 0), (0, 0), (0, 0)))
    # Single cheap layout op per forward: NCHW -> row-stacked (n*32, W*C) slab.
    x = jnp.transpose(x_nchw, (0, 2, 3, 1)).reshape(n_pad * 32, 96)

    keys = ["w1", "b1", "r1", "c1", "w2", "b2", "r2", "c2",
            "g", "fc1w", "fc1b", "fc2w", "fc2b", "fc3w", "fc3b"]
    consts = [pp[k] for k in keys]

    def full_spec(arr):
        rank = arr.ndim
        return pl.BlockSpec(arr.shape, lambda i, rank=rank: (0,) * rank)

    grid_spec = pltpu.PrefetchScalarGridSpec(
        num_scalar_prefetch=0,
        grid=(n_pad // B,),
        in_specs=[pl.BlockSpec((B * 32, 96), lambda i: (i, 0))]
                 + [full_spec(c) for c in consts],
        out_specs=pl.BlockSpec((B, 128), lambda i: (i, 0)),
        scratch_shapes=[pltpu.VMEM((B * 32 - 4, 168), jnp.float32),   # conv1 out
                        pltpu.VMEM((B * 14, 84), jnp.float32),        # pool1 out
                        pltpu.VMEM((B * 14 - 4, 160), jnp.float32)],  # conv2 out
    )

    out = pl.pallas_call(
        _lenet_kernel,
        out_shape=jax.ShapeDtypeStruct((n_pad, 128), jnp.float32),
        grid_spec=grid_spec,
        compiler_params=pltpu.CompilerParams(
            dimension_semantics=("parallel",)),
        cost_estimate=pl.CostEstimate(
            flops=int(1.2e7) * n_pad,
            transcendentals=0,
            bytes_accessed=n_pad * (32 * 96 + 128) * 4 + 1_500_000),
    )(x, *consts)
    return out[:n, :10]


# ----------------------------- params & XLA reference -----------------------------

def init_params(key):
    ks = jax.random.split(key, 10)

    def u(k, shape, fan_in):
        bound = 1.0 / math.sqrt(fan_in)
        return jax.random.uniform(k, shape, jnp.float32, -bound, bound)

    return {
        "conv1_w": u(ks[0], (6, 3, 5, 5), 3 * 5 * 5),
        "conv1_b": u(ks[1], (6,), 3 * 5 * 5),
        "conv2_w": u(ks[2], (16, 6, 5, 5), 6 * 5 * 5),
        "conv2_b": u(ks[3], (16,), 6 * 5 * 5),
        "fc1_w": u(ks[4], (400, 120), 400),
        "fc1_b": u(ks[5], (120,), 400),
        "fc2_w": u(ks[6], (120, 84), 120),
        "fc2_b": u(ks[7], (84,), 120),
        "fc3_w": u(ks[8], (84, 10), 84),
        "fc3_b": u(ks[9], (10,), 84),
    }


def reference_forward(x_nchw, p):
    """Pure-JAX/XLA reference matching the PyTorch module."""
    dn = ("NCHW", "OIHW", "NCHW")
    y = jax.lax.conv_general_dilated(x_nchw, p["conv1_w"], (1, 1), "VALID",
                                     dimension_numbers=dn)
    y = jax.nn.relu(y + p["conv1_b"][None, :, None, None])
    y = jax.lax.reduce_window(y, -jnp.inf, jax.lax.max,
                              (1, 1, 2, 2), (1, 1, 2, 2), "VALID")
    y = jax.lax.conv_general_dilated(y, p["conv2_w"], (1, 1), "VALID",
                                     dimension_numbers=dn)
    y = jax.nn.relu(y + p["conv2_b"][None, :, None, None])
    y = jax.lax.reduce_window(y, -jnp.inf, jax.lax.max,
                              (1, 1, 2, 2), (1, 1, 2, 2), "VALID")
    y = y.reshape(y.shape[0], -1)
    y = jax.nn.relu(y @ p["fc1_w"] + p["fc1_b"])
    y = jax.nn.relu(y @ p["fc2_w"] + p["fc2_b"])
    return y @ p["fc3_w"] + p["fc3_b"]


# ----------------------------- main -----------------------------

if __name__ == "__main__":
    key = jax.random.PRNGKey(0)
    k_x, k_p = jax.random.split(key)
    # LeNet for CIFAR-10: 32x32 RGB input (required by the 16*5*5 flatten).
    n = 16                                      # 2 grid steps of 8 images each
    x = jax.random.normal(k_x, (n, 3, 32, 32), dtype=jnp.float32)
    params = init_params(k_p)

    prepped = prepare_params(params, block_b=8)            # one-time weight repack
    out = jax.block_until_ready(jax.jit(lenet_forward)(x, prepped))
    assert out.shape == (n, 10) and out.dtype == jnp.float32

    ref = jax.block_until_ready(reference_forward(x, params))
    assert jnp.allclose(out, ref, atol=2e-4, rtol=2e-4), "mismatch vs XLA reference"

    print("KERNEL_OK")
</pallas_src>

<mosaic_0001>
module attributes {stable_mosaic.version = 11 : i64} {
  func.func @_lenet_kernel(%arg0: i32, %arg1: memref<256x96xf32, #tpu.memory_space<vmem>>, %arg2: memref<5x96x168xf32, #tpu.memory_space<vmem>>, %arg3: memref<1x168xf32, #tpu.memory_space<vmem>>, %arg4: memref<2x112x252xf32, #tpu.memory_space<vmem>>, %arg5: memref<2x168x84xf32, #tpu.memory_space<vmem>>, %arg6: memref<5x84x160xf32, #tpu.memory_space<vmem>>, %arg7: memref<1x160xf32, #tpu.memory_space<vmem>>, %arg8: memref<2x40x108xf32, #tpu.memory_space<vmem>>, %arg9: memref<2x160x80xf32, #tpu.memory_space<vmem>>, %arg10: memref<5x8x40xf32, #tpu.memory_space<vmem>>, %arg11: memref<5x80x120xf32, #tpu.memory_space<vmem>>, %arg12: memref<1x120xf32, #tpu.memory_space<vmem>>, %arg13: memref<120x84xf32, #tpu.memory_space<vmem>>, %arg14: memref<1x84xf32, #tpu.memory_space<vmem>>, %arg15: memref<84x128xf32, #tpu.memory_space<vmem>>, %arg16: memref<1x128xf32, #tpu.memory_space<vmem>>, %arg17: memref<8x128xf32, #tpu.memory_space<vmem>>, %arg18: memref<252x168xf32, #tpu.memory_space<vmem>>, %arg19: memref<112x84xf32, #tpu.memory_space<vmem>>, %arg20: memref<108x160xf32, #tpu.memory_space<vmem>>) attributes {dimension_semantics = [#tpu.dimension_semantics<parallel>], iteration_bounds = array<i64: 2>, scalar_prefetch = 0 : i64, scratch_operands = 3 : i64, tpu.core_type = #tpu.core_type<tc>, window_params = [{transform_indices = @transform_0, window_bounds = array<i64: 256, 96>}, {pipeline_mode = #tpu.pipeline_mode<synchronous>, transform_indices = @transform_1, window_bounds = array<i64: 5, 96, 168>}, {pipeline_mode = #tpu.pipeline_mode<synchronous>, transform_indices = @transform_2, window_bounds = array<i64: 1, 168>}, {pipeline_mode = #tpu.pipeline_mode<synchronous>, transform_indices = @transform_3, window_bounds = array<i64: 2, 112, 252>}, {pipeline_mode = #tpu.pipeline_mode<synchronous>, transform_indices = @transform_4, window_bounds = array<i64: 2, 168, 84>}, {pipeline_mode = #tpu.pipeline_mode<synchronous>, transform_indices = @transform_5, window_bounds = array<i64: 5, 84, 160>}, {pipeline_mode = #tpu.pipeline_mode<synchronous>, transform_indices = @transform_6, window_bounds = array<i64: 1, 160>}, {pipeline_mode = #tpu.pipeline_mode<synchronous>, transform_indices = @transform_7, window_bounds = array<i64: 2, 40, 108>}, {pipeline_mode = #tpu.pipeline_mode<synchronous>, transform_indices = @transform_8, window_bounds = array<i64: 2, 160, 80>}, {pipeline_mode = #tpu.pipeline_mode<synchronous>, transform_indices = @transform_9, window_bounds = array<i64: 5, 8, 40>}, {pipeline_mode = #tpu.pipeline_mode<synchronous>, transform_indices = @transform_10, window_bounds = array<i64: 5, 80, 120>}, {pipeline_mode = #tpu.pipeline_mode<synchronous>, transform_indices = @transform_11, window_bounds = array<i64: 1, 120>}, {pipeline_mode = #tpu.pipeline_mode<synchronous>, transform_indices = @transform_12, window_bounds = array<i64: 120, 84>}, {pipeline_mode = #tpu.pipeline_mode<synchronous>, transform_indices = @transform_13, window_bounds = array<i64: 1, 84>}, {pipeline_mode = #tpu.pipeline_mode<synchronous>, transform_indices = @transform_14, window_bounds = array<i64: 84, 128>}, {pipeline_mode = #tpu.pipeline_mode<synchronous>, transform_indices = @transform_15, window_bounds = array<i64: 1, 128>}, {transform_indices = @transform_16, window_bounds = array<i64: 8, 128>}]} {
    %c0 = arith.constant 0 : index
    %c0_0 = arith.constant 0 : index
    %0 = vector.load %arg3[%c0, %c0_0] : memref<1x168xf32, #tpu.memory_space<vmem>>, vector<1x168xf32>
    %c0_1 = arith.constant 0 : index
    %c0_2 = arith.constant 0 : index
    %1 = vector.load %arg1[%c0_1, %c0_2] : memref<256x96xf32, #tpu.memory_space<vmem>>, vector<252x96xf32>
    %c0_3 = arith.constant 0 : index
    %c0_4 = arith.constant 0 : index
    %c0_5 = arith.constant 0 : index
    %2 = vector.load %arg2[%c0_3, %c0_4, %c0_5] : memref<5x96x168xf32, #tpu.memory_space<vmem>>, vector<1x96x168xf32>
    %3 = vector.shape_cast %2 : vector<1x96x168xf32> to vector<96x168xf32>
    %cst = arith.constant dense<0.000000e+00> : vector<252x168xf32>
    %4 = tpu.matmul %1, %3, %cst {dimension_numbers = #tpu.dot_dimension_numbers<[1], [0], [0], [1], [0, 0, 1, 1], [], []>} : vector<252x96xf32>, vector<96x168xf32>, vector<252x168xf32> -> vector<252x168xf32>
    %5 = vector.broadcast %0 : vector<1x168xf32> to vector<252x168xf32>
    %6 = arith.addf %5, %4 : vector<252x168xf32>
    %c1 = arith.constant 1 : index
    %c0_6 = arith.constant 0 : index
    %7 = vector.load %arg1[%c1, %c0_6] : memref<256x96xf32, #tpu.memory_space<vmem>>, vector<252x96xf32>
    %c1_7 = arith.constant 1 : index
    %c0_8 = arith.constant 0 : index
    %c0_9 = arith.constant 0 : index
    %8 = vector.load %arg2[%c1_7, %c0_8, %c0_9] : memref<5x96x168xf32, #tpu.memory_space<vmem>>, vector<1x96x168xf32>
    %9 = vector.shape_cast %8 : vector<1x96x168xf32> to vector<96x168xf32>
    %cst_10 = arith.constant dense<0.000000e+00> : vector<252x168xf32>
    %10 = tpu.matmul %7, %9, %cst_10 {dimension_numbers = #tpu.dot_dimension_numbers<[1], [0], [0], [1], [0, 0, 1, 1], [], []>} : vector<252x96xf32>, vector<96x168xf32>, vector<252x168xf32> -> vector<252x168xf32>
    %11 = arith.addf %6, %10 : vector<252x168xf32>
    %c2 = arith.constant 2 : index
    %c0_11 = arith.constant 0 : index
    %12 = vector.load %arg1[%c2, %c0_11] : memref<256x96xf32, #tpu.memory_space<vmem>>, vector<252x96xf32>
    %c2_12 = arith.constant 2 : index
    %c0_13 = arith.constant 0 : index
    %c0_14 = arith.constant 0 : index
    %13 = vector.load %arg2[%c2_12, %c0_13, %c0_14] : memref<5x96x168xf32, #tpu.memory_space<vmem>>, vector<1x96x168xf32>
    %14 = vector.shape_cast %13 : vector<1x96x168xf32> to vector<96x168xf32>
    %cst_15 = arith.constant dense<0.000000e+00> : vector<252x168xf32>
    %15 = tpu.matmul %12, %14, %cst_15 {dimension_numbers = #tpu.dot_dimension_numbers<[1], [0], [0], [1], [0, 0, 1, 1], [], []>} : vector<252x96xf32>, vector<96x168xf32>, vector<252x168xf32> -> vector<252x168xf32>
    %16 = arith.addf %11, %15 : vector<252x168xf32>
    %c3 = arith.constant 3 : index
    %c0_16 = arith.constant 0 : index
    %17 = vector.load %arg1[%c3, %c0_16] : memref<256x96xf32, #tpu.memory_space<vmem>>, vector<252x96xf32>
    %c3_17 = arith.constant 3 : index
    %c0_18 = arith.constant 0 : index
    %c0_19 = arith.constant 0 : index
    %18 = vector.load %arg2[%c3_17, %c0_18, %c0_19] : memref<5x96x168xf32, #tpu.memory_space<vmem>>, vector<1x96x168xf32>
    %19 = vector.shape_cast %18 : vector<1x96x168xf32> to vector<96x168xf32>
    %cst_20 = arith.constant dense<0.000000e+00> : vector<252x168xf32>
    %20 = tpu.matmul %17, %19, %cst_20 {dimension_numbers = #tpu.dot_dimension_numbers<[1], [0], [0], [1], [0, 0, 1, 1], [], []>} : vector<252x96xf32>, vector<96x168xf32>, vector<252x168xf32> -> vector<252x168xf32>
    %21 = arith.addf %16, %20 : vector<252x168xf32>
    %c4 = arith.constant 4 : index
    %c0_21 = arith.constant 0 : index
    %22 = vector.load %arg1[%c4, %c0_21] : memref<256x96xf32, #tpu.memory_space<vmem>>, vector<252x96xf32>
    %c4_22 = arith.constant 4 : index
    %c0_23 = arith.constant 0 : index
    %c0_24 = arith.constant 0 : index
    %23 = vector.load %arg2[%c4_22, %c0_23, %c0_24] : memref<5x96x168xf32, #tpu.memory_space<vmem>>, vector<1x96x168xf32>
    %24 = vector.shape_cast %23 : vector<1x96x168xf32> to vector<96x168xf32>
    %cst_25 = arith.constant dense<0.000000e+00> : vector<252x168xf32>
    %25 = tpu.matmul %22, %24, %cst_25 {dimension_numbers = #tpu.dot_dimension_numbers<[1], [0], [0], [1], [0, 0, 1, 1], [], []>} : vector<252x96xf32>, vector<96x168xf32>, vector<252x168xf32> -> vector<252x168xf32>
    %26 = arith.addf %21, %25 : vector<252x168xf32>
    %cst_26 = arith.constant 0.000000e+00 : f32
    %27 = vector.broadcast %cst_26 : f32 to vector<252x168xf32>
    %28 = arith.maximumf %26, %27 : vector<252x168xf32>
    %c0_27 = arith.constant 0 : index
    %c0_28 = arith.constant 0 : index
    %29 = vector.load %arg18[%c0_27, %c0_28] : memref<252x168xf32, #tpu.memory_space<vmem>>, vector<252x168xf32>
    tpu.vector_store %arg18[%c0_27, %c0_28], %28 {strides = array<i32>} : memref<252x168xf32, #tpu.memory_space<vmem>>, vector<252x168xf32>,
    %c0_29 = arith.constant 0 : index
    %c0_30 = arith.constant 0 : index
    %30 = vector.load %arg18[%c0_29, %c0_30] : memref<252x168xf32, #tpu.memory_space<vmem>>, vector<252x168xf32>
    %c0_31 = arith.constant 0 : index
    %c0_32 = arith.constant 0 : index
    %c0_33 = arith.constant 0 : index
    %31 = vector.load %arg4[%c0_31, %c0_32, %c0_33] : memref<2x112x252xf32, #tpu.memory_space<vmem>>, vector<1x112x252xf32>
    %32 = vector.shape_cast %31 : vector<1x112x252xf32> to vector<112x252xf32>
    %cst_34 = arith.constant dense<0.000000e+00> : vector<112x168xf32>
    %33 = tpu.matmul %32, %30, %cst_34 {dimension_numbers = #tpu.dot_dimension_numbers<[1], [0], [0], [1], [0, 0, 1, 1], [], []>} : vector<112x252xf32>, vector<252x168xf32>, vector<112x168xf32> -> vector<112x168xf32>
    %c1_35 = arith.constant 1 : index
    %c0_36 = arith.constant 0 : index
    %c0_37 = arith.constant 0 : index
    %34 = vector.load %arg4[%c1_35, %c0_36, %c0_37] : memref<2x112x252xf32, #tpu.memory_space<vmem>>, vector<1x112x252xf32>
    %35 = vector.shape_cast %34 : vector<1x112x252xf32> to vector<112x252xf32>
    %cst_38 = arith.constant dense<0.000000e+00> : vector<112x168xf32>
    %36 = tpu.matmul %35, %30, %cst_38 {dimension_numbers = #tpu.dot_dimension_numbers<[1], [0], [0], [1], [0, 0, 1, 1], [], []>} : vector<112x252xf32>, vector<252x168xf32>, vector<112x168xf32> -> vector<112x168xf32>
    %37 = arith.maximumf %33, %36 : vector<112x168xf32>
    %c0_39 = arith.constant 0 : index
    %c0_40 = arith.constant 0 : index
    %c0_41 = arith.constant 0 : index
    %38 = vector.load %arg5[%c0_39, %c0_40, %c0_41] : memref<2x168x84xf32, #tpu.memory_space<vmem>>, vector<1x168x84xf32>
    %39 = vector.shape_cast %38 : vector<1x168x84xf32> to vector<168x84xf32>
    %cst_42 = arith.constant dense<0.000000e+00> : vector<112x84xf32>
    %40 = tpu.matmul %37, %39, %cst_42 {dimension_numbers = #tpu.dot_dimension_numbers<[1], [0], [0], [1], [0, 0, 1, 1], [], []>} : vector<112x168xf32>, vector<168x84xf32>, vector<112x84xf32> -> vector<112x84xf32>
    %c1_43 = arith.constant 1 : index
    %c0_44 = arith.constant 0 : index
    %c0_45 = arith.constant 0 : index
    %41 = vector.load %arg5[%c1_43, %c0_44, %c0_45] : memref<2x168x84xf32, #tpu.memory_space<vmem>>, vector<1x168x84xf32>
    %42 = vector.shape_cast %41 : vector<1x168x84xf32> to vector<168x84xf32>
    %cst_46 = arith.constant dense<0.000000e+00> : vector<112x84xf32>
    %43 = tpu.matmul %37, %42, %cst_46 {dimension_numbers = #tpu.dot_dimension_numbers<[1], [0], [0], [1], [0, 0, 1, 1], [], []>} : vector<112x168xf32>, vector<168x84xf32>, vector<112x84xf32> -> vector<112x84xf32>
    %44 = arith.maximumf %40, %43 : vector<112x84xf32>
    %c0_47 = arith.constant 0 : index
    %c0_48 = arith.constant 0 : index
    %45 = vector.load %arg19[%c0_47, %c0_48] : memref<112x84xf32, #tpu.memory_space<vmem>>, vector<112x84xf32>
    tpu.vector_store %arg19[%c0_47, %c0_48], %44 {strides = array<i32>} : memref<112x84xf32, #tpu.memory_space<vmem>>, vector<112x84xf32>,
    %c0_49 = arith.constant 0 : index
    %c0_50 = arith.constant 0 : index
    %46 = vector.load %arg7[%c0_49, %c0_50] : memref<1x160xf32, #tpu.memory_space<vmem>>, vector<1x160xf32>
    %c0_51 = arith.constant 0 : index
    %c0_52 = arith.constant 0 : index
    %47 = vector.load %arg19[%c0_51, %c0_52] : memref<112x84xf32, #tpu.memory_space<vmem>>, vector<108x84xf32>
    %c0_53 = arith.constant 0 : index
    %c0_54 = arith.constant 0 : index
    %c0_55 = arith.constant 0 : index
    %48 = vector.load %arg6[%c0_53, %c0_54, %c0_55] : memref<5x84x160xf32, #tpu.memory_space<vmem>>, vector<1x84x160xf32>
    %49 = vector.shape_cast %48 : vector<1x84x160xf32> to vector<84x160xf32>
    %cst_56 = arith.constant dense<0.000000e+00> : vector<108x160xf32>
    %50 = tpu.matmul %47, %49, %cst_56 {dimension_numbers = #tpu.dot_dimension_numbers<[1], [0], [0], [1], [0, 0, 1, 1], [], []>} : vector<108x84xf32>, vector<84x160xf32>, vector<108x160xf32> -> vector<108x160xf32>
    %51 = vector.broadcast %46 : vector<1x160xf32> to vector<108x160xf32>
    %52 = arith.addf %51, %50 : vector<108x160xf32>
    %c1_57 = arith.constant 1 : index
    %c0_58 = arith.constant 0 : index
    %53 = vector.load %arg19[%c1_57, %c0_58] : memref<112x84xf32, #tpu.memory_space<vmem>>, vector<108x84xf32>
    %c1_59 = arith.constant 1 : index
    %c0_60 = arith.constant 0 : index
    %c0_61 = arith.constant 0 : index
    %54 = vector.load %arg6[%c1_59, %c0_60, %c0_61] : memref<5x84x160xf32, #tpu.memory_space<vmem>>, vector<1x84x160xf32>
    %55 = vector.shape_cast %54 : vector<1x84x160xf32> to vector<84x160xf32>
    %cst_62 = arith.constant dense<0.000000e+00> : vector<108x160xf32>
    %56 = tpu.matmul %53, %55, %cst_62 {dimension_numbers = #tpu.dot_dimension_numbers<[1], [0], [0], [1], [0, 0, 1, 1], [], []>} : vector<108x84xf32>, vector<84x160xf32>, vector<108x160xf32> -> vector<108x160xf32>
    %57 = arith.addf %52, %56 : vector<108x160xf32>
    %c2_63 = arith.constant 2 : index
    %c0_64 = arith.constant 0 : index
    %58 = vector.load %arg19[%c2_63, %c0_64] : memref<112x84xf32, #tpu.memory_space<vmem>>, vector<108x84xf32>
    %c2_65 = arith.constant 2 : index
    %c0_66 = arith.constant 0 : index
    %c0_67 = arith.constant 0 : index
    %59 = vector.load %arg6[%c2_65, %c0_66, %c0_67] : memref<5x84x160xf32, #tpu.memory_space<vmem>>, vector<1x84x160xf32>
    %60 = vector.shape_cast %59 : vector<1x84x160xf32> to vector<84x160xf32>
    %cst_68 = arith.constant dense<0.000000e+00> : vector<108x160xf32>
    %61 = tpu.matmul %58, %60, %cst_68 {dimension_numbers = #tpu.dot_dimension_numbers<[1], [0], [0], [1], [0, 0, 1, 1], [], []>} : vector<108x84xf32>, vector<84x160xf32>, vector<108x160xf32> -> vector<108x160xf32>
    %62 = arith.addf %57, %61 : vector<108x160xf32>
    %c3_69 = arith.constant 3 : index
    %c0_70 = arith.constant 0 : index
    %63 = vector.load %arg19[%c3_69, %c0_70] : memref<112x84xf32, #tpu.memory_space<vmem>>, vector<108x84xf32>
    %c3_71 = arith.constant 3 : index
    %c0_72 = arith.constant 0 : index
    %c0_73 = arith.constant 0 : index
    %64 = vector.load %arg6[%c3_71, %c0_72, %c0_73] : memref<5x84x160xf32, #tpu.memory_space<vmem>>, vector<1x84x160xf32>
    %65 = vector.shape_cast %64 : vector<1x84x160xf32> to vector<84x160xf32>
    %cst_74 = arith.constant dense<0.000000e+00> : vector<108x160xf32>
    %66 = tpu.matmul %63, %65, %cst_74 {dimension_numbers = #tpu.dot_dimension_numbers<[1], [0], [0], [1], [0, 0, 1, 1], [], []>} : vector<108x84xf32>, vector<84x160xf32>, vector<108x160xf32> -> vector<108x160xf32>
    %67 = arith.addf %62, %66 : vector<108x160xf32>
    %c4_75 = arith.constant 4 : index
    %c0_76 = arith.constant 0 : index
    %68 = vector.load %arg19[%c4_75, %c0_76] : memref<112x84xf32, #tpu.memory_space<vmem>>, vector<108x84xf32>
    %c4_77 = arith.constant 4 : index
    %c0_78 = arith.constant 0 : index
    %c0_79 = arith.constant 0 : index
    %69 = vector.load %arg6[%c4_77, %c0_78, %c0_79] : memref<5x84x160xf32, #tpu.memory_space<vmem>>, vector<1x84x160xf32>
    %70 = vector.shape_cast %69 : vector<1x84x160xf32> to vector<84x160xf32>
    %cst_80 = arith.constant dense<0.000000e+00> : vector<108x160xf32>
    %71 = tpu.matmul %68, %70, %cst_80 {dimension_numbers = #tpu.dot_dimension_numbers<[1], [0], [0], [1], [0, 0, 1, 1], [], []>} : vector<108x84xf32>, vector<84x160xf32>, vector<108x160xf32> -> vector<108x160xf32>
    %72 = arith.addf %67, %71 : vector<108x160xf32>
    %cst_81 = arith.constant 0.000000e+00 : f32
    %73 = vector.broadcast %cst_81 : f32 to vector<108x160xf32>
    %74 = arith.maximumf %72, %73 : vector<108x160xf32>
    %c0_82 = arith.constant 0 : index
    %c0_83 = arith.constant 0 : index
    %75 = vector.load %arg20[%c0_82, %c0_83] : memref<108x160xf32, #tpu.memory_space<vmem>>, vector<108x160xf32>
    tpu.vector_store %arg20[%c0_82, %c0_83], %74 {strides = array<i32>} : memref<108x160xf32, #tpu.memory_space<vmem>>, vector<108x160xf32>,
    %c0_84 = arith.constant 0 : index
    %c0_85 = arith.constant 0 : index
    %76 = vector.load %arg20[%c0_84, %c0_85] : memref<108x160xf32, #tpu.memory_space<vmem>>, vector<108x160xf32>
    %c0_86 = arith.constant 0 : index
    %c0_87 = arith.constant 0 : index
    %c0_88 = arith.constant 0 : index
    %77 = vector.load %arg8[%c0_86, %c0_87, %c0_88] : memref<2x40x108xf32, #tpu.memory_space<vmem>>, vector<1x40x108xf32>
    %78 = vector.shape_cast %77 : vector<1x40x108xf32> to vector<40x108xf32>
    %cst_89 = arith.constant dense<0.000000e+00> : vector<40x160xf32>
    %79 = tpu.matmul %78, %76, %cst_89 {dimension_numbers = #tpu.dot_dimension_numbers<[1], [0], [0], [1], [0, 0, 1, 1], [], []>} : vector<40x108xf32>, vector<108x160xf32>, vector<40x160xf32> -> vector<40x160xf32>
    %c1_90 = arith.constant 1 : index
    %c0_91 = arith.constant 0 : index
    %c0_92 = arith.constant 0 : index
    %80 = vector.load %arg8[%c1_90, %c0_91, %c0_92] : memref<2x40x108xf32, #tpu.memory_space<vmem>>, vector<1x40x108xf32>
    %81 = vector.shape_cast %80 : vector<1x40x108xf32> to vector<40x108xf32>
    %cst_93 = arith.constant dense<0.000000e+00> : vector<40x160xf32>
    %82 = tpu.matmul %81, %76, %cst_93 {dimension_numbers = #tpu.dot_dimension_numbers<[1], [0], [0], [1], [0, 0, 1, 1], [], []>} : vector<40x108xf32>, vector<108x160xf32>, vector<40x160xf32> -> vector<40x160xf32>
    %83 = arith.maximumf %79, %82 : vector<40x160xf32>
    %c0_94 = arith.constant 0 : index
    %c0_95 = arith.constant 0 : index
    %c0_96 = arith.constant 0 : index
    %84 = vector.load %arg9[%c0_94, %c0_95, %c0_96] : memref<2x160x80xf32, #tpu.memory_space<vmem>>, vector<1x160x80xf32>
    %85 = vector.shape_cast %84 : vector<1x160x80xf32> to vector<160x80xf32>
    %cst_97 = arith.constant dense<0.000000e+00> : vector<40x80xf32>
    %86 = tpu.matmul %83, %85, %cst_97 {dimension_numbers = #tpu.dot_dimension_numbers<[1], [0], [0], [1], [0, 0, 1, 1], [], []>} : vector<40x160xf32>, vector<160x80xf32>, vector<40x80xf32> -> vector<40x80xf32>
    %c1_98 = arith.constant 1 : index
    %c0_99 = arith.constant 0 : index
    %c0_100 = arith.constant 0 : index
    %87 = vector.load %arg9[%c1_98, %c0_99, %c0_100] : memref<2x160x80xf32, #tpu.memory_space<vmem>>, vector<1x160x80xf32>
    %88 = vector.shape_cast %87 : vector<1x160x80xf32> to vector<160x80xf32>
    %cst_101 = arith.constant dense<0.000000e+00> : vector<40x80xf32>
    %89 = tpu.matmul %83, %88, %cst_101 {dimension_numbers = #tpu.dot_dimension_numbers<[1], [0], [0], [1], [0, 0, 1, 1], [], []>} : vector<40x160xf32>, vector<160x80xf32>, vector<40x80xf32> -> vector<40x80xf32>
    %90 = arith.maximumf %86, %89 : vector<40x80xf32>
    %c0_102 = arith.constant 0 : index
    %c0_103 = arith.constant 0 : index
    %91 = vector.load %arg12[%c0_102, %c0_103] : memref<1x120xf32, #tpu.memory_space<vmem>>, vector<1x120xf32>
    %c0_104 = arith.constant 0 : index
    %c0_105 = arith.constant 0 : index
    %c0_106 = arith.constant 0 : index
    %92 = vector.load %arg10[%c0_104, %c0_105, %c0_106] : memref<5x8x40xf32, #tpu.memory_space<vmem>>, vector<1x8x40xf32>
    %93 = vector.shape_cast %92 : vector<1x8x40xf32> to vector<8x40xf32>
    %cst_107 = arith.constant dense<0.000000e+00> : vector<8x80xf32>
    %94 = tpu.matmul %93, %90, %cst_107 {dimension_numbers = #tpu.dot_dimension_numbers<[1], [0], [0], [1], [0, 0, 1, 1], [], []>} : vector<8x40xf32>, vector<40x80xf32>, vector<8x80xf32> -> vector<8x80xf32>
    %c0_108 = arith.constant 0 : index
    %c0_109 = arith.constant 0 : index
    %c0_110 = arith.constant 0 : index
    %95 = vector.load %arg11[%c0_108, %c0_109, %c0_110] : memref<5x80x120xf32, #tpu.memory_space<vmem>>, vector<1x80x120xf32>
    %96 = vector.shape_cast %95 : vector<1x80x120xf32> to vector<80x120xf32>
    %cst_111 = arith.constant dense<0.000000e+00> : vector<8x120xf32>
    %97 = tpu.matmul %94, %96, %cst_111 {dimension_numbers = #tpu.dot_dimension_numbers<[1], [0], [0], [1], [0, 0, 1, 1], [], []>} : vector<8x80xf32>, vector<80x120xf32>, vector<8x120xf32> -> vector<8x120xf32>
    %98 = vector.broadcast %91 : vector<1x120xf32> to vector<8x120xf32>
    %99 = arith.addf %98, %97 : vector<8x120xf32>
    %c1_112 = arith.constant 1 : index
    %c0_113 = arith.constant 0 : index
    %c0_114 = arith.constant 0 : index
    %100 = vector.load %arg10[%c1_112, %c0_113, %c0_114] : memref<5x8x40xf32, #tpu.memory_space<vmem>>, vector<1x8x40xf32>
    %101 = vector.shape_cast %100 : vector<1x8x40xf32> to vector<8x40xf32>
    %cst_115 = arith.constant dense<0.000000e+00> : vector<8x80xf32>
    %102 = tpu.matmul %101, %90, %cst_115 {dimension_numbers = #tpu.dot_dimension_numbers<[1], [0], [0], [1], [0, 0, 1, 1], [], []>} : vector<8x40xf32>, vector<40x80xf32>, vector<8x80xf32> -> vector<8x80xf32>
    %c1_116 = arith.constant 1 : index
    %c0_117 = arith.constant 0 : index
    %c0_118 = arith.constant 0 : index
    %103 = vector.load %arg11[%c1_116, %c0_117, %c0_118] : memref<5x80x120xf32, #tpu.memory_space<vmem>>, vector<1x80x120xf32>
    %104 = vector.shape_cast %103 : vector<1x80x120xf32> to vector<80x120xf32>
    %cst_119 = arith.constant dense<0.000000e+00> : vector<8x120xf32>
    %105 = tpu.matmul %102, %104, %cst_119 {dimension_numbers = #tpu.dot_dimension_numbers<[1], [0], [0], [1], [0, 0, 1, 1], [], []>} : vector<8x80xf32>, vector<80x120xf32>, vector<8x120xf32> -> vector<8x120xf32>
    %106 = arith.addf %99, %105 : vector<8x120xf32>
    %c2_120 = arith.constant 2 : index
    %c0_121 = arith.constant 0 : index
    %c0_122 = arith.constant 0 : index
    %107 = vector.load %arg10[%c2_120, %c0_121, %c0_122] : memref<5x8x40xf32, #tpu.memory_space<vmem>>, vector<1x8x40xf32>
    %108 = vector.shape_cast %107 : vector<1x8x40xf32> to vector<8x40xf32>
    %cst_123 = arith.constant dense<0.000000e+00> : vector<8x80xf32>
    %109 = tpu.matmul %108, %90, %cst_123 {dimension_numbers = #tpu.dot_dimension_numbers<[1], [0], [0], [1], [0, 0, 1, 1], [], []>} : vector<8x40xf32>, vector<40x80xf32>, vector<8x80xf32> -> vector<8x80xf32>
    %c2_124 = arith.constant 2 : index
    %c0_125 = arith.constant 0 : index
    %c0_126 = arith.constant 0 : index
    %110 = vector.load %arg11[%c2_124, %c0_125, %c0_126] : memref<5x80x120xf32, #tpu.memory_space<vmem>>, vector<1x80x120xf32>
    %111 = vector.shape_cast %110 : vector<1x80x120xf32> to vector<80x120xf32>
    %cst_127 = arith.constant dense<0.000000e+00> : vector<8x120xf32>
    %112 = tpu.matmul %109, %111, %cst_127 {dimension_numbers = #tpu.dot_dimension_numbers<[1], [0], [0], [1], [0, 0, 1, 1], [], []>} : vector<8x80xf32>, vector<80x120xf32>, vector<8x120xf32> -> vector<8x120xf32>
    %113 = arith.addf %106, %112 : vector<8x120xf32>
    %c3_128 = arith.constant 3 : index
    %c0_129 = arith.constant 0 : index
    %c0_130 = arith.constant 0 : index
    %114 = vector.load %arg10[%c3_128, %c0_129, %c0_130] : memref<5x8x40xf32, #tpu.memory_space<vmem>>, vector<1x8x40xf32>
    %115 = vector.shape_cast %114 : vector<1x8x40xf32> to vector<8x40xf32>
    %cst_131 = arith.constant dense<0.000000e+00> : vector<8x80xf32>
    %116 = tpu.matmul %115, %90, %cst_131 {dimension_numbers = #tpu.dot_dimension_numbers<[1], [0], [0], [1], [0, 0, 1, 1], [], []>} : vector<8x40xf32>, vector<40x80xf32>, vector<8x80xf32> -> vector<8x80xf32>
    %c3_132 = arith.constant 3 : index
    %c0_133 = arith.constant 0 : index
    %c0_134 = arith.constant 0 : index
    %117 = vector.load %arg11[%c3_132, %c0_133, %c0_134] : memref<5x80x120xf32, #tpu.memory_space<vmem>>, vector<1x80x120xf32>
    %118 = vector.shape_cast %117 : vector<1x80x120xf32> to vector<80x120xf32>
    %cst_135 = arith.constant dense<0.000000e+00> : vector<8x120xf32>
    %119 = tpu.matmul %116, %118, %cst_135 {dimension_numbers = #tpu.dot_dimension_numbers<[1], [0], [0], [1], [0, 0, 1, 1], [], []>} : vector<8x80xf32>, vector<80x120xf32>, vector<8x120xf32> -> vector<8x120xf32>
    %120 = arith.addf %113, %119 : vector<8x120xf32>
    %c4_136 = arith.constant 4 : index
    %c0_137 = arith.constant 0 : index
    %c0_138 = arith.constant 0 : index
    %121 = vector.load %arg10[%c4_136, %c0_137, %c0_138] : memref<5x8x40xf32, #tpu.memory_space<vmem>>, vector<1x8x40xf32>
    %122 = vector.shape_cast %121 : vector<1x8x40xf32> to vector<8x40xf32>
    %cst_139 = arith.constant dense<0.000000e+00> : vector<8x80xf32>
    %123 = tpu.matmul %122, %90, %cst_139 {dimension_numbers = #tpu.dot_dimension_numbers<[1], [0], [0], [1], [0, 0, 1, 1], [], []>} : vector<8x40xf32>, vector<40x80xf32>, vector<8x80xf32> -> vector<8x80xf32>
    %c4_140 = arith.constant 4 : index
    %c0_141 = arith.constant 0 : index
    %c0_142 = arith.constant 0 : index
    %124 = vector.load %arg11[%c4_140, %c0_141, %c0_142] : memref<5x80x120xf32, #tpu.memory_space<vmem>>, vector<1x80x120xf32>
    %125 = vector.shape_cast %124 : vector<1x80x120xf32> to vector<80x120xf32>
    %cst_143 = arith.constant dense<0.000000e+00> : vector<8x120xf32>
    %126 = tpu.matmul %123, %125, %cst_143 {dimension_numbers = #tpu.dot_dimension_numbers<[1], [0], [0], [1], [0, 0, 1, 1], [], []>} : vector<8x80xf32>, vector<80x120xf32>, vector<8x120xf32> -> vector<8x120xf32>
    %127 = arith.addf %120, %126 : vector<8x120xf32>
    %cst_144 = arith.constant 0.000000e+00 : f32
    %128 = vector.broadcast %cst_144 : f32 to vector<8x120xf32>
    %129 = arith.maximumf %127, %128 : vector<8x120xf32>
    %c0_145 = arith.constant 0 : index
    %c0_146 = arith.constant 0 : index
    %130 = vector.load %arg13[%c0_145, %c0_146] : memref<120x84xf32, #tpu.memory_space<vmem>>, vector<120x84xf32>
    %cst_147 = arith.constant dense<0.000000e+00> : vector<8x84xf32>
    %131 = tpu.matmul %129, %130, %cst_147 {dimension_numbers = #tpu.dot_dimension_numbers<[1], [0], [0], [1], [0, 0, 1, 1], [], []>} : vector<8x120xf32>, vector<120x84xf32>, vector<8x84xf32> -> vector<8x84xf32>
    %c0_148 = arith.constant 0 : index
    %c0_149 = arith.constant 0 : index
    %132 = vector.load %arg14[%c0_148, %c0_149] : memref<1x84xf32, #tpu.memory_space<vmem>>, vector<1x84xf32>
    %133 = vector.broadcast %132 : vector<1x84xf32> to vector<8x84xf32>
    %134 = arith.addf %131, %133 : vector<8x84xf32>
    %cst_150 = arith.constant 0.000000e+00 : f32
    %135 = vector.broadcast %cst_150 : f32 to vector<8x84xf32>
    %136 = arith.maximumf %134, %135 : vector<8x84xf32>
    %c0_151 = arith.constant 0 : index
    %c0_152 = arith.constant 0 : index
    %137 = vector.load %arg15[%c0_151, %c0_152] : memref<84x128xf32, #tpu.memory_space<vmem>>, vector<84x128xf32>
    %cst_153 = arith.constant dense<0.000000e+00> : vector<8x128xf32>
    %138 = tpu.matmul %136, %137, %cst_153 {dimension_numbers = #tpu.dot_dimension_numbers<[1], [0], [0], [1], [0, 0, 1, 1], [], []>} : vector<8x84xf32>, vector<84x128xf32>, vector<8x128xf32> -> vector<8x128xf32>
    %c0_154 = arith.constant 0 : index
    %c0_155 = arith.constant 0 : index
    %139 = vector.load %arg16[%c0_154, %c0_155] : memref<1x128xf32, #tpu.memory_space<vmem>>, vector<1x128xf32>
    %140 = vector.broadcast %139 : vector<1x128xf32> to vector<8x128xf32>
    %141 = arith.addf %138, %140 : vector<8x128xf32>
    %c0_156 = arith.constant 0 : index
    %c0_157 = arith.constant 0 : index
    %142 = vector.load %arg17[%c0_156, %c0_157] : memref<8x128xf32, #tpu.memory_space<vmem>>, vector<8x128xf32>
    tpu.vector_store %arg17[%c0_156, %c0_157], %141 {strides = array<i32>} : memref<8x128xf32, #tpu.memory_space<vmem>>, vector<8x128xf32>,
    return
  }
  func.func @transform_0(%arg0: i32) -> (i32, i32) {
    %c0_i32 = arith.constant 0 : i32
    %c0_i32_0 = arith.constant 0 : i32
    return %arg0, %c0_i32 : i32, i32
  }
  func.func @transform_1(%arg0: i32) -> (i32, i32, i32) {
    %c0_i32 = arith.constant 0 : i32
    %c0_i32_0 = arith.constant 0 : i32
    %c0_i32_1 = arith.constant 0 : i32
    %c0_i32_2 = arith.constant 0 : i32
    return %c0_i32, %c0_i32_0, %c0_i32_1 : i32, i32, i32
  }
  func.func @transform_2(%arg0: i32) -> (i32, i32) {
    %c0_i32 = arith.constant 0 : i32
    %c0_i32_0 = arith.constant 0 : i32
    %c0_i32_1 = arith.constant 0 : i32
    return %c0_i32, %c0_i32_0 : i32, i32
  }
  func.func @transform_3(%arg0: i32) -> (i32, i32, i32) {
    %c0_i32 = arith.constant 0 : i32
    %c0_i32_0 = arith.constant 0 : i32
    %c0_i32_1 = arith.constant 0 : i32
    %c0_i32_2 = arith.constant 0 : i32
    return %c0_i32, %c0_i32_0, %c0_i32_1 : i32, i32, i32
  }
  func.func @transform_4(%arg0: i32) -> (i32, i32, i32) {
    %c0_i32 = arith.constant 0 : i32
    %c0_i32_0 = arith.constant 0 : i32
    %c0_i32_1 = arith.constant 0 : i32
    %c0_i32_2 = arith.constant 0 : i32
    return %c0_i32, %c0_i32_0, %c0_i32_1 : i32, i32, i32
  }
  func.func @transform_5(%arg0: i32) -> (i32, i32, i32) {
    %c0_i32 = arith.constant 0 : i32
    %c0_i32_0 = arith.constant 0 : i32
    %c0_i32_1 = arith.constant 0 : i32
    %c0_i32_2 = arith.constant 0 : i32
    return %c0_i32, %c0_i32_0, %c0_i32_1 : i32, i32, i32
  }
  func.func @transform_6(%arg0: i32) -> (i32, i32) {
    %c0_i32 = arith.constant 0 : i32
    %c0_i32_0 = arith.constant 0 : i32
    %c0_i32_1 = arith.constant 0 : i32
    return %c0_i32, %c0_i32_0 : i32, i32
  }
  func.func @transform_7(%arg0: i32) -> (i32, i32, i32) {
    %c0_i32 = arith.constant 0 : i32
    %c0_i32_0 = arith.constant 0 : i32
    %c0_i32_1 = arith.constant 0 : i32
    %c0_i32_2 = arith.constant 0 : i32
    return %c0_i32, %c0_i32_0, %c0_i32_1 : i32, i32, i32
  }
  func.func @transform_8(%arg0: i32) -> (i32, i32, i32) {
    %c0_i32 = arith.constant 0 : i32
    %c0_i32_0 = arith.constant 0 : i32
    %c0_i32_1 = arith.constant 0 : i32
    %c0_i32_2 = arith.constant 0 : i32
    return %c0_i32, %c0_i32_0, %c0_i32_1 : i32, i32, i32
  }
  func.func @transform_9(%arg0: i32) -> (i32, i32, i32) {
    %c0_i32 = arith.constant 0 : i32
    %c0_i32_0 = arith.constant 0 : i32
    %c0_i32_1 = arith.constant 0 : i32
    %c0_i32_2 = arith.constant 0 : i32
    return %c0_i32, %c0_i32_0, %c0_i32_1 : i32, i32, i32
  }
  func.func @transform_10(%arg0: i32) -> (i32, i32, i32) {
    %c0_i32 = arith.constant 0 : i32
    %c0_i32_0 = arith.constant 0 : i32
    %c0_i32_1 = arith.constant 0 : i32
    %c0_i32_2 = arith.constant 0 : i32
    return %c0_i32, %c0_i32_0, %c0_i32_1 : i32, i32, i32
  }
  func.func @transform_11(%arg0: i32) -> (i32, i32) {
    %c0_i32 = arith.constant 0 : i32
    %c0_i32_0 = arith.constant 0 : i32
    %c0_i32_1 = arith.constant 0 : i32
    return %c0_i32, %c0_i32_0 : i32, i32
  }
  func.func @transform_12(%arg0: i32) -> (i32, i32) {
    %c0_i32 = arith.constant 0 : i32
    %c0_i32_0 = arith.constant 0 : i32
    %c0_i32_1 = arith.constant 0 : i32
    return %c0_i32, %c0_i32_0 : i32, i32
  }
  func.func @transform_13(%arg0: i32) -> (i32, i32) {
    %c0_i32 = arith.constant 0 : i32
    %c0_i32_0 = arith.constant 0 : i32
    %c0_i32_1 = arith.constant 0 : i32
    return %c0_i32, %c0_i32_0 : i32, i32
  }
  func.func @transform_14(%arg0: i32) -> (i32, i32) {
    %c0_i32 = arith.constant 0 : i32
    %c0_i32_0 = arith.constant 0 : i32
    %c0_i32_1 = arith.constant 0 : i32
    return %c0_i32, %c0_i32_0 : i32, i32
  }
  func.func @transform_15(%arg0: i32) -> (i32, i32) {
    %c0_i32 = arith.constant 0 : i32
    %c0_i32_0 = arith.constant 0 : i32
    %c0_i32_1 = arith.constant 0 : i32
    return %c0_i32, %c0_i32_0 : i32, i32
  }
  func.func @transform_16(%arg0: i32) -> (i32, i32) {
    %c0_i32 = arith.constant 0 : i32
    %c0_i32_0 = arith.constant 0 : i32
    return %arg0, %c0_i32 : i32, i32
  }
}

</mosaic_0001>

<bundles_post_ra>
// kernel: lenet_forward.1
= control target key start
LH: loop header
LB: loop body
LE: loop exit
PB: predicated region body
PF: predicated region fallthrough
CT: control target
= control target key end

     0   :  { %s11169_s0 = inlined_call_operand.vmem [shape: f32[512,96], index: 0, kind: input, shape index: {}]   ;;  %s11170_s1 = inlined_call_operand.vmem [shape: f32[5,96,168], index: 1, kind: input, shape index: {}]   ;;  %s11171_s2 = inlined_call_operand.vmem [shape: f32[1,168], index: 2, kind: input, shape index: {}]   ;;  %s11172_s3 = inlined_call_operand.vmem [shape: f32[2,112,252], index: 3, kind: input, shape index: {}]   ;;  %s11173_s4 = inlined_call_operand.vmem [shape: f32[2,168,84], index: 4, kind: input, shape index: {}]   ;;  %s11174_s5 = inlined_call_operand.vmem [shape: f32[5,84,160], index: 5, kind: input, shape index: {}]   ;;  %s11175_s6 = inlined_call_operand.vmem [shape: f32[1,160], index: 6, kind: input, shape index: {}]   ;;  %s11176_s7 = inlined_call_operand.vmem [shape: f32[2,40,108], index: 7, kind: input, shape index: {}]   ;;  %s11177_s8 = inlined_call_operand.vmem [shape: f32[2,160,80], index: 8, kind: input, shape index: {}]   ;;  %s11178_s9 = inlined_call_operand.vmem [shape: f32[5,8,40], index: 9, kind: input, shape index: {}]   ;;  %s11179_s10 = inlined_call_operand.vmem [shape: f32[5,80,120], index: 10, kind: input, shape index: {}]   ;;  %s11180_s11 = inlined_call_operand.vmem [shape: f32[1,120], index: 11, kind: input, shape index: {}]   ;;  %s11181_s12 = inlined_call_operand.vmem [shape: f32[120,84], index: 12, kind: input, shape index: {}]   ;;  %s11182_s13 = inlined_call_operand.vmem [shape: f32[1,84], index: 13, kind: input, shape index: {}]   ;;  %s11183_s14 = inlined_call_operand.vmem [shape: f32[84,128], index: 14, kind: input, shape index: {}]   ;;  %s11184_s15 = inlined_call_operand.vmem [shape: f32[1,128], index: 15, kind: input, shape index: {}]   ;;  %s11185_s16 = inlined_call_operand.hbm [shape: f32[16,128], index: 16, kind: output, shape index: {}]  }
   0x1   :  { %11200 = sst [smem:[#allocation126_spill]] %s11169_s0 }
   0x2   :  { %11201 = sst [smem:[#allocation127_spill]] %s11170_s1 }
   0x3   :  { %21 = vsyncpa [#allocation6], 0 }
   0x4   :  { %23 = vsyncpa [#allocation6 + $0x1], 0  ;;  %s7133_s21 = smov 0   ;;  %s7135_s22 = smov 0  }
   0x5   :  { %s7137_s23 = smov 0   ;;  %s7139_s24 = smov 0  }
   0x6 LB: > { %11202 = sst [smem:[#allocation8_spill]] %s7034_s21  ;;  %s7154_s25 = sadd.s32 4294967295, %s7046_s24   ;;  %s7046_s24 = sphi %s7139_s24, %s11508_s24   ;;  %s7042_s23 = sphi %s7137_s23, %s11510_s23   ;;  %s7038_s22 = sphi %s7135_s22, %s11512_s22   ;;  %s7034_s21 = sphi %s7133_s21, %s11511_s21  }
   0x7   : > { %11203 = sst [smem:[#allocation9_spill]] %s7042_s23  ;;  %s6022_s26 = sadd.s32 4294967294, %s7046_s24  }
   0x8   : > { %11204 = sst [smem:[#allocation10_spill]] %s7046_s24  ;;  %s7158_s27 = sadd.s32 1, %s7046_s24  }
   0x9   : > { %11205 = sst [smem:[#allocation11_spill]] %s7158_s27  ;;  %s377_s28 = sadd.s32 1, %s7042_s23 }
   0xa   : > { %s374_s29 = ssub.s32 %s7046_s24, %s7158_s27  ;;  %p387_p0 = scmp.ne.s32.totalorder %s7042_s23, %s7038_s22 }
   0xb   : > { %p375_p1 = scmp.eq.s32.totalorder %s374_s29, 0  ;;  %p388_p2 = scmp.eq.s32.totalorder %s7154_s25, 1 }
   0xc   : > { %p393_p3 = scmp.ne.s32.totalorder %s7038_s22, %s7034_s21  ;;  %p394_p4 = scmp.eq.s32.totalorder %s6022_s26, 1 }
   0xd   : > { %s7169_s30 = scalar_select %p375_p1, %s7042_s23, %s377_s28  }
   0xe   : > { %p7171_p5 = por %p388_p2, %p387_p0  ;;  %p7175_p6 = por %p394_p4, %p393_p3 }
   0xf   : > { %11206 = sst [smem:[#allocation12_spill]] %s7169_s30  ;;  %p6025_p7 = scmp.ge.s32.totalorder %s7046_s24, 1 }
  0x10   : > { %s11208_s17 = scalar_select %p7175_p6, 1, 0 }
  0x11   : > { %p466_p8 = scmp.lt.s32.totalorder %s7046_s24, 3 }
  0x12   : > { %11209 = sst [smem:[#allocation13_spill]] %s11208_s17 }
  0x13   : > { %p467_p9 = pnand %p6025_p7, %p466_p8 }
  0x15   : > { %470 = sbr.rel (%p467_p9) target bundleno = 3014 (0xbc6), region = 84 }
  0x1a   : > { %s11210_s1 = sld [smem:[#allocation127_spill]]  ;;  %s11211_s29 = sshll.u32 %s7154_s25, 5  ;;  %vm579_vm0 = vcmask 785408   ;;  %vm2808_vm1 = vcmask 326656   ;;  %vm2871_vm2 = vcmask 322560   ;;  %vm3008_vm3 = vcmask 1043456  }
  0x1b   : > { %p7250_p10 = scmp.lt.s32.totalorder %s11211_s29, 63  ;;  %s11213_s26 = sshll.u32 %s7154_s25, 5  ;;  %vm2965_vm4 = vcmask 1014784   ;;  %vm3921_vm5 = vcmask 687104   ;;  %vm5125_vm6 = vcmask 261120   ;;  %vm5152_vm7 = vcmask 257024  }
  0x1c   : > { %s11214_s24 = sld [smem:[#allocation126_spill]]  ;;  %vm5187_vm8 = vcmask 883712   ;;  %vm5592_vm9 = vcmask 654336   ;;  %vm5880_vm10 = vcmask 982016   ;;  %s6937_s29 = sshll.u32 %s7154_s25, 3 }
  0x1d   : > { %s11514_s26 = smov (!%p7250_p10, %s11213_s26), 63  ;;  %s5958_s27 = scalar_lea.hbm %s11185_s16, %s6937_s29 }
  0x1e   : > { %s6028_s23 = sshll.u32 %s11514_s26, 3  ;;  %s5962_s19 = sshll.u32 %s5958_s27, 4  ;;  %s5963_s19 = int_to_ptr.hbm [resolvable:$true] %s5962_s19 }
  0x1f   : > { %s7004_s26 = scalar_lea.hbm %s11185_s16, 16 }
  0x20   : > { %v577_v0 = vld [vmem:[%s11210_s1 + $0xb0] sm:$0xff]  ;;  %v578_v1 = vld [vmem:[%s11210_s1 + $0xb8] sm:$0xff]  ;;  %v575_v4 = vld [vmem:[%s11210_s1 + $0xa0] sm:$0xff] }
  0x21   : > { %v6115_v2 = vld [vmem:[%s11210_s1 + $0x170] sm:$0xff]  ;;  %680 = vmatpush.msra.mxu0 %v577_v0  ;;  %793 = vmatpush.msra.mxu1 %v578_v1  ;;  %v6116_v3 = vld [vmem:[%s11210_s1 + $0x178] sm:$0xff]  ;;  %v576_v5 = vld [vmem:[%s11210_s1 + $0xa8] sm:$0xff] }
  0x22   : > { %1128 = vmatpush.msra.mxu2 %v6115_v2  ;;  %1241 = vmatpush.msra.mxu3 %v6116_v3  ;;  %v6113_v6 = vld [vmem:[%s11210_s1 + $0x160] sm:$0xff]  ;;  %v6114_v7 = vld [vmem:[%s11210_s1 + $0x168] sm:$0xff]  ;;  %v573_v8 = vld [vmem:[%s11210_s1 + $0x90] sm:$0xff]  ;;  %s7330_s21 = scalar_lea.vmem %s11214_s24, %s6028_s23 }
  0x23   : > { %681 = vmatpush.msra.mxu0 %v575_v4  ;;  %794 = vmatpush.msra.mxu1 %v576_v5  ;;  %v574_v9 = vld [vmem:[%s11210_s1 + $0x98] sm:$0xff]  ;;  %v6111_v10 = vld [vmem:[%s11210_s1 + $0x150] sm:$0xff]  ;;  %v571_v12 = vld [vmem:[%s11210_s1 + $0x80] sm:$0xff] }
  0x24   : > { %v6112_v11 = vld [vmem:[%s11210_s1 + $0x158] sm:$0xff]  ;;  %1129 = vmatpush.msra.mxu2 %v6113_v6  ;;  %1242 = vmatpush.msra.mxu3 %v6114_v7  ;;  %v572_v13 = vld [vmem:[%s11210_s1 + $0x88] sm:$0xff]  ;;  %v6109_v14 = vld [vmem:[%s11210_s1 + $0x140] sm:$0xff] }
  0x25   : > { %682 = vmatpush.msra.mxu0 %v573_v8  ;;  %795 = vmatpush.msra.mxu1 %v574_v9  ;;  %v6110_v15 = vld [vmem:[%s11210_s1 + $0x148] sm:$0xff]  ;;  %v569_v16 = vld [vmem:[%s11210_s1 + $0x70] sm:$0xff]  ;;  %v570_v17 = vld [vmem:[%s11210_s1 + $0x78] sm:$0xff] }
  0x26   : > { %1130 = vmatpush.msra.mxu2 %v6111_v10  ;;  %1243 = vmatpush.msra.mxu3 %v6112_v11  ;;  %v6107_v18 = vld [vmem:[%s11210_s1 + $0x130] sm:$0xff]  ;;  %v6108_v19 = vld [vmem:[%s11210_s1 + $0x138] sm:$0xff]  ;;  %v567_v20 = vld [vmem:[%s11210_s1 + $0x60] sm:$0xff] }
  0x27   : > { %683 = vmatpush.msra.mxu0 %v571_v12  ;;  %796 = vmatpush.msra.mxu1 %v572_v13  ;;  %v568_v21 = vld [vmem:[%s11210_s1 + $0x68] sm:$0xff]  ;;  %v6105_v22 = vld [vmem:[%s11210_s1 + $0x120] sm:$0xff]  ;;  %v565_v24 = vld [vmem:[%s11210_s1 + $0x50] sm:$0xff] }
  0x28   : > { %1131 = vmatpush.msra.mxu2 %v6109_v14  ;;  %1244 = vmatpush.msra.mxu3 %v6110_v15  ;;  %v6106_v23 = vld [vmem:[%s11210_s1 + $0x128] sm:$0xff]  ;;  %v566_v25 = vld [vmem:[%s11210_s1 + $0x58] sm:$0xff]  ;;  %v6103_v26 = vld [vmem:[%s11210_s1 + $0x110] sm:$0xff] }
  0x29   : > { %684 = vmatpush.msra.mxu0 %v569_v16  ;;  %797 = vmatpush.msra.mxu1 %v570_v17  ;;  %v6104_v27 = vld [vmem:[%s11210_s1 + $0x118] sm:$0xff]  ;;  %v563_v28 = vld [vmem:[%s11210_s1 + $0x40] sm:$0xff]  ;;  %v564_v29 = vld [vmem:[%s11210_s1 + $0x48] sm:$0xff] }
  0x2a   : > { %1132 = vmatpush.msra.mxu2 %v6107_v18  ;;  %1245 = vmatpush.msra.mxu3 %v6108_v19  ;;  %v6101_v30 = vld [vmem:[%s11210_s1 + $0x100] sm:$0xff]  ;;  %v6102_v31 = vld [vmem:[%s11210_s1 + $0x108] sm:$0xff]  ;;  %v561_v32 = vld [vmem:[%s11210_s1 + $0x30] sm:$0xff] }
  0x2b   : > { %685 = vmatpush.msra.mxu0 %v567_v20  ;;  %798 = vmatpush.msra.mxu1 %v568_v21  ;;  %v562_v33 = vld [vmem:[%s11210_s1 + $0x38] sm:$0xff]  ;;  %v6099_v34 = vld [vmem:[%s11210_s1 + $0xf0] sm:$0xff]  ;;  %v559_v36 = vld [vmem:[%s11210_s1 + $0x20] sm:$0xff] }
  0x2c   : > { %1133 = vmatpush.msra.mxu2 %v6105_v22  ;;  %1246 = vmatpush.msra.mxu3 %v6106_v23  ;;  %v6100_v35 = vld [vmem:[%s11210_s1 + $0xf8] sm:$0xff]  ;;  %v560_v37 = vld [vmem:[%s11210_s1 + $0x28] sm:$0xff]  ;;  %v6097_v38 = vld [vmem:[%s11210_s1 + $0xe0] sm:$0xff] }
  0x2d   : > { %686 = vmatpush.msra.mxu0 %v565_v24  ;;  %799 = vmatpush.msra.mxu1 %v566_v25  ;;  %v6098_v39 = vld [vmem:[%s11210_s1 + $0xe8] sm:$0xff]  ;;  %v557_v40 = vld [vmem:[%s11210_s1 + $0x10] sm:$0xff]  ;;  %v558_v41 = vld [vmem:[%s11210_s1 + $0x18] sm:$0xff] }
  0x2e   : > { %1134 = vmatpush.msra.mxu2 %v6103_v26  ;;  %1247 = vmatpush.msra.mxu3 %v6104_v27  ;;  %v6095_v42 = vld [vmem:[%s11210_s1 + $0xd0] sm:$0xff]  ;;  %v6096_v43 = vld [vmem:[%s11210_s1 + $0xd8] sm:$0xff]  ;;  %v555_v44 = vld [vmem:[%s11210_s1] sm:$0xff] }
  0x2f   : > { %687 = vmatpush.msra.mxu0 %v563_v28  ;;  %800 = vmatpush.msra.mxu1 %v564_v29  ;;  %v556_v45 = vld [vmem:[%s11210_s1 + $0x8] sm:$0xff]  ;;  %v6093_v46 = vld [vmem:[%s11210_s1 + $0xc0] sm:$0xff]  ;;  %v525_v52 = vld [vmem:[%s7330_s21 + $0x10] sm:$0xff] }
  0x30   : > { %1135 = vmatpush.msra.mxu2 %v6101_v30  ;;  %1248 = vmatpush.msra.mxu3 %v6102_v31  ;;  %v6094_v47 = vld [vmem:[%s11210_s1 + $0xc8] sm:$0xff]  ;;  %v523_v48 = vld [vmem:[%s7330_s21] sm:$0xff]  ;;  %v973_v53 = vld [vmem:[%s7330_s21 + $0x11] sm:$0xff] }
  0x31   : > { %688 = vmatpush.msra.mxu0 %v561_v32  ;;  %801 = vmatpush.msra.mxu1 %v562_v33  ;;  %v971_v49 = vld [vmem:[%s7330_s21 + $0x1] sm:$0xff]  ;;  %v972_v51 = vld [vmem:[%s7330_s21 + $0x9] sm:$0xff]  ;;  %v526_v54 = vld [vmem:[%s7330_s21 + $0x18] sm:$0xff] }
  0x32   : > { %1136 = vmatpush.msra.mxu2 %v6099_v34  ;;  %1249 = vmatpush.msra.mxu3 %v6100_v35  ;;  %v524_v50 = vld [vmem:[%s7330_s21 + $0x8] sm:$0xff]  ;;  %v974_v55 = vld [vmem:[%s7330_s21 + $0x19] sm:$0xff]  ;;  %v529_v60 = vld [vmem:[%s7330_s21 + $0x30] sm:$0xff] }
  0x33   : > { %689 = vmatpush.msra.mxu0 %v559_v36  ;;  %802 = vmatpush.msra.mxu1 %v560_v37  ;;  %v527_v56 = vld [vmem:[%s7330_s21 + $0x20] sm:$0xff]  ;;  %v528_v58 = vld [vmem:[%s7330_s21 + $0x28] sm:$0xff]  ;;  %v977_v61 = vld [vmem:[%s7330_s21 + $0x31] sm:$0xff] }
  0x34   : > { %1137 = vmatpush.msra.mxu2 %v6097_v38  ;;  %1250 = vmatpush.msra.mxu3 %v6098_v39  ;;  %v975_v57 = vld [vmem:[%s7330_s21 + $0x21] sm:$0xff]  ;;  %v976_v59 = vld [vmem:[%s7330_s21 + $0x29] sm:$0xff]  ;;  %v530_v62 = vld [vmem:[%s7330_s21 + $0x38] sm:$0xff] }
  0x35   : > { %690 = vmatpush.msra.mxu0 %v557_v40  ;;  %803 = vmatpush.msra.mxu1 %v558_v41  ;;  %v978_v63 = vld [vmem:[%s7330_s21 + $0x39] sm:$0xff]  ;;  %v979_v1 = vld [vmem:[%s7330_s21 + $0x41] sm:$0xff]  ;;  %v980_v3 = vld [vmem:[%s7330_s21 + $0x49] sm:$0xff] }
  0x36   : > { %1138 = vmatpush.msra.mxu2 %v6095_v42  ;;  %1251 = vmatpush.msra.mxu3 %v6096_v43  ;;  %v531_v0 = vld [vmem:[%s7330_s21 + $0x40] sm:$0xff]  ;;  %v532_v2 = vld [vmem:[%s7330_s21 + $0x48] sm:$0xff]  ;;  %v533_v4 = vld [vmem:[%s7330_s21 + $0x50] sm:$0xff] }
  0x37   : > { %691 = vmatpush.msra.mxu0 %v555_v44  ;;  %804 = vmatpush.msra.mxu1 %v556_v45  ;;  %v981_v5 = vld [vmem:[%s7330_s21 + $0x51] sm:$0xff]  ;;  %v982_v7 = vld [vmem:[%s7330_s21 + $0x59] sm:$0xff]  ;;  %v983_v9 = vld [vmem:[%s7330_s21 + $0x61] sm:$0xff] }
  0x38   : > { %1139 = vmatpush.msra.mxu2 %v6093_v46  ;;  %1252 = vmatpush.msra.mxu3 %v6094_v47  ;;  %v534_v6 = vld [vmem:[%s7330_s21 + $0x58] sm:$0xff]  ;;  %v535_v8 = vld [vmem:[%s7330_s21 + $0x60] sm:$0xff]  ;;  %v536_v10 = vld [vmem:[%s7330_s21 + $0x68] sm:$0xff] }
  0x39   : > { %6029 = vmatmul.msk.f32.vlgmr.msra.gmra.mxu0 %vm579_vm0, %v523_v48  ;;  %6061 = vmatmul.msk.f32.vlgmr.msra.gmra.mxu1 %vm579_vm0, %v523_v48  ;;  %v984_v11 = vld [vmem:[%s7330_s21 + $0x69] sm:$0xff]  ;;  %v985_v13 = vld [vmem:[%s7330_s21 + $0x71] sm:$0xff]  ;;  %v986_v15 = vld [vmem:[%s7330_s21 + $0x79] sm:$0xff] }
  0x3a   : > { %6117 = vmatmul.msk.f32.vlgmr.msra.gmra.mxu2 %vm579_vm0, %v971_v49  ;;  %6149 = vmatmul.msk.f32.vlgmr.msra.gmra.mxu3 %vm579_vm0, %v971_v49  ;;  %v537_v12 = vld [vmem:[%s7330_s21 + $0x70] sm:$0xff]  ;;  %v538_v14 = vld [vmem:[%s7330_s21 + $0x78] sm:$0xff]  ;;  %v539_v18 = vld [vmem:[%s7330_s21 + $0x80] sm:$0xff] }
  0x3b   : > { %v987_v19 = vld [vmem:[%s7330_s21 + $0x81] sm:$0xff]  ;;  %v988_v25 = vld [vmem:[%s7330_s21 + $0x89] sm:$0xff]  ;;  %v989_v31 = vld [vmem:[%s7330_s21 + $0x91] sm:$0xff] }
  0x3c   : > { %v540_v24 = vld [vmem:[%s7330_s21 + $0x88] sm:$0xff]  ;;  %v541_v30 = vld [vmem:[%s7330_s21 + $0x90] sm:$0xff]  ;;  %v542_v36 = vld [vmem:[%s7330_s21 + $0x98] sm:$0xff] }
  0x3d   : > { %v990_v37 = vld [vmem:[%s7330_s21 + $0x99] sm:$0xff]  ;;  %v991_v43 = vld [vmem:[%s7330_s21 + $0xa1] sm:$0xff]  ;;  %v992_v49 = vld [vmem:[%s7330_s21 + $0xa9] sm:$0xff] }
  0x3e   : > { %v543_v42 = vld [vmem:[%s7330_s21 + $0xa0] sm:$0xff]  ;;  %v544_v48 = vld [vmem:[%s7330_s21 + $0xa8] sm:$0xff] }
  0x41   : > { %6030 = vmatmul.msk.f32.gmra.mxu0 %vm579_vm0, %v524_v50  ;;  %6062 = vmatmul.msk.f32.gmra.mxu1 %vm579_vm0, %v524_v50 }
  0x42   : > { %6118 = vmatmul.msk.f32.gmra.mxu2 %vm579_vm0, %v972_v51  ;;  %6150 = vmatmul.msk.f32.gmra.mxu3 %vm579_vm0, %v972_v51 }
  0x49   : > { %6031 = vmatmul.msk.f32.gmra.mxu0 %vm579_vm0, %v525_v52  ;;  %6063 = vmatmul.msk.f32.gmra.mxu1 %vm579_vm0, %v525_v52 }
  0x4a   : > { %6119 = vmatmul.msk.f32.gmra.mxu2 %vm579_vm0, %v973_v53  ;;  %6151 = vmatmul.msk.f32.gmra.mxu3 %vm579_vm0, %v973_v53 }
  0x51   : > { %6032 = vmatmul.msk.f32.gmra.mxu0 %vm579_vm0, %v526_v54  ;;  %6064 = vmatmul.msk.f32.gmra.mxu1 %vm579_vm0, %v526_v54  ;;  %v545_v54 = vld [vmem:[%s7330_s21 + $0xb0] sm:$0xff] }
  0x52   : > { %6120 = vmatmul.msk.f32.gmra.mxu2 %vm579_vm0, %v974_v55  ;;  %6152 = vmatmul.msk.f32.gmra.mxu3 %vm579_vm0, %v974_v55  ;;  %v993_v55 = vld [vmem:[%s7330_s21 + $0xb1] sm:$0xff] }
  0x59   : > { %6033 = vmatmul.msk.f32.gmra.mxu0 %vm579_vm0, %v527_v56  ;;  %6065 = vmatmul.msk.f32.gmra.mxu1 %vm579_vm0, %v527_v56 }
  0x5a   : > { %6121 = vmatmul.msk.f32.gmra.mxu2 %vm579_vm0, %v975_v57  ;;  %6153 = vmatmul.msk.f32.gmra.mxu3 %vm579_vm0, %v975_v57 }
  0x61   : > { %6034 = vmatmul.msk.f32.gmra.mxu0 %vm579_vm0, %v528_v58  ;;  %6066 = vmatmul.msk.f32.gmra.mxu1 %vm579_vm0, %v528_v58 }
  0x62   : > { %6122 = vmatmul.msk.f32.gmra.mxu2 %vm579_vm0, %v976_v59  ;;  %6154 = vmatmul.msk.f32.gmra.mxu3 %vm579_vm0, %v976_v59 }
  0x69   : > { %6035 = vmatmul.msk.f32.gmra.mxu0 %vm579_vm0, %v529_v60  ;;  %6067 = vmatmul.msk.f32.gmra.mxu1 %vm579_vm0, %v529_v60  ;;  %v546_v60 = vld [vmem:[%s7330_s21 + $0xb8] sm:$0xff] }
  0x6a   : > { %6123 = vmatmul.msk.f32.gmra.mxu2 %vm579_vm0, %v977_v61  ;;  %6155 = vmatmul.msk.f32.gmra.mxu3 %vm579_vm0, %v977_v61  ;;  %v994_v61 = vld [vmem:[%s7330_s21 + $0xb9] sm:$0xff] }
  0x71   : > { %6036 = vmatmul.msk.f32.gmra.mxu0 %vm579_vm0, %v530_v62  ;;  %6068 = vmatmul.msk.f32.gmra.mxu1 %vm579_vm0, %v530_v62 }
  0x72   : > { %6124 = vmatmul.msk.f32.gmra.mxu2 %vm579_vm0, %v978_v63  ;;  %6156 = vmatmul.msk.f32.gmra.mxu3 %vm579_vm0, %v978_v63 }
  0x79   : > { %6037 = vmatmul.msk.f32.gmra.mxu0 %vm579_vm0, %v531_v0  ;;  %6069 = vmatmul.msk.f32.gmra.mxu1 %vm579_vm0, %v531_v0 }
  0x7a   : > { %6125 = vmatmul.msk.f32.gmra.mxu2 %vm579_vm0, %v979_v1  ;;  %6157 = vmatmul.msk.f32.gmra.mxu3 %vm579_vm0, %v979_v1 }
  0x81   : > { %6038 = vmatmul.msk.f32.gmra.mxu0 %vm579_vm0, %v532_v2  ;;  %6070 = vmatmul.msk.f32.gmra.mxu1 %vm579_vm0, %v532_v2  ;;  %v547_v2 = vld [vmem:[%s7330_s21 + $0xc0] sm:$0xff] }
  0x82   : > { %6126 = vmatmul.msk.f32.gmra.mxu2 %vm579_vm0, %v980_v3  ;;  %6158 = vmatmul.msk.f32.gmra.mxu3 %vm579_vm0, %v980_v3  ;;  %v995_v3 = vld [vmem:[%s7330_s21 + $0xc1] sm:$0xff] }
  0x89   : > { %6039 = vmatmul.msk.f32.gmra.mxu0 %vm579_vm0, %v533_v4  ;;  %6071 = vmatmul.msk.f32.gmra.mxu1 %vm579_vm0, %v533_v4  ;;  %v6203_v4 = vld [vmem:[%s11210_s1 + $0x230] sm:$0xff] }
  0x8a   : > { %6127 = vmatmul.msk.f32.gmra.mxu2 %vm579_vm0, %v981_v5  ;;  %6159 = vmatmul.msk.f32.gmra.mxu3 %vm579_vm0, %v981_v5 }
  0x8b   : > { %1571 = vmatpush.msrb.mxu0 %v6203_v4  ;;  %v6283_v4 = vld [vmem:[%s11210_s1 + $0x2b0] sm:$0xff] }
  0x91   : > { %6040 = vmatmul.msk.f32.gmra.mxu0 %vm579_vm0, %v534_v6  ;;  %6072 = vmatmul.msk.f32.gmra.mxu1 %vm579_vm0, %v534_v6 }
  0x92   : > { %6128 = vmatmul.msk.f32.gmra.mxu2 %vm579_vm0, %v982_v7  ;;  %6160 = vmatmul.msk.f32.gmra.mxu3 %vm579_vm0, %v982_v7 }
  0x99   : > { %6041 = vmatmul.msk.f32.gmra.mxu0 %vm579_vm0, %v535_v8  ;;  %6073 = vmatmul.msk.f32.gmra.mxu1 %vm579_vm0, %v535_v8 }
  0x9a   : > { %6129 = vmatmul.msk.f32.gmra.mxu2 %vm579_vm0, %v983_v9  ;;  %6161 = vmatmul.msk.f32.gmra.mxu3 %vm579_vm0, %v983_v9  ;;  %v548_v9 = vld [vmem:[%s7330_s21 + $0xc8] sm:$0xff] }
  0xa1   : > { %6042 = vmatmul.msk.f32.gmra.mxu0 %vm579_vm0, %v536_v10  ;;  %6074 = vmatmul.msk.f32.gmra.mxu1 %vm579_vm0, %v536_v10  ;;  %v996_v10 = vld [vmem:[%s7330_s21 + $0xc9] sm:$0xff] }
  0xa2   : > { %6130 = vmatmul.msk.f32.gmra.mxu2 %vm579_vm0, %v984_v11  ;;  %6162 = vmatmul.msk.f32.gmra.mxu3 %vm579_vm0, %v984_v11  ;;  %v6204_v11 = vld [vmem:[%s11210_s1 + $0x238] sm:$0xff] }
  0xa3   : > { %1684 = vmatpush.msrb.mxu1 %v6204_v11  ;;  %v6194_v11 = vld [vmem:[%s11210_s1 + $0x1e8] sm:$0xff] }
  0xa9   : > { %6043 = vmatmul.msk.f32.gmra.mxu0 %vm579_vm0, %v537_v12  ;;  %6075 = vmatmul.msk.f32.gmra.mxu1 %vm579_vm0, %v537_v12  ;;  %v6291_v12 = vld [vmem:[%s11210_s1 + $0x2f0] sm:$0xff] }
  0xaa   : > { %6131 = vmatmul.msk.f32.gmra.mxu2 %vm579_vm0, %v985_v13  ;;  %6163 = vmatmul.msk.f32.gmra.mxu3 %vm579_vm0, %v985_v13  ;;  %v6292_v13 = vld [vmem:[%s11210_s1 + $0x2f8] sm:$0xff] }
  0xab   : > { %2014 = vmatpush.msrb.mxu2 %v6291_v12  ;;  %2127 = vmatpush.msrb.mxu3 %v6292_v13 }
  0xb1   : > { %6044 = vmatmul.msk.f32.gmra.mxu0 %vm579_vm0, %v538_v14  ;;  %6076 = vmatmul.msk.f32.gmra.mxu1 %vm579_vm0, %v538_v14  ;;  %v6201_v14 = vld [vmem:[%s11210_s1 + $0x220] sm:$0xff] }
  0xb2   : > { %6132 = vmatmul.msk.f32.gmra.mxu2 %vm579_vm0, %v986_v15  ;;  %6164 = vmatmul.msk.f32.gmra.mxu3 %vm579_vm0, %v986_v15  ;;  %v6202_v15 = vld [vmem:[%s11210_s1 + $0x228] sm:$0xff] }
  0xb3   : > { %1572 = vmatpush.msrb.mxu0 %v6201_v14  ;;  %1685 = vmatpush.msrb.mxu1 %v6202_v15  ;;  %v6281_v14 = vld [vmem:[%s11210_s1 + $0x2a0] sm:$0xff]  ;;  %v6282_v15 = vld [vmem:[%s11210_s1 + $0x2a8] sm:$0xff] }
  0xb6   : > { %v7440_v16 = vpop.f32.mrf.mxu0  ;;  %v7442_v17 = vpop.f32.mrf.mxu1 }
  0xb9   : > { %6045 = vmatmul.msk.f32.gmra.mxu0 %vm579_vm0, %v539_v18  ;;  %6077 = vmatmul.msk.f32.gmra.mxu1 %vm579_vm0, %v539_v18  ;;  %v6289_v18 = vld [vmem:[%s11210_s1 + $0x2e0] sm:$0xff] }
  0xba   : > { %6133 = vmatmul.msk.f32.gmra.mxu2 %vm579_vm0, %v987_v19  ;;  %6165 = vmatmul.msk.f32.gmra.mxu3 %vm579_vm0, %v987_v19 }
  0xbb   : > { %2015 = vmatpush.msrb.mxu2 %v6289_v18 }
  0xbd   : > { %v7450_v20 = vpop.f32.mrf.mxu2  ;;  %v7452_v21 = vpop.f32.mrf.mxu3 }
  0xbe   : > { %v7454_v22 = vpop.f32.mrf.mxu0  ;;  %v7456_v23 = vpop.f32.mrf.mxu1 }
  0xc1   : > { %6046 = vmatmul.msk.f32.gmra.mxu0 %vm579_vm0, %v540_v24  ;;  %6078 = vmatmul.msk.f32.gmra.mxu1 %vm579_vm0, %v540_v24 }
  0xc2   : > { %6134 = vmatmul.msk.f32.gmra.mxu2 %vm579_vm0, %v988_v25  ;;  %6166 = vmatmul.msk.f32.gmra.mxu3 %vm579_vm0, %v988_v25  ;;  %v549_v25 = vld [vmem:[%s7330_s21 + $0xd0] sm:$0xff] }
  0xc5   : > { %v7464_v26 = vpop.f32.mrf.mxu2  ;;  %v7466_v27 = vpop.f32.mrf.mxu3 }
  0xc6   : > { %v7468_v28 = vpop.f32.mrf.mxu0  ;;  %v7470_v29 = vpop.f32.mrf.mxu1 }
  0xc9   : > { %6047 = vmatmul.msk.f32.gmra.mxu0 %vm579_vm0, %v541_v30  ;;  %6079 = vmatmul.msk.f32.gmra.mxu1 %vm579_vm0, %v541_v30  ;;  %v6290_v30 = vld [vmem:[%s11210_s1 + $0x2e8] sm:$0xff] }
  0xca   : > { %6135 = vmatmul.msk.f32.gmra.mxu2 %vm579_vm0, %v989_v31  ;;  %6167 = vmatmul.msk.f32.gmra.mxu3 %vm579_vm0, %v989_v31 }
  0xcb   : > { %2128 = vmatpush.msrb.mxu3 %v6290_v30  ;;  %v550_v30 = vld [vmem:[%s7330_s21 + $0xd8] sm:$0xff] }
  0xcd   : > { %v7478_v32 = vpop.f32.mrf.mxu2  ;;  %v7480_v33 = vpop.f32.mrf.mxu3 }
  0xce   : > { %v7482_v34 = vpop.f32.mrf.mxu0  ;;  %v7484_v35 = vpop.f32.mrf.mxu1 }
  0xd1   : > { %6048 = vmatmul.msk.f32.gmra.mxu0 %vm579_vm0, %v542_v36  ;;  %6080 = vmatmul.msk.f32.gmra.mxu1 %vm579_vm0, %v542_v36 }
  0xd2   : > { %6136 = vmatmul.msk.f32.gmra.mxu2 %vm579_vm0, %v990_v37  ;;  %6168 = vmatmul.msk.f32.gmra.mxu3 %vm579_vm0, %v990_v37  ;;  %v6199_v37 = vld [vmem:[%s11210_s1 + $0x210] sm:$0xff] }
  0xd3   : > { %1573 = vmatpush.msrb.mxu0 %v6199_v37  ;;  %v998_v37 = vld [vmem:[%s7330_s21 + $0xd9] sm:$0xff] }
  0xd5   : > { %v7492_v38 = vpop.f32.mrf.mxu2  ;;  %v7494_v39 = vpop.f32.mrf.mxu3 }
  0xd6   : > { %v7496_v40 = vpop.f32.mrf.mxu0  ;;  %v7498_v41 = vpop.f32.mrf.mxu1 }
  0xd9   : > { %6049 = vmatmul.msk.f32.gmra.mxu0 %vm579_vm0, %v543_v42  ;;  %6081 = vmatmul.msk.f32.gmra.mxu1 %vm579_vm0, %v543_v42  ;;  %v6200_v42 = vld [vmem:[%s11210_s1 + $0x218] sm:$0xff] }
  0xda   : > { %6137 = vmatmul.msk.f32.gmra.mxu2 %vm579_vm0, %v991_v43  ;;  %6169 = vmatmul.msk.f32.gmra.mxu3 %vm579_vm0, %v991_v43  ;;  %v6287_v43 = vld [vmem:[%s11210_s1 + $0x2d0] sm:$0xff] }
  0xdb   : > { %1686 = vmatpush.msrb.mxu1 %v6200_v42  ;;  %2016 = vmatpush.msrb.mxu2 %v6287_v43  ;;  %v6191_v42 = vld [vmem:[%s11210_s1 + $0x1d0] sm:$0xff]  ;;  %v6192_v43 = vld [vmem:[%s11210_s1 + $0x1d8] sm:$0xff] }
  0xdd   : > { %v7506_v44 = vpop.f32.mrf.mxu2  ;;  %v7508_v45 = vpop.f32.mrf.mxu3 }
  0xde   : > { %v7510_v46 = vpop.f32.mrf.mxu0  ;;  %v7512_v47 = vpop.f32.mrf.mxu1 }
  0xe1   : > { %6050 = vmatmul.msk.f32.gmra.mxu0 %vm579_vm0, %v544_v48  ;;  %6082 = vmatmul.msk.f32.gmra.mxu1 %vm579_vm0, %v544_v48  ;;  %v997_v48 = vld [vmem:[%s7330_s21 + $0xd1] sm:$0xff] }
  0xe2   : > { %6138 = vmatmul.msk.f32.gmra.mxu2 %vm579_vm0, %v992_v49  ;;  %6170 = vmatmul.msk.f32.gmra.mxu3 %vm579_vm0, %v992_v49  ;;  %v6288_v49 = vld [vmem:[%s11210_s1 + $0x2d8] sm:$0xff] }
  0xe3   : > { %2129 = vmatpush.msrb.mxu3 %v6288_v49  ;;  %v6280_v49 = vld [vmem:[%s11210_s1 + $0x298] sm:$0xff] }
  0xe5   : > { %v7520_v50 = vpop.f32.mrf.mxu2  ;;  %v7522_v51 = vpop.f32.mrf.mxu3 }
  0xe6   : > { %v7524_v52 = vpop.f32.mrf.mxu0  ;;  %v7526_v53 = vpop.f32.mrf.mxu1 }
  0xe9   : > { %6051 = vmatmul.msk.f32.gmra.mxu0 %vm579_vm0, %v545_v54  ;;  %6083 = vmatmul.msk.f32.gmra.mxu1 %vm579_vm0, %v545_v54  ;;  %v6197_v54 = vld [vmem:[%s11210_s1 + $0x200] sm:$0xff] }
  0xea   : > { %6139 = vmatmul.msk.f32.gmra.mxu2 %vm579_vm0, %v993_v55  ;;  %6171 = vmatmul.msk.f32.gmra.mxu3 %vm579_vm0, %v993_v55  ;;  %v6198_v55 = vld [vmem:[%s11210_s1 + $0x208] sm:$0xff] }
  0xeb   : > { %1574 = vmatpush.msrb.mxu0 %v6197_v54  ;;  %1687 = vmatpush.msrb.mxu1 %v6198_v55  ;;  %v6189_v54 = vld [vmem:[%s11210_s1 + $0x1c0] sm:$0xff]  ;;  %v6190_v55 = vld [vmem:[%s11210_s1 + $0x1c8] sm:$0xff] }
  0xed   : > { %v7534_v56 = vpop.f32.mrf.mxu2  ;;  %v7536_v57 = vpop.f32.mrf.mxu3 }
  0xee   : > { %v7538_v58 = vpop.f32.mrf.mxu0  ;;  %v7540_v59 = vpop.f32.mrf.mxu1 }
  0xf1   : > { %6052 = vmatmul.msk.f32.gmra.mxu0 %vm579_vm0, %v546_v60  ;;  %6084 = vmatmul.msk.f32.gmra.mxu1 %vm579_vm0, %v546_v60  ;;  %v6285_v60 = vld [vmem:[%s11210_s1 + $0x2c0] sm:$0xff] }
  0xf2   : > { %6140 = vmatmul.msk.f32.gmra.mxu2 %vm579_vm0, %v994_v61  ;;  %6172 = vmatmul.msk.f32.gmra.mxu3 %vm579_vm0, %v994_v61  ;;  %v6286_v61 = vld [vmem:[%s11210_s1 + $0x2c8] sm:$0xff] }
  0xf3   : > { %2017 = vmatpush.msrb.mxu2 %v6285_v60  ;;  %2130 = vmatpush.msrb.mxu3 %v6286_v61  ;;  %v6277_v60 = vld [vmem:[%s11210_s1 + $0x280] sm:$0xff]  ;;  %v6278_v61 = vld [vmem:[%s11210_s1 + $0x288] sm:$0xff] }
  0xf5   : > { %v7548_v62 = vpop.f32.mrf.mxu2  ;;  %v7550_v63 = vpop.f32.mrf.mxu3  ;;  %2018 = vmatpush.msrb.mxu2 %v6283_v4 }
  0xf6   : > { %v7552_v0 = vpop.f32.mrf.mxu0  ;;  %v7554_v1 = vpop.f32.mrf.mxu1 }
  0xf7   : > { %2019 = vmatpush.msrb.mxu2 %v6281_v14 }
  0xf9   : > { %6053 = vmatmul.msk.f32.gmra.mxu0 %vm579_vm0, %v547_v2  ;;  %6085 = vmatmul.msk.f32.gmra.mxu1 %vm579_vm0, %v547_v2  ;;  %v6195_v2 = vld [vmem:[%s11210_s1 + $0x1f0] sm:$0xff] }
  0xfa   : > { %6141 = vmatmul.msk.f32.gmra.mxu2 %vm579_vm0, %v995_v3  ;;  %6173 = vmatmul.msk.f32.gmra.mxu3 %vm579_vm0, %v995_v3  ;;  %v6196_v3 = vld [vmem:[%s11210_s1 + $0x1f8] sm:$0xff] }
  0xfb   : > { %1575 = vmatpush.msrb.mxu0 %v6195_v2  ;;  %1688 = vmatpush.msrb.mxu1 %v6196_v3  ;;  %v6187_v2 = vld [vmem:[%s11210_s1 + $0x1b0] sm:$0xff]  ;;  %v6188_v3 = vld [vmem:[%s11210_s1 + $0x1b8] sm:$0xff] }
  0xfd   : > { %v7565_v5 = vpop.f32.mrf.mxu2  ;;  %v7567_v6 = vpop.f32.mrf.mxu3  ;;  %1689 = vmatpush.msrb.mxu1 %v6194_v11  ;;  %v6276_v11 = vld [vmem:[%s11210_s1 + $0x278] sm:$0xff] }
  0xfe   : > { %v7569_v7 = vpop.f32.mrf.mxu0  ;;  %v7571_v8 = vpop.f32.mrf.mxu1 }
  0xff   : > { %1690 = vmatpush.msrb.mxu1 %v6192_v43  ;;  %v6186_v43 = vld [vmem:[%s11210_s1 + $0x1a8] sm:$0xff] }
 0x101   : > { %6054 = vmatmul.msk.f32.gmra.mxu0 %vm579_vm0, %v548_v9  ;;  %6086 = vmatmul.msk.f32.gmra.mxu1 %vm579_vm0, %v548_v9  ;;  %v6284_v9 = vld [vmem:[%s11210_s1 + $0x2b8] sm:$0xff] }
 0x102   : > { %6142 = vmatmul.msk.f32.gmra.mxu2 %vm579_vm0, %v996_v10  ;;  %6174 = vmatmul.msk.f32.gmra.mxu3 %vm579_vm0, %v996_v10  ;;  %v6193_v10 = vld [vmem:[%s11210_s1 + $0x1e0] sm:$0xff] }
 0x103   : > { %2131 = vmatpush.msrb.mxu3 %v6284_v9  ;;  %1576 = vmatpush.msrb.mxu0 %v6193_v10  ;;  %v6275_v10 = vld [vmem:[%s11210_s1 + $0x270] sm:$0xff] }
 0x104   : > { %1691 = vmatpush.msrb.mxu1 %v6190_v55  ;;  %v6184_v55 = vld [vmem:[%s11210_s1 + $0x198] sm:$0xff] }
 0x105   : > { %v7597_v19 = vpop.f32.mrf.mxu2  ;;  %v7599_v24 = vpop.f32.mrf.mxu3  ;;  %2132 = vmatpush.msrb.mxu3 %v6282_v15  ;;  %1577 = vmatpush.msrb.mxu0 %v6191_v42  ;;  %v6185_v42 = vld [vmem:[%s11210_s1 + $0x1a0] sm:$0xff] }
 0x106   : > { %v7605_v31 = vpop.f32.mrf.mxu0  ;;  %v7607_v36 = vpop.f32.mrf.mxu1  ;;  %1692 = vmatpush.msrb.mxu1 %v6188_v3  ;;  %v6182_v3 = vld [vmem:[%s11210_s1 + $0x188] sm:$0xff] }
 0x107   : > { %2133 = vmatpush.msrb.mxu3 %v6280_v49  ;;  %1578 = vmatpush.msrb.mxu0 %v6189_v54  ;;  %v6274_v49 = vld [vmem:[%s11210_s1 + $0x268] sm:$0xff]  ;;  %v6183_v54 = vld [vmem:[%s11210_s1 + $0x190] sm:$0xff] }
 0x108   : > { %1693 = vmatpush.msrb.mxu1 %v6186_v43 }
 0x109   : > { %6055 = vmatmul.msk.f32.gmra.mxu0 %vm579_vm0, %v549_v25  ;;  %6087 = vmatmul.msk.f32.gmra.mxu1 %vm579_vm0, %v549_v25 }
 0x10a   : > { %6143 = vmatmul.msk.f32.gmra.mxu2 %vm579_vm0, %v997_v48  ;;  %6175 = vmatmul.msk.f32.gmra.mxu3 %vm579_vm0, %v997_v48  ;;  %v6279_v48 = vld [vmem:[%s11210_s1 + $0x290] sm:$0xff] }
 0x10b   : > { %2020 = vmatpush.msrb.mxu2 %v6279_v48  ;;  %2134 = vmatpush.msrb.mxu3 %v6278_v61  ;;  %v6273_v48 = vld [vmem:[%s11210_s1 + $0x260] sm:$0xff]  ;;  %v6272_v61 = vld [vmem:[%s11210_s1 + $0x258] sm:$0xff] }
 0x10c   : > { %1579 = vmatpush.msrb.mxu0 %v6187_v2  ;;  %v6181_v2 = vld [vmem:[%s11210_s1 + $0x180] sm:$0xff]  ;;  %1694 = vmatpush.msrb.mxu1 %v6184_v55 }
 0x10d   : > { %v7656_v12 = vpop.f32.mrf.mxu2  ;;  %v7658_v13 = vpop.f32.mrf.mxu3  ;;  %2021 = vmatpush.msrb.mxu2 %v6277_v60  ;;  %2135 = vmatpush.msrb.mxu3 %v6276_v11  ;;  %v6271_v60 = vld [vmem:[%s11210_s1 + $0x250] sm:$0xff] }
 0x10e   : > { %v7666_v18 = vpop.f32.mrf.mxu0  ;;  %v7668_v25 = vpop.f32.mrf.mxu1  ;;  %1580 = vmatpush.msrb.mxu0 %v6185_v42  ;;  %1695 = vmatpush.msrb.mxu1 %v6182_v3  ;;  %v1001_v3 = vld [vmem:[%s7330_s21 + $0xf1] sm:$0xff] }
 0x10f   : > { %2022 = vmatpush.msrb.mxu2 %v6275_v10  ;;  %2136 = vmatpush.msrb.mxu3 %v6274_v49  ;;  %v1000_v49 = vld [vmem:[%s7330_s21 + $0xe9] sm:$0xff] }
 0x110   : > { %1581 = vmatpush.msrb.mxu0 %v6183_v54 }
 0x111   : > { %6056 = vmatmul.msk.f32.gmra.mxu0 %vm579_vm0, %v550_v30  ;;  %6088 = vmatmul.msk.f32.gmra.mxu1 %vm579_vm0, %v550_v30  ;;  %v551_v30 = vld [vmem:[%s7330_s21 + $0xe0] sm:$0xff] }
 0x112   : > { %6144 = vmatmul.msk.f32.gmra.mxu2 %vm579_vm0, %v998_v37  ;;  %6176 = vmatmul.msk.f32.gmra.mxu3 %vm579_vm0, %v998_v37  ;;  %v999_v37 = vld [vmem:[%s7330_s21 + $0xe1] sm:$0xff] }
 0x113   : > { %2023 = vmatpush.msrb.mxu2 %v6273_v48  ;;  %v552_v48 = vld [vmem:[%s7330_s21 + $0xe8] sm:$0xff]  ;;  %2137 = vmatpush.msrb.mxu3 %v6272_v61 }
 0x114   : > { %1582 = vmatpush.msrb.mxu0 %v6181_v2  ;;  %v553_v2 = vld [vmem:[%s7330_s21 + $0xf0] sm:$0xff] }
 0x115   : > { %v7706_v4 = vpop.f32.mrf.mxu2  ;;  %v7708_v9 = vpop.f32.mrf.mxu3  ;;  %2024 = vmatpush.msrb.mxu2 %v6271_v60 }
 0x116   : > { %v7716_v14 = vpop.f32.mrf.mxu0  ;;  %v7718_v15 = vpop.f32.mrf.mxu1 }
 0x117   : > { %11215 = vst [vmem:[#allocation14_spill] sm:$0xff] %v7716_v14 }
 0x118   : > { %11216 = vst [vmem:[#allocation15_spill] sm:$0xff] %v7718_v15 }
 0x119   : > { %6057 = vmatmul.msk.f32.gmra.mxu0 %vm579_vm0, %v551_v30  ;;  %6089 = vmatmul.msk.f32.gmra.mxu1 %vm579_vm0, %v551_v30  ;;  %v6269_v30 = vld [vmem:[%s11210_s1 + $0x240] sm:$0xff] }
 0x11a   : > { %6145 = vmatmul.msk.f32.gmra.mxu2 %vm579_vm0, %v999_v37  ;;  %6177 = vmatmul.msk.f32.gmra.mxu3 %vm579_vm0, %v999_v37  ;;  %v6270_v37 = vld [vmem:[%s11210_s1 + $0x248] sm:$0xff] }
 0x11b   : > { %2025 = vmatpush.msrb.mxu2 %v6269_v30  ;;  %2138 = vmatpush.msrb.mxu3 %v6270_v37 }
 0x11d   : > { %v7756_v10 = vpop.f32.mrf.mxu2  ;;  %v7758_v11 = vpop.f32.mrf.mxu3 }
 0x11e   : > { %11217 = vst [vmem:[#allocation16_spill] sm:$0xff] %v7756_v10  ;;  %v7766_v42 = vpop.f32.mrf.mxu0  ;;  %v7768_v43 = vpop.f32.mrf.mxu1 }
 0x11f   : > { %11218 = vst [vmem:[#allocation17_spill] sm:$0xff] %v7758_v11 }
 0x120   : > { %11219 = vst [vmem:[#allocation18_spill] sm:$0xff] %v7766_v42  ;;  %v1430_v42 = vld [vmem:[%s7330_s21 + $0x82] sm:$0xff] }
 0x121   : > { %11220 = vst [vmem:[#allocation19_spill] sm:$0xff] %v7768_v43  ;;  %6058 = vmatmul.msk.f32.gmra.mxu0 %vm579_vm0, %v552_v48  ;;  %6090 = vmatmul.msk.f32.gmra.mxu1 %vm579_vm0, %v552_v48  ;;  %v1873_v43 = vld [vmem:[%s7330_s21 + $0x83] sm:$0xff] }
 0x122   : > { %6146 = vmatmul.msk.f32.gmra.mxu2 %vm579_vm0, %v1000_v49  ;;  %6178 = vmatmul.msk.f32.gmra.mxu3 %vm579_vm0, %v1000_v49 }
 0x125   : > { %v7776_v54 = vpop.f32.mrf.mxu2  ;;  %v7778_v55 = vpop.f32.mrf.mxu3 }
 0x126   : > { %11221 = vst [vmem:[#allocation20_spill] sm:$0xff] %v7776_v54  ;;  %v7780_v60 = vpop.f32.mrf.mxu0  ;;  %v7782_v61 = vpop.f32.mrf.mxu1 }
 0x127   : > { %11222 = vst [vmem:[#allocation21_spill] sm:$0xff] %v7778_v55 }
 0x128   : > { %11223 = vst [vmem:[#allocation22_spill] sm:$0xff] %v7780_v60  ;;  %v554_v60 = vld [vmem:[%s7330_s21 + $0xf8] sm:$0xf] }
 0x129   : > { %11224 = vst [vmem:[#allocation23_spill] sm:$0xff] %v7782_v61  ;;  %6059 = vmatmul.msk.f32.gmra.mxu0 %vm579_vm0, %v553_v2  ;;  %6091 = vmatmul.msk.f32.gmra.mxu1 %vm579_vm0, %v553_v2  ;;  %v1002_v61 = vld [vmem:[%s7330_s21 + $0xf9] sm:$0xf] }
 0x12a   : > { %6147 = vmatmul.msk.f32.gmra.mxu2 %vm579_vm0, %v1001_v3  ;;  %6179 = vmatmul.msk.f32.gmra.mxu3 %vm579_vm0, %v1001_v3 }
 0x12d   : > { %v7790_v30 = vpop.f32.mrf.mxu2  ;;  %v7792_v37 = vpop.f32.mrf.mxu3 }
 0x12e   : > { %11225 = vst [vmem:[#allocation24_spill] sm:$0xff] %v7790_v30  ;;  %v7794_v48 = vpop.f32.mrf.mxu0  ;;  %v7796_v49 = vpop.f32.mrf.mxu1  ;;  %v1857_v30 = vld [vmem:[%s7330_s21 + $0x3] sm:$0xff] }
 0x12f   : > { %11226 = vst [vmem:[#allocation25_spill] sm:$0xff] %v7792_v37 }
 0x130   : > { %11227 = vst [vmem:[#allocation26_spill] sm:$0xff] %v7794_v48 }
 0x131   : > { %11228 = vst [vmem:[#allocation27_spill] sm:$0xff] %v7796_v49  ;;  %6060 = vmatmul.msk.f32.gmra.mxu0 %vm579_vm0, %v554_v60  ;;  %6092 = vmatmul.msk.f32.gmra.mxu1 %vm579_vm0, %v554_v60  ;;  %v1414_v49 = vld [vmem:[%s7330_s21 + $0x2] sm:$0xff] }
 0x132   : > { %6148 = vmatmul.msk.f32.gmra.mxu2 %vm579_vm0, %v1002_v61  ;;  %6180 = vmatmul.msk.f32.gmra.mxu3 %vm579_vm0, %v1002_v61 }
 0x135   : > { %v7804_v2 = vpop.f32.mrf.mxu2  ;;  %v7806_v3 = vpop.f32.mrf.mxu3 }
 0x136   : > { %11229 = vst [vmem:[#allocation28_spill] sm:$0xff] %v7804_v2  ;;  %v7808_v37 = vpop.f32.mrf.mxu0  ;;  %v7810_v48 = vpop.f32.mrf.mxu1  ;;  %v1858_v2 = vld [vmem:[%s7330_s21 + $0xb] sm:$0xff] }
 0x137   : > { %11230 = vst [vmem:[#allocation29_spill] sm:$0xff] %v7806_v3 }
 0x138   : > { %11231 = vst [vmem:[#allocation30_spill] sm:$0xff] %v7808_v37 }
 0x139   : > { %11232 = vst [vmem:[#allocation31_spill] sm:$0xff] %v7810_v48  ;;  %6205 = vmatmul.msk.f32.vlgmr.msrb.gmra.mxu0 %vm579_vm0, %v1414_v49  ;;  %6237 = vmatmul.msk.f32.vlgmr.msrb.gmra.mxu1 %vm579_vm0, %v1414_v49  ;;  %v1415_v48 = vld [vmem:[%s7330_s21 + $0xa] sm:$0xff] }
 0x13a   : > { %6293 = vmatmul.msk.f32.vlgmr.msrb.gmra.mxu2 %vm579_vm0, %v1857_v30  ;;  %6325 = vmatmul.msk.f32.vlgmr.msrb.gmra.mxu3 %vm579_vm0, %v1857_v30 }
 0x13d   : > { %v7818_v60 = vpop.f32.mrf.mxu2  ;;  %v7820_v61 = vpop.f32.mrf.mxu3 }
 0x13e   : > { %11233 = vst [vmem:[#allocation32_spill] sm:$0xff] %v7818_v60  ;;  %v7822_v3 = vpop.f32.mrf.mxu0  ;;  %v7824_v37 = vpop.f32.mrf.mxu1  ;;  %v1859_v60 = vld [vmem:[%s7330_s21 + $0x13] sm:$0xff] }
 0x13f   : > { %11234 = vst [vmem:[#allocation33_spill] sm:$0xff] %v7820_v61 }
 0x140   : > { %11235 = vst [vmem:[#allocation34_spill] sm:$0xff] %v7822_v3 }
 0x141   : > { %11236 = vst [vmem:[#allocation35_spill] sm:$0xff] %v7824_v37  ;;  %6206 = vmatmul.msk.f32.gmra.mxu0 %vm579_vm0, %v1415_v48  ;;  %6238 = vmatmul.msk.f32.gmra.mxu1 %vm579_vm0, %v1415_v48  ;;  %v1416_v37 = vld [vmem:[%s7330_s21 + $0x12] sm:$0xff] }
 0x142   : > { %6294 = vmatmul.msk.f32.gmra.mxu2 %vm579_vm0, %v1858_v2  ;;  %6326 = vmatmul.msk.f32.gmra.mxu3 %vm579_vm0, %v1858_v2 }
 0x145   : > { %v7832_v30 = vpop.f32.mrf.mxu2  ;;  %v7834_v49 = vpop.f32.mrf.mxu3 }
 0x146   : > { %11237 = vst [vmem:[#allocation36_spill] sm:$0xff] %v7832_v30  ;;  %v7836_v61 = vpop.f32.mrf.mxu0  ;;  %v7838_v3 = vpop.f32.mrf.mxu1  ;;  %v1860_v30 = vld [vmem:[%s7330_s21 + $0x1b] sm:$0xff] }
 0x147   : > { %11238 = vst [vmem:[#allocation37_spill] sm:$0xff] %v7834_v49 }
 0x148   : > { %11239 = vst [vmem:[#allocation38_spill] sm:$0xff] %v7836_v61 }
 0x149   : > { %11240 = vst [vmem:[#allocation39_spill] sm:$0xff] %v7838_v3  ;;  %6207 = vmatmul.msk.f32.gmra.mxu0 %vm579_vm0, %v1416_v37  ;;  %6239 = vmatmul.msk.f32.gmra.mxu1 %vm579_vm0, %v1416_v37  ;;  %v1417_v3 = vld [vmem:[%s7330_s21 + $0x1a] sm:$0xff] }
 0x14a   : > { %6295 = vmatmul.msk.f32.gmra.mxu2 %vm579_vm0, %v1859_v60  ;;  %6327 = vmatmul.msk.f32.gmra.mxu3 %vm579_vm0, %v1859_v60 }
 0x14d   : > { %v7846_v48 = vpop.f32.mrf.mxu2  ;;  %v7848_v2 = vpop.f32.mrf.mxu3 }
 0x14e   : > { %11241 = vst [vmem:[#allocation40_spill] sm:$0xff] %v7846_v48  ;;  %v7850_v49 = vpop.f32.mrf.mxu0  ;;  %v7852_v61 = vpop.f32.mrf.mxu1  ;;  %v1861_v48 = vld [vmem:[%s7330_s21 + $0x23] sm:$0xff] }
 0x14f   : > { %11242 = vst [vmem:[#allocation41_spill] sm:$0xff] %v7848_v2 }
 0x150   : > { %11243 = vst [vmem:[#allocation42_spill] sm:$0xff] %v7850_v49 }
 0x151   : > { %11244 = vst [vmem:[#allocation43_spill] sm:$0xff] %v7852_v61  ;;  %6208 = vmatmul.msk.f32.gmra.mxu0 %vm579_vm0, %v1417_v3  ;;  %6240 = vmatmul.msk.f32.gmra.mxu1 %vm579_vm0, %v1417_v3  ;;  %v1418_v61 = vld [vmem:[%s7330_s21 + $0x22] sm:$0xff] }
 0x152   : > { %6296 = vmatmul.msk.f32.gmra.mxu2 %vm579_vm0, %v1860_v30  ;;  %6328 = vmatmul.msk.f32.gmra.mxu3 %vm579_vm0, %v1860_v30 }
 0x155   : > { %v7860_v37 = vpop.f32.mrf.mxu2  ;;  %v7862_v60 = vpop.f32.mrf.mxu3 }
 0x156   : > { %11245 = vst [vmem:[#allocation44_spill] sm:$0xff] %v7860_v37  ;;  %v7864_v2 = vpop.f32.mrf.mxu0  ;;  %v7866_v49 = vpop.f32.mrf.mxu1  ;;  %v1862_v37 = vld [vmem:[%s7330_s21 + $0x2b] sm:$0xff] }
 0x157   : > { %11246 = vst [vmem:[#allocation45_spill] sm:$0xff] %v7862_v60 }
 0x158   : > { %11247 = vst [vmem:[#allocation46_spill] sm:$0xff] %v7864_v2 }
 0x159   : > { %11248 = vst [vmem:[#allocation47_spill] sm:$0xff] %v7866_v49  ;;  %6209 = vmatmul.msk.f32.gmra.mxu0 %vm579_vm0, %v1418_v61  ;;  %6241 = vmatmul.msk.f32.gmra.mxu1 %vm579_vm0, %v1418_v61  ;;  %v1419_v49 = vld [vmem:[%s7330_s21 + $0x2a] sm:$0xff] }
 0x15a   : > { %6297 = vmatmul.msk.f32.gmra.mxu2 %vm579_vm0, %v1861_v48  ;;  %6329 = vmatmul.msk.f32.gmra.mxu3 %vm579_vm0, %v1861_v48 }
 0x15d   : > { %v7874_v3 = vpop.f32.mrf.mxu2  ;;  %v7876_v30 = vpop.f32.mrf.mxu3 }
 0x15e   : > { %11249 = vst [vmem:[#allocation48_spill] sm:$0xff] %v7874_v3  ;;  %v7878_v60 = vpop.f32.mrf.mxu0  ;;  %v7880_v2 = vpop.f32.mrf.mxu1  ;;  %v1863_v3 = vld [vmem:[%s7330_s21 + $0x33] sm:$0xff] }
 0x15f   : > { %11250 = vst [vmem:[#allocation49_spill] sm:$0xff] %v7876_v30 }
 0x160   : > { %11251 = vst [vmem:[#allocation50_spill] sm:$0xff] %v7878_v60 }
 0x161   : > { %11252 = vst [vmem:[#allocation51_spill] sm:$0xff] %v7880_v2  ;;  %6210 = vmatmul.msk.f32.gmra.mxu0 %vm579_vm0, %v1419_v49  ;;  %6242 = vmatmul.msk.f32.gmra.mxu1 %vm579_vm0, %v1419_v49  ;;  %v1420_v2 = vld [vmem:[%s7330_s21 + $0x32] sm:$0xff] }
 0x162   : > { %6298 = vmatmul.msk.f32.gmra.mxu2 %vm579_vm0, %v1862_v37  ;;  %6330 = vmatmul.msk.f32.gmra.mxu3 %vm579_vm0, %v1862_v37 }
 0x165   : > { %v7888_v61 = vpop.f32.mrf.mxu2  ;;  %v7890_v48 = vpop.f32.mrf.mxu3 }
 0x166   : > { %11253 = vst [vmem:[#allocation52_spill] sm:$0xff] %v7888_v61  ;;  %v7892_v30 = vpop.f32.mrf.mxu0  ;;  %v7894_v60 = vpop.f32.mrf.mxu1  ;;  %v1864_v61 = vld [vmem:[%s7330_s21 + $0x3b] sm:$0xff] }
 0x167   : > { %11254 = vst [vmem:[#allocation53_spill] sm:$0xff] %v7890_v48 }
 0x168   : > { %11255 = vst [vmem:[#allocation54_spill] sm:$0xff] %v7892_v30 }
 0x169   : > { %11256 = vst [vmem:[#allocation55_spill] sm:$0xff] %v7894_v60  ;;  %6211 = vmatmul.msk.f32.gmra.mxu0 %vm579_vm0, %v1420_v2  ;;  %6243 = vmatmul.msk.f32.gmra.mxu1 %vm579_vm0, %v1420_v2  ;;  %v1421_v60 = vld [vmem:[%s7330_s21 + $0x3a] sm:$0xff] }
 0x16a   : > { %6299 = vmatmul.msk.f32.gmra.mxu2 %vm579_vm0, %v1863_v3  ;;  %6331 = vmatmul.msk.f32.gmra.mxu3 %vm579_vm0, %v1863_v3 }
 0x16d   : > { %v7902_v49 = vpop.f32.mrf.mxu2  ;;  %v7904_v37 = vpop.f32.mrf.mxu3 }
 0x16e   : > { %11257 = vst [vmem:[#allocation56_spill] sm:$0xff] %v7902_v49  ;;  %v7906_v48 = vpop.f32.mrf.mxu0  ;;  %v7908_v30 = vpop.f32.mrf.mxu1  ;;  %v1865_v49 = vld [vmem:[%s7330_s21 + $0x43] sm:$0xff] }
 0x16f   : > { %11258 = vst [vmem:[#allocation57_spill] sm:$0xff] %v7904_v37 }
 0x170   : > { %11259 = vst [vmem:[#allocation58_spill] sm:$0xff] %v7906_v48 }
 0x171   : > { %11260 = vst [vmem:[#allocation59_spill] sm:$0xff] %v7908_v30  ;;  %6212 = vmatmul.msk.f32.gmra.mxu0 %vm579_vm0, %v1421_v60  ;;  %6244 = vmatmul.msk.f32.gmra.mxu1 %vm579_vm0, %v1421_v60  ;;  %v1422_v30 = vld [vmem:[%s7330_s21 + $0x42] sm:$0xff] }
 0x172   : > { %6300 = vmatmul.msk.f32.gmra.mxu2 %vm579_vm0, %v1864_v61  ;;  %6332 = vmatmul.msk.f32.gmra.mxu3 %vm579_vm0, %v1864_v61 }
 0x175   : > { %v7916_v2 = vpop.f32.mrf.mxu2  ;;  %v7918_v3 = vpop.f32.mrf.mxu3 }
 0x176   : > { %11261 = vst [vmem:[#allocation60_spill] sm:$0xff] %v7916_v2  ;;  %v7920_v37 = vpop.f32.mrf.mxu0  ;;  %v7922_v48 = vpop.f32.mrf.mxu1  ;;  %v1866_v2 = vld [vmem:[%s7330_s21 + $0x4b] sm:$0xff] }
 0x177   : > { %11262 = vst [vmem:[#allocation61_spill] sm:$0xff] %v7918_v3 }
 0x178   : > { %11263 = vst [vmem:[#allocation62_spill] sm:$0xff] %v7920_v37 }
 0x179   : > { %11264 = vst [vmem:[#allocation63_spill] sm:$0xff] %v7922_v48  ;;  %6213 = vmatmul.msk.f32.gmra.mxu0 %vm579_vm0, %v1422_v30  ;;  %6245 = vmatmul.msk.f32.gmra.mxu1 %vm579_vm0, %v1422_v30  ;;  %v1423_v48 = vld [vmem:[%s7330_s21 + $0x4a] sm:$0xff] }
 0x17a   : > { %6301 = vmatmul.msk.f32.gmra.mxu2 %vm579_vm0, %v1865_v49  ;;  %6333 = vmatmul.msk.f32.gmra.mxu3 %vm579_vm0, %v1865_v49 }
 0x17d   : > { %v7930_v60 = vpop.f32.mrf.mxu2  ;;  %v7932_v61 = vpop.f32.mrf.mxu3 }
 0x17e   : > { %11265 = vst [vmem:[#allocation64_spill] sm:$0xff] %v7930_v60  ;;  %v7934_v3 = vpop.f32.mrf.mxu0  ;;  %v7936_v37 = vpop.f32.mrf.mxu1  ;;  %v1867_v60 = vld [vmem:[%s7330_s21 + $0x53] sm:$0xff] }
 0x17f   : > { %11266 = vst [vmem:[#allocation65_spill] sm:$0xff] %v7932_v61 }
 0x180   : > { %11267 = vst [vmem:[#allocation66_spill] sm:$0xff] %v7934_v3 }
 0x181   : > { %11268 = vst [vmem:[#allocation67_spill] sm:$0xff] %v7936_v37  ;;  %6214 = vmatmul.msk.f32.gmra.mxu0 %vm579_vm0, %v1423_v48  ;;  %6246 = vmatmul.msk.f32.gmra.mxu1 %vm579_vm0, %v1423_v48  ;;  %v1424_v37 = vld [vmem:[%s7330_s21 + $0x52] sm:$0xff] }
 0x182   : > { %6302 = vmatmul.msk.f32.gmra.mxu2 %vm579_vm0, %v1866_v2  ;;  %6334 = vmatmul.msk.f32.gmra.mxu3 %vm579_vm0, %v1866_v2 }
 0x185   : > { %v7944_v30 = vpop.f32.mrf.mxu2  ;;  %v7946_v49 = vpop.f32.mrf.mxu3 }
 0x186   : > { %11269 = vst [vmem:[#allocation68_spill] sm:$0xff] %v7944_v30  ;;  %v7948_v61 = vpop.f32.mrf.mxu0  ;;  %v7950_v3 = vpop.f32.mrf.mxu1  ;;  %v1868_v30 = vld [vmem:[%s7330_s21 + $0x5b] sm:$0xff] }
 0x187   : > { %11270 = vst [vmem:[#allocation69_spill] sm:$0xff] %v7946_v49 }
 0x188   : > { %11271 = vst [vmem:[#allocation70_spill] sm:$0xff] %v7948_v61 }
 0x189   : > { %11272 = vst [vmem:[#allocation71_spill] sm:$0xff] %v7950_v3  ;;  %6215 = vmatmul.msk.f32.gmra.mxu0 %vm579_vm0, %v1424_v37  ;;  %6247 = vmatmul.msk.f32.gmra.mxu1 %vm579_vm0, %v1424_v37  ;;  %v1425_v3 = vld [vmem:[%s7330_s21 + $0x5a] sm:$0xff] }
 0x18a   : > { %6303 = vmatmul.msk.f32.gmra.mxu2 %vm579_vm0, %v1867_v60  ;;  %6335 = vmatmul.msk.f32.gmra.mxu3 %vm579_vm0, %v1867_v60 }
 0x18d   : > { %v7958_v48 = vpop.f32.mrf.mxu2  ;;  %v7960_v2 = vpop.f32.mrf.mxu3 }
 0x18e   : > { %11273 = vst [vmem:[#allocation72_spill] sm:$0xff] %v7958_v48  ;;  %v7962_v49 = vpop.f32.mrf.mxu0  ;;  %v7964_v61 = vpop.f32.mrf.mxu1  ;;  %v1869_v48 = vld [vmem:[%s7330_s21 + $0x63] sm:$0xff] }
 0x18f   : > { %11274 = vst [vmem:[#allocation73_spill] sm:$0xff] %v7960_v2 }
 0x190   : > { %11275 = vst [vmem:[#allocation74_spill] sm:$0xff] %v7962_v49 }
 0x191   : > { %11276 = vst [vmem:[#allocation75_spill] sm:$0xff] %v7964_v61  ;;  %6216 = vmatmul.msk.f32.gmra.mxu0 %vm579_vm0, %v1425_v3  ;;  %6248 = vmatmul.msk.f32.gmra.mxu1 %vm579_vm0, %v1425_v3  ;;  %v1426_v61 = vld [vmem:[%s7330_s21 + $0x62] sm:$0xff] }
 0x192   : > { %6304 = vmatmul.msk.f32.gmra.mxu2 %vm579_vm0, %v1868_v30  ;;  %6336 = vmatmul.msk.f32.gmra.mxu3 %vm579_vm0, %v1868_v30 }
 0x195   : > { %v7972_v37 = vpop.f32.mrf.mxu2  ;;  %v7974_v60 = vpop.f32.mrf.mxu3 }
 0x196   : > { %11277 = vst [vmem:[#allocation76_spill] sm:$0xff] %v7972_v37  ;;  %v7976_v2 = vpop.f32.mrf.mxu0  ;;  %v7978_v49 = vpop.f32.mrf.mxu1  ;;  %v1870_v37 = vld [vmem:[%s7330_s21 + $0x6b] sm:$0xff] }
 0x197   : > { %11278 = vst [vmem:[#allocation77_spill] sm:$0xff] %v7974_v60 }
 0x198   : > { %11279 = vst [vmem:[#allocation78_spill] sm:$0xff] %v7976_v2 }
 0x199   : > { %11280 = vst [vmem:[#allocation79_spill] sm:$0xff] %v7978_v49  ;;  %6217 = vmatmul.msk.f32.gmra.mxu0 %vm579_vm0, %v1426_v61  ;;  %6249 = vmatmul.msk.f32.gmra.mxu1 %vm579_vm0, %v1426_v61  ;;  %v1427_v49 = vld [vmem:[%s7330_s21 + $0x6a] sm:$0xff] }
 0x19a   : > { %6305 = vmatmul.msk.f32.gmra.mxu2 %vm579_vm0, %v1869_v48  ;;  %6337 = vmatmul.msk.f32.gmra.mxu3 %vm579_vm0, %v1869_v48 }
 0x19d   : > { %v7986_v3 = vpop.f32.mrf.mxu2  ;;  %v7988_v30 = vpop.f32.mrf.mxu3 }
 0x19e   : > { %11281 = vst [vmem:[#allocation80_spill] sm:$0xff] %v7986_v3  ;;  %v7990_v60 = vpop.f32.mrf.mxu0  ;;  %v7992_v2 = vpop.f32.mrf.mxu1  ;;  %v1871_v3 = vld [vmem:[%s7330_s21 + $0x73] sm:$0xff] }
 0x19f   : > { %11282 = vst [vmem:[#allocation81_spill] sm:$0xff] %v7988_v30 }
 0x1a0   : > { %11283 = vst [vmem:[#allocation82_spill] sm:$0xff] %v7990_v60 }
 0x1a1   : > { %11284 = vst [vmem:[#allocation83_spill] sm:$0xff] %v7992_v2  ;;  %6218 = vmatmul.msk.f32.gmra.mxu0 %vm579_vm0, %v1427_v49  ;;  %6250 = vmatmul.msk.f32.gmra.mxu1 %vm579_vm0, %v1427_v49  ;;  %v1428_v2 = vld [vmem:[%s7330_s21 + $0x72] sm:$0xff] }
 0x1a2   : > { %6306 = vmatmul.msk.f32.gmra.mxu2 %vm579_vm0, %v1870_v37  ;;  %6338 = vmatmul.msk.f32.gmra.mxu3 %vm579_vm0, %v1870_v37 }
 0x1a5   : > { %v8000_v61 = vpop.f32.mrf.mxu2  ;;  %v8002_v48 = vpop.f32.mrf.mxu3 }
 0x1a6   : > { %11285 = vst [vmem:[#allocation84_spill] sm:$0xff] %v8000_v61  ;;  %v8004_v30 = vpop.f32.mrf.mxu0  ;;  %v8006_v60 = vpop.f32.mrf.mxu1 }
 0x1a7   : > { %11286 = vst [vmem:[#allocation85_spill] sm:$0xff] %v8002_v48  ;;  %v1872_v48 = vld [vmem:[%s7330_s21 + $0x7b] sm:$0xff] }
 0x1a8   : > { %11287 = vst [vmem:[#allocation86_spill] sm:$0xff] %v8004_v30 }
 0x1a9   : > { %11288 = vst [vmem:[#allocation87_spill] sm:$0xff] %v8006_v60  ;;  %6219 = vmatmul.msk.f32.gmra.mxu0 %vm579_vm0, %v1428_v2  ;;  %6251 = vmatmul.msk.f32.gmra.mxu1 %vm579_vm0, %v1428_v2  ;;  %v1429_v60 = vld [vmem:[%s7330_s21 + $0x7a] sm:$0xff] }
 0x1aa   : > { %6307 = vmatmul.msk.f32.gmra.mxu2 %vm579_vm0, %v1871_v3  ;;  %6339 = vmatmul.msk.f32.gmra.mxu3 %vm579_vm0, %v1871_v3  ;;  %v522_v2 = vld [vmem:[%s11171_s2] sm:$0x3] }
 0x1ab   : > { %v8029_v3 = vperm.slane %v522_v2, 1 }
 0x1ad   : > { %v8014_v49 = vpop.f32.mrf.mxu2  ;;  %v8016_v37 = vpop.f32.mrf.mxu3 }
 0x1ae   : > { %11289 = vst [vmem:[#allocation88_spill] sm:$0xff] %v8014_v49  ;;  %v8018_v61 = vpop.f32.mrf.mxu0  ;;  %v8020_v30 = vpop.f32.mrf.mxu1  ;;  %v908_v49 = vadd.f32 %v8029_v3, %v7442_v17 }
 0x1af   : > { %11290 = vst [vmem:[#allocation89_spill] sm:$0xff] %v8016_v37 }
 0x1b0   : > { %11291 = vst [vmem:[#allocation90_spill] sm:$0xff] %v8018_v61  ;;  %v8033_v61 = vperm.slane %v522_v2, 0  ;;  %v1351_v2 = vadd.f32 %v7452_v21, %v908_v49 }
 0x1b1   : > { %11292 = vst [vmem:[#allocation91_spill] sm:$0xff] %v8020_v30  ;;  %6220 = vmatmul.msk.f32.gmra.mxu0 %vm579_vm0, %v1429_v60  ;;  %6252 = vmatmul.msk.f32.gmra.mxu1 %vm579_vm0, %v1429_v60 }
 0x1b2   : > { %6308 = vmatmul.msk.f32.gmra.mxu2 %vm579_vm0, %v1872_v48  ;;  %6340 = vmatmul.msk.f32.gmra.mxu3 %vm579_vm0, %v1872_v48  ;;  %v907_v60 = vadd.f32 %v8033_v61, %v7440_v16  ;;  %v910_v16 = vadd.f32 %v8029_v3, %v7456_v23  ;;  %v909_v21 = vadd.f32 %v8033_v61, %v7454_v22 }
 0x1b3   : > { %v912_v22 = vadd.f32 %v8029_v3, %v7470_v29 }
 0x1b4   : > { %v1350_v48 = vadd.f32 %v7450_v20, %v907_v60  ;;  %v1431_v20 = vld [vmem:[%s7330_s21 + $0x8a] sm:$0xff]  ;;  %v1353_v23 = vadd.f32 %v7466_v27, %v910_v16  ;;  %v911_v27 = vadd.f32 %v8033_v61, %v7468_v28  ;;  %v914_v28 = vadd.f32 %v8029_v3, %v7484_v35 }
 0x1b5   : > { %v8035_v30 = vpop.f32.mrf.mxu2  ;;  %v8037_v37 = vpop.f32.mrf.mxu3  ;;  %v1874_v60 = vld [vmem:[%s7330_s21 + $0x8b] sm:$0xff]  ;;  %v1355_v29 = vadd.f32 %v7480_v33, %v912_v22  ;;  %v913_v33 = vadd.f32 %v8033_v61, %v7482_v34  ;;  %v916_v34 = vadd.f32 %v8029_v3, %v7498_v41 }
 0x1b6   : > { %11293 = vst [vmem:[#allocation92_spill] sm:$0xff] %v8035_v30  ;;  %v1584_v55 = vpop.f32.mrf.mxu0  ;;  %v1697_v54 = vpop.f32.mrf.mxu1  ;;  %v1357_v35 = vadd.f32 %v7494_v39, %v914_v28  ;;  %v915_v39 = vadd.f32 %v8033_v61, %v7496_v40  ;;  %v918_v40 = vadd.f32 %v8029_v3, %v7512_v47 }
 0x1b7   : > { %11294 = vst [vmem:[#allocation93_spill] sm:$0xff] %v8037_v37  ;;  %v1793_v17 = vadd.f32 %v1584_v55, %v1350_v48  ;;  %v1794_v37 = vadd.f32 %v1697_v54, %v1351_v2  ;;  %v1359_v41 = vadd.f32 %v7508_v45, %v916_v34  ;;  %v917_v45 = vadd.f32 %v8033_v61, %v7510_v46 }
 0x1b8   : > { %v1361_v47 = vadd.f32 %v7522_v51, %v918_v40  ;;  %v920_v46 = vadd.f32 %v8029_v3, %v7526_v53  ;;  %v919_v51 = vadd.f32 %v8033_v61, %v7524_v52  ;;  %v922_v52 = vadd.f32 %v8029_v3, %v7540_v59 }
 0x1b9   : > { %6221 = vmatmul.msk.f32.gmra.mxu0 %vm579_vm0, %v1430_v42  ;;  %6253 = vmatmul.msk.f32.gmra.mxu1 %vm579_vm0, %v1430_v42 }
 0x1ba   : > { %6309 = vmatmul.msk.f32.gmra.mxu2 %vm579_vm0, %v1873_v43  ;;  %6341 = vmatmul.msk.f32.gmra.mxu3 %vm579_vm0, %v1873_v43  ;;  %v1352_v43 = vadd.f32 %v7464_v26, %v909_v21  ;;  %v1432_v26 = vld [vmem:[%s7330_s21 + $0x92] sm:$0xff]  ;;  %v1363_v53 = vadd.f32 %v7536_v57, %v920_v46  ;;  %v921_v57 = vadd.f32 %v8033_v61, %v7538_v58 }
 0x1bb   : > { %v1365_v59 = vadd.f32 %v7550_v63, %v922_v52  ;;  %v1881_v63 = vld [vmem:[%s7330_s21 + $0xc3] sm:$0xff] }
 0x1bc   : > { %v6373_v52 = vld [vmem:[%s11210_s1 + $0x380] sm:$0xff] }
 0x1bd   : > { %v2027_v30 = vpop.f32.mrf.mxu2  ;;  %v2140_v11 = vpop.f32.mrf.mxu3 }
 0x1be   : > { %v8053_v10 = vadd.f32 %v2027_v30, %v1793_v17  ;;  %v8055_v14 = vadd.f32 %v2140_v11, %v1794_v37  ;;  %v1587_v42 = vpop.f32.mrf.mxu0  ;;  %v1700_v15 = vpop.f32.mrf.mxu1  ;;  %v1875_v17 = vld [vmem:[%s7330_s21 + $0x93] sm:$0xff] }
 0x1bf   : > { %v1795_v11 = vadd.f32 %v1587_v42, %v1352_v43  ;;  %v1796_v54 = vadd.f32 %v1700_v15, %v1353_v23  ;;  %v1354_v15 = vadd.f32 %v7478_v32, %v911_v27  ;;  %v1433_v32 = vld [vmem:[%s7330_s21 + $0x9a] sm:$0xff] }
 0x1c1   : > { %6222 = vmatmul.msk.f32.gmra.mxu0 %vm579_vm0, %v1431_v20  ;;  %6254 = vmatmul.msk.f32.gmra.mxu1 %vm579_vm0, %v1431_v20 }
 0x1c2   : > { %6310 = vmatmul.msk.f32.gmra.mxu2 %vm579_vm0, %v1874_v60  ;;  %6342 = vmatmul.msk.f32.gmra.mxu3 %vm579_vm0, %v1874_v60 }
 0x1c5   : > { %v2030_v55 = vpop.f32.mrf.mxu2  ;;  %v2143_v30 = vpop.f32.mrf.mxu3 }
 0x1c6   : > { %v8069_v49 = vadd.f32 %v2030_v55, %v1795_v11  ;;  %v8071_v37 = vadd.f32 %v2143_v30, %v1796_v54  ;;  %v1590_v48 = vpop.f32.mrf.mxu0  ;;  %v1703_v2 = vpop.f32.mrf.mxu1  ;;  %v1876_v54 = vld [vmem:[%s7330_s21 + $0x9b] sm:$0xff]  ;;  %v1356_v55 = vadd.f32 %v7492_v38, %v913_v33  ;;  %v1878_v33 = vld [vmem:[%s7330_s21 + $0xab] sm:$0xff] }
 0x1c7   : > { %v1797_v16 = vadd.f32 %v1590_v48, %v1354_v15  ;;  %v1798_v42 = vadd.f32 %v1703_v2, %v1355_v29  ;;  %v1434_v38 = vld [vmem:[%s7330_s21 + $0xa2] sm:$0xff] }
 0x1c8   : > { %v1877_v29 = vld [vmem:[%s7330_s21 + $0xa3] sm:$0xff] }
 0x1c9   : > { %6223 = vmatmul.msk.f32.gmra.mxu0 %vm579_vm0, %v1432_v26  ;;  %6255 = vmatmul.msk.f32.gmra.mxu1 %vm579_vm0, %v1432_v26 }
 0x1ca   : > { %6311 = vmatmul.msk.f32.gmra.mxu2 %vm579_vm0, %v1875_v17  ;;  %6343 = vmatmul.msk.f32.gmra.mxu3 %vm579_vm0, %v1875_v17 }
 0x1cd   : > { %v2033_v20 = vpop.f32.mrf.mxu2  ;;  %v2146_v60 = vpop.f32.mrf.mxu3 }
 0x1ce   : > { %v8085_v21 = vadd.f32 %v2033_v20, %v1797_v16  ;;  %v8087_v43 = vadd.f32 %v2146_v60, %v1798_v42  ;;  %v1593_v23 = vpop.f32.mrf.mxu0  ;;  %v1706_v11 = vpop.f32.mrf.mxu1  ;;  %v1358_v16 = vadd.f32 %v7506_v44, %v915_v39  ;;  %v1435_v44 = vld [vmem:[%s7330_s21 + $0xaa] sm:$0xff] }
 0x1cf   : > { %v1799_v30 = vadd.f32 %v1593_v23, %v1356_v55  ;;  %v1800_v22 = vadd.f32 %v1706_v11, %v1357_v35  ;;  %v1360_v55 = vadd.f32 %v7520_v50, %v917_v45  ;;  %v1436_v50 = vld [vmem:[%s7330_s21 + $0xb2] sm:$0xff] }
 0x1d1   : > { %6224 = vmatmul.msk.f32.gmra.mxu0 %vm579_vm0, %v1433_v32  ;;  %6256 = vmatmul.msk.f32.gmra.mxu1 %vm579_vm0, %v1433_v32 }
 0x1d2   : > { %6312 = vmatmul.msk.f32.gmra.mxu2 %vm579_vm0, %v1876_v54  ;;  %6344 = vmatmul.msk.f32.gmra.mxu3 %vm579_vm0, %v1876_v54 }
 0x1d5   : > { %v2036_v48 = vpop.f32.mrf.mxu2  ;;  %v2149_v2 = vpop.f32.mrf.mxu3 }
 0x1d6   : > { %v8101_v26 = vadd.f32 %v2036_v48, %v1799_v30  ;;  %v8103_v17 = vadd.f32 %v2149_v2, %v1800_v22  ;;  %v1596_v27 = vpop.f32.mrf.mxu0  ;;  %v1709_v15 = vpop.f32.mrf.mxu1 }
 0x1d7   : > { %v1801_v42 = vadd.f32 %v1596_v27, %v1358_v16  ;;  %v1802_v20 = vadd.f32 %v1709_v15, %v1359_v41 }
 0x1d9   : > { %6225 = vmatmul.msk.f32.gmra.mxu0 %vm579_vm0, %v1434_v38  ;;  %6257 = vmatmul.msk.f32.gmra.mxu1 %vm579_vm0, %v1434_v38  ;;  %v1879_v38 = vld [vmem:[%s7330_s21 + $0xb3] sm:$0xff] }
 0x1da   : > { %6313 = vmatmul.msk.f32.gmra.mxu2 %vm579_vm0, %v1877_v29  ;;  %6345 = vmatmul.msk.f32.gmra.mxu3 %vm579_vm0, %v1877_v29  ;;  %v1362_v29 = vadd.f32 %v7534_v56, %v919_v51  ;;  %v1437_v56 = vld [vmem:[%s7330_s21 + $0xba] sm:$0xff]  ;;  %v6378_v51 = vld [vmem:[%s11210_s1 + $0x3a8] sm:$0xff] }
 0x1dd   : > { %v2039_v60 = vpop.f32.mrf.mxu2  ;;  %v2152_v28 = vpop.f32.mrf.mxu3 }
 0x1de   : > { %v8117_v23 = vadd.f32 %v2039_v60, %v1801_v42  ;;  %v8119_v11 = vadd.f32 %v2152_v28, %v1802_v20  ;;  %v1599_v32 = vpop.f32.mrf.mxu0  ;;  %v1712_v54 = vpop.f32.mrf.mxu1 }
 0x1df   : > { %v1803_v35 = vadd.f32 %v1599_v32, %v1360_v55  ;;  %v1804_v30 = vadd.f32 %v1712_v54, %v1361_v47  ;;  %v1880_v32 = vld [vmem:[%s7330_s21 + $0xbb] sm:$0xff]  ;;  %v1364_v54 = vadd.f32 %v7548_v62, %v921_v57  ;;  %v6370_v57 = vld [vmem:[%s11210_s1 + $0x368] sm:$0xff] }
 0x1e0   : > { %v1438_v62 = vld [vmem:[%s7330_s21 + $0xc2] sm:$0xff] }
 0x1e1   : > { %6226 = vmatmul.msk.f32.gmra.mxu0 %vm579_vm0, %v1435_v44  ;;  %6258 = vmatmul.msk.f32.gmra.mxu1 %vm579_vm0, %v1435_v44 }
 0x1e2   : > { %6314 = vmatmul.msk.f32.gmra.mxu2 %vm579_vm0, %v1878_v33  ;;  %6346 = vmatmul.msk.f32.gmra.mxu3 %vm579_vm0, %v1878_v33 }
 0x1e5   : > { %v2042_v22 = vpop.f32.mrf.mxu2  ;;  %v2155_v48 = vpop.f32.mrf.mxu3 }
 0x1e6   : > { %v8133_v2 = vadd.f32 %v2042_v22, %v1803_v35  ;;  %v8135_v34 = vadd.f32 %v2155_v48, %v1804_v30  ;;  %v1602_v27 = vpop.f32.mrf.mxu0  ;;  %v1715_v15 = vpop.f32.mrf.mxu1  ;;  %v6379_v22 = vld [vmem:[%s11210_s1 + $0x3b0] sm:$0xff] }
 0x1e7   : > { %v1805_v39 = vadd.f32 %v1602_v27, %v1362_v29  ;;  %v1806_v16 = vadd.f32 %v1715_v15, %v1363_v53  ;;  %2457 = vmatpush.msra.mxu0 %v6379_v22  ;;  %v1439_v27 = vld [vmem:[%s7330_s21 + $0xca] sm:$0xff] }
 0x1e8   : > { %v1882_v15 = vld [vmem:[%s7330_s21 + $0xcb] sm:$0xff] }
 0x1e9   : > { %6227 = vmatmul.msk.f32.gmra.mxu0 %vm579_vm0, %v1436_v50  ;;  %6259 = vmatmul.msk.f32.gmra.mxu1 %vm579_vm0, %v1436_v50  ;;  %v6380_v50 = vld [vmem:[%s11210_s1 + $0x3b8] sm:$0xff]  ;;  %v6363_v22 = vld [vmem:[%s11210_s1 + $0x330] sm:$0xff] }
 0x1ea   : > { %6315 = vmatmul.msk.f32.gmra.mxu2 %vm579_vm0, %v1879_v38  ;;  %6347 = vmatmul.msk.f32.gmra.mxu3 %vm579_vm0, %v1879_v38  ;;  %v6377_v38 = vld [vmem:[%s11210_s1 + $0x3a0] sm:$0xff] }
 0x1eb   : > { %2570 = vmatpush.msra.mxu1 %v6380_v50  ;;  %2458 = vmatpush.msra.mxu0 %v6377_v38  ;;  %v1442_v38 = vld [vmem:[%s7330_s21 + $0xe2] sm:$0xff] }
 0x1ed   : > { %v2045_v41 = vpop.f32.mrf.mxu2  ;;  %v2158_v42 = vpop.f32.mrf.mxu3  ;;  %2571 = vmatpush.msra.mxu1 %v6378_v51  ;;  %v1885_v51 = vld [vmem:[%s7330_s21 + $0xe3] sm:$0xff] }
 0x1ee   : > { %v8149_v20 = vadd.f32 %v2045_v41, %v1805_v39  ;;  %v8151_v60 = vadd.f32 %v2158_v42, %v1806_v16  ;;  %v1605_v28 = vpop.f32.mrf.mxu0  ;;  %v1718_v40 = vpop.f32.mrf.mxu1  ;;  %v1440_v39 = vld [vmem:[%s7330_s21 + $0xd2] sm:$0xff] }
 0x1ef   : > { %v1807_v44 = vadd.f32 %v1605_v28, %v1364_v54  ;;  %v1808_v33 = vadd.f32 %v1718_v40, %v1365_v59  ;;  %v6375_v16 = vld [vmem:[%s11210_s1 + $0x390] sm:$0xff]  ;;  %v6376_v41 = vld [vmem:[%s11210_s1 + $0x398] sm:$0xff]  ;;  %v6374_v28 = vld [vmem:[%s11210_s1 + $0x388] sm:$0xff] }
 0x1f0   : > { %v1883_v42 = vld [vmem:[%s7330_s21 + $0xd3] sm:$0xff]  ;;  %2459 = vmatpush.msra.mxu0 %v6375_v16  ;;  %2572 = vmatpush.msra.mxu1 %v6376_v41  ;;  %v6362_v16 = vld [vmem:[%s11210_s1 + $0x328] sm:$0xff] }
 0x1f1   : > { %6228 = vmatmul.msk.f32.gmra.mxu0 %vm579_vm0, %v1437_v56  ;;  %6260 = vmatmul.msk.f32.gmra.mxu1 %vm579_vm0, %v1437_v56  ;;  %v6371_v40 = vld [vmem:[%s11210_s1 + $0x370] sm:$0xff]  ;;  %v6372_v56 = vld [vmem:[%s11210_s1 + $0x378] sm:$0xff] }
 0x1f2   : > { %6316 = vmatmul.msk.f32.gmra.mxu2 %vm579_vm0, %v1880_v32  ;;  %6348 = vmatmul.msk.f32.gmra.mxu3 %vm579_vm0, %v1880_v32  ;;  %v6369_v32 = vld [vmem:[%s11210_s1 + $0x360] sm:$0xff]  ;;  %v6359_v41 = vld [vmem:[%s11210_s1 + $0x310] sm:$0xff] }
 0x1f3   : > { %2460 = vmatpush.msra.mxu0 %v6373_v52  ;;  %2573 = vmatpush.msra.mxu1 %v6374_v28  ;;  %v6357_v52 = vld [vmem:[%s11210_s1 + $0x300] sm:$0xff]  ;;  %v6358_v28 = vld [vmem:[%s11210_s1 + $0x308] sm:$0xff] }
 0x1f5   : > { %v2048_v45 = vpop.f32.mrf.mxu2  ;;  %v2161_v55 = vpop.f32.mrf.mxu3  ;;  %2461 = vmatpush.msra.mxu0 %v6371_v40  ;;  %2574 = vmatpush.msra.mxu1 %v6372_v56 }
 0x1f6   : > { %v8163_v58 = vadd.f32 %v2048_v45, %v1807_v44  ;;  %v8165_v47 = vadd.f32 %v2161_v55, %v1808_v33  ;;  %v8167_v35 = vpop.f32.mrf.mxu0  ;;  %v8169_v30 = vpop.f32.mrf.mxu1  ;;  %v1441_v44 = vld [vmem:[%s7330_s21 + $0xda] sm:$0xff]  ;;  %v6367_v45 = vld [vmem:[%s11210_s1 + $0x350] sm:$0xff] }
 0x1f7   : > { %v1884_v33 = vld [vmem:[%s7330_s21 + $0xdb] sm:$0xff]  ;;  %2462 = vmatpush.msra.mxu0 %v6369_v32  ;;  %2575 = vmatpush.msra.mxu1 %v6370_v57  ;;  %v1443_v32 = vld [vmem:[%s7330_s21 + $0xea] sm:$0xff] }
 0x1f8   : > { %v6368_v55 = vld [vmem:[%s11210_s1 + $0x358] sm:$0xff]  ;;  %v1886_v57 = vld [vmem:[%s7330_s21 + $0xeb] sm:$0xff] }
 0x1f9   : > { %6229 = vmatmul.msk.f32.gmra.mxu0 %vm579_vm0, %v1438_v62  ;;  %6261 = vmatmul.msk.f32.gmra.mxu1 %vm579_vm0, %v1438_v62  ;;  %v6365_v62 = vld [vmem:[%s11210_s1 + $0x340] sm:$0xff] }
 0x1fa   : > { %6317 = vmatmul.msk.f32.gmra.mxu2 %vm579_vm0, %v1881_v63  ;;  %6349 = vmatmul.msk.f32.gmra.mxu3 %vm579_vm0, %v1881_v63  ;;  %v6366_v63 = vld [vmem:[%s11210_s1 + $0x348] sm:$0xff] }
 0x1fb   : > { %2463 = vmatpush.msra.mxu0 %v6367_v45  ;;  %2576 = vmatpush.msra.mxu1 %v6368_v55  ;;  %v1444_v45 = vld [vmem:[%s7330_s21 + $0xf2] sm:$0xff] }
 0x1fc   : > { %v1887_v55 = vld [vmem:[%s7330_s21 + $0xf3] sm:$0xff] }
 0x1fd   : > { %2464 = vmatpush.msra.mxu0 %v6365_v62  ;;  %2577 = vmatpush.msra.mxu1 %v6366_v63 }
 0x1fe   : > { %v8180_v48 = vpop.f32.mrf.mxu0  ;;  %v8182_v46 = vpop.f32.mrf.mxu1 }
 0x1ff   : > { %2465 = vmatpush.msra.mxu0 %v6363_v22  ;;  %v1445_v22 = vld [vmem:[%s7330_s21 + $0xfa] sm:$0xf] }
 0x201   : > { %6230 = vmatmul.msk.f32.gmra.mxu0 %vm579_vm0, %v1439_v27  ;;  %6262 = vmatmul.msk.f32.gmra.mxu1 %vm579_vm0, %v1439_v27  ;;  %v6364_v27 = vld [vmem:[%s11210_s1 + $0x338] sm:$0xff] }
 0x202   : > { %6318 = vmatmul.msk.f32.gmra.mxu2 %vm579_vm0, %v1882_v15  ;;  %6350 = vmatmul.msk.f32.gmra.mxu3 %vm579_vm0, %v1882_v15 }
 0x203   : > { %2578 = vmatpush.msra.mxu1 %v6364_v27  ;;  %v1888_v27 = vld [vmem:[%s7330_s21 + $0xfb] sm:$0xf] }
 0x205   : > { %2579 = vmatpush.msra.mxu1 %v6362_v16 }
 0x206   : > { %v8199_v29 = vpop.f32.mrf.mxu0  ;;  %v8201_v53 = vpop.f32.mrf.mxu1 }
 0x209   : > { %6231 = vmatmul.msk.f32.gmra.mxu0 %vm579_vm0, %v1440_v39  ;;  %6263 = vmatmul.msk.f32.gmra.mxu1 %vm579_vm0, %v1440_v39  ;;  %v6361_v39 = vld [vmem:[%s11210_s1 + $0x320] sm:$0xff] }
 0x20a   : > { %6319 = vmatmul.msk.f32.gmra.mxu2 %vm579_vm0, %v1883_v42  ;;  %6351 = vmatmul.msk.f32.gmra.mxu3 %vm579_vm0, %v1883_v42  ;;  %v6360_v42 = vld [vmem:[%s11210_s1 + $0x318] sm:$0xff]  ;;  %s6998_s1 = sshra.s32 %s5963_s19, 4  ;;  %s6999_s1 = int_to_ptr.hbm [resolvable:$true] %s6998_s1 }
 0x20b   : > { %2466 = vmatpush.msra.mxu0 %v6361_v39  ;;  %2580 = vmatpush.msra.mxu1 %v6360_v42  ;;  %v2300_v39 = vld [vmem:[%s7330_s21 + $0x4] sm:$0xff]  ;;  %v2301_v42 = vld [vmem:[%s7330_s21 + $0xc] sm:$0xff]  ;;  %s7000_s25 = scalar_lea.hbm %s6999_s1, 8  ;;  %p7005_p0 = scmp.lt.s32.totalorder %s6999_s1, %s11185_s16 }
 0x20c   : > { %p7001_p11 = scmp.ne.s32.totalorder %s6999_s1, %s7000_s25  ;;  %p7006_p1 = scmp.lt.s32.totalorder %s7004_s26, %s7000_s25 }
 0x20d   : > { %2467 = vmatpush.msra.mxu0 %v6359_v41  ;;  %2581 = vmatpush.msra.mxu1 %v6358_v28 }
 0x20e   : > { %v8233_v54 = vpop.f32.mrf.mxu0  ;;  %v8235_v59 = vpop.f32.mrf.mxu1  ;;  %p7002_p12 = pnand %p7001_p11, %p7171_p5  ;;  %p7007_p2 = por %p7006_p1, %p7005_p0 }
 0x20f   : > { %2468 = vmatpush.msra.mxu0 %v6357_v52 }
 0x210   : > { %p7003_p13 = pneg %p7002_p12 }
 0x211   : > { %6232 = vmatmul.msk.f32.gmra.mxu0 %vm579_vm0, %v1441_v44  ;;  %6264 = vmatmul.msk.f32.gmra.mxu1 %vm579_vm0, %v1441_v44 }
 0x212   : > { %6320 = vmatmul.msk.f32.gmra.mxu2 %vm579_vm0, %v1884_v33  ;;  %6352 = vmatmul.msk.f32.gmra.mxu3 %vm579_vm0, %v1884_v33  ;;  %p7008_p3 = pnand %p7007_p2, %p7003_p13 }
 0x216   : > { %v8261_v15 = vpop.f32.mrf.mxu0  ;;  %v8263_v50 = vpop.f32.mrf.mxu1 }
 0x219   : > { %6233 = vmatmul.msk.f32.gmra.mxu0 %vm579_vm0, %v1442_v38  ;;  %6265 = vmatmul.msk.f32.gmra.mxu1 %vm579_vm0, %v1442_v38 }
 0x21a   : > { %6321 = vmatmul.msk.f32.gmra.mxu2 %vm579_vm0, %v1885_v51  ;;  %6353 = vmatmul.msk.f32.gmra.mxu3 %vm579_vm0, %v1885_v51 }
 0x21e   : > { %v8289_v40 = vpop.f32.mrf.mxu0  ;;  %v8291_v56 = vpop.f32.mrf.mxu1 }
 0x221   : > { %6234 = vmatmul.msk.f32.gmra.mxu0 %vm579_vm0, %v1443_v32  ;;  %6266 = vmatmul.msk.f32.gmra.mxu1 %vm579_vm0, %v1443_v32  ;;  %v2302_v32 = vld [vmem:[%s7330_s21 + $0x14] sm:$0xff] }
 0x222   : > { %6322 = vmatmul.msk.f32.gmra.mxu2 %vm579_vm0, %v1886_v57  ;;  %6354 = vmatmul.msk.f32.gmra.mxu3 %vm579_vm0, %v1886_v57 }
 0x226   : > { %v8299_v44 = vpop.f32.mrf.mxu0  ;;  %v8301_v33 = vpop.f32.mrf.mxu1 }
 0x229   : > { %6235 = vmatmul.msk.f32.gmra.mxu0 %vm579_vm0, %v1444_v45  ;;  %6267 = vmatmul.msk.f32.gmra.mxu1 %vm579_vm0, %v1444_v45 }
 0x22a   : > { %6323 = vmatmul.msk.f32.gmra.mxu2 %vm579_vm0, %v1887_v55  ;;  %6355 = vmatmul.msk.f32.gmra.mxu3 %vm579_vm0, %v1887_v55  ;;  %v2303_v55 = vld [vmem:[%s7330_s21 + $0x1c] sm:$0xff] }
 0x22e   : > { %v8309_v62 = vpop.f32.mrf.mxu0  ;;  %v8311_v63 = vpop.f32.mrf.mxu1 }
 0x231   : > { %6236 = vmatmul.msk.f32.gmra.mxu0 %vm579_vm0, %v1445_v22  ;;  %6268 = vmatmul.msk.f32.gmra.mxu1 %vm579_vm0, %v1445_v22 }
 0x232   : > { %6324 = vmatmul.msk.f32.gmra.mxu2 %vm579_vm0, %v1888_v27  ;;  %6356 = vmatmul.msk.f32.gmra.mxu3 %vm579_vm0, %v1888_v27 }
 0x236   : > { %v8319_v38 = vpop.f32.mrf.mxu0  ;;  %v8321_v51 = vpop.f32.mrf.mxu1 }
 0x239   : > { %6381 = vmatmul.msk.f32.vlgmr.msra.gmra.mxu0 %vm579_vm0, %v2300_v39  ;;  %6413 = vmatmul.msk.f32.vlgmr.msra.gmra.mxu1 %vm579_vm0, %v2300_v39  ;;  %v2304_v39 = vld [vmem:[%s7330_s21 + $0x24] sm:$0xff] }
 0x23e   : > { %v8326_v16 = vpop.f32.mrf.mxu0  ;;  %v8328_v41 = vpop.f32.mrf.mxu1 }
 0x241   : > { %6382 = vmatmul.msk.f32.gmra.mxu0 %vm579_vm0, %v2301_v42  ;;  %6414 = vmatmul.msk.f32.gmra.mxu1 %vm579_vm0, %v2301_v42 }
 0x246   : > { %v8333_v52 = vpop.f32.mrf.mxu0  ;;  %v8335_v28 = vpop.f32.mrf.mxu1 }
 0x247   : > { %11295 = vst [vmem:[#allocation94_spill] sm:$0xff] %v8333_v52 }
 0x248   : > { %11296 = vst [vmem:[#allocation95_spill] sm:$0xff] %v8335_v28 }
 0x249   : > { %6383 = vmatmul.msk.f32.gmra.mxu0 %vm579_vm0, %v2302_v32  ;;  %6415 = vmatmul.msk.f32.gmra.mxu1 %vm579_vm0, %v2302_v32 }
 0x24e   : > { %v8340_v57 = vpop.f32.mrf.mxu0  ;;  %v8342_v45 = vpop.f32.mrf.mxu1 }
 0x24f   : > { %11297 = vst [vmem:[#allocation96_spill] sm:$0xff] %v8340_v57 }
 0x250   : > { %11298 = vst [vmem:[#allocation97_spill] sm:$0xff] %v8342_v45  ;;  %v2305_v45 = vld [vmem:[%s7330_s21 + $0x2c] sm:$0xff] }
 0x251   : > { %6384 = vmatmul.msk.f32.gmra.mxu0 %vm579_vm0, %v2303_v55  ;;  %6416 = vmatmul.msk.f32.gmra.mxu1 %vm579_vm0, %v2303_v55 }
 0x256   : > { %v8347_v22 = vpop.f32.mrf.mxu0  ;;  %v8349_v27 = vpop.f32.mrf.mxu1 }
 0x257   : > { %11299 = vst [vmem:[#allocation98_spill] sm:$0xff] %v8347_v22 }
 0x258   : > { %11300 = vst [vmem:[#allocation99_spill] sm:$0xff] %v8349_v27  ;;  %v2306_v27 = vld [vmem:[%s7330_s21 + $0x34] sm:$0xff] }
 0x259   : > { %6385 = vmatmul.msk.f32.gmra.mxu0 %vm579_vm0, %v2304_v39  ;;  %6417 = vmatmul.msk.f32.gmra.mxu1 %vm579_vm0, %v2304_v39 }
 0x25e   : > { %v8354_v42 = vpop.f32.mrf.mxu0  ;;  %v8356_v32 = vpop.f32.mrf.mxu1 }
 0x25f   : > { %11301 = vst [vmem:[#allocation100_spill] sm:$0xff] %v8354_v42 }
 0x260   : > { %11302 = vst [vmem:[#allocation101_spill] sm:$0xff] %v8356_v32  ;;  %v2307_v32 = vld [vmem:[%s7330_s21 + $0x3c] sm:$0xff] }
 0x261   : > { %6386 = vmatmul.msk.f32.gmra.mxu0 %vm579_vm0, %v2305_v45  ;;  %6418 = vmatmul.msk.f32.gmra.mxu1 %vm579_vm0, %v2305_v45 }
 0x266   : > { %v8361_v55 = vpop.f32.mrf.mxu0  ;;  %v8363_v22 = vpop.f32.mrf.mxu1 }
 0x267   : > { %11303 = vst [vmem:[#allocation102_spill] sm:$0xff] %v8361_v55 }
 0x268   : > { %11304 = vst [vmem:[#allocation103_spill] sm:$0xff] %v8363_v22  ;;  %v2308_v22 = vld [vmem:[%s7330_s21 + $0x44] sm:$0xff] }
 0x269   : > { %6387 = vmatmul.msk.f32.gmra.mxu0 %vm579_vm0, %v2306_v27  ;;  %6419 = vmatmul.msk.f32.gmra.mxu1 %vm579_vm0, %v2306_v27 }
 0x26e   : > { %v8368_v39 = vpop.f32.mrf.mxu0  ;;  %v8370_v42 = vpop.f32.mrf.mxu1 }
 0x26f   : > { %11305 = vst [vmem:[#allocation104_spill] sm:$0xff] %v8368_v39 }
 0x270   : > { %11306 = vst [vmem:[#allocation105_spill] sm:$0xff] %v8370_v42  ;;  %v2309_v42 = vld [vmem:[%s7330_s21 + $0x4c] sm:$0xff] }
 0x271   : > { %6388 = vmatmul.msk.f32.gmra.mxu0 %vm579_vm0, %v2307_v32  ;;  %6420 = vmatmul.msk.f32.gmra.mxu1 %vm579_vm0, %v2307_v32 }
 0x276   : > { %v8375_v45 = vpop.f32.mrf.mxu0  ;;  %v8377_v55 = vpop.f32.mrf.mxu1 }
 0x277   : > { %11307 = vst [vmem:[#allocation106_spill] sm:$0xff] %v8375_v45 }
 0x278   : > { %11308 = vst [vmem:[#allocation107_spill] sm:$0xff] %v8377_v55  ;;  %v2310_v55 = vld [vmem:[%s7330_s21 + $0x54] sm:$0xff] }
 0x279   : > { %6389 = vmatmul.msk.f32.gmra.mxu0 %vm579_vm0, %v2308_v22  ;;  %6421 = vmatmul.msk.f32.gmra.mxu1 %vm579_vm0, %v2308_v22 }
 0x27e   : > { %v8382_v27 = vpop.f32.mrf.mxu0  ;;  %v8384_v39 = vpop.f32.mrf.mxu1 }
 0x27f   : > { %11309 = vst [vmem:[#allocation108_spill] sm:$0xff] %v8382_v27 }
 0x280   : > { %11310 = vst [vmem:[#allocation109_spill] sm:$0xff] %v8384_v39  ;;  %v2311_v39 = vld [vmem:[%s7330_s21 + $0x5c] sm:$0xff] }
 0x281   : > { %6390 = vmatmul.msk.f32.gmra.mxu0 %vm579_vm0, %v2309_v42  ;;  %6422 = vmatmul.msk.f32.gmra.mxu1 %vm579_vm0, %v2309_v42 }
 0x286   : > { %v8389_v32 = vpop.f32.mrf.mxu0  ;;  %v8391_v45 = vpop.f32.mrf.mxu1 }
 0x287   : > { %11311 = vst [vmem:[#allocation110_spill] sm:$0xff] %v8389_v32 }
 0x288   : > { %11312 = vst [vmem:[#allocation111_spill] sm:$0xff] %v8391_v45  ;;  %v2312_v45 = vld [vmem:[%s7330_s21 + $0x64] sm:$0xff] }
 0x289   : > { %6391 = vmatmul.msk.f32.gmra.mxu0 %vm579_vm0, %v2310_v55  ;;  %6423 = vmatmul.msk.f32.gmra.mxu1 %vm579_vm0, %v2310_v55 }
 0x28e   : > { %v8396_v22 = vpop.f32.mrf.mxu0  ;;  %v8398_v27 = vpop.f32.mrf.mxu1 }
 0x28f   : > { %11313 = vst [vmem:[#allocation112_spill] sm:$0xff] %v8396_v22 }
 0x290   : > { %11314 = vst [vmem:[#allocation113_spill] sm:$0xff] %v8398_v27  ;;  %v2313_v27 = vld [vmem:[%s7330_s21 + $0x6c] sm:$0xff] }
 0x291   : > { %6392 = vmatmul.msk.f32.gmra.mxu0 %vm579_vm0, %v2311_v39  ;;  %6424 = vmatmul.msk.f32.gmra.mxu1 %vm579_vm0, %v2311_v39 }
 0x296   : > { %v8403_v42 = vpop.f32.mrf.mxu0  ;;  %v8405_v32 = vpop.f32.mrf.mxu1 }
 0x297   : > { %11315 = vst [vmem:[#allocation114_spill] sm:$0xff] %v8403_v42 }
 0x298   : > { %11316 = vst [vmem:[#allocation115_spill] sm:$0xff] %v8405_v32  ;;  %v2314_v32 = vld [vmem:[%s7330_s21 + $0x74] sm:$0xff] }
 0x299   : > { %6393 = vmatmul.msk.f32.gmra.mxu0 %vm579_vm0, %v2312_v45  ;;  %6425 = vmatmul.msk.f32.gmra.mxu1 %vm579_vm0, %v2312_v45 }
 0x29e   : > { %v8410_v55 = vpop.f32.mrf.mxu0  ;;  %v8412_v22 = vpop.f32.mrf.mxu1 }
 0x29f   : > { %11317 = vst [vmem:[#allocation116_spill] sm:$0xff] %v8410_v55 }
 0x2a0   : > { %11318 = vst [vmem:[#allocation117_spill] sm:$0xff] %v8412_v22  ;;  %v2315_v22 = vld [vmem:[%s7330_s21 + $0x7c] sm:$0xff] }
 0x2a1   : > { %6394 = vmatmul.msk.f32.gmra.mxu0 %vm579_vm0, %v2313_v27  ;;  %6426 = vmatmul.msk.f32.gmra.mxu1 %vm579_vm0, %v2313_v27 }
 0x2a6   : > { %v8417_v39 = vpop.f32.mrf.mxu0  ;;  %v8419_v42 = vpop.f32.mrf.mxu1 }
 0x2a7   : > { %11319 = vst [vmem:[#allocation118_spill] sm:$0xff] %v8417_v39  ;;  %v2316_v39 = vld [vmem:[%s7330_s21 + $0x84] sm:$0xff] }
 0x2a8   : > { %11320 = vst [vmem:[#allocation119_spill] sm:$0xff] %v8419_v42 }
 0x2a9   : > { %6395 = vmatmul.msk.f32.gmra.mxu0 %vm579_vm0, %v2314_v32  ;;  %6427 = vmatmul.msk.f32.gmra.mxu1 %vm579_vm0, %v2314_v32 }
 0x2ae   : > { %v8424_v45 = vpop.f32.mrf.mxu0  ;;  %v8426_v55 = vpop.f32.mrf.mxu1 }
 0x2af   : > { %11321 = vst [vmem:[#allocation120_spill] sm:$0xff] %v8424_v45 }
 0x2b0   : > { %11322 = vst [vmem:[#allocation121_spill] sm:$0xff] %v8426_v55 }
 0x2b1   : > { %6396 = vmatmul.msk.f32.gmra.mxu0 %vm579_vm0, %v2315_v22  ;;  %6428 = vmatmul.msk.f32.gmra.mxu1 %vm579_vm0, %v2315_v22 }
 0x2b6   : > { %v2470_v27 = vpop.f32.mrf.mxu0  ;;  %v2583_v57 = vpop.f32.mrf.mxu1 }
 0x2b7   : > { %v8433_v42 = vadd.f32 %v2470_v27, %v8053_v10  ;;  %v2680_v28 = vadd.f32 %v2583_v57, %v8055_v14  ;;  %v2317_v10 = vld [vmem:[%s7330_s21 + $0x8c] sm:$0xff] }
 0x2b9   : > { %11323 = vst [vmem:[#allocation122_spill] sm:$0xff] %v8433_v42  ;;  %v11192_v32 = vmax.f32 %v8433_v42, 0.0  ;;  %v2744_v52 = vmax.f32 %v2680_v28, 0.0  ;;  %6397 = vmatmul.msk.f32.gmra.mxu0 %vm579_vm0, %v2316_v39  ;;  %6429 = vmatmul.msk.f32.gmra.mxu1 %vm579_vm0, %v2316_v39  ;;  %v8450_v39 = vpop.f32.mrf.mxu2 }
 0x2bb   : > { %2807 = vst [vmem:[#allocation2] sm:$0xff] %v11192_v32  ;;  %v8452_v32 = vpop.f32.mrf.mxu3 }
 0x2bc   : > { %2809 = vst.msk [vmem:[#allocation2 + $0x8] sm:$0xff] %vm2808_vm1, %v2744_v52 }
 0x2be   : > { %v2473_v22 = vpop.f32.mrf.mxu0  ;;  %v2586_v55 = vpop.f32.mrf.mxu1 }
 0x2bf   : > { %v8444_v27 = vadd.f32 %v2473_v22, %v8069_v49  ;;  %v2682_v14 = vadd.f32 %v2586_v55, %v8071_v37  ;;  %v2318_v37 = vld [vmem:[%s7330_s21 + $0x94] sm:$0xff] }
 0x2c1   : > { %11324 = vst [vmem:[#allocation123_spill] sm:$0xff] %v8444_v27  ;;  %v11193_v28 = vmax.f32 %v8444_v27, 0.0  ;;  %v2746_v57 = vmax.f32 %v2682_v14, 0.0  ;;  %6398 = vmatmul.msk.f32.gmra.mxu0 %vm579_vm0, %v2317_v10  ;;  %6430 = vmatmul.msk.f32.gmra.mxu1 %vm579_vm0, %v2317_v10  ;;  %v2320_v10 = vld [vmem:[%s7330_s21 + $0xa4] sm:$0xff] }
 0x2c3   : > { %2810 = vst [vmem:[#allocation2 + $0x10] sm:$0xff] %v11193_v28  ;;  %v8466_v28 = vpop.f32.mrf.mxu2 }
 0x2c4   : > { %2811 = vst.msk [vmem:[#allocation2 + $0x18] sm:$0xff] %vm2808_vm1, %v2746_v57  ;;  %v8468_v57 = vpop.f32.mrf.mxu3 }
 0x2c6   : > { %v2476_v49 = vpop.f32.mrf.mxu0  ;;  %v2589_v52 = vpop.f32.mrf.mxu1 }
 0x2c7   : > { %v8459_v55 = vadd.f32 %v2476_v49, %v8085_v21  ;;  %v2684_v22 = vadd.f32 %v2589_v52, %v8087_v43  ;;  %v2319_v21 = vld [vmem:[%s7330_s21 + $0x9c] sm:$0xff] }
 0x2c9   : > { %11325 = vst [vmem:[#allocation124_spill] sm:$0xff] %v8459_v55  ;;  %v2748_v14 = vmax.f32 %v2684_v22, 0.0  ;;  %6399 = vmatmul.msk.f32.gmra.mxu0 %vm579_vm0, %v2318_v37  ;;  %6431 = vmatmul.msk.f32.gmra.mxu1 %vm579_vm0, %v2318_v37 }
 0x2cb   : > { %2813 = vst.msk [vmem:[#allocation2 + $0x28] sm:$0xff] %vm2808_vm1, %v2748_v14  ;;  %v8480_v27 = vpop.f32.mrf.mxu2 }
 0x2cc   : > { %v8482_v55 = vpop.f32.mrf.mxu3 }
 0x2ce   : > { %v2479_v45 = vpop.f32.mrf.mxu0  ;;  %v2592_v42 = vpop.f32.mrf.mxu1 }
 0x2cf   : > { %v8472_v49 = vadd.f32 %v2479_v45, %v8101_v26  ;;  %v2686_v43 = vadd.f32 %v2592_v42, %v8103_v17 }
 0x2d1   : > { %11326 = vst [vmem:[#allocation125_spill] sm:$0xff] %v8472_v49  ;;  %v2750_v22 = vmax.f32 %v2686_v43, 0.0  ;;  %6400 = vmatmul.msk.f32.gmra.mxu0 %vm579_vm0, %v2319_v21  ;;  %6432 = vmatmul.msk.f32.gmra.mxu1 %vm579_vm0, %v2319_v21 }
 0x2d3   : > { %2815 = vst.msk [vmem:[#allocation2 + $0x38] sm:$0xff] %vm2808_vm1, %v2750_v22  ;;  %v2321_v22 = vld [vmem:[%s7330_s21 + $0xac] sm:$0xff] }
 0x2d6   : > { %v2482_v37 = vpop.f32.mrf.mxu0  ;;  %v2595_v14 = vpop.f32.mrf.mxu1 }
 0x2d7   : > { %v8485_v26 = vadd.f32 %v2482_v37, %v8117_v23  ;;  %v2688_v17 = vadd.f32 %v2595_v14, %v8119_v11  ;;  %v8497_v37 = vpop.f32.mrf.mxu2  ;;  %v8499_v11 = vpop.f32.mrf.mxu3  ;;  %v2323_v14 = vld [vmem:[%s7330_s21 + $0xbc] sm:$0xff] }
 0x2d9   : > { %v2752_v45 = vmax.f32 %v2688_v17, 0.0  ;;  %6401 = vmatmul.msk.f32.gmra.mxu0 %vm579_vm0, %v2320_v10  ;;  %6433 = vmatmul.msk.f32.gmra.mxu1 %vm579_vm0, %v2320_v10 }
 0x2db   : > { %2817 = vst.msk [vmem:[#allocation2 + $0x48] sm:$0xff] %vm2808_vm1, %v2752_v45 }
 0x2de   : > { %v2485_v21 = vpop.f32.mrf.mxu0  ;;  %v2598_v43 = vpop.f32.mrf.mxu1 }
 0x2df   : > { %v8494_v52 = vadd.f32 %v2485_v21, %v8133_v2  ;;  %v2690_v23 = vadd.f32 %v2598_v43, %v8135_v34  ;;  %v2322_v2 = vld [vmem:[%s7330_s21 + $0xb4] sm:$0xff] }
 0x2e1   : > { %v2754_v17 = vmax.f32 %v2690_v23, 0.0  ;;  %6402 = vmatmul.msk.f32.gmra.mxu0 %vm579_vm0, %v2321_v22  ;;  %6434 = vmatmul.msk.f32.gmra.mxu1 %vm579_vm0, %v2321_v22  ;;  %v8513_v23 = vpop.f32.mrf.mxu2  ;;  %v8515_v22 = vpop.f32.mrf.mxu3 }
 0x2e3   : > { %2819 = vst.msk [vmem:[#allocation2 + $0x58] sm:$0xff] %vm2808_vm1, %v2754_v17  ;;  %v924_v17 = vadd.f32 %v8029_v3, %v7554_v1 }
 0x2e5   : > { %v1367_v43 = vadd.f32 %v7567_v6, %v924_v17 }
 0x2e6   : > { %v2488_v10 = vpop.f32.mrf.mxu0  ;;  %v2601_v45 = vpop.f32.mrf.mxu1 }
 0x2e7   : > { %v8507_v21 = vadd.f32 %v2488_v10, %v8149_v20  ;;  %v2692_v34 = vadd.f32 %v2601_v45, %v8151_v60  ;;  %v923_v60 = vadd.f32 %v8033_v61, %v7552_v0  ;;  %v1810_v0 = vadd.f32 %v8169_v30, %v1367_v43 }
 0x2e9   : > { %v2756_v42 = vmax.f32 %v2692_v34, 0.0  ;;  %6403 = vmatmul.msk.f32.gmra.mxu0 %vm579_vm0, %v2322_v2  ;;  %6435 = vmatmul.msk.f32.gmra.mxu1 %vm579_vm0, %v2322_v2  ;;  %v1366_v34 = vadd.f32 %v7565_v5, %v923_v60  ;;  %v2253_v6 = vadd.f32 %v8452_v32, %v1810_v0  ;;  %v8541_v17 = vpop.f32.mrf.mxu3  ;;  %v2325_v0 = vld [vmem:[%s7330_s21 + $0xcc] sm:$0xff] }
 0x2eb   : > { %2821 = vst.msk [vmem:[#allocation2 + $0x68] sm:$0xff] %vm2808_vm1, %v2756_v42  ;;  %v1809_v1 = vadd.f32 %v8167_v35, %v1366_v34  ;;  %v925_v35 = vadd.f32 %v8033_v61, %v7569_v7  ;;  %v928_v7 = vadd.f32 %v8029_v3, %v7607_v36 }
 0x2ed   : > { %v2252_v5 = vadd.f32 %v8450_v39, %v1809_v1 }
 0x2ee   : > { %v2491_v20 = vpop.f32.mrf.mxu0  ;;  %v2604_v10 = vpop.f32.mrf.mxu1 }
 0x2ef   : > { %v8524_v45 = vadd.f32 %v2491_v20, %v8163_v58  ;;  %v2694_v2 = vadd.f32 %v2604_v10, %v8165_v47  ;;  %v926_v58 = vadd.f32 %v8029_v3, %v7571_v8  ;;  %v8539_v47 = vpop.f32.mrf.mxu2  ;;  %v1368_v8 = vadd.f32 %v7597_v19, %v925_v35 }
 0x2f1   : > { %v2757_v42 = vmax.f32 %v8524_v45, 0.0  ;;  %v2758_v49 = vmax.f32 %v2694_v2, 0.0  ;;  %6404 = vmatmul.msk.f32.gmra.mxu0 %vm579_vm0, %v2323_v14  ;;  %6436 = vmatmul.msk.f32.gmra.mxu1 %vm579_vm0, %v2323_v14  ;;  %v2324_v14 = vld [vmem:[%s7330_s21 + $0xc4] sm:$0xff]  ;;  %v1369_v39 = vadd.f32 %v7599_v24, %v926_v58  ;;  %v1811_v60 = vadd.f32 %v8180_v48, %v1368_v8  ;;  %v8565_v48 = vpop.f32.mrf.mxu3  ;;  %v2326_v8 = vld [vmem:[%s7330_s21 + $0xd4] sm:$0xff] }
 0x2f2   : > { %v927_v58 = vadd.f32 %v8033_v61, %v7605_v31 }
 0x2f3   : > { %2823 = vst.msk [vmem:[#allocation2 + $0x78] sm:$0xff] %vm2808_vm1, %v2758_v49  ;;  %v1812_v2 = vadd.f32 %v8182_v46, %v1369_v39  ;;  %v2254_v19 = vadd.f32 %v8466_v28, %v1811_v60  ;;  %v1371_v28 = vadd.f32 %v7658_v13, %v928_v7  ;;  %v929_v39 = vadd.f32 %v8033_v61, %v7666_v18 }
 0x2f4   : > { %v1370_v36 = vadd.f32 %v7656_v12, %v927_v58  ;;  %v11328_v58 = vld [vmem:[#allocation14_spill] sm:$0xff] }
 0x2f5   : > { %v2255_v24 = vadd.f32 %v8468_v57, %v1812_v2 }
 0x2f6   : > { %v2494_v20 = vpop.f32.mrf.mxu0  ;;  %v2607_v10 = vpop.f32.mrf.mxu1  ;;  %v1813_v31 = vadd.f32 %v8199_v29, %v1370_v36 }
 0x2f7   : > { %v8546_v30 = vadd.f32 %v2494_v20, %v2252_v5  ;;  %v2696_v49 = vadd.f32 %v2607_v10, %v2253_v6  ;;  %v8563_v5 = vpop.f32.mrf.mxu2  ;;  %v1814_v10 = vadd.f32 %v8201_v53, %v1371_v28  ;;  %v1372_v53 = vadd.f32 %v7706_v4, %v929_v39  ;;  %v11327_v4 = vld [vmem:[#allocation15_spill] sm:$0xff]  ;;  %v11329_v28 = vld [vmem:[#allocation16_spill] sm:$0xff] }
 0x2f8   : > { %v2256_v12 = vadd.f32 %v8480_v27, %v1813_v31 }
 0x2f9   : > { %v2759_v32 = vmax.f32 %v8546_v30, 0.0  ;;  %v2760_v43 = vmax.f32 %v2696_v49, 0.0  ;;  %6405 = vmatmul.msk.f32.gmra.mxu0 %vm579_vm0, %v2324_v14  ;;  %6437 = vmatmul.msk.f32.gmra.mxu1 %vm579_vm0, %v2324_v14  ;;  %v930_v14 = vadd.f32 %v8029_v3, %v7668_v25  ;;  %v2257_v13 = vadd.f32 %v8482_v55, %v1814_v10  ;;  %v8590_v25 = vpop.f32.mrf.mxu3  ;;  %v11417_v30 = vld [vmem:[#allocation75_spill] sm:$0xff] }
 0x2fa   : > { %v1815_v18 = vadd.f32 %v8233_v54, %v1372_v53 }
 0x2fb   : > { %2825 = vst.msk [vmem:[#allocation2 + $0x88] sm:$0xff] %vm2808_vm1, %v2760_v43  ;;  %v1373_v60 = vadd.f32 %v7708_v9, %v930_v14  ;;  %v932_v9 = vadd.f32 %v8029_v3, %v11327_v4 }
 0x2fd   : > { %v1816_v7 = vadd.f32 %v8235_v59, %v1373_v60  ;;  %v2328_v60 = vld [vmem:[%s7330_s21 + $0xe4] sm:$0xff] }
 0x2fe   : > { %v2497_v34 = vpop.f32.mrf.mxu0  ;;  %v2610_v1 = vpop.f32.mrf.mxu1 }
 0x2ff   : > { %v8567_v46 = vadd.f32 %v2497_v34, %v2254_v19  ;;  %v2698_v6 = vadd.f32 %v2610_v1, %v2255_v24  ;;  %v8588_v2 = vpop.f32.mrf.mxu2  ;;  %v2258_v19 = vadd.f32 %v8497_v37, %v1815_v18  ;;  %v2259_v24 = vadd.f32 %v8499_v11, %v1816_v7  ;;  %v11333_v7 = vld [vmem:[#allocation20_spill] sm:$0xff] }
 0x301   : > { %v2761_v57 = vmax.f32 %v8567_v46, 0.0  ;;  %v2762_v20 = vmax.f32 %v2698_v6, 0.0  ;;  %6406 = vmatmul.msk.f32.gmra.mxu0 %vm579_vm0, %v2325_v0  ;;  %6438 = vmatmul.msk.f32.gmra.mxu1 %vm579_vm0, %v2325_v0  ;;  %v2327_v0 = vld [vmem:[%s7330_s21 + $0xdc] sm:$0xff]  ;;  %v931_v6 = vadd.f32 %v8033_v61, %v11328_v58 }
 0x303   : > { %2827 = vst.msk [vmem:[#allocation2 + $0x98] sm:$0xff] %vm2808_vm1, %v2762_v20  ;;  %v1374_v59 = vadd.f32 %v11329_v28, %v931_v6  ;;  %v11330_v20 = vld [vmem:[#allocation17_spill] sm:$0xff] }
 0x304   : > { %v1375_v31 = vadd.f32 %v11330_v20, %v932_v9  ;;  %v11334_v9 = vld [vmem:[#allocation21_spill] sm:$0xff] }
 0x305   : > { %v1817_v37 = vadd.f32 %v8261_v15, %v1374_v59 }
 0x306   : > { %v2500_v35 = vpop.f32.mrf.mxu0  ;;  %v2613_v49 = vpop.f32.mrf.mxu1  ;;  %v1818_v11 = vadd.f32 %v8263_v50, %v1375_v31  ;;  %v2329_v31 = vld [vmem:[%s7330_s21 + $0xec] sm:$0xff] }
 0x307   : > { %v8584_v43 = vadd.f32 %v2500_v35, %v2256_v12  ;;  %v2700_v29 = vadd.f32 %v2613_v49, %v2257_v13  ;;  %v8614_v12 = vpop.f32.mrf.mxu2  ;;  %v8616_v13 = vpop.f32.mrf.mxu3  ;;  %v11331_v35 = vld [vmem:[#allocation19_spill] sm:$0xff] }
 0x308   : > { %v934_v49 = vadd.f32 %v8029_v3, %v11331_v35  ;;  %v2261_v39 = vadd.f32 %v8515_v22, %v1818_v11  ;;  %v11337_v11 = vld [vmem:[#allocation24_spill] sm:$0xff] }
 0x309   : > { %v2763_v27 = vmax.f32 %v8584_v43, 0.0  ;;  %v2764_v55 = vmax.f32 %v2700_v29, 0.0  ;;  %6407 = vmatmul.msk.f32.gmra.mxu0 %vm579_vm0, %v2326_v8  ;;  %6439 = vmatmul.msk.f32.gmra.mxu1 %vm579_vm0, %v2326_v8  ;;  %v2260_v8 = vadd.f32 %v8513_v23, %v1817_v37  ;;  %v11412_v43 = vld [vmem:[#allocation72_spill] sm:$0xff] }
 0x30b   : > { %2829 = vst.msk [vmem:[#allocation2 + $0xa8] sm:$0xff] %vm2808_vm1, %v2764_v55  ;;  %v11332_v55 = vld [vmem:[#allocation18_spill] sm:$0xff] }
 0x30c   : > { %v933_v15 = vadd.f32 %v8033_v61, %v11332_v55 }
 0x30e   : > { %v2503_v34 = vpop.f32.mrf.mxu0  ;;  %v2616_v1 = vpop.f32.mrf.mxu1  ;;  %v1376_v4 = vadd.f32 %v11333_v7, %v933_v15 }
 0x30f   : > { %v8605_v36 = vadd.f32 %v2503_v34, %v2258_v19  ;;  %v2702_v54 = vadd.f32 %v2616_v1, %v2259_v24  ;;  %v1377_v19 = vadd.f32 %v11334_v9, %v934_v49  ;;  %v11335_v1 = vld [vmem:[#allocation23_spill] sm:$0xff]  ;;  %v8642_v28 = vpop.f32.mrf.mxu3  ;;  %v11338_v49 = vld [vmem:[#allocation25_spill] sm:$0xff]  ;;  %v11340_v9 = vld [vmem:[#allocation26_spill] sm:$0xff] }
 0x310   : > { %v1819_v23 = vadd.f32 %v8289_v40, %v1376_v4  ;;  %v2330_v4 = vld [vmem:[%s7330_s21 + $0xf4] sm:$0xff] }
 0x311   : > { %v2765_v10 = vmax.f32 %v8605_v36, 0.0  ;;  %v2766_v14 = vmax.f32 %v2702_v54, 0.0  ;;  %6408 = vmatmul.msk.f32.gmra.mxu0 %vm579_vm0, %v2327_v0  ;;  %6440 = vmatmul.msk.f32.gmra.mxu1 %vm579_vm0, %v2327_v0  ;;  %v1820_v22 = vadd.f32 %v8291_v56, %v1377_v19  ;;  %v936_v0 = vadd.f32 %v8029_v3, %v11335_v1  ;;  %v8640_v54 = vpop.f32.mrf.mxu2 }
 0x312   : > { %v2262_v58 = vadd.f32 %v8539_v47, %v1819_v23  ;;  %v937_v19 = vadd.f32 %v8033_v61, %v11340_v9 }
 0x313   : > { %2831 = vst.msk [vmem:[#allocation2 + $0xb8] sm:$0xff] %vm2808_vm1, %v2766_v14  ;;  %v2263_v6 = vadd.f32 %v8541_v17, %v1820_v22  ;;  %v11336_v14 = vld [vmem:[#allocation22_spill] sm:$0xff]  ;;  %v1379_v47 = vadd.f32 %v11338_v49, %v936_v0  ;;  %v11341_v22 = vld [vmem:[#allocation28_spill] sm:$0xff]  ;;  %v11342_v0 = vld [vmem:[#allocation29_spill] sm:$0xff] }
 0x314   : > { %v935_v40 = vadd.f32 %v8033_v61, %v11336_v14  ;;  %v1380_v1 = vadd.f32 %v11341_v22, %v937_v19  ;;  %v11344_v49 = vld [vmem:[#allocation30_spill] sm:$0xff] }
 0x316   : > { %v2506_v29 = vpop.f32.mrf.mxu0  ;;  %v2619_v53 = vpop.f32.mrf.mxu1  ;;  %v1378_v35 = vadd.f32 %v11337_v11, %v935_v40 }
 0x317   : > { %v8626_v50 = vadd.f32 %v2506_v29, %v2260_v8  ;;  %v2704_v18 = vadd.f32 %v2619_v53, %v2261_v39  ;;  %v1822_v29 = vadd.f32 %v8301_v33, %v1379_v47  ;;  %v11339_v53 = vld [vmem:[#allocation27_spill] sm:$0xff]  ;;  %v939_v47 = vadd.f32 %v8033_v61, %v11344_v49 }
 0x318   : > { %v1821_v39 = vadd.f32 %v8299_v44, %v1378_v35  ;;  %v8666_v44 = vpop.f32.mrf.mxu3  ;;  %v2331_v35 = vld [vmem:[%s7330_s21 + $0xfc] sm:$0xf]  ;;  %s513_s21 = sand.u32 1, %s7038_s22  }
 0x319   : > { %v2767_v24 = vmax.f32 %v8626_v50, 0.0  ;;  %v2768_v34 = vmax.f32 %v2704_v18, 0.0  ;;  %6409 = vmatmul.msk.f32.gmra.mxu0 %vm579_vm0, %v2328_v60  ;;  %6441 = vmatmul.msk.f32.gmra.mxu1 %vm579_vm0, %v2328_v60  ;;  %v938_v60 = vadd.f32 %v8029_v3, %v11339_v53  ;;  %v2265_v15 = vadd.f32 %v8565_v48, %v1822_v29  ;;  %v11346_v29 = vld [vmem:[#allocation33_spill] sm:$0xff]  ;;  %v11410_v50 = vld [vmem:[#allocation71_spill] sm:$0xff]  ;;  %s6026_s28 = sshll.u32 %s513_s21, 3  ;;  %s5948_s24 = scalar_lea.sflag [#allocation6], %s513_s21 }
 0x31a   : > { %v2264_v55 = vadd.f32 %v8563_v5, %v1821_v39  ;;  %v11345_v39 = vld [vmem:[#allocation32_spill] sm:$0xff]  ;;  %s515_s20 = scalar_lea.vmem [#allocation5], %s6026_s28 }
 0x31b   : > { %2833 = vst.msk [vmem:[#allocation2 + $0xc8] sm:$0xff] %vm2808_vm1, %v2768_v34  ;;  %v8664_v34 = vpop.f32.mrf.mxu2  ;;  %v1381_v5 = vadd.f32 %v11342_v0, %v938_v60  ;;  %s5960_s18 = sshll.u32 %s515_s20, 4  ;;  %s5961_s18 = int_to_ptr.vmem [resolvable:$true] %s5960_s18 }
 0x31e   : > { %v2509_v59 = vpop.f32.mrf.mxu0  ;;  %v2622_v20 = vpop.f32.mrf.mxu1 }
 0x31f   : > { %v8647_v56 = vadd.f32 %v2509_v59, %v2262_v58  ;;  %v2706_v37 = vadd.f32 %v2622_v20, %v2263_v6  ;;  %v1823_v6 = vadd.f32 %v8309_v62, %v1380_v1  ;;  %v1824_v59 = vadd.f32 %v8311_v63, %v1381_v5  ;;  %v11343_v20 = vld [vmem:[#allocation31_spill] sm:$0xff]  ;;  %v11349_v5 = vld [vmem:[#allocation36_spill] sm:$0xff] }
 0x320   : > { %v1382_v63 = vadd.f32 %v11345_v39, %v939_v47  ;;  %v11352_v39 = vld [vmem:[#allocation38_spill] sm:$0xff] }
 0x321   : > { %v2769_v17 = vmax.f32 %v8647_v56, 0.0  ;;  %v2770_v8 = vmax.f32 %v2706_v37, 0.0  ;;  %6410 = vmatmul.msk.f32.gmra.mxu0 %vm579_vm0, %v2329_v31  ;;  %6442 = vmatmul.msk.f32.gmra.mxu1 %vm579_vm0, %v2329_v31  ;;  %v940_v31 = vadd.f32 %v8029_v3, %v11343_v20  ;;  %v2266_v14 = vadd.f32 %v8588_v2, %v1823_v6  ;;  %v11350_v6 = vld [vmem:[#allocation37_spill] sm:$0xff] }
 0x322   : > { %v2267_v40 = vadd.f32 %v8590_v25, %v1824_v59 }
 0x323   : > { %2835 = vst.msk [vmem:[#allocation2 + $0xd8] sm:$0xff] %vm2808_vm1, %v2770_v8  ;;  %v1383_v53 = vadd.f32 %v11346_v29, %v940_v31  ;;  %v8689_v60 = vpop.f32.mrf.mxu2 }
 0x326   : > { %v2512_v18 = vpop.f32.mrf.mxu0  ;;  %v2625_v7 = vpop.f32.mrf.mxu1 }
 0x327   : > { %v8668_v33 = vadd.f32 %v2512_v18, %v2264_v55  ;;  %v2708_v23 = vadd.f32 %v2625_v7, %v2265_v15  ;;  %v8691_v55 = vpop.f32.mrf.mxu3  ;;  %v1825_v15 = vadd.f32 %v8319_v38, %v1382_v63  ;;  %v1826_v18 = vadd.f32 %v8321_v51, %v1383_v53  ;;  %v11347_v7 = vld [vmem:[#allocation35_spill] sm:$0xff]  ;;  %v11348_v38 = vld [vmem:[#allocation34_spill] sm:$0xff] }
 0x328   : > { %v941_v51 = vadd.f32 %v8033_v61, %v11348_v38  ;;  %v943_v63 = vadd.f32 %v8033_v61, %v11352_v39  ;;  %v11361_v39 = vld [vmem:[#allocation44_spill] sm:$0xff] }
 0x329   : > { %v2771_v48 = vmax.f32 %v8668_v33, 0.0  ;;  %v2772_v58 = vmax.f32 %v2708_v23, 0.0  ;;  %6411 = vmatmul.msk.f32.gmra.mxu0 %vm579_vm0, %v2330_v4  ;;  %6443 = vmatmul.msk.f32.gmra.mxu1 %vm579_vm0, %v2330_v4  ;;  %v942_v4 = vadd.f32 %v8029_v3, %v11347_v7  ;;  %v2268_v9 = vadd.f32 %v8614_v12, %v1825_v15  ;;  %v11354_v15 = vld [vmem:[#allocation41_spill] sm:$0xff]  ;;  %v11376_v7 = vld [vmem:[#allocation122_spill] sm:$0xff] }
 0x32a   : > { %v2269_v19 = vadd.f32 %v8616_v13, %v1826_v18  ;;  %v8827_v13 = vld [vmem:[#allocation2 + $0x48] sm:$0xff] }
 0x32b   : > { %2837 = vst.msk [vmem:[#allocation2 + $0xe8] sm:$0xff] %vm2808_vm1, %v2772_v58  ;;  %v1384_v58 = vadd.f32 %v11349_v5, %v941_v51  ;;  %v1385_v12 = vadd.f32 %v11350_v6, %v942_v4  ;;  %v8758_v51 = vld [vmem:[#allocation2 + $0xb8] sm:$0xff] }
 0x32d   : > { %v1827_v20 = vadd.f32 %v8326_v16, %v1384_v58  ;;  %v1828_v31 = vadd.f32 %v8328_v41, %v1385_v12 }
 0x32e   : > { %v2515_v37 = vpop.f32.mrf.mxu0  ;;  %v2628_v11 = vpop.f32.mrf.mxu1 }
 0x32f   : > { %v8685_v8 = vadd.f32 %v2515_v37, %v2266_v14  ;;  %v2710_v62 = vadd.f32 %v2628_v11, %v2267_v40  ;;  %v8720_v14 = vpop.f32.mrf.mxu2  ;;  %v8722_v40 = vpop.f32.mrf.mxu3  ;;  %v11351_v11 = vld [vmem:[#allocation39_spill] sm:$0xff]  ;;  %v2270_v16 = vadd.f32 %v8640_v54, %v1827_v20  ;;  %v2271_v41 = vadd.f32 %v8642_v28, %v1828_v31  ;;  %v11353_v54 = vld [vmem:[#allocation40_spill] sm:$0xff] }
 0x330   : > { %v1386_v28 = vadd.f32 %v11353_v54, %v943_v63  ;;  %v8772_v20 = vld [vmem:[#allocation2 + $0xa8] sm:$0xff]  ;;  %v11358_v31 = vmax.f32 %v8507_v21, 0.0 }
 0x331   : > { %v2773_v2 = vmax.f32 %v8685_v8, 0.0  ;;  %v2774_v25 = vmax.f32 %v2710_v62, 0.0  ;;  %6412 = vmatmul.msk.f32.gmra.mxu0 %vm579_vm0, %v2331_v35  ;;  %6444 = vmatmul.msk.f32.gmra.mxu1 %vm579_vm0, %v2331_v35  ;;  %v944_v35 = vadd.f32 %v8029_v3, %v11351_v11 }
 0x332   : > { %v8734_v49 = vld [vmem:[#allocation2 + $0xe8] sm:$0xff] }
 0x333   : > { %3015 = vmatpush.msra.mxu2 %v2773_v2  ;;  %2839 = vst.msk [vmem:[#allocation2 + $0xf8] sm:$0xff] %vm2808_vm1, %v2774_v25  ;;  %v8743_v25 = vld [vmem:[#allocation2 + $0xd8] sm:$0xff]  ;;  %v1387_v18 = vadd.f32 %v11354_v15, %v944_v35 }
 0x335   : > { %3016 = vmatpush.msra.mxu2 %v2771_v48 }
 0x336   : > { %v2518_v23 = vpop.f32.mrf.mxu0  ;;  %v2631_v22 = vpop.f32.mrf.mxu1 }
 0x337   : > { %v8709_v1 = vadd.f32 %v2518_v23, %v2268_v9  ;;  %v2712_v0 = vadd.f32 %v2631_v22, %v2269_v19  ;;  %3017 = vmatpush.msra.mxu2 %v2769_v17  ;;  %v8751_v9 = vld [vmem:[#allocation2 + $0xc8] sm:$0xff]  ;;  %v11355_v19 = vld [vmem:[#allocation94_spill] sm:$0xff]  ;;  %v8768_v12 = vpop.f32.mrf.mxu2 }
 0x338   : > { %v1829_v23 = vadd.f32 %v11355_v19, %v1386_v28  ;;  %v11356_v22 = vld [vmem:[#allocation95_spill] sm:$0xff]  ;;  %v11364_v19 = vld [vmem:[#allocation96_spill] sm:$0xff] }
 0x339   : > { %v2776_v59 = vmax.f32 %v2712_v0, 0.0  ;;  %3018 = vmatpush.msra.mxu2 %v2767_v24  ;;  %v1830_v38 = vadd.f32 %v11356_v22, %v1387_v18  ;;  %v11357_v0 = vld [vmem:[#allocation43_spill] sm:$0xff]  ;;  %v11365_v22 = vld [vmem:[#allocation97_spill] sm:$0xff] }
 0x33a   : > { %v8724_v37 = vld [vmem:[#allocation2 + $0xf8] sm:$0xff]  ;;  %v946_v5 = vadd.f32 %v8029_v3, %v11357_v0  ;;  %v2272_v58 = vadd.f32 %v8664_v34, %v1829_v23  ;;  %v8789_v18 = vld [vmem:[#allocation2 + $0x88] sm:$0xff] }
 0x33b   : > { %3019 = vmatpush.msra.mxu2 %v2765_v10  ;;  %2841 = vst.msk [vmem:[#allocation2 + $0x108] sm:$0xff] %vm2808_vm1, %v2776_v59  ;;  %3440 = vmatpush.msrb.mxu0 %v8724_v37  ;;  %v2273_v6 = vadd.f32 %v8666_v44, %v1830_v38  ;;  %v8770_v59 = vpop.f32.mrf.mxu3  ;;  %v8781_v44 = vld [vmem:[#allocation2 + $0x98] sm:$0xff] }
 0x33c   : > { %v8796_v0 = vld [vmem:[#allocation2 + $0x78] sm:$0xff] }
 0x33d   : > { %3020 = vmatpush.msra.mxu2 %v2763_v27  ;;  %3441 = vmatpush.msrb.mxu0 %v8734_v49 }
 0x33e   : > { %v2521_v47 = vpop.f32.mrf.mxu0  ;;  %v2634_v62 = vpop.f32.mrf.mxu1 }
 0x33f   : > { %v8741_v29 = vadd.f32 %v2521_v47, %v2270_v16  ;;  %v2714_v53 = vadd.f32 %v2634_v62, %v2271_v41  ;;  %3021 = vmatpush.msra.mxu2 %v2761_v57  ;;  %3442 = vmatpush.msrb.mxu0 %v8743_v25  ;;  %v11359_v16 = vld [vmem:[#allocation42_spill] sm:$0xff]  ;;  %v11360_v62 = vmax.f32 %v8494_v52, 0.0 }
 0x340   : > { %v945_v41 = vadd.f32 %v8033_v61, %v11359_v16  ;;  %v8806_v16 = vld [vmem:[#allocation2 + $0x68] sm:$0xff] }
 0x341   : > { %v2778_v4 = vmax.f32 %v2714_v53, 0.0  ;;  %3022 = vmatpush.msra.mxu2 %v2759_v32  ;;  %3443 = vmatpush.msrb.mxu0 %v8751_v9  ;;  %v11362_v53 = vld [vmem:[#allocation45_spill] sm:$0xff] }
 0x342   : > { %v1388_v63 = vadd.f32 %v11361_v39, %v945_v41  ;;  %v1389_v54 = vadd.f32 %v11362_v53, %v946_v5  ;;  %v11368_v5 = vld [vmem:[#allocation47_spill] sm:$0xff]  ;;  %v11369_v41 = vld [vmem:[#allocation124_spill] sm:$0xff] }
 0x343   : > { %3023 = vmatpush.msra.mxu2 %v2757_v42  ;;  %2843 = vst.msk [vmem:[#allocation2 + $0x118] sm:$0xff] %vm2808_vm1, %v2778_v4  ;;  %3444 = vmatpush.msrb.mxu0 %v8758_v51  ;;  %v11363_v4 = vmax.f32 %v8485_v26, 0.0 }
 0x344   : > { %v1831_v23 = vadd.f32 %v11364_v19, %v1388_v63  ;;  %v1832_v38 = vadd.f32 %v11365_v22, %v1389_v54  ;;  %v11371_v63 = vld [vmem:[#allocation46_spill] sm:$0xff]  ;;  %v8813_v54 = vpop.f32.mrf.mxu2  ;;  %v11372_v19 = vld [vmem:[#allocation123_spill] sm:$0xff]  ;;  %v11374_v22 = vld [vmem:[#allocation48_spill] sm:$0xff] }
 0x345   : > { %3024 = vmatpush.msra.mxu2 %v11358_v31  ;;  %3445 = vmatpush.msrb.mxu0 %v8772_v20  ;;  %v948_v31 = vadd.f32 %v8029_v3, %v11368_v5  ;;  %v947_v53 = vadd.f32 %v8033_v61, %v11371_v63 }
 0x346   : > { %v2524_v11 = vpop.f32.mrf.mxu0  ;;  %v2637_v35 = vpop.f32.mrf.mxu1 }
 0x347   : > { %v8779_v47 = vadd.f32 %v2524_v11, %v2272_v58  ;;  %v2716_v34 = vadd.f32 %v2637_v35, %v2273_v6  ;;  %3025 = vmatpush.msra.mxu2 %v11360_v62  ;;  %3446 = vmatpush.msrb.mxu0 %v8781_v44  ;;  %v11366_v58 = vld [vmem:[#allocation125_spill] sm:$0xff]  ;;  %v2274_v11 = vadd.f32 %v8689_v60, %v1831_v23  ;;  %v11373_v23 = vmax.f32 %v11372_v19, 0.0 }
 0x348   : > { %v11367_v6 = vmax.f32 %v11366_v58, 0.0  ;;  %v2275_v35 = vadd.f32 %v8691_v55, %v1832_v38  ;;  %v8819_v55 = vld [vmem:[#allocation2 + $0x58] sm:$0xff]  ;;  %v1390_v38 = vadd.f32 %v11374_v22, %v947_v53  ;;  %v8850_v22 = vld [vmem:[#allocation2 + $0x28] sm:$0xff] }
 0x349   : > { %v2780_v15 = vmax.f32 %v2716_v34, 0.0  ;;  %3026 = vmatpush.msra.mxu2 %v11363_v4  ;;  %3447 = vmatpush.msrb.mxu0 %v8789_v18  ;;  %v11370_v34 = vmax.f32 %v11369_v41, 0.0  ;;  %v8840_v19 = vld [vmem:[#allocation2 + $0x38] sm:$0xff] }
 0x34b   : > { %3027 = vmatpush.msra.mxu2 %v11367_v6  ;;  %2845 = vst.msk [vmem:[#allocation2 + $0x128] sm:$0xff] %vm2808_vm1, %v2780_v15  ;;  %3448 = vmatpush.msrb.mxu0 %v8796_v0  ;;  %v8815_v15 = vpop.f32.mrf.mxu3  ;;  %v11375_v6 = vld [vmem:[#allocation49_spill] sm:$0xff] }
 0x34c   : > { %v1391_v5 = vadd.f32 %v11375_v6, %v948_v31  ;;  %v11379_v31 = vld [vmem:[#allocation99_spill] sm:$0xff] }
 0x34d   : > { %3028 = vmatpush.msra.mxu2 %v11370_v34  ;;  %3449 = vmatpush.msrb.mxu0 %v8806_v16 }
 0x34e   : > { %v2527_v62 = vpop.f32.mrf.mxu0  ;;  %v2640_v39 = vpop.f32.mrf.mxu1  ;;  %v1834_v53 = vadd.f32 %v11379_v31, %v1391_v5  ;;  %v11381_v5 = vld [vmem:[#allocation50_spill] sm:$0xff] }
 0x34f   : > { %v8817_v4 = vadd.f32 %v2527_v62, %v2274_v11  ;;  %v2718_v60 = vadd.f32 %v2640_v39, %v2275_v35  ;;  %3029 = vmatpush.msra.mxu2 %v11373_v23  ;;  %3450 = vmatpush.msrb.mxu0 %v8819_v55  ;;  %v11377_v11 = vmax.f32 %v11376_v7, 0.0  ;;  %v8834_v35 = vld [vmem:[%s11172_s3] sm:$0xff]  ;;  %v11380_v7 = vld [vmem:[#allocation51_spill] sm:$0xff] }
 0x350   : > { %v11378_v62 = vld [vmem:[#allocation98_spill] sm:$0xff] }
 0x351   : > { %v2782_v63 = vmax.f32 %v2718_v60, 0.0  ;;  %3030 = vmatpush.msra.mxu2 %v11377_v11  ;;  %3451 = vmatpush.msrb.mxu0 %v8827_v13  ;;  %v1833_v39 = vadd.f32 %v11378_v62, %v1390_v38  ;;  %v950_v60 = vadd.f32 %v8029_v3, %v11380_v7  ;;  %v2876_v62 = vld [vmem:[#allocation2 + $0x18] sm:$0xff] }
 0x352   : > { %3031 = vmatmul.f32.vlgmr.msra.gmra.mxu2 %v8834_v35 }
 0x353   : > { %3133 = vmatpush.msrb.mxu2 %v8724_v37  ;;  %2847 = vst.msk [vmem:[#allocation2 + $0x138] sm:$0xff] %vm2808_vm1, %v2782_v63  ;;  %3452 = vmatpush.msrb.mxu0 %v8840_v19  ;;  %v2276_v23 = vadd.f32 %v8720_v14, %v1833_v39  ;;  %v2277_v37 = vadd.f32 %v8722_v40, %v1834_v53  ;;  %v11382_v14 = vld [vmem:[#allocation52_spill] sm:$0xff]  ;;  %v11383_v39 = vld [vmem:[#allocation53_spill] sm:$0xff]  ;;  %v2096_v53 = vpop.f32.mrf.mxu2  ;;  %v2209_v7 = vpop.f32.mrf.mxu3 }
 0x354   : > { %v949_v63 = vadd.f32 %v8033_v61, %v11381_v5  ;;  %v1393_v31 = vadd.f32 %v11383_v39, %v950_v60 }
 0x355   : > { %3134 = vmatpush.msrb.mxu2 %v8734_v49  ;;  %3453 = vmatpush.msrb.mxu0 %v8850_v22 }
 0x356   : > { %v2530_v38 = vpop.f32.mrf.mxu0  ;;  %v2643_v6 = vpop.f32.mrf.mxu1  ;;  %v1392_v40 = vadd.f32 %v11382_v14, %v949_v63 }
 0x357   : > { %3135 = vmatpush.msrb.mxu2 %v8743_v25  ;;  %v8856_v11 = vadd.f32 %v2530_v38, %v2276_v23  ;;  %v2720_v49 = vadd.f32 %v2643_v6, %v2277_v37  ;;  %3454 = vmatpush.msrb.mxu0 %v2876_v62  ;;  %v2874_v25 = vld [vmem:[#allocation2 + $0x8] sm:$0xff]  ;;  %v11384_v23 = vld [vmem:[#allocation100_spill] sm:$0xff]  ;;  %v11385_v37 = vld [vmem:[#allocation101_spill] sm:$0xff] }
 0x358   : > { %v1835_v38 = vadd.f32 %v11384_v23, %v1392_v40  ;;  %v1836_v6 = vadd.f32 %v11385_v37, %v1393_v31  ;;  %v11389_v23 = vld [vmem:[#allocation57_spill] sm:$0xff] }
 0x359   : > { %3136 = vmatpush.msrb.mxu2 %v8751_v9  ;;  %v2784_v34 = vmax.f32 %v2720_v49, 0.0  ;;  %3455 = vmatpush.msrb.mxu0 %v2874_v25  ;;  %v11386_v9 = vld [vmem:[#allocation55_spill] sm:$0xff] }
 0x35a   : > { %v952_v60 = vadd.f32 %v8029_v3, %v11386_v9  ;;  %v2278_v5 = vadd.f32 %v8768_v12, %v1835_v38  ;;  %v2279_v63 = vadd.f32 %v8770_v59, %v1836_v6  ;;  %v11390_v59 = vld [vmem:[#allocation102_spill] sm:$0xff] }
 0x35b   : > { %3137 = vmatpush.msrb.mxu2 %v8758_v51  ;;  %2849 = vst.msk [vmem:[#allocation2 + $0x148] sm:$0xff] %vm2808_vm1, %v2784_v34  ;;  %v11387_v51 = vld [vmem:[#allocation54_spill] sm:$0xff]  ;;  %v2099_v28 = vpop.f32.mrf.mxu2 }
 0x35c   : > { %v951_v40 = vadd.f32 %v8033_v61, %v11387_v51  ;;  %v1395_v37 = vadd.f32 %v11389_v23, %v952_v60  ;;  %v2212_v51 = vpop.f32.mrf.mxu3  ;;  %v11395_v23 = vld [vmem:[#allocation61_spill] sm:$0xff] }
 0x35d   : > { %3138 = vmatpush.msrb.mxu2 %v8772_v20  ;;  %v11388_v20 = vld [vmem:[#allocation56_spill] sm:$0xff] }
 0x35e   : > { %v2533_v49 = vpop.f32.mrf.mxu0  ;;  %v2646_v14 = vpop.f32.mrf.mxu1  ;;  %v1394_v34 = vadd.f32 %v11388_v20, %v951_v40 }
 0x35f   : > { %3139 = vmatpush.msrb.mxu2 %v8781_v44  ;;  %v8874_v39 = vadd.f32 %v2533_v49, %v2278_v5  ;;  %v2722_v31 = vadd.f32 %v2646_v14, %v2279_v63  ;;  %v11391_v44 = vld [vmem:[#allocation103_spill] sm:$0xff] }
 0x360   : > { %v1837_v6 = vadd.f32 %v11390_v59, %v1394_v34  ;;  %v1838_v9 = vadd.f32 %v11391_v44, %v1395_v37  ;;  %v11398_v44 = vld [vmem:[#allocation63_spill] sm:$0xff] }
 0x361   : > { %3140 = vmatpush.msrb.mxu2 %v8789_v18  ;;  %v2785_v12 = vmax.f32 %v8874_v39, 0.0  ;;  %v2786_v38 = vmax.f32 %v2722_v31, 0.0  ;;  %v11392_v18 = vld [vmem:[#allocation59_spill] sm:$0xff] }
 0x362   : > { %v954_v5 = vadd.f32 %v8029_v3, %v11392_v18  ;;  %v2280_v60 = vadd.f32 %v8813_v54, %v1837_v6  ;;  %v2281_v63 = vadd.f32 %v8815_v15, %v1838_v9  ;;  %v11396_v15 = vld [vmem:[#allocation104_spill] sm:$0xff] }
 0x363   : > { %3141 = vmatpush.msrb.mxu2 %v8796_v0  ;;  %2851 = vst.msk [vmem:[#allocation2 + $0x158] sm:$0xff] %vm2808_vm1, %v2786_v38  ;;  %v11393_v0 = vld [vmem:[#allocation58_spill] sm:$0xff] }
 0x364   : > { %v953_v40 = vadd.f32 %v8033_v61, %v11393_v0  ;;  %v1397_v37 = vadd.f32 %v11395_v23, %v954_v5  ;;  %v2215_v5 = vpop.f32.mrf.mxu3 }
 0x365   : > { %3142 = vmatpush.msrb.mxu2 %v8806_v16  ;;  %v11394_v16 = vld [vmem:[#allocation60_spill] sm:$0xff] }
 0x366   : > { %v2536_v49 = vpop.f32.mrf.mxu0  ;;  %v2649_v14 = vpop.f32.mrf.mxu1  ;;  %v1396_v34 = vadd.f32 %v11394_v16, %v953_v40 }
 0x367   : > { %3143 = vmatpush.msrb.mxu2 %v8819_v55  ;;  %v8892_v31 = vadd.f32 %v2536_v49, %v2280_v60  ;;  %v2724_v20 = vadd.f32 %v2649_v14, %v2281_v63  ;;  %v11397_v55 = vld [vmem:[#allocation105_spill] sm:$0xff]  ;;  %v2102_v60 = vpop.f32.mrf.mxu2  ;;  %v11399_v14 = vld [vmem:[#allocation62_spill] sm:$0xff] }
 0x368   : > { %v1839_v59 = vadd.f32 %v11396_v15, %v1396_v34  ;;  %v1840_v6 = vadd.f32 %v11397_v55, %v1397_v37 }
 0x369   : > { %3144 = vmatpush.msrb.mxu2 %v8827_v13  ;;  %v2787_v54 = vmax.f32 %v8892_v31, 0.0  ;;  %v2788_v38 = vmax.f32 %v2724_v20, 0.0  ;;  %v956_v13 = vadd.f32 %v8029_v3, %v11398_v44  ;;  %v11400_v20 = vld [vmem:[#allocation64_spill] sm:$0xff]  ;;  %v9220_v31 = vld [vmem:[%s11172_s3 + $0x88] sm:$0xff] }
 0x36a   : > { %v2282_v9 = vadd.f32 %v2096_v53, %v1839_v59  ;;  %v2283_v18 = vadd.f32 %v2209_v7, %v1840_v6  ;;  %v11402_v7 = vld [vmem:[#allocation106_spill] sm:$0xff] }
 0x36b   : > { %3145 = vmatpush.msrb.mxu2 %v8840_v19  ;;  %2853 = vst.msk [vmem:[#allocation2 + $0x168] sm:$0xff] %vm2808_vm1, %v2788_v38  ;;  %v955_v19 = vadd.f32 %v8033_v61, %v11399_v14 }
 0x36d   : > { %3146 = vmatpush.msrb.mxu2 %v8850_v22  ;;  %v1398_v16 = vadd.f32 %v11400_v20, %v955_v19  ;;  %v11401_v22 = vld [vmem:[#allocation65_spill] sm:$0xff] }
 0x36e   : > { %v2539_v63 = vpop.f32.mrf.mxu0  ;;  %v2652_v49 = vpop.f32.mrf.mxu1  ;;  %v1399_v34 = vadd.f32 %v11401_v22, %v956_v13  ;;  %v11409_v19 = vld [vmem:[#allocation109_spill] sm:$0xff] }
 0x36f   : > { %3147 = vmatpush.msrb.mxu2 %v2876_v62  ;;  %v8907_v0 = vadd.f32 %v2539_v63, %v2282_v9  ;;  %v2726_v40 = vadd.f32 %v2652_v49, %v2283_v18  ;;  %v1841_v37 = vadd.f32 %v11402_v7, %v1398_v16  ;;  %v11403_v62 = vld [vmem:[#allocation107_spill] sm:$0xff]  ;;  %v2105_v13 = vpop.f32.mrf.mxu2  ;;  %v2218_v9 = vpop.f32.mrf.mxu3  ;;  %v11408_v49 = vld [vmem:[#allocation108_spill] sm:$0xff] }
 0x370   : > { %v1842_v38 = vadd.f32 %v11403_v62, %v1399_v34 }
 0x371   : > { %3148 = vmatpush.msrb.mxu2 %v2874_v25  ;;  %v2789_v23 = vmax.f32 %v8907_v0, 0.0  ;;  %v2790_v53 = vmax.f32 %v2726_v40, 0.0  ;;  %v11404_v25 = vld [vmem:[#allocation67_spill] sm:$0xff]  ;;  %v2284_v59 = vadd.f32 %v2099_v28, %v1841_v37  ;;  %v11407_v28 = vld [vmem:[#allocation69_spill] sm:$0xff]  ;;  %v9204_v0 = vld [vmem:[%s11172_s3 + $0xb0] sm:$0xff] }
 0x372   : > { %v958_v15 = vadd.f32 %v8029_v3, %v11404_v25  ;;  %v2285_v55 = vadd.f32 %v2212_v51, %v1842_v38  ;;  %v11413_v37 = vld [vmem:[#allocation73_spill] sm:$0xff]  ;;  %v11414_v38 = vld [vmem:[#allocation110_spill] sm:$0xff] }
 0x373   : > { %3322 = vmatpush.msra.mxu2 %v2773_v2  ;;  %2855 = vst.msk [vmem:[#allocation2 + $0x178] sm:$0xff] %vm2808_vm1, %v2790_v53  ;;  %v11405_v2 = vld [vmem:[#allocation66_spill] sm:$0xff] }
 0x374   : > { %v957_v44 = vadd.f32 %v8033_v61, %v11405_v2  ;;  %v1401_v51 = vadd.f32 %v11407_v28, %v958_v15  ;;  %v11415_v15 = vld [vmem:[#allocation111_spill] sm:$0xff]  ;;  %v11418_v2 = vmax.f32 %v8494_v52, 0.0  ;;  %v11421_v28 = vld [vmem:[#allocation76_spill] sm:$0xff]  ;;  %v11423_v52 = vmax.f32 %v11366_v58, 0.0 }
 0x375   : > { %3323 = vmatpush.msra.mxu2 %v2771_v48  ;;  %v11406_v48 = vld [vmem:[#allocation68_spill] sm:$0xff] }
 0x376   : > { %v2542_v6 = vpop.f32.mrf.mxu0  ;;  %v2655_v8 = vpop.f32.mrf.mxu1  ;;  %v1400_v63 = vadd.f32 %v11406_v48, %v957_v44  ;;  %v1844_v40 = vadd.f32 %v11409_v19, %v1401_v51 }
 0x377   : > { %3324 = vmatpush.msra.mxu2 %v2769_v17  ;;  %v8925_v18 = vadd.f32 %v2542_v6, %v2284_v59  ;;  %v2728_v33 = vadd.f32 %v2655_v8, %v2285_v55  ;;  %v11416_v55 = vmax.f32 %v8507_v21, 0.0  ;;  %v11420_v21 = vmax.f32 %v8485_v26, 0.0  ;;  %v11427_v26 = vld [vmem:[#allocation79_spill] sm:$0xff] }
 0x378   : > { %v1843_v14 = vadd.f32 %v11408_v49, %v1400_v63  ;;  %v2287_v16 = vadd.f32 %v2215_v5, %v1844_v40  ;;  %v2221_v5 = vpop.f32.mrf.mxu3  ;;  %v11425_v40 = vld [vmem:[#allocation113_spill] sm:$0xff] }
 0x379   : > { %3325 = vmatpush.msra.mxu2 %v2767_v24  ;;  %v2791_v56 = vmax.f32 %v8925_v18, 0.0  ;;  %v2792_v17 = vmax.f32 %v2728_v33, 0.0  ;;  %v960_v24 = vadd.f32 %v8029_v3, %v11410_v50 }
 0x37a   : > { %v2286_v20 = vadd.f32 %v2102_v60, %v1843_v14  ;;  %v2108_v60 = vpop.f32.mrf.mxu2  ;;  %v11424_v14 = vld [vmem:[#allocation112_spill] sm:$0xff] }
 0x37b   : > { %3326 = vmatpush.msra.mxu2 %v2765_v10  ;;  %2857 = vst.msk [vmem:[#allocation2 + $0x188] sm:$0xff] %vm2808_vm1, %v2792_v17  ;;  %v11411_v10 = vld [vmem:[#allocation70_spill] sm:$0xff]  ;;  %v1403_v62 = vadd.f32 %v11413_v37, %v960_v24  ;;  %v11422_v17 = vld [vmem:[#allocation77_spill] sm:$0xff] }
 0x37c   : > { %v959_v34 = vadd.f32 %v8033_v61, %v11411_v10 }
 0x37d   : > { %3327 = vmatpush.msra.mxu2 %v2763_v27  ;;  %v1846_v59 = vadd.f32 %v11415_v15, %v1403_v62 }
 0x37e   : > { %v2545_v22 = vpop.f32.mrf.mxu0  ;;  %v2658_v36 = vpop.f32.mrf.mxu1  ;;  %v1402_v27 = vadd.f32 %v11412_v43, %v959_v34  ;;  %v6982_v34 = vld [vmem:[#allocation2 + $0x10] sm:$0xff]  ;;  %v11428_v43 = vld [vmem:[#allocation78_spill] sm:$0xff] }
 0x37f   : > { %3328 = vmatpush.msra.mxu2 %v2761_v57  ;;  %v8945_v53 = vadd.f32 %v2545_v22, %v2286_v20  ;;  %v2730_v7 = vadd.f32 %v2658_v36, %v2287_v16  ;;  %v2289_v8 = vadd.f32 %v2218_v9, %v1846_v59  ;;  %v11426_v16 = vmax.f32 %v11369_v41, 0.0  ;;  %v11429_v41 = vld [vmem:[#allocation80_spill] sm:$0xff] }
 0x380   : > { %v1845_v25 = vadd.f32 %v11414_v38, %v1402_v27  ;;  %v2224_v20 = vpop.f32.mrf.mxu3  ;;  %v964_v22 = vadd.f32 %v8029_v3, %v11427_v26  ;;  %v963_v27 = vadd.f32 %v8033_v61, %v11428_v43  ;;  %v11439_v26 = vld [vmem:[#allocation87_spill] sm:$0xff] }
 0x381   : > { %3329 = vmatpush.msra.mxu2 %v2759_v32  ;;  %v2793_v46 = vmax.f32 %v8945_v53, 0.0  ;;  %v2794_v57 = vmax.f32 %v2730_v7, 0.0  ;;  %v962_v32 = vadd.f32 %v8029_v3, %v11417_v30  ;;  %v11432_v30 = vld [vmem:[#allocation115_spill] sm:$0xff]  ;;  %v9259_v53 = vld [vmem:[%s11172_s3 + $0xe0] sm:$0xff] }
 0x382   : > { %v2288_v6 = vadd.f32 %v2105_v13, %v1845_v25  ;;  %v2111_v24 = vpop.f32.mrf.mxu2  ;;  %v1406_v38 = vadd.f32 %v11429_v41, %v963_v27  ;;  %v11430_v25 = vld [vmem:[#allocation81_spill] sm:$0xff]  ;;  %3456 = vmatmul.f32.vlgmr.msrb.gmra.mxu0 %v9259_v53 }
 0x383   : > { %3330 = vmatpush.msra.mxu2 %v2757_v42  ;;  %2859 = vst.msk [vmem:[#allocation2 + $0x198] sm:$0xff] %vm2808_vm1, %v2794_v57  ;;  %v11419_v42 = vld [vmem:[#allocation74_spill] sm:$0xff]  ;;  %v1405_v49 = vadd.f32 %v11422_v17, %v962_v32  ;;  %v1407_v15 = vadd.f32 %v11430_v25, %v964_v22  ;;  %v968_v22 = vadd.f32 %v8029_v3, %v11439_v26 }
 0x384   : > { %v961_v33 = vadd.f32 %v8033_v61, %v11419_v42  ;;  %v6983_v57 = vld [vmem:[#allocation2] sm:$0xff] }
 0x385   : > { %3331 = vmatpush.msra.mxu2 %v11416_v55  ;;  %v1848_v50 = vadd.f32 %v11425_v40, %v1405_v49  ;;  %v1850_v32 = vadd.f32 %v11432_v30, %v1407_v15  ;;  %v11435_v49 = vld [vmem:[#allocation84_spill] sm:$0xff]  ;;  %v11442_v15 = vld [vmem:[#allocation89_spill] sm:$0xff]  ;;  %v11443_v30 = vld [vmem:[#allocation118_spill] sm:$0xff] }
 0x386   : > { %v2548_v44 = vpop.f32.mrf.mxu0  ;;  %v2661_v45 = vpop.f32.mrf.mxu1  ;;  %v1404_v51 = vadd.f32 %v11421_v28, %v961_v33 }
 0x387   : > { %3332 = vmatpush.msra.mxu2 %v11418_v2  ;;  %v8965_v48 = vadd.f32 %v2548_v44, %v2288_v6  ;;  %v2732_v63 = vadd.f32 %v2661_v45, %v2289_v8  ;;  %v2291_v10 = vadd.f32 %v2221_v5, %v1848_v50  ;;  %v11431_v5 = vld [vmem:[#allocation114_spill] sm:$0xff]  ;;  %v11433_v6 = vld [vmem:[#allocation83_spill] sm:$0xff]  ;;  %v2293_v44 = vadd.f32 %v2224_v20, %v1850_v32  ;;  %v11437_v50 = vld [vmem:[#allocation116_spill] sm:$0xff] }
 0x388   : > { %v1847_v19 = vadd.f32 %v11424_v14, %v1404_v51  ;;  %v1849_v55 = vadd.f32 %v11431_v5, %v1406_v38  ;;  %v966_v8 = vadd.f32 %v8029_v3, %v11433_v6  ;;  %v2227_v42 = vpop.f32.mrf.mxu3  ;;  %v11438_v20 = vld [vmem:[#allocation117_spill] sm:$0xff]  ;;  %v11441_v38 = vld [vmem:[#allocation88_spill] sm:$0xff]  ;;  %v11444_v6 = vld [vmem:[#allocation119_spill] sm:$0xff] }
 0x389   : > { %3333 = vmatpush.msra.mxu2 %v11420_v21  ;;  %v2795_v13 = vmax.f32 %v8965_v48, 0.0  ;;  %v2796_v9 = vmax.f32 %v2732_v63, 0.0  ;;  %v11434_v21 = vld [vmem:[#allocation82_spill] sm:$0xff]  ;;  %v9280_v48 = vld [vmem:[%s11172_s3 + $0xf0] sm:$0xff] }
 0x38a   : > { %v2290_v36 = vadd.f32 %v2108_v60, %v1847_v19  ;;  %v2292_v2 = vadd.f32 %v2111_v24, %v1849_v55  ;;  %v2114_v45 = vpop.f32.mrf.mxu2  ;;  %v965_v28 = vadd.f32 %v8033_v61, %v11434_v21  ;;  %v11446_v21 = vld [vmem:[#allocation90_spill] sm:$0xff]  ;;  %3459 = vmatmul.f32.gmra.mxu0 %v9280_v48 }
 0x38b   : > { %3334 = vmatpush.msra.mxu2 %v11423_v52  ;;  %2861 = vst.msk [vmem:[#allocation2 + $0x1a8] sm:$0xff] %vm2808_vm1, %v2796_v9  ;;  %v11436_v52 = vld [vmem:[#allocation85_spill] sm:$0xff] }
 0x38c   : > { %v1408_v9 = vadd.f32 %v11435_v49, %v965_v28  ;;  %v1409_v14 = vadd.f32 %v11436_v52, %v966_v8  ;;  %v969_v28 = vadd.f32 %v8033_v61, %v11446_v21  ;;  %v9069_v21 = vld [vmem:[%s11172_s3 + $0x30] sm:$0xff] }
 0x38d   : > { %3335 = vmatpush.msra.mxu2 %v11426_v16 }
 0x38e   : > { %v2551_v58 = vpop.f32.mrf.mxu0  ;;  %v2664_v7 = vpop.f32.mrf.mxu1  ;;  %v1851_v24 = vadd.f32 %v11437_v50, %v1408_v9  ;;  %v1852_v16 = vadd.f32 %v11438_v20, %v1409_v14  ;;  %v11447_v9 = vld [vmem:[#allocation92_spill] sm:$0xff]  ;;  %v11448_v14 = vld [vmem:[#allocation93_spill] sm:$0xff] }
 0x38f   : > { %3336 = vmatpush.msra.mxu2 %v6982_v34  ;;  %v8983_v37 = vadd.f32 %v2551_v58, %v2290_v36  ;;  %v2734_v62 = vadd.f32 %v2664_v7, %v2291_v10  ;;  %v11440_v7 = vld [vmem:[#allocation86_spill] sm:$0xff]  ;;  %v1412_v52 = vadd.f32 %v11447_v9, %v969_v28  ;;  %v11452_v28 = vmax.f32 %v8817_v4, 0.0 }
 0x390   : > { %v2294_v36 = vadd.f32 %v2114_v45, %v1851_v24  ;;  %v2295_v10 = vadd.f32 %v2227_v42, %v1852_v16  ;;  %v967_v43 = vadd.f32 %v8033_v61, %v11440_v7  ;;  %v2230_v41 = vpop.f32.mrf.mxu3  ;;  %v11453_v9 = vmax.f32 %v8779_v47, 0.0  ;;  %v9225_v4 = vld [vmem:[%s11172_s3 + $0xc0] sm:$0xff]  ;;  %v9246_v47 = vld [vmem:[%s11172_s3 + $0xa8] sm:$0xff] }
 0x391   : > { %3337 = vmatpush.msra.mxu2 %v6983_v57  ;;  %v2797_v59 = vmax.f32 %v8983_v37, 0.0  ;;  %v2798_v60 = vmax.f32 %v2734_v62, 0.0  ;;  %v9183_v37 = vld [vmem:[%s11172_s3 + $0xa0] sm:$0xff] }
 0x392   : > { %v2117_v57 = vpop.f32.mrf.mxu2  ;;  %v1410_v25 = vadd.f32 %v11441_v38, %v967_v43 }
 0x393   : > { %2863 = vst.msk [vmem:[#allocation2 + $0x1b8] sm:$0xff] %vm2808_vm1, %v2798_v60  ;;  %v1411_v60 = vadd.f32 %v11442_v15, %v968_v22  ;;  %v11450_v22 = vld [vmem:[#allocation121_spill] sm:$0xff] }
 0x394   : > { %v1853_v32 = vadd.f32 %v11443_v30, %v1410_v25 }
 0x395   : > { %v1854_v8 = vadd.f32 %v11444_v6, %v1411_v60  ;;  %v2924_v6 = vld [vmem:[#allocation2 + $0x198] sm:$0xff] }
 0x396   : > { %v2554_v33 = vpop.f32.mrf.mxu0  ;;  %v2667_v63 = vpop.f32.mrf.mxu1  ;;  %v2296_v45 = vadd.f32 %v2117_v57, %v1853_v32  ;;  %v2926_v32 = vld [vmem:[#allocation2 + $0x1a8] sm:$0xff] }
 0x397   : > { %v8995_v51 = vadd.f32 %v2554_v33, %v2292_v2  ;;  %v2736_v17 = vadd.f32 %v2667_v63, %v2293_v44  ;;  %v11445_v2 = vld [vmem:[#allocation91_spill] sm:$0xff]  ;;  %v2297_v42 = vadd.f32 %v2230_v41, %v1854_v8 }
 0x398   : > { %v970_v44 = vadd.f32 %v8029_v3, %v11445_v2  ;;  %v2233_v16 = vpop.f32.mrf.mxu3  ;;  %v11449_v3 = vld [vmem:[#allocation120_spill] sm:$0xff]  ;;  %v2922_v8 = vld [vmem:[#allocation2 + $0x188] sm:$0xff]  ;;  %v9055_v2 = vld [vmem:[%s11172_s3 + $0x20] sm:$0xff] }
 0x399   : > { %v2799_v19 = vmax.f32 %v8995_v51, 0.0  ;;  %v2800_v40 = vmax.f32 %v2736_v17, 0.0  ;;  %v1855_v26 = vadd.f32 %v11449_v3, %v1412_v52  ;;  %v2910_v52 = vld [vmem:[#allocation2 + $0x128] sm:$0xff]  ;;  %v9090_v3 = vld [vmem:[%s11172_s3 + $0x40] sm:$0xff] }
 0x39a   : > { %v2120_v20 = vpop.f32.mrf.mxu2  ;;  %v2928_v30 = vld [vmem:[#allocation2 + $0x1b8] sm:$0xff]  ;;  %v9178_v51 = vld [vmem:[%s11172_s3 + $0x68] sm:$0xff] }
 0x39b   : > { %2865 = vst.msk [vmem:[#allocation2 + $0x1c8] sm:$0xff] %vm2808_vm1, %v2800_v40  ;;  %v1413_v40 = vadd.f32 %v11448_v14, %v970_v44  ;;  %v2920_v44 = vld [vmem:[#allocation2 + $0x178] sm:$0xff]  ;;  %v11454_v14 = vmax.f32 %v8741_v29, 0.0  ;;  %v9238_v29 = vld [vmem:[%s11172_s3 + $0xd0] sm:$0xff] }
 0x39d   : > { %v11459_v39 = vmov %v11454_v14 }
 0x39e   : > { %v2557_v34 = vpop.f32.mrf.mxu0  ;;  %v2670_v58 = vpop.f32.mrf.mxu1 }
 0x39f   : > { %v9007_v27 = vadd.f32 %v2557_v34, %v2294_v36  ;;  %v2738_v62 = vadd.f32 %v2670_v58, %v2295_v10  ;;  %v1856_v36 = vadd.f32 %v11450_v22, %v1413_v40  ;;  %v2298_v10 = vadd.f32 %v2120_v20, %v1855_v26  ;;  %v2908_v40 = vld [vmem:[#allocation2 + $0x118] sm:$0xff]  ;;  %v9104_v22 = vld [vmem:[%s11172_s3 + $0x50] sm:$0xff] }
 0x3a0   : > { %v11455_v20 = vmax.f32 %v8709_v1, 0.0  ;;  %v9097_v26 = vld [vmem:[%s11172_s3 + $0x18] sm:$0xff] }
 0x3a1   : > { %v2801_v5 = vmax.f32 %v9007_v27, 0.0  ;;  %v2802_v55 = vmax.f32 %v2738_v62, 0.0  ;;  %v2299_v61 = vadd.f32 %v2233_v16, %v1856_v36  ;;  %v2906_v16 = vld [vmem:[#allocation2 + $0x108] sm:$0xff]  ;;  %v9233_v1 = vld [vmem:[%s11172_s3 + $0x98] sm:$0xff]  ;;  %v9301_v27 = vld [vmem:[%s11172_s3 + $0x100] sm:$0xff] }
 0x3a2   : > { %v2930_v60 = vld [vmem:[#allocation2 + $0x1c8] sm:$0xff]  ;;  %3462 = vmatmul.f32.gmra.mxu0 %v9301_v27 }
 0x3a3   : > { %2867 = vst.msk [vmem:[#allocation2 + $0x1d8] sm:$0xff] %vm2808_vm1, %v2802_v55  ;;  %v9041_v55 = vld [vmem:[%s11172_s3 + $0x10] sm:$0xff]  ;;  %v9110_v36 = vld [vmem:[%s11172_s3 + $0x28] sm:$0xff] }
 0x3a4   : > { %3034 = vmatmul.f32.gmra.mxu2 %v9041_v55 }
 0x3a6   : > { %v2560_v33 = vpop.f32.mrf.mxu0  ;;  %v2673_v63 = vpop.f32.mrf.mxu1 }
 0x3a7   : > { %v9019_v17 = vadd.f32 %v2560_v33, %v2296_v45  ;;  %v2740_v49 = vadd.f32 %v2673_v63, %v2297_v42  ;;  %v2918_v45 = vld [vmem:[#allocation2 + $0x168] sm:$0xff]  ;;  %v2916_v42 = vld [vmem:[#allocation2 + $0x158] sm:$0xff]  ;;  %v11451_v33 = vmax.f32 %v8856_v11, 0.0  ;;  %v11458_v11 = vmov %v11453_v9 }
 0x3a8   : > { %v2914_v63 = vld [vmem:[#allocation2 + $0x148] sm:$0xff] }
 0x3a9   : > { %v2803_v50 = vmax.f32 %v9019_v17, 0.0  ;;  %v2804_v24 = vmax.f32 %v2740_v49, 0.0  ;;  %v2912_v49 = vld [vmem:[#allocation2 + $0x138] sm:$0xff]  ;;  %v11456_v18 = vmov %v11451_v33 }
 0x3aa   : > { %v2932_v15 = vld [vmem:[#allocation2 + $0x1d8] sm:$0xff] }
 0x3ab   : > { %2869 = vst.msk [vmem:[#allocation2 + $0x1e8] sm:$0xff] %vm2808_vm1, %v2804_v24  ;;  %v9081_v24 = vld [vmem:[%s11172_s3 + $0x8] sm:$0xff] }
 0x3ac   : > { %3037 = vmatmul.f32.gmra.mxu2 %v9055_v2 }
 0x3ae   : > { %v2563_v34 = vpop.f32.mrf.mxu0  ;;  %v2676_v58 = vpop.f32.mrf.mxu1 }
 0x3af   : > { %v2741_v7 = vadd.f32 %v2563_v34, %v2298_v10  ;;  %v2742_v43 = vadd.f32 %v2676_v58, %v2299_v61  ;;  %v9117_v10 = vld [vmem:[%s11172_s3 + $0x60] sm:$0xff]  ;;  %v9123_v61 = vld [vmem:[%s11172_s3 + $0x38] sm:$0xff]  ;;  %v9130_v34 = vld [vmem:[%s11172_s3 + $0x70] sm:$0xff] }
 0x3b0   : > { %v9136_v58 = vld [vmem:[%s11172_s3 + $0x48] sm:$0xff] }
 0x3b1   : > { %v2805_v62 = vmax.f32 %v2741_v7, 0.0  ;;  %v2806_v57 = vmax.f32 %v2742_v43, 0.0  ;;  %v9141_v7 = vld [vmem:[%s11172_s3 + $0x80] sm:$0xff]  ;;  %v9157_v43 = vld [vmem:[%s11172_s3 + $0x58] sm:$0xff] }
 0x3b2   : > { %v2934_v25 = vld [vmem:[#allocation2 + $0x1e8] sm:$0xff] }
 0x3b3   : > { %2870 = vst [vmem:[#allocation2 + $0x1f0] sm:$0xf] %v2805_v62  ;;  %v9162_v62 = vld [vmem:[%s11172_s3 + $0x90] sm:$0xff] }
 0x3b4   : > { %2872 = vst.msk [vmem:[#allocation2 + $0x1f8] sm:$0xf] %vm2871_vm2, %v2806_v57  ;;  %3040 = vmatmul.f32.gmra.mxu2 %v9069_v21  ;;  %v9322_v57 = vld [vmem:[%s11172_s3 + $0x118] sm:$0xff] }
 0x3ba   : > { %v9027_v41 = vld [vmem:[#allocation2 + $0x1f0] sm:$0xf] }
 0x3bb   : > { %6445 = vmatpush.msk.msra.mxu3 %vm3008_vm3, %v9027_v41  ;;  %v2936_v38 = vld [vmem:[#allocation2 + $0x1f8] sm:$0xf] }
 0x3bc   : > { %6518 = vmatpush.msk.msrb.mxu1 %vm3008_vm3, %v2936_v38  ;;  %3043 = vmatmul.f32.gmra.mxu2 %v9090_v3 }
 0x3bd   : > { %3075 = vmatpush.msra.mxu3 %v2803_v50 }
 0x3be   : > { %3500 = vmatpush.msrb.mxu1 %v2934_v25 }
 0x3bf   : > { %3076 = vmatpush.msra.mxu3 %v2801_v5 }
 0x3c0   : > { %3501 = vmatpush.msrb.mxu1 %v2932_v15 }
 0x3c1   : > { %3077 = vmatpush.msra.mxu3 %v2799_v19 }
 0x3c2   : > { %3502 = vmatpush.msrb.mxu1 %v2930_v60 }
 0x3c3   : > { %3078 = vmatpush.msra.mxu3 %v2797_v59 }
 0x3c4   : > { %3503 = vmatpush.msrb.mxu1 %v2928_v30  ;;  %3046 = vmatmul.f32.gmra.mxu2 %v9104_v22 }
 0x3c5   : > { %3079 = vmatpush.msra.mxu3 %v2795_v13 }
 0x3c6   : > { %3504 = vmatpush.msrb.mxu1 %v2926_v32 }
 0x3c7   : > { %3080 = vmatpush.msra.mxu3 %v2793_v46 }
 0x3c8   : > { %3505 = vmatpush.msrb.mxu1 %v2924_v6 }
 0x3c9   : > { %3081 = vmatpush.msra.mxu3 %v2791_v56 }
 0x3ca   : > { %3506 = vmatpush.msrb.mxu1 %v2922_v8 }
 0x3cb   : > { %3082 = vmatpush.msra.mxu3 %v2789_v23 }
 0x3cc   : > { %3507 = vmatpush.msrb.mxu1 %v2920_v44  ;;  %3049 = vmatmul.f32.gmra.mxu2 %v9117_v10 }
 0x3cd   : > { %3083 = vmatpush.msra.mxu3 %v2787_v54 }
 0x3ce   : > { %3508 = vmatpush.msrb.mxu1 %v2918_v45 }
 0x3cf   : > { %3084 = vmatpush.msra.mxu3 %v2785_v12 }
 0x3d0   : > { %3509 = vmatpush.msrb.mxu1 %v2916_v42 }
 0x3d1   : > { %3085 = vmatpush.msra.mxu3 %v11451_v33  ;;  %v9385_v33 = vld [vmem:[%s11172_s3 + $0x150] sm:$0xff] }
 0x3d2   : > { %3510 = vmatpush.msrb.mxu1 %v2914_v63 }
 0x3d3   : > { %3086 = vmatpush.msra.mxu3 %v11452_v28 }
 0x3d4   : > { %3511 = vmatpush.msrb.mxu1 %v2912_v49  ;;  %3052 = vmatmul.f32.gmra.mxu2 %v9130_v34 }
 0x3d5   : > { %3087 = vmatpush.msra.mxu3 %v11453_v9  ;;  %v9403_v9 = vld [vmem:[%s11172_s3 + $0x160] sm:$0xff] }
 0x3d6   : > { %3512 = vmatpush.msrb.mxu1 %v2910_v52 }
 0x3d7   : > { %3088 = vmatpush.msra.mxu3 %v11454_v14 }
 0x3d8   : > { %3513 = vmatpush.msrb.mxu1 %v2908_v40 }
 0x3d9   : > { %3089 = vmatpush.msra.mxu3 %v11455_v20 }
 0x3da   : > { %3514 = vmatpush.msrb.mxu1 %v2906_v16  ;;  %6446 = vmatmul.msk.f32.vlgmr.msra.gmra.mxu3 %vm2965_vm4, %v9081_v24 }
 0x3db   : > { %6460 = vmatpush.msk.msrb.mxu3 %vm3008_vm3, %v2936_v38  ;;  %v9333_v38 = vld [vmem:[%s11172_s3 + $0x120] sm:$0xff] }
 0x3dc   : > { %3055 = vmatmul.f32.gmra.mxu2 %v9141_v7 }
 0x3dd   : > { %3193 = vmatpush.msrb.mxu3 %v2934_v25  ;;  %v9338_v25 = vld [vmem:[%s11172_s3 + $0x128] sm:$0xff] }
 0x3df   : > { %3194 = vmatpush.msrb.mxu3 %v2932_v15 }
 0x3e1   : > { %3195 = vmatpush.msrb.mxu3 %v2930_v60  ;;  %v9349_v60 = vld [vmem:[%s11172_s3 + $0x130] sm:$0xff] }
 0x3e2   : > { %6447 = vmatmul.msk.f32.gmra.mxu3 %vm2965_vm4, %v9097_v26 }
 0x3e3   : > { %3196 = vmatpush.msrb.mxu3 %v2928_v30 }
 0x3e4   : > { %3058 = vmatmul.f32.gmra.mxu2 %v9162_v62 }
 0x3e5   : > { %3197 = vmatpush.msrb.mxu3 %v2926_v32 }
 0x3e7   : > { %3198 = vmatpush.msrb.mxu3 %v2924_v6 }
 0x3e9   : > { %3199 = vmatpush.msrb.mxu3 %v2922_v8  ;;  %v9367_v8 = vld [vmem:[%s11172_s3 + $0x140] sm:$0xff] }
 0x3ea   : > { %6448 = vmatmul.msk.f32.gmra.mxu3 %vm2965_vm4, %v9110_v36 }
 0x3eb   : > { %3200 = vmatpush.msrb.mxu3 %v2920_v44 }
 0x3ec   : > { %3061 = vmatmul.f32.gmra.mxu2 %v9183_v37 }
 0x3ed   : > { %3201 = vmatpush.msrb.mxu3 %v2918_v45 }
 0x3ef   : > { %3202 = vmatpush.msrb.mxu3 %v2916_v42 }
 0x3f1   : > { %3203 = vmatpush.msrb.mxu3 %v2914_v63  ;;  %v9390_v63 = vld [vmem:[%s11172_s3 + $0x158] sm:$0xff] }
 0x3f2   : > { %6449 = vmatmul.msk.f32.gmra.mxu3 %vm2965_vm4, %v9123_v61 }
 0x3f3   : > { %3204 = vmatpush.msrb.mxu3 %v2912_v49 }
 0x3f4   : > { %3064 = vmatmul.f32.gmra.mxu2 %v9204_v0 }
 0x3f5   : > { %3205 = vmatpush.msrb.mxu3 %v2910_v52  ;;  %v9408_v52 = vld [vmem:[%s11172_s3 + $0x168] sm:$0xff] }
 0x3f7   : > { %3206 = vmatpush.msrb.mxu3 %v2908_v40 }
 0x3f9   : > { %3207 = vmatpush.msrb.mxu3 %v2906_v16  ;;  %v9426_v16 = vld [vmem:[%s11172_s3 + $0x178] sm:$0xff] }
 0x3fa   : > { %6450 = vmatmul.msk.f32.gmra.mxu3 %vm2965_vm4, %v9136_v58 }
 0x3fb   : > { %6503 = vmatpush.msk.msra.mxu3 %vm3008_vm3, %v9027_v41 }
 0x3fc   : > { %3067 = vmatmul.f32.gmra.mxu2 %v9225_v4 }
 0x3fd   : > { %3382 = vmatpush.msra.mxu3 %v2803_v50  ;;  %v9317_v50 = vld [vmem:[%s11172_s3 + $0x110] sm:$0xff] }
 0x3fe   : > { %3465 = vmatmul.f32.gmra.mxu0 %v9317_v50 }
 0x3ff   : > { %3383 = vmatpush.msra.mxu3 %v2801_v5  ;;  %v9306_v5 = vld [vmem:[%s11172_s3 + $0x108] sm:$0xff] }
 0x401   : > { %3384 = vmatpush.msra.mxu3 %v2799_v19  ;;  %v9296_v19 = vld [vmem:[%s11172_s3 + $0xd8] sm:$0xff] }
 0x402   : > { %6451 = vmatmul.msk.f32.gmra.mxu3 %vm2965_vm4, %v9157_v43 }
 0x403   : > { %3385 = vmatpush.msra.mxu3 %v2797_v59  ;;  %v3032_v59 = vpop.f32.mrf.mxu2 }
 0x404   : > { %3070 = vmatmul.f32.gmra.mxu2 %v9238_v29 }
 0x405   : > { %3386 = vmatpush.msra.mxu3 %v2795_v13  ;;  %v9285_v13 = vld [vmem:[%s11172_s3 + $0xf8] sm:$0xff] }
 0x406   : > { %3468 = vmatmul.f32.gmra.mxu0 %v9333_v38 }
 0x407   : > { %3387 = vmatpush.msra.mxu3 %v2793_v46  ;;  %v9264_v46 = vld [vmem:[%s11172_s3 + $0xe8] sm:$0xff] }
 0x408   : > { %6519 = vmatmul.msk.f32.vlgmr.msrb.gmra.mxu1 %vm2965_vm4, %v9264_v46 }
 0x409   : > { %3388 = vmatpush.msra.mxu3 %v2791_v56  ;;  %v9199_v56 = vld [vmem:[%s11172_s3 + $0x78] sm:$0xff] }
 0x40a   : > { %6452 = vmatmul.msk.f32.gmra.mxu3 %vm2965_vm4, %v9178_v51 }
 0x40b   : > { %3389 = vmatpush.msra.mxu3 %v2789_v23  ;;  %v11457_v23 = vmov %v11452_v28 }
 0x40c   : > { %3149 = vmatmul.f32.vlgmr.msrb.gmra.mxu2 %v8834_v35  ;;  %v9275_v35 = vld [vmem:[%s11172_s3 + $0xc8] sm:$0xff] }
 0x40d   : > { %3390 = vmatpush.msra.mxu3 %v2787_v54  ;;  %v9254_v54 = vld [vmem:[%s11172_s3 + $0xb8] sm:$0xff] }
 0x40e   : > { %3471 = vmatmul.f32.gmra.mxu0 %v9349_v60 }
 0x40f   : > { %3391 = vmatpush.msra.mxu3 %v2785_v12  ;;  %v11460_v12 = vmov %v11455_v20  ;;  %v9421_v20 = vld [vmem:[%s11172_s3 + $0x170] sm:$0xff] }
 0x410   : > { %6520 = vmatmul.msk.f32.gmra.mxu1 %vm2965_vm4, %v9285_v13 }
 0x411   : > { %3392 = vmatpush.msra.mxu3 %v11456_v18  ;;  %v9475_v18 = vld [vmem:[%s11172_s3 + $0x1a0] sm:$0xff] }
 0x412   : > { %6453 = vmatmul.msk.f32.gmra.mxu3 %vm2965_vm4, %v9199_v56 }
 0x413   : > { %3393 = vmatpush.msra.mxu3 %v11457_v23 }
 0x414   : > { %3152 = vmatmul.f32.gmra.mxu2 %v9041_v55  ;;  %v9354_v55 = vld [vmem:[%s11172_s3 + $0x138] sm:$0xff] }
 0x415   : > { %3394 = vmatpush.msra.mxu3 %v11458_v11 }
 0x416   : > { %3474 = vmatmul.f32.gmra.mxu0 %v9367_v8 }
 0x417   : > { %3395 = vmatpush.msra.mxu3 %v11459_v39  ;;  %v9493_v39 = vld [vmem:[%s11172_s3 + $0x1b0] sm:$0xff] }
 0x418   : > { %6521 = vmatmul.msk.f32.gmra.mxu1 %vm2965_vm4, %v9306_v5 }
 0x419   : > { %3396 = vmatpush.msra.mxu3 %v11460_v12  ;;  %v9498_v12 = vld [vmem:[%s11172_s3 + $0x1b8] sm:$0xff] }
 0x41a   : > { %6454 = vmatmul.msk.f32.gmra.mxu3 %vm2965_vm4, %v9220_v31 }
 0x41c   : > { %3155 = vmatmul.f32.gmra.mxu2 %v9055_v2  ;;  %v9372_v2 = vld [vmem:[%s11172_s3 + $0x148] sm:$0xff] }
 0x41e   : > { %3477 = vmatmul.f32.gmra.mxu0 %v9385_v33 }
 0x420   : > { %6522 = vmatmul.msk.f32.gmra.mxu1 %vm2965_vm4, %v9322_v57 }
 0x422   : > { %6455 = vmatmul.msk.f32.gmra.mxu3 %vm2965_vm4, %v9233_v1 }
 0x424   : > { %3158 = vmatmul.f32.gmra.mxu2 %v9069_v21 }
 0x426   : > { %3480 = vmatmul.f32.gmra.mxu0 %v9403_v9 }
 0x427   : > { %v3035_v17 = vpop.f32.mrf.mxu2 }
 0x428   : > { %6523 = vmatmul.msk.f32.gmra.mxu1 %vm2965_vm4, %v9338_v25 }
 0x42a   : > { %6456 = vmatmul.msk.f32.gmra.mxu3 %vm2965_vm4, %v9246_v47 }
 0x42c   : > { %3161 = vmatmul.f32.gmra.mxu2 %v9090_v3 }
 0x42e   : > { %3483 = vmatmul.f32.gmra.mxu0 %v9421_v20 }
 0x42f   : > { %v3038_v41 = vpop.f32.mrf.mxu2 }
 0x430   : > { %6524 = vmatmul.msk.f32.gmra.mxu1 %vm2965_vm4, %v9354_v55 }
 0x432   : > { %6457 = vmatmul.msk.f32.gmra.mxu3 %vm2965_vm4, %v9254_v54 }
 0x434   : > { %3164 = vmatmul.f32.gmra.mxu2 %v9104_v22 }
 0x437   : > { %v3041_v15 = vpop.f32.mrf.mxu2 }
 0x438   : > { %6525 = vmatmul.msk.f32.gmra.mxu1 %vm2965_vm4, %v9372_v2 }
 0x43a   : > { %6458 = vmatmul.msk.f32.gmra.mxu3 %vm2965_vm4, %v9275_v35 }
 0x43c   : > { %3167 = vmatmul.f32.gmra.mxu2 %v9117_v10  ;;  %v9444_v10 = vld [vmem:[%s11172_s3 + $0x188] sm:$0xff] }
 0x43f   : > { %v3044_v6 = vpop.f32.mrf.mxu2 }
 0x440   : > { %6526 = vmatmul.msk.f32.gmra.mxu1 %vm2965_vm4, %v9390_v63 }
 0x442   : > { %6459 = vmatmul.msk.f32.gmra.mxu3 %vm2965_vm4, %v9296_v19 }
 0x444   : > { %3170 = vmatmul.f32.gmra.mxu2 %v9130_v34 }
 0x447   : > { %v3047_v42 = vpop.f32.mrf.mxu2 }
 0x448   : > { %6527 = vmatmul.msk.f32.gmra.mxu1 %vm2965_vm4, %v9408_v52 }
 0x44a   : > { %6461 = vmatmul.msk.f32.vlgmr.msrb.gmra.mxu3 %vm2965_vm4, %v9081_v24 }
 0x44c   : > { %3173 = vmatmul.f32.gmra.mxu2 %v9141_v7  ;;  %v9457_v7 = vld [vmem:[%s11172_s3 + $0x190] sm:$0xff] }
 0x44f   : > { %v3050_v49 = vpop.f32.mrf.mxu2 }
 0x450   : > { %6528 = vmatmul.msk.f32.gmra.mxu1 %vm2965_vm4, %v9426_v16 }
 0x452   : > { %6462 = vmatmul.msk.f32.gmra.mxu3 %vm2965_vm4, %v9097_v26 }
 0x454   : > { %3176 = vmatmul.f32.gmra.mxu2 %v9162_v62 }
 0x457   : > { %v3053_v24 = vpop.f32.mrf.mxu2 }
 0x458   : > { %6529 = vmatmul.msk.f32.gmra.mxu1 %vm2965_vm4, %v9444_v10 }
 0x45a   : > { %6463 = vmatmul.msk.f32.gmra.mxu3 %vm2965_vm4, %v9110_v36  ;;  %v9439_v36 = vld [vmem:[%s11172_s3 + $0x180] sm:$0xff] }
 0x45b   : > { %3486 = vmatmul.f32.gmra.mxu0 %v9439_v36 }
 0x45c   : > { %3179 = vmatmul.f32.gmra.mxu2 %v9183_v37 }
 0x45d   : > { %v3091_v30 = vpop.f32.mrf.mxu3 }
 0x45e   : > { %v9362_v32 = vadd.f32 %v3091_v30, %v3032_v59  ;;  %v3457_v30 = vpop.f32.mrf.mxu0 }
 0x45f   : > { %v3056_v26 = vpop.f32.mrf.mxu2 }
 0x462   : > { %6464 = vmatmul.msk.f32.gmra.mxu3 %vm2965_vm4, %v9123_v61 }
 0x463   : > { %3489 = vmatmul.f32.gmra.mxu0 %v9457_v7 }
 0x464   : > { %3182 = vmatmul.f32.gmra.mxu2 %v9204_v0 }
 0x465   : > { %v3094_v44 = vpop.f32.mrf.mxu3 }
 0x466   : > { %v9380_v45 = vadd.f32 %v3094_v44, %v3035_v17 }
 0x467   : > { %v3059_v34 = vpop.f32.mrf.mxu2 }
 0x46a   : > { %6465 = vmatmul.msk.f32.gmra.mxu3 %vm2965_vm4, %v9136_v58 }
 0x46b   : > { %3492 = vmatmul.f32.gmra.mxu0 %v9475_v18 }
 0x46c   : > { %3185 = vmatmul.f32.gmra.mxu2 %v9225_v4 }
 0x46d   : > { %v3097_v21 = vpop.f32.mrf.mxu3 }
 0x46e   : > { %v9398_v28 = vadd.f32 %v3097_v21, %v3038_v41  ;;  %v6567_v41 = vld [vmem:[%s11173_s4 + $0x148] sm:$0xff] }
 0x46f   : > { %3859 = vmatpush.msra.mxu1 %v6567_v41 }
 0x472   : > { %6466 = vmatmul.msk.f32.gmra.mxu3 %vm2965_vm4, %v9157_v43  ;;  %v9462_v43 = vld [vmem:[%s11172_s3 + $0x198] sm:$0xff] }
 0x473   : > { %6530 = vmatmul.msk.f32.gmra.mxu1 %vm2965_vm4, %v9462_v43  ;;  %3495 = vmatmul.f32.gmra.mxu0 %v9493_v39 }
 0x474   : > { %3188 = vmatmul.f32.gmra.mxu2 %v9238_v29 }
 0x475   : > { %v3100_v14 = vpop.f32.mrf.mxu3 }
 0x476   : > { %v9416_v40 = vadd.f32 %v3100_v14, %v3041_v15 }
 0x47a   : > { %6467 = vmatmul.msk.f32.gmra.mxu3 %vm2965_vm4, %v9178_v51  ;;  %v3062_v51 = vpop.f32.mrf.mxu2 }
 0x47c   : > { %3338 = vmatmul.f32.vlgmr.msra.gmra.mxu2 %v9259_v53 }
 0x47d   : > { %v3103_v3 = vpop.f32.mrf.mxu3 }
 0x47e   : > { %v9434_v22 = vadd.f32 %v3103_v3, %v3044_v6 }
 0x482   : > { %6468 = vmatmul.msk.f32.gmra.mxu3 %vm2965_vm4, %v9199_v56  ;;  %v9480_v56 = vld [vmem:[%s11172_s3 + $0x1a8] sm:$0xff]  ;;  %v3065_v23 = vpop.f32.mrf.mxu2 }
 0x483   : > { %6531 = vmatmul.msk.f32.gmra.mxu1 %vm2965_vm4, %v9480_v56 }
 0x484   : > { %3341 = vmatmul.f32.gmra.mxu2 %v9280_v48 }
 0x485   : > { %v3106_v61 = vpop.f32.mrf.mxu3  ;;  %v3516_v6 = vpop.f32.mrf.mxu1 }
 0x486   : > { %v9452_v58 = vadd.f32 %v3106_v61, %v3047_v42 }
 0x48a   : > { %6469 = vmatmul.msk.f32.gmra.mxu3 %vm2965_vm4, %v9220_v31  ;;  %v3068_v4 = vpop.f32.mrf.mxu2 }
 0x48b   : > { %6532 = vmatmul.msk.f32.gmra.mxu1 %vm2965_vm4, %v9498_v12 }
 0x48c   : > { %3344 = vmatmul.f32.gmra.mxu2 %v9301_v27  ;;  %v6563_v27 = vld [vmem:[%s11173_s4 + $0x128] sm:$0xff] }
 0x48d   : > { %v3109_v62 = vpop.f32.mrf.mxu3  ;;  %v3519_v14 = vpop.f32.mrf.mxu1 }
 0x48e   : > { %v9470_v37 = vadd.f32 %v3109_v62, %v3050_v49  ;;  %v3460_v49 = vpop.f32.mrf.mxu0 }
 0x492   : > { %6470 = vmatmul.msk.f32.gmra.mxu3 %vm2965_vm4, %v9233_v1  ;;  %v3071_v59 = vpop.f32.mrf.mxu2 }
 0x494   : > { %3347 = vmatmul.f32.gmra.mxu2 %v9317_v50 }
 0x495   : > { %v3112_v0 = vpop.f32.mrf.mxu3  ;;  %v3522_v50 = vpop.f32.mrf.mxu1 }
 0x496   : > { %v9488_v11 = vadd.f32 %v3112_v0, %v3053_v24 }
 0x49a   : > { %6471 = vmatmul.msk.f32.gmra.mxu3 %vm2965_vm4, %v9246_v47  ;;  %v6566_v47 = vld [vmem:[%s11173_s4 + $0x140] sm:$0xff]  ;;  %v3150_v48 = vpop.f32.mrf.mxu2 }
 0x49b   : > { %3860 = vmatpush.msra.mxu1 %v6566_v47 }
 0x49c   : > { %3350 = vmatmul.f32.gmra.mxu2 %v9333_v38 }
 0x49d   : > { %v3115_v31 = vpop.f32.mrf.mxu3 }
 0x49e   : > { %v9506_v1 = vadd.f32 %v3115_v31, %v3056_v26 }
 0x4a2   : > { %6472 = vmatmul.msk.f32.gmra.mxu3 %vm2965_vm4, %v9254_v54  ;;  %v6565_v54 = vld [vmem:[%s11173_s4 + $0x138] sm:$0xff]  ;;  %v3153_v42 = vpop.f32.mrf.mxu2 }
 0x4a3   : > { %3861 = vmatpush.msra.mxu1 %v6565_v54 }
 0x4a4   : > { %3353 = vmatmul.f32.gmra.mxu2 %v9349_v60  ;;  %v3520_v60 = vadd.f32 %v3519_v14, %v3460_v49 }
 0x4a5   : > { %v3118_v29 = vpop.f32.mrf.mxu3 }
 0x4a6   : > { %v9511_v17 = vadd.f32 %v3118_v29, %v3059_v34 }
 0x4aa   : > { %6473 = vmatmul.msk.f32.gmra.mxu3 %vm2965_vm4, %v9275_v35  ;;  %v6564_v35 = vld [vmem:[%s11173_s4 + $0x130] sm:$0xff]  ;;  %v3156_v3 = vpop.f32.mrf.mxu2 }
 0x4ab   : > { %3862 = vmatpush.msra.mxu1 %v6564_v35 }
 0x4ac   : > { %3356 = vmatmul.f32.gmra.mxu2 %v9367_v8 }
 0x4ad   : > { %v3121_v53 = vpop.f32.mrf.mxu3  ;;  %3863 = vmatpush.msra.mxu1 %v6563_v27 }
 0x4ae   : > { %v9525_v15 = vadd.f32 %v3121_v53, %v3062_v51  ;;  %v3525_v51 = vpop.f32.mrf.mxu1 }
 0x4b2   : > { %6474 = vmatmul.msk.f32.gmra.mxu3 %vm2965_vm4, %v9296_v19  ;;  %v3463_v19 = vpop.f32.mrf.mxu0  ;;  %v3159_v34 = vpop.f32.mrf.mxu2 }
 0x4b4   : > { %3359 = vmatmul.f32.gmra.mxu2 %v9385_v33 }
 0x4b5   : > { %v3124_v44 = vpop.f32.mrf.mxu3 }
 0x4b6   : > { %v9536_v21 = vadd.f32 %v3124_v44, %v3065_v23 }
 0x4ba   : > { %6504 = vmatmul.msk.f32.vlgmr.msra.gmra.mxu3 %vm2965_vm4, %v9264_v46  ;;  %v3517_v46 = vadd.f32 %v3516_v6, %v3457_v30  ;;  %v3466_v38 = vpop.f32.mrf.mxu0  ;;  %v3162_v23 = vpop.f32.mrf.mxu2 }
 0x4bc   : > { %3362 = vmatmul.f32.gmra.mxu2 %v9403_v9 }
 0x4bd   : > { %v3127_v24 = vpop.f32.mrf.mxu3 }
 0x4be   : > { %v9541_v26 = vadd.f32 %v3127_v24, %v3068_v4 }
 0x4c2   : > { %6505 = vmatmul.msk.f32.gmra.mxu3 %vm2965_vm4, %v9285_v13  ;;  %v3165_v4 = vpop.f32.mrf.mxu2  ;;  %v3469_v29 = vpop.f32.mrf.mxu0 }
 0x4c4   : > { %3365 = vmatmul.f32.gmra.mxu2 %v9421_v20 }
 0x4c5   : > { %v3130_v61 = vpop.f32.mrf.mxu3 }
 0x4c6   : > { %v9546_v62 = vadd.f32 %v3130_v61, %v3071_v59  ;;  %v3528_v59 = vpop.f32.mrf.mxu1 }
 0x4ca   : > { %6506 = vmatmul.msk.f32.gmra.mxu3 %vm2965_vm4, %v9306_v5  ;;  %v3168_v47 = vpop.f32.mrf.mxu2 }
 0x4cc   : > { %3368 = vmatmul.f32.gmra.mxu2 %v9439_v36 }
 0x4cd   : > { %v3209_v0 = vpop.f32.mrf.mxu3 }
 0x4ce   : > { %v3210_v31 = vadd.f32 %v3209_v0, %v3150_v48  ;;  %v3472_v48 = vpop.f32.mrf.mxu0  ;;  %v3531_v30 = vpop.f32.mrf.mxu1 }
 0x4d0   : > { %v9551_v13 = vmax.f32 %v3210_v31, %v3517_v46 }
 0x4d2   : > { %6507 = vmatmul.msk.f32.gmra.mxu3 %vm2965_vm4, %v9322_v57  ;;  %6568 = vmatmul.msk.f32.vlgmr.msra.gmra.mxu1 %vm2808_vm1, %v9551_v13  ;;  %v3523_v57 = vadd.f32 %v3522_v50, %v3463_v19  ;;  %v3171_v6 = vpop.f32.mrf.mxu2 }
 0x4d4   : > { %3371 = vmatmul.f32.gmra.mxu2 %v9457_v7 }
 0x4d5   : > { %v3212_v5 = vpop.f32.mrf.mxu3 }
 0x4d6   : > { %v3213_v8 = vadd.f32 %v3212_v5, %v3153_v42  ;;  %v3475_v44 = vpop.f32.mrf.mxu0  ;;  %v3534_v42 = vpop.f32.mrf.mxu1  ;;  %v3604_v5 = vld [vmem:[%s11173_s4 + $0x90] sm:$0xff] }
 0x4d8   : > { %v9558_v41 = vmax.f32 %v3213_v8, %v3520_v60  ;;  %v3605_v60 = vld [vmem:[%s11173_s4 + $0x98] sm:$0xff] }
 0x4da   : > { %6508 = vmatmul.msk.f32.gmra.mxu3 %vm2965_vm4, %v9338_v25  ;;  %6569 = vmatmul.msk.f32.gmra.mxu1 %vm2808_vm1, %v9558_v41  ;;  %v3526_v25 = vadd.f32 %v3525_v51, %v3466_v38  ;;  %v9579_v49 = vpop.f32.mrf.mxu2 }
 0x4dc   : > { %3374 = vmatmul.f32.gmra.mxu2 %v9475_v18  ;;  %v6562_v18 = vld [vmem:[%s11173_s4 + $0x120] sm:$0xff] }
 0x4dd   : > { %v3215_v33 = vpop.f32.mrf.mxu3  ;;  %3789 = vmatpush.msra.mxu0 %v6562_v18 }
 0x4de   : > { %v3216_v54 = vadd.f32 %v3215_v33, %v3156_v3  ;;  %v3478_v36 = vpop.f32.mrf.mxu0  ;;  %v3537_v3 = vpop.f32.mrf.mxu1  ;;  %v6560_v33 = vld [vmem:[%s11173_s4 + $0x110] sm:$0xff] }
 0x4e0   : > { %v9565_v53 = vmax.f32 %v3216_v54, %v3523_v57  ;;  %v3599_v57 = vld [vmem:[%s11173_s4 + $0x68] sm:$0xff] }
 0x4e1   : > { %v6559_v54 = vld [vmem:[%s11173_s4 + $0x108] sm:$0xff] }
 0x4e2   : > { %6509 = vmatmul.msk.f32.gmra.mxu3 %vm2965_vm4, %v9354_v55  ;;  %6570 = vmatmul.msk.f32.gmra.mxu1 %vm2808_vm1, %v9565_v53  ;;  %v3529_v55 = vadd.f32 %v3528_v59, %v3469_v29  ;;  %v9588_v50 = vpop.f32.mrf.mxu2 }
 0x4e4   : > { %3377 = vmatmul.f32.gmra.mxu2 %v9493_v39  ;;  %v6561_v39 = vld [vmem:[%s11173_s4 + $0x118] sm:$0xff] }
 0x4e5   : > { %v3218_v9 = vpop.f32.mrf.mxu3  ;;  %3790 = vmatpush.msra.mxu0 %v6561_v39  ;;  %v3590_v39 = vld [vmem:[%s11173_s4 + $0x20] sm:$0xff] }
 0x4e6   : > { %v3219_v35 = vadd.f32 %v3218_v9, %v3159_v34  ;;  %v3481_v51 = vpop.f32.mrf.mxu0  ;;  %v3540_v0 = vpop.f32.mrf.mxu1 }
 0x4e7   : > { %3791 = vmatpush.msra.mxu0 %v6560_v33  ;;  %v6549_v33 = vld [vmem:[%s11173_s4 + $0xb8] sm:$0xff] }
 0x4e8   : > { %v9572_v27 = vmax.f32 %v3219_v35, %v3526_v25 }
 0x4e9   : > { %3792 = vmatpush.msra.mxu0 %v6559_v54 }
 0x4ea   : > { %6510 = vmatmul.msk.f32.gmra.mxu3 %vm2965_vm4, %v9372_v2  ;;  %6571 = vmatmul.msk.f32.gmra.mxu1 %vm2808_vm1, %v9572_v27  ;;  %v3532_v2 = vadd.f32 %v3531_v30, %v3472_v48  ;;  %v9597_v46 = vpop.f32.mrf.mxu2  ;;  %v3597_v48 = vld [vmem:[%s11173_s4 + $0x58] sm:$0xff]  ;;  %v6558_v30 = vld [vmem:[%s11173_s4 + $0x100] sm:$0xff] }
 0x4eb   : > { %3793 = vmatpush.msra.mxu0 %v6558_v30 }
 0x4ed   : > { %v3221_v20 = vpop.f32.mrf.mxu3 }
 0x4ee   : > { %v3222_v14 = vadd.f32 %v3221_v20, %v3162_v23  ;;  %v3606_v23 = vld [vmem:[%s11173_s4 + $0xa0] sm:$0xff]  ;;  %v3484_v9 = vpop.f32.mrf.mxu0  ;;  %v3543_v35 = vpop.f32.mrf.mxu1  ;;  %v3541_v20 = vadd.f32 %v3540_v0, %v3481_v51  ;;  %v3592_v0 = vld [vmem:[%s11173_s4 + $0x30] sm:$0xff] }
 0x4ef   : > { %3719 = vmatpush.msrb.mxu3 %v3606_v23  ;;  %v6553_v23 = vld [vmem:[%s11173_s4 + $0xd8] sm:$0xff] }
 0x4f0   : > { %v9581_v24 = vmax.f32 %v3222_v14, %v3529_v55  ;;  %v6557_v55 = vld [vmem:[%s11173_s4 + $0xf8] sm:$0xff] }
 0x4f1   : > { %3720 = vmatpush.msrb.mxu3 %v3605_v60  ;;  %3794 = vmatpush.msra.mxu0 %v6557_v55  ;;  %v3591_v60 = vld [vmem:[%s11173_s4 + $0x28] sm:$0xff] }
 0x4f2   : > { %6511 = vmatmul.msk.f32.gmra.mxu3 %vm2965_vm4, %v9390_v63  ;;  %6572 = vmatmul.msk.f32.gmra.mxu1 %vm2808_vm1, %v9581_v24  ;;  %v3535_v63 = vadd.f32 %v3534_v42, %v3475_v44  ;;  %v9627_v29 = vpop.f32.mrf.mxu2  ;;  %v3602_v44 = vld [vmem:[%s11173_s4 + $0x80] sm:$0xff]  ;;  %v3596_v42 = vld [vmem:[%s11173_s4 + $0x50] sm:$0xff] }
 0x4f3   : > { %3721 = vmatpush.msrb.mxu3 %v3604_v5 }
 0x4f5   : > { %v3224_v19 = vpop.f32.mrf.mxu3 }
 0x4f6   : > { %v3225_v61 = vadd.f32 %v3224_v19, %v3165_v4  ;;  %v3538_v4 = vadd.f32 %v3537_v3, %v3478_v36  ;;  %v3595_v36 = vld [vmem:[%s11173_s4 + $0x48] sm:$0xff]  ;;  %v6556_v3 = vld [vmem:[%s11173_s4 + $0xf0] sm:$0xff]  ;;  %v3594_v19 = vld [vmem:[%s11173_s4 + $0x40] sm:$0xff]  ;;  %v3546_v51 = vpop.f32.mrf.mxu1 }
 0x4f7   : > { %3795 = vmatpush.msra.mxu0 %v6556_v3 }
 0x4f8   : > { %v9590_v34 = vmax.f32 %v3225_v61, %v3532_v2  ;;  %v6555_v61 = vld [vmem:[%s11173_s4 + $0xe8] sm:$0xff] }
 0x4f9   : > { %3796 = vmatpush.msra.mxu0 %v6555_v61 }
 0x4fa   : > { %6512 = vmatmul.msk.f32.gmra.mxu3 %vm2965_vm4, %v9408_v52  ;;  %6573 = vmatmul.msk.f32.gmra.mxu1 %vm2808_vm1, %v9590_v34  ;;  %v3601_v52 = vld [vmem:[%s11173_s4 + $0x78] sm:$0xff]  ;;  %v9665_v14 = vpop.f32.mrf.mxu2 }
 0x4fb   : > { %3649 = vmatpush.msrb.mxu2 %v3601_v52  ;;  %v3544_v52 = vadd.f32 %v3543_v35, %v3484_v9  ;;  %v3587_v9 = vld [vmem:[%s11173_s4 + $0x8] sm:$0xff]  ;;  %v3586_v35 = vld [vmem:[%s11173_s4] sm:$0xff] }
 0x4fd   : > { %v3227_v7 = vpop.f32.mrf.mxu3 }
 0x4fe   : > { %v3228_v38 = vadd.f32 %v3227_v7, %v3168_v47  ;;  %v3598_v47 = vld [vmem:[%s11173_s4 + $0x60] sm:$0xff]  ;;  %v3549_v30 = vpop.f32.mrf.mxu1 }
 0x500   : > { %v9602_v31 = vmax.f32 %v3228_v38, %v3535_v63  ;;  %v6554_v63 = vld [vmem:[%s11173_s4 + $0xe0] sm:$0xff]  ;;  %v3487_v38 = vpop.f32.mrf.mxu0 }
 0x501   : > { %3797 = vmatpush.msra.mxu0 %v6554_v63 }
 0x502   : > { %6513 = vmatmul.msk.f32.gmra.mxu3 %vm2965_vm4, %v9426_v16  ;;  %v3600_v16 = vld [vmem:[%s11173_s4 + $0x70] sm:$0xff]  ;;  %6574 = vmatmul.msk.f32.gmra.mxu1 %vm2808_vm1, %v9602_v31  ;;  %v3189_v5 = vpop.f32.mrf.mxu2 }
 0x503   : > { %3650 = vmatpush.msrb.mxu2 %v3600_v16  ;;  %3798 = vmatpush.msra.mxu0 %v6553_v23  ;;  %v6552_v16 = vld [vmem:[%s11173_s4 + $0xd0] sm:$0xff] }
 0x505   : > { %v3230_v8 = vpop.f32.mrf.mxu3  ;;  %3651 = vmatpush.msrb.mxu2 %v3599_v57  ;;  %3799 = vmatpush.msra.mxu0 %v6552_v16  ;;  %v3588_v57 = vld [vmem:[%s11173_s4 + $0x10] sm:$0xff] }
 0x506   : > { %v3231_v59 = vadd.f32 %v3230_v8, %v3171_v6  ;;  %v3603_v6 = vld [vmem:[%s11173_s4 + $0x88] sm:$0xff]  ;;  %v6550_v8 = vld [vmem:[%s11173_s4 + $0xc0] sm:$0xff] }
 0x507   : > { %3652 = vmatpush.msrb.mxu2 %v3598_v47  ;;  %3722 = vmatpush.msrb.mxu3 %v3603_v6  ;;  %v3547_v47 = vadd.f32 %v3546_v51, %v3487_v38  ;;  %v6548_v6 = vld [vmem:[%s11173_s4 + $0xb0] sm:$0xff] }
 0x508   : > { %v9647_v25 = vmax.f32 %v3231_v59, %v3538_v4  ;;  %v6551_v4 = vld [vmem:[%s11173_s4 + $0xc8] sm:$0xff]  ;;  %v3490_v54 = vpop.f32.mrf.mxu0 }
 0x509   : > { %3653 = vmatpush.msrb.mxu2 %v3597_v48  ;;  %3723 = vmatpush.msrb.mxu3 %v3602_v44  ;;  %v6547_v44 = vld [vmem:[%s11173_s4 + $0xa8] sm:$0xff]  ;;  %v3550_v55 = vadd.f32 %v3549_v30, %v3490_v54 }
 0x50a   : > { %6514 = vmatmul.msk.f32.gmra.mxu3 %vm2965_vm4, %v9444_v10  ;;  %6575 = vmatmul.msk.f32.gmra.mxu1 %vm2808_vm1, %v9647_v25 }
 0x50b   : > { %3654 = vmatpush.msrb.mxu2 %v3596_v42  ;;  %3800 = vmatpush.msra.mxu0 %v6551_v4 }
 0x50d   : > { %v3233_v10 = vpop.f32.mrf.mxu3  ;;  %3655 = vmatpush.msrb.mxu2 %v3595_v36  ;;  %3801 = vmatpush.msra.mxu0 %v6550_v8  ;;  %v3552_v36 = vpop.f32.mrf.mxu1 }
 0x50e   : > { %v3234_v2 = vadd.f32 %v3233_v10, %v9579_v49  ;;  %v3593_v49 = vld [vmem:[%s11173_s4 + $0x38] sm:$0xff] }
 0x50f   : > { %3656 = vmatpush.msrb.mxu2 %v3594_v19  ;;  %3802 = vmatpush.msra.mxu0 %v6549_v33 }
 0x510   : > { %v9686_v7 = vmax.f32 %v3234_v2, %v3541_v20  ;;  %v3493_v2 = vpop.f32.mrf.mxu0 }
 0x511   : > { %3657 = vmatpush.msrb.mxu2 %v3593_v49  ;;  %3803 = vmatpush.msra.mxu0 %v6548_v6  ;;  %v3553_v61 = vadd.f32 %v3552_v36, %v3493_v2 }
 0x512   : > { %6515 = vmatmul.msk.f32.gmra.mxu3 %vm2965_vm4, %v9462_v43  ;;  %6576 = vmatmul.msk.f32.gmra.mxu1 %vm2808_vm1, %v9686_v7 }
 0x513   : > { %3658 = vmatpush.msrb.mxu2 %v3592_v0  ;;  %3804 = vmatpush.msra.mxu0 %v6547_v44 }
 0x515   : > { %v3236_v18 = vpop.f32.mrf.mxu3  ;;  %3659 = vmatpush.msrb.mxu2 %v3591_v60  ;;  %v3555_v51 = vpop.f32.mrf.mxu1 }
 0x516   : > { %v3237_v43 = vadd.f32 %v3236_v18, %v9588_v50  ;;  %v3589_v50 = vld [vmem:[%s11173_s4 + $0x18] sm:$0xff] }
 0x517   : > { %3660 = vmatpush.msrb.mxu2 %v3590_v39 }
 0x518   : > { %v9717_v59 = vmax.f32 %v3237_v43, %v3544_v52  ;;  %v3496_v38 = vpop.f32.mrf.mxu0 }
 0x519   : > { %3661 = vmatpush.msrb.mxu2 %v3589_v50 }
 0x51a   : > { %6516 = vmatmul.msk.f32.gmra.mxu3 %vm2965_vm4, %v9480_v56  ;;  %6577 = vmatmul.msk.f32.gmra.mxu1 %vm2808_vm1, %v9717_v59 }
 0x51b   : > { %3662 = vmatpush.msrb.mxu2 %v3588_v57 }
 0x51d   : > { %v3239_v48 = vpop.f32.mrf.mxu3  ;;  %3663 = vmatpush.msrb.mxu2 %v3587_v9 }
 0x51e   : > { %v3240_v56 = vadd.f32 %v3239_v48, %v9597_v46  ;;  %v3339_v46 = vpop.f32.mrf.mxu2 }
 0x51f   : > { %3664 = vmatpush.msrb.mxu2 %v3586_v35 }
 0x520   : > { %v9742_v42 = vmax.f32 %v3240_v56, %v3547_v47 }
 0x522   : > { %6517 = vmatmul.msk.f32.gmra.mxu3 %vm2965_vm4, %v9498_v12  ;;  %6578 = vmatmul.msk.f32.gmra.mxu1 %vm2808_vm1, %v9742_v42 }
 0x525   : > { %v3242_v20 = vpop.f32.mrf.mxu3 }
 0x526   : > { %v3243_v10 = vadd.f32 %v3242_v20, %v9627_v29  ;;  %v3342_v19 = vpop.f32.mrf.mxu2  ;;  %v3556_v29 = vadd.f32 %v3555_v51, %v3496_v38  ;;  %v3966_v38 = vld [vmem:[%s11174_s5 + $0x78] sm:$0xff] }
 0x528   : > { %v9749_v3 = vmax.f32 %v3243_v10, %v3550_v55 }
 0x52a   : > { %6533 = vmatmul.msk.f32.vlgmr.msrb.gmra.mxu3 %vm2808_vm1, %v9551_v13  ;;  %6579 = vmatmul.msk.f32.gmra.mxu1 %vm2808_vm1, %v9749_v3 }
 0x52d   : > { %v3245_v12 = vpop.f32.mrf.mxu3 }
 0x52e   : > { %v3246_v49 = vadd.f32 %v3245_v12, %v9665_v14  ;;  %v3345_v0 = vpop.f32.mrf.mxu2 }
 0x530   : > { %v9756_v63 = vmax.f32 %v3246_v49, %v3553_v61  ;;  %v3970_v49 = vld [vmem:[%s11174_s5 + $0x98] sm:$0xff] }
 0x532   : > { %6534 = vmatmul.msk.f32.gmra.mxu3 %vm2808_vm1, %v9558_v41  ;;  %6580 = vmatmul.msk.f32.gmra.mxu1 %vm2808_vm1, %v9756_v63 }
 0x535   : > { %v3248_v13 = vpop.f32.mrf.mxu3 }
 0x536   : > { %v3249_v23 = vadd.f32 %v3248_v13, %v3189_v5  ;;  %v3348_v43 = vpop.f32.mrf.mxu2 }
 0x538   : > { %v9762_v52 = vmax.f32 %v3249_v23, %v3556_v29  ;;  %v3964_v23 = vld [vmem:[%s11174_s5 + $0x68] sm:$0xff] }
 0x53a   : > { %6535 = vmatmul.msk.f32.gmra.mxu3 %vm2808_vm1, %v9565_v53  ;;  %6581 = vmatmul.msk.f32.gmra.mxu1 %vm2808_vm1, %v9762_v52 }
 0x53d   : > { %v3398_v14 = vpop.f32.mrf.mxu3 }
 0x53e   : > { %v3399_v18 = vadd.f32 %v3398_v14, %v3339_v46  ;;  %v3351_v5 = vpop.f32.mrf.mxu2  ;;  %v6633_v14 = vld [vmem:[%s11174_s5 + $0x158] sm:$0xf] }
 0x53f   : > { %6649 = vmatpush.msk.msrb.mxu1 %vm3008_vm3, %v6633_v14 }
 0x540   : > { %v3558_v41 = vmax.f32 %v9362_v32, %v3399_v18 }
 0x542   : > { %3665 = vmatmul.f32.vlgmr.msrb.gmra.mxu2 %v3558_v41  ;;  %3805 = vmatmul.f32.vlgmr.msra.gmra.mxu0 %v3558_v41  ;;  %v3962_v41 = vld [vmem:[%s11174_s5 + $0x58] sm:$0xff] }
 0x543   : > { %6536 = vmatmul.msk.f32.gmra.mxu3 %vm2808_vm1, %v9572_v27 }
 0x545   : > { %v3401_v60 = vpop.f32.mrf.mxu3 }
 0x546   : > { %v3402_v16 = vadd.f32 %v3401_v60, %v3342_v19  ;;  %v3354_v32 = vpop.f32.mrf.mxu2  ;;  %v6630_v60 = vld [vmem:[%s11174_s5 + $0x140] sm:$0xff] }
 0x548   : > { %v3560_v39 = vmax.f32 %v9380_v45, %v3402_v16 }
 0x54a   : > { %3668 = vmatmul.f32.gmra.mxu2 %v3560_v39  ;;  %3808 = vmatmul.f32.gmra.mxu0 %v3560_v39  ;;  %v3959_v39 = vld [vmem:[%s11174_s5 + $0x40] sm:$0xff] }
 0x54b   : > { %6537 = vmatmul.msk.f32.gmra.mxu3 %vm2808_vm1, %v9581_v24 }
 0x54d   : > { %v3404_v53 = vpop.f32.mrf.mxu3 }
 0x54e   : > { %v3405_v4 = vadd.f32 %v3404_v53, %v3345_v0  ;;  %v3357_v57 = vpop.f32.mrf.mxu2  ;;  %v3963_v0 = vld [vmem:[%s11174_s5 + $0x60] sm:$0xff]  ;;  %v6628_v53 = vld [vmem:[%s11174_s5 + $0x130] sm:$0xff] }
 0x54f   : > { %v9856_v16 = vpop.f32.mrf.mxu1 }
 0x550   : > { %v3562_v50 = vmax.f32 %v9398_v28, %v3405_v4  ;;  %v6629_v4 = vld [vmem:[%s11174_s5 + $0x138] sm:$0xff] }
 0x552   : > { %3671 = vmatmul.f32.gmra.mxu2 %v3562_v50  ;;  %3811 = vmatmul.f32.gmra.mxu0 %v3562_v50  ;;  %v3957_v50 = vld [vmem:[%s11174_s5 + $0x30] sm:$0xff] }
 0x553   : > { %6538 = vmatmul.msk.f32.gmra.mxu3 %vm2808_vm1, %v9590_v34 }
 0x555   : > { %v3407_v27 = vpop.f32.mrf.mxu3 }
 0x556   : > { %v3408_v8 = vadd.f32 %v3407_v27, %v3348_v43  ;;  %v3360_v54 = vpop.f32.mrf.mxu2  ;;  %v3961_v43 = vld [vmem:[%s11174_s5 + $0x50] sm:$0xff]  ;;  %v6626_v27 = vld [vmem:[%s11174_s5 + $0x120] sm:$0xff] }
 0x558   : > { %v3564_v45 = vmax.f32 %v9416_v40, %v3408_v8  ;;  %v6627_v8 = vld [vmem:[%s11174_s5 + $0x128] sm:$0xff] }
 0x55a   : > { %3674 = vmatmul.f32.gmra.mxu2 %v3564_v45  ;;  %3814 = vmatmul.f32.gmra.mxu0 %v3564_v45 }
 0x55b   : > { %6539 = vmatmul.msk.f32.gmra.mxu3 %vm2808_vm1, %v9602_v31 }
 0x55d   : > { %v3410_v24 = vpop.f32.mrf.mxu3 }
 0x55e   : > { %v3411_v33 = vadd.f32 %v3410_v24, %v3351_v5  ;;  %v3960_v5 = vld [vmem:[%s11174_s5 + $0x48] sm:$0xff]  ;;  %v3955_v24 = vld [vmem:[%s11174_s5 + $0x20] sm:$0xff] }
 0x560   : > { %v3566_v28 = vmax.f32 %v9434_v22, %v3411_v33  ;;  %v3363_v22 = vpop.f32.mrf.mxu2  ;;  %v6624_v33 = vld [vmem:[%s11174_s5 + $0x110] sm:$0xff] }
 0x562   : > { %3677 = vmatmul.f32.gmra.mxu2 %v3566_v28  ;;  %3817 = vmatmul.f32.gmra.mxu0 %v3566_v28  ;;  %v6625_v28 = vld [vmem:[%s11174_s5 + $0x118] sm:$0xff] }
 0x563   : > { %6540 = vmatmul.msk.f32.gmra.mxu3 %vm2808_vm1, %v9647_v25 }
 0x565   : > { %v3413_v34 = vpop.f32.mrf.mxu3 }
 0x566   : > { %v3414_v47 = vadd.f32 %v3413_v34, %v3354_v32  ;;  %v3958_v32 = vld [vmem:[%s11174_s5 + $0x38] sm:$0xff]  ;;  %v3953_v34 = vld [vmem:[%s11174_s5 + $0x10] sm:$0xff] }
 0x568   : > { %v3568_v40 = vmax.f32 %v9452_v58, %v3414_v47  ;;  %v3366_v58 = vpop.f32.mrf.mxu2  ;;  %v3954_v47 = vld [vmem:[%s11174_s5 + $0x18] sm:$0xff] }
 0x56a   : > { %3680 = vmatmul.f32.gmra.mxu2 %v3568_v40  ;;  %3820 = vmatmul.f32.gmra.mxu0 %v3568_v40  ;;  %v6623_v40 = vld [vmem:[%s11174_s5 + $0x108] sm:$0xff] }
 0x56b   : > { %6541 = vmatmul.msk.f32.gmra.mxu3 %vm2808_vm1, %v9686_v7 }
 0x56d   : > { %v3416_v31 = vpop.f32.mrf.mxu3 }
 0x56e   : > { %v3417_v48 = vadd.f32 %v3416_v31, %v3357_v57  ;;  %v3956_v57 = vld [vmem:[%s11174_s5 + $0x28] sm:$0xff]  ;;  %v3951_v31 = vld [vmem:[%s11174_s5] sm:$0xff] }
 0x570   : > { %v3570_v30 = vmax.f32 %v9470_v37, %v3417_v48  ;;  %v3369_v35 = vpop.f32.mrf.mxu2  ;;  %v3952_v48 = vld [vmem:[%s11174_s5 + $0x8] sm:$0xff] }
 0x572   : > { %3683 = vmatmul.f32.gmra.mxu2 %v3570_v30  ;;  %3823 = vmatmul.f32.gmra.mxu0 %v3570_v30  ;;  %v6620_v30 = vld [vmem:[%s11174_s5 + $0xf0] sm:$0xff] }
 0x573   : > { %6542 = vmatmul.msk.f32.gmra.mxu3 %vm2808_vm1, %v9717_v59 }
 0x575   : > { %v3419_v25 = vpop.f32.mrf.mxu3 }
 0x576   : > { %v3420_v56 = vadd.f32 %v3419_v25, %v3360_v54  ;;  %v6622_v54 = vld [vmem:[%s11174_s5 + $0x100] sm:$0xff]  ;;  %v3868_v25 = vpop.f32.mrf.mxu1 }
 0x578   : > { %v3572_v9 = vmax.f32 %v9488_v11, %v3420_v56  ;;  %v6618_v56 = vld [vmem:[%s11174_s5 + $0xe0] sm:$0xff] }
 0x57a   : > { %3686 = vmatmul.f32.gmra.mxu2 %v3572_v9  ;;  %3826 = vmatmul.f32.gmra.mxu0 %v3572_v9  ;;  %v6619_v9 = vld [vmem:[%s11174_s5 + $0xe8] sm:$0xff] }
 0x57b   : > { %6543 = vmatmul.msk.f32.gmra.mxu3 %vm2808_vm1, %v9742_v42  ;;  %v3971_v42 = vld [vmem:[%s11174_s5 + $0xa0] sm:$0xf] }
 0x57c   : > { %6582 = vmatpush.msk.msra.mxu2 %vm3008_vm3, %v3971_v42 }
 0x57d   : > { %v3422_v7 = vpop.f32.mrf.mxu3 }
 0x57e   : > { %v3423_v6 = vadd.f32 %v3422_v7, %v3363_v22  ;;  %v6621_v22 = vld [vmem:[%s11174_s5 + $0xf8] sm:$0xff]  ;;  %v6616_v7 = vld [vmem:[%s11174_s5 + $0xd0] sm:$0xff] }
 0x580   : > { %v3574_v37 = vmax.f32 %v9506_v1, %v3423_v6  ;;  %v3972_v1 = vld [vmem:[%s11174_s5 + $0xa8] sm:$0xf]  ;;  %v6617_v6 = vld [vmem:[%s11174_s5 + $0xd8] sm:$0xff] }
 0x581   : > { %6597 = vmatpush.msk.msra.mxu3 %vm3008_vm3, %v3972_v1 }
 0x582   : > { %3689 = vmatmul.f32.gmra.mxu2 %v3574_v37  ;;  %3829 = vmatmul.f32.gmra.mxu0 %v3574_v37  ;;  %v6614_v37 = vld [vmem:[%s11174_s5 + $0xc0] sm:$0xff] }
 0x583   : > { %6544 = vmatmul.msk.f32.gmra.mxu3 %vm2808_vm1, %v9749_v3 }
 0x584   : > { %4086 = vmatpush.msra.mxu3 %v3970_v49 }
 0x585   : > { %v3425_v59 = vpop.f32.mrf.mxu3 }
 0x586   : > { %v3426_v44 = vadd.f32 %v3425_v59, %v3366_v58  ;;  %v6615_v59 = vld [vmem:[%s11174_s5 + $0xc8] sm:$0xff] }
 0x588   : > { %v3576_v11 = vmax.f32 %v9511_v17, %v3426_v44  ;;  %v3372_v17 = vpop.f32.mrf.mxu2  ;;  %v6613_v44 = vld [vmem:[%s11174_s5 + $0xb8] sm:$0xff] }
 0x58a   : > { %3692 = vmatmul.f32.gmra.mxu2 %v3576_v11  ;;  %3832 = vmatmul.f32.gmra.mxu0 %v3576_v11  ;;  %v3871_v11 = vpop.f32.mrf.mxu1 }
 0x58b   : > { %6545 = vmatmul.msk.f32.gmra.mxu3 %vm2808_vm1, %v9756_v63  ;;  %v3967_v63 = vld [vmem:[%s11174_s5 + $0x80] sm:$0xff] }
 0x58d   : > { %v3428_v46 = vpop.f32.mrf.mxu3 }
 0x58e   : > { %v3429_v55 = vadd.f32 %v3428_v46, %v3369_v35  ;;  %v6612_v35 = vld [vmem:[%s11174_s5 + $0xb0] sm:$0xff] }
 0x590   : > { %v3578_v20 = vmax.f32 %v9525_v15, %v3429_v55  ;;  %v3375_v3 = vpop.f32.mrf.mxu2  ;;  %v3969_v15 = vld [vmem:[%s11174_s5 + $0x90] sm:$0xff] }
 0x591   : > { %4027 = vmatpush.msra.mxu2 %v3969_v15 }
 0x592   : > { %3695 = vmatmul.f32.gmra.mxu2 %v3578_v20  ;;  %3835 = vmatmul.f32.gmra.mxu0 %v3578_v20 }
 0x593   : > { %6546 = vmatmul.msk.f32.gmra.mxu3 %vm2808_vm1, %v9762_v52  ;;  %4028 = vmatpush.msra.mxu2 %v3967_v63  ;;  %v6632_v52 = vld [vmem:[%s11174_s5 + $0x150] sm:$0xf] }
 0x594   : > { %6634 = vmatpush.msk.msrb.mxu0 %vm3008_vm3, %v6632_v52 }
 0x595   : > { %v3431_v10 = vpop.f32.mrf.mxu3 }
 0x596   : > { %v3432_v2 = vadd.f32 %v3431_v10, %v3372_v17  ;;  %4263 = vmatpush.msrb.mxu0 %v6630_v60 }
 0x598   : > { %v3580_v36 = vmax.f32 %v9536_v21, %v3432_v2  ;;  %v3968_v21 = vld [vmem:[%s11174_s5 + $0x88] sm:$0xff]  ;;  %v3378_v51 = vpop.f32.mrf.mxu2  ;;  %4264 = vmatpush.msrb.mxu0 %v6628_v53  ;;  %v3874_v2 = vpop.f32.mrf.mxu1 }
 0x599   : > { %4087 = vmatpush.msra.mxu3 %v3968_v21 }
 0x59a   : > { %3698 = vmatmul.f32.gmra.mxu2 %v3580_v36  ;;  %3838 = vmatmul.f32.gmra.mxu0 %v3580_v36 }
 0x59b   : > { %4088 = vmatpush.msra.mxu3 %v3966_v38  ;;  %4265 = vmatpush.msrb.mxu0 %v6626_v27 }
 0x59d   : > { %v3434_v19 = vpop.f32.mrf.mxu3  ;;  %4089 = vmatpush.msra.mxu3 %v3964_v23  ;;  %4266 = vmatpush.msrb.mxu0 %v6624_v33 }
 0x59e   : > { %v3435_v61 = vadd.f32 %v3434_v19, %v3375_v3 }
 0x59f   : > { %4090 = vmatpush.msra.mxu3 %v3962_v41  ;;  %4267 = vmatpush.msrb.mxu0 %v6622_v54 }
 0x5a0   : > { %v3582_v12 = vmax.f32 %v9541_v26, %v3435_v61  ;;  %v3965_v26 = vld [vmem:[%s11174_s5 + $0x70] sm:$0xff]  ;;  %v3877_v63 = vpop.f32.mrf.mxu1 }
 0x5a1   : > { %4029 = vmatpush.msra.mxu2 %v3965_v26  ;;  %4091 = vmatpush.msra.mxu3 %v3960_v5 }
 0x5a2   : > { %3701 = vmatmul.f32.gmra.mxu2 %v3582_v12  ;;  %3841 = vmatmul.f32.gmra.mxu0 %v3582_v12 }
 0x5a3   : > { %4030 = vmatpush.msra.mxu2 %v3963_v0  ;;  %4092 = vmatpush.msra.mxu3 %v3958_v32 }
 0x5a4   : > { %4268 = vmatpush.msrb.mxu0 %v6620_v30 }
 0x5a5   : > { %v3437_v29 = vpop.f32.mrf.mxu3  ;;  %4031 = vmatpush.msra.mxu2 %v3961_v43  ;;  %4093 = vmatpush.msra.mxu3 %v3956_v57 }
 0x5a6   : > { %v3438_v13 = vadd.f32 %v3437_v29, %v3378_v51  ;;  %4269 = vmatpush.msrb.mxu0 %v6618_v56 }
 0x5a7   : > { %4032 = vmatpush.msra.mxu2 %v3959_v39  ;;  %4094 = vmatpush.msra.mxu3 %v3954_v47 }
 0x5a8   : > { %v3584_v18 = vmax.f32 %v9546_v62, %v3438_v13  ;;  %v6631_v62 = vld [vmem:[%s11174_s5 + $0x148] sm:$0xff]  ;;  %4270 = vmatpush.msrb.mxu0 %v6616_v7  ;;  %v3880_v52 = vpop.f32.mrf.mxu1 }
 0x5a9   : > { %4322 = vmatpush.msrb.mxu1 %v6631_v62  ;;  %4033 = vmatpush.msra.mxu2 %v3957_v50 }
 0x5aa   : > { %3704 = vmatmul.f32.gmra.mxu2 %v3584_v18  ;;  %3844 = vmatmul.f32.gmra.mxu0 %v3584_v18 }
 0x5ab   : > { %4323 = vmatpush.msrb.mxu1 %v6629_v4  ;;  %4034 = vmatpush.msra.mxu2 %v3955_v24 }
 0x5ac   : > { %4095 = vmatpush.msra.mxu3 %v3952_v48  ;;  %4271 = vmatpush.msrb.mxu0 %v6614_v37 }
 0x5ad   : > { %v3725_v45 = vpop.f32.mrf.mxu3  ;;  %4324 = vmatpush.msrb.mxu1 %v6627_v8  ;;  %4035 = vmatpush.msra.mxu2 %v3953_v34 }
 0x5ae   : > { %4272 = vmatpush.msrb.mxu0 %v6612_v35 }
 0x5af   : > { %4325 = vmatpush.msrb.mxu1 %v6625_v28  ;;  %4036 = vmatpush.msra.mxu2 %v3951_v31 }
 0x5b0   : > { %v3883_v50 = vpop.f32.mrf.mxu1 }
 0x5b1   : > { %4326 = vmatpush.msrb.mxu1 %v6623_v40 }
 0x5b3   : > { %4327 = vmatpush.msrb.mxu1 %v6621_v22 }
 0x5b5   : > { %v3728_v58 = vpop.f32.mrf.mxu3  ;;  %4328 = vmatpush.msrb.mxu1 %v6619_v9 }
 0x5b7   : > { %4329 = vmatpush.msrb.mxu1 %v6617_v6 }
 0x5b8   : > { %v3886_v54 = vpop.f32.mrf.mxu1 }
 0x5b9   : > { %4330 = vmatpush.msrb.mxu1 %v6615_v59 }
 0x5bb   : > { %4331 = vmatpush.msrb.mxu1 %v6613_v44 }
 0x5bd   : > { %v3731_v1 = vpop.f32.mrf.mxu3 }
 0x5bf   : > { %v3806_v42 = vpop.f32.mrf.mxu0 }
 0x5c0   : > { %v3866_v55 = vadd.f32 %v9856_v16, %v3806_v42  ;;  %v3889_v6 = vpop.f32.mrf.mxu1 }
 0x5c5   : > { %v3666_v46 = vpop.f32.mrf.mxu2 }
 0x5c6   : > { %v3726_v17 = vadd.f32 %v3725_v45, %v3666_v46  ;;  %v3734_v36 = vpop.f32.mrf.mxu3 }
 0x5c7   : > { %v3809_v20 = vpop.f32.mrf.mxu0 }
 0x5c8   : > { %v3907_v10 = vmax.f32 %v3726_v17, %v3866_v55  ;;  %v3869_v19 = vadd.f32 %v3868_v25, %v3809_v20  ;;  %v3892_v55 = vpop.f32.mrf.mxu1 }
 0x5ca   : > { %3922 = vst.msk [vmem:[#allocation3] sm:$0xff] %vm3921_vm5, %v3907_v10 }
 0x5cd   : > { %v3669_v3 = vpop.f32.mrf.mxu2 }
 0x5ce   : > { %v3729_v61 = vadd.f32 %v3728_v58, %v3669_v3  ;;  %v3737_v21 = vpop.f32.mrf.mxu3 }
 0x5cf   : > { %v3812_v12 = vpop.f32.mrf.mxu0 }
 0x5d0   : > { %v3908_v15 = vmax.f32 %v3729_v61, %v3869_v19  ;;  %v3872_v38 = vadd.f32 %v3871_v11, %v3812_v12 }
 0x5d1   : > { %v3937_v49 = vld [vmem:[#allocation3] sm:$0xff] }
 0x5d2   : > { %3923 = vst.msk [vmem:[#allocation3 + $0x8] sm:$0xff] %vm3921_vm5, %v3908_v15  ;;  %6583 = vmatmul.msk.f32.vlgmr.msra.gmra.mxu2 %vm3921_vm5, %v3937_v49  ;;  %6598 = vmatmul.msk.f32.vlgmr.msra.gmra.mxu3 %vm3921_vm5, %v3937_v49 }
 0x5d5   : > { %v3672_v26 = vpop.f32.mrf.mxu2 }
 0x5d6   : > { %v3732_v51 = vadd.f32 %v3731_v1, %v3672_v26  ;;  %v3740_v18 = vpop.f32.mrf.mxu3  ;;  %v6685_v26 = vld [vmem:[%s11174_s5 + $0x208] sm:$0xf] }
 0x5d7   : > { %v3815_v29 = vpop.f32.mrf.mxu0  ;;  %6701 = vmatpush.msk.msrb.mxu3 %vm3008_vm3, %v6685_v26  ;;  %v6721_v26 = vld [vmem:[%s11174_s5 + $0x238] sm:$0xff] }
 0x5d8   : > { %v3909_v13 = vmax.f32 %v3732_v51, %v3872_v38  ;;  %v3875_v43 = vadd.f32 %v3874_v2, %v3815_v29 }
 0x5d9   : > { %v3938_v0 = vld [vmem:[#allocation3 + $0x8] sm:$0xff] }
 0x5da   : > { %v4172_v23 = vld [vmem:[#allocation3 + $0x1] sm:$0xff]  ;;  %3924 = vst.msk [vmem:[#allocation3 + $0x10] sm:$0xff] %vm3921_vm5, %v3909_v13  ;;  %6584 = vmatmul.msk.f32.gmra.mxu2 %vm3921_vm5, %v3938_v0  ;;  %6599 = vmatmul.msk.f32.gmra.mxu3 %vm3921_vm5, %v3938_v0  ;;  %v6682_v13 = vld [vmem:[%s11174_s5 + $0x1f0] sm:$0xff]  ;;  %v6683_v0 = vld [vmem:[%s11174_s5 + $0x1f8] sm:$0xff] }
 0x5db   : > { %6635 = vmatmul.msk.f32.vlgmr.msrb.gmra.mxu0 %vm3921_vm5, %v4172_v23  ;;  %6650 = vmatmul.msk.f32.vlgmr.msrb.gmra.mxu1 %vm3921_vm5, %v4172_v23 }
 0x5dc   : > { %4553 = vmatpush.msrb.mxu3 %v6683_v0  ;;  %v6719_v0 = vld [vmem:[%s11174_s5 + $0x228] sm:$0xff] }
 0x5dd   : > { %v3675_v14 = vpop.f32.mrf.mxu2 }
 0x5de   : > { %v3735_v41 = vadd.f32 %v3734_v36, %v3675_v14  ;;  %v3743_v27 = vpop.f32.mrf.mxu3  ;;  %v6680_v14 = vld [vmem:[%s11174_s5 + $0x1e0] sm:$0xff] }
 0x5df   : > { %v3818_v60 = vpop.f32.mrf.mxu0 }
 0x5e0   : > { %v3910_v62 = vmax.f32 %v3735_v41, %v3875_v43  ;;  %v3878_v53 = vadd.f32 %v3877_v63, %v3818_v60  ;;  %v3895_v63 = vpop.f32.mrf.mxu1  ;;  %v6678_v43 = vld [vmem:[%s11174_s5 + $0x1d0] sm:$0xff]  ;;  %v6679_v41 = vld [vmem:[%s11174_s5 + $0x1d8] sm:$0xff] }
 0x5e1   : > { %v3939_v16 = vld [vmem:[#allocation3 + $0x10] sm:$0xff] }
 0x5e2   : > { %v4173_v39 = vld [vmem:[#allocation3 + $0x9] sm:$0xff]  ;;  %3925 = vst.msk [vmem:[#allocation3 + $0x18] sm:$0xff] %vm3921_vm5, %v3910_v62  ;;  %6585 = vmatmul.msk.f32.gmra.mxu2 %vm3921_vm5, %v3939_v16  ;;  %6600 = vmatmul.msk.f32.gmra.mxu3 %vm3921_vm5, %v3939_v16  ;;  %v6737_v62 = vld [vmem:[%s11174_s5 + $0x2b8] sm:$0xf] }
 0x5e3   : > { %6636 = vmatmul.msk.f32.gmra.mxu0 %vm3921_vm5, %v4173_v39  ;;  %6651 = vmatmul.msk.f32.gmra.mxu1 %vm3921_vm5, %v4173_v39  ;;  %v6736_v60 = vld [vmem:[%s11174_s5 + $0x2b0] sm:$0xf]  ;;  %v6676_v39 = vld [vmem:[%s11174_s5 + $0x1c0] sm:$0xff] }
 0x5e4   : > { %6738 = vmatpush.msk.msra.mxu0 %vm3008_vm3, %v6736_v60  ;;  %6753 = vmatpush.msk.msra.mxu1 %vm3008_vm3, %v6737_v62 }
 0x5e5   : > { %v3678_v5 = vpop.f32.mrf.mxu2 }
 0x5e6   : > { %v3738_v4 = vadd.f32 %v3737_v21, %v3678_v5  ;;  %v3746_v48 = vpop.f32.mrf.mxu3  ;;  %v6684_v21 = vld [vmem:[%s11174_s5 + $0x200] sm:$0xf]  ;;  %v6677_v5 = vld [vmem:[%s11174_s5 + $0x1c8] sm:$0xff] }
 0x5e7   : > { %v3821_v32 = vpop.f32.mrf.mxu0  ;;  %6686 = vmatpush.msk.msrb.mxu2 %vm3008_vm3, %v6684_v21  ;;  %v6720_v21 = vld [vmem:[%s11174_s5 + $0x230] sm:$0xff] }
 0x5e8   : > { %v3911_v8 = vmax.f32 %v3738_v4, %v3878_v53  ;;  %v3881_v33 = vadd.f32 %v3880_v52, %v3821_v32  ;;  %v6734_v53 = vld [vmem:[%s11174_s5 + $0x2a0] sm:$0xff]  ;;  %v6735_v32 = vld [vmem:[%s11174_s5 + $0x2a8] sm:$0xff] }
 0x5e9   : > { %v3940_v45 = vld [vmem:[#allocation3 + $0x18] sm:$0xff]  ;;  %4494 = vmatpush.msrb.mxu2 %v6682_v13  ;;  %4725 = vmatpush.msra.mxu0 %v6734_v53 }
 0x5ea   : > { %v4174_v24 = vld [vmem:[#allocation3 + $0x11] sm:$0xff]  ;;  %3926 = vst.msk [vmem:[#allocation3 + $0x20] sm:$0xff] %vm3921_vm5, %v3911_v8  ;;  %6586 = vmatmul.msk.f32.gmra.mxu2 %vm3921_vm5, %v3940_v45  ;;  %6601 = vmatmul.msk.f32.gmra.mxu3 %vm3921_vm5, %v3940_v45 }
 0x5eb   : > { %6637 = vmatmul.msk.f32.gmra.mxu0 %vm3921_vm5, %v4174_v24  ;;  %6652 = vmatmul.msk.f32.gmra.mxu1 %vm3921_vm5, %v4174_v24  ;;  %v6732_v8 = vld [vmem:[%s11174_s5 + $0x290] sm:$0xff]  ;;  %v6733_v45 = vld [vmem:[%s11174_s5 + $0x298] sm:$0xff] }
 0x5ec   : > { %4495 = vmatpush.msrb.mxu2 %v6680_v14  ;;  %4784 = vmatpush.msra.mxu1 %v6735_v32  ;;  %v6717_v14 = vld [vmem:[%s11174_s5 + $0x218] sm:$0xff] }
 0x5ed   : > { %v3681_v57 = vpop.f32.mrf.mxu2  ;;  %4726 = vmatpush.msra.mxu0 %v6732_v8  ;;  %v4634_v8 = vld [vmem:[#allocation3 + $0x3] sm:$0xff] }
 0x5ee   : > { %v3741_v28 = vadd.f32 %v3740_v18, %v3681_v57  ;;  %v3749_v37 = vpop.f32.mrf.mxu3  ;;  %v6681_v18 = vld [vmem:[%s11174_s5 + $0x1e8] sm:$0xff]  ;;  %4496 = vmatpush.msrb.mxu2 %v6678_v43  ;;  %v3898_v57 = vpop.f32.mrf.mxu1  ;;  %4785 = vmatpush.msra.mxu1 %v6733_v45  ;;  %v4405_v45 = vld [vmem:[#allocation3 + $0x12] sm:$0xff] }
 0x5ef   : > { %v3824_v34 = vpop.f32.mrf.mxu0  ;;  %4554 = vmatpush.msrb.mxu3 %v6681_v18 }
 0x5f0   : > { %v3912_v47 = vmax.f32 %v3741_v28, %v3881_v33  ;;  %v3884_v22 = vadd.f32 %v3883_v50, %v3824_v34  ;;  %4497 = vmatpush.msrb.mxu2 %v6676_v39  ;;  %v6674_v33 = vld [vmem:[%s11174_s5 + $0x1b0] sm:$0xff] }
 0x5f1   : > { %v3941_v40 = vld [vmem:[#allocation3 + $0x20] sm:$0xff]  ;;  %4555 = vmatpush.msrb.mxu3 %v6679_v41 }
 0x5f2   : > { %v4175_v31 = vld [vmem:[#allocation3 + $0x19] sm:$0xff]  ;;  %3927 = vst.msk [vmem:[#allocation3 + $0x28] sm:$0xff] %vm3921_vm5, %v3912_v47  ;;  %6587 = vmatmul.msk.f32.gmra.mxu2 %vm3921_vm5, %v3941_v40  ;;  %6602 = vmatmul.msk.f32.gmra.mxu3 %vm3921_vm5, %v3941_v40 }
 0x5f3   : > { %6638 = vmatmul.msk.f32.gmra.mxu0 %vm3921_vm5, %v4175_v31  ;;  %6653 = vmatmul.msk.f32.gmra.mxu1 %vm3921_vm5, %v4175_v31  ;;  %v6672_v40 = vld [vmem:[%s11174_s5 + $0x1a0] sm:$0xff]  ;;  %v6673_v31 = vld [vmem:[%s11174_s5 + $0x1a8] sm:$0xff] }
 0x5f4   : > { %4556 = vmatpush.msrb.mxu3 %v6677_v5  ;;  %4498 = vmatpush.msrb.mxu2 %v6674_v33 }
 0x5f5   : > { %v3684_v30 = vpop.f32.mrf.mxu2 }
 0x5f6   : > { %v3744_v25 = vadd.f32 %v3743_v27, %v3684_v30  ;;  %v3752_v20 = vpop.f32.mrf.mxu3  ;;  %v6670_v30 = vld [vmem:[%s11174_s5 + $0x190] sm:$0xff]  ;;  %4499 = vmatpush.msrb.mxu2 %v6672_v40 }
 0x5f7   : > { %v3827_v56 = vpop.f32.mrf.mxu0 }
 0x5f8   : > { %v3913_v9 = vmax.f32 %v3744_v25, %v3884_v22  ;;  %v3887_v35 = vadd.f32 %v3886_v54, %v3827_v56  ;;  %v6675_v54 = vld [vmem:[%s11174_s5 + $0x1b8] sm:$0xff]  ;;  %v6731_v22 = vld [vmem:[%s11174_s5 + $0x288] sm:$0xff]  ;;  %4500 = vmatpush.msrb.mxu2 %v6670_v30 }
 0x5f9   : > { %v3942_v58 = vld [vmem:[#allocation3 + $0x28] sm:$0xff]  ;;  %4557 = vmatpush.msrb.mxu3 %v6675_v54  ;;  %v6671_v56 = vld [vmem:[%s11174_s5 + $0x198] sm:$0xff]  ;;  %4786 = vmatpush.msra.mxu1 %v6731_v22 }
 0x5fa   : > { %v4176_v7 = vld [vmem:[#allocation3 + $0x21] sm:$0xff]  ;;  %3928 = vst.msk [vmem:[#allocation3 + $0x30] sm:$0xff] %vm3921_vm5, %v3913_v9  ;;  %6588 = vmatmul.msk.f32.gmra.mxu2 %vm3921_vm5, %v3942_v58  ;;  %6603 = vmatmul.msk.f32.gmra.mxu3 %vm3921_vm5, %v3942_v58  ;;  %v6728_v9 = vld [vmem:[%s11174_s5 + $0x270] sm:$0xff]  ;;  %v6729_v58 = vld [vmem:[%s11174_s5 + $0x278] sm:$0xff] }
 0x5fb   : > { %6639 = vmatmul.msk.f32.gmra.mxu0 %vm3921_vm5, %v4176_v7  ;;  %6654 = vmatmul.msk.f32.gmra.mxu1 %vm3921_vm5, %v4176_v7  ;;  %v4407_v40 = vld [vmem:[#allocation3 + $0x22] sm:$0xff] }
 0x5fc   : > { %4558 = vmatpush.msrb.mxu3 %v6673_v31  ;;  %4787 = vmatpush.msra.mxu1 %v6729_v58  ;;  %v4637_v31 = vld [vmem:[#allocation3 + $0x1b] sm:$0xff] }
 0x5fd   : > { %v3687_v59 = vpop.f32.mrf.mxu2 }
 0x5fe   : > { %v3747_v44 = vadd.f32 %v3746_v48, %v3687_v59  ;;  %v3755_v51 = vpop.f32.mrf.mxu3  ;;  %v6730_v48 = vld [vmem:[%s11174_s5 + $0x280] sm:$0xff]  ;;  %v6727_v59 = vld [vmem:[%s11174_s5 + $0x268] sm:$0xff]  ;;  %4559 = vmatpush.msrb.mxu3 %v6671_v56 }
 0x5ff   : > { %v3830_v11 = vpop.f32.mrf.mxu0  ;;  %4727 = vmatpush.msra.mxu0 %v6730_v48  ;;  %4788 = vmatpush.msra.mxu1 %v6727_v59 }
 0x600   : > { %v3914_v42 = vmax.f32 %v3747_v44, %v3887_v35  ;;  %v3890_v10 = vadd.f32 %v3889_v6, %v3830_v11  ;;  %v6668_v44 = vld [vmem:[%s11174_s5 + $0x180] sm:$0xff] }
 0x601   : > { %v3943_v1 = vld [vmem:[#allocation3 + $0x30] sm:$0xff]  ;;  %4728 = vmatpush.msra.mxu0 %v6728_v9  ;;  %4501 = vmatpush.msrb.mxu2 %v6668_v44 }
 0x602   : > { %v4177_v46 = vld [vmem:[#allocation3 + $0x29] sm:$0xff]  ;;  %3929 = vst.msk [vmem:[#allocation3 + $0x38] sm:$0xff] %vm3921_vm5, %v3914_v42  ;;  %6589 = vmatmul.msk.f32.gmra.mxu2 %vm3921_vm5, %v3943_v1  ;;  %6604 = vmatmul.msk.f32.gmra.mxu3 %vm3921_vm5, %v3943_v1 }
 0x603   : > { %6640 = vmatmul.msk.f32.gmra.mxu0 %vm3921_vm5, %v4177_v46  ;;  %6655 = vmatmul.msk.f32.gmra.mxu1 %vm3921_vm5, %v4177_v46  ;;  %v6669_v46 = vld [vmem:[%s11174_s5 + $0x188] sm:$0xff] }
 0x604   : > { %4560 = vmatpush.msrb.mxu3 %v6669_v46  ;;  %v4408_v22 = vld [vmem:[#allocation3 + $0x2a] sm:$0xff] }
 0x605   : > { %v3690_v17 = vpop.f32.mrf.mxu2  ;;  %v6786_v46 = vld [vmem:[%s11174_s5 + $0x350] sm:$0xff] }
 0x606   : > { %v3750_v2 = vadd.f32 %v3749_v37, %v3690_v17  ;;  %v3758_v47 = vpop.f32.mrf.mxu3  ;;  %v6726_v37 = vld [vmem:[%s11174_s5 + $0x260] sm:$0xff]  ;;  %v6724_v17 = vld [vmem:[%s11174_s5 + $0x250] sm:$0xff] }
 0x607   : > { %v3833_v36 = vpop.f32.mrf.mxu0  ;;  %4729 = vmatpush.msra.mxu0 %v6726_v37 }
 0x608   : > { %v3915_v3 = vmax.f32 %v3750_v2, %v3890_v10  ;;  %v3893_v15 = vadd.f32 %v3892_v55, %v3833_v36  ;;  %v3901_v55 = vpop.f32.mrf.mxu1  ;;  %v6666_v2 = vld [vmem:[%s11174_s5 + $0x170] sm:$0xff]  ;;  %v6667_v36 = vld [vmem:[%s11174_s5 + $0x178] sm:$0xff] }
 0x609   : > { %v3944_v19 = vld [vmem:[#allocation3 + $0x38] sm:$0xff]  ;;  %4730 = vmatpush.msra.mxu0 %v6724_v17  ;;  %4502 = vmatpush.msrb.mxu2 %v6666_v2 }
 0x60a   : > { %v4178_v61 = vld [vmem:[#allocation3 + $0x31] sm:$0xff]  ;;  %3930 = vst.msk [vmem:[#allocation3 + $0x40] sm:$0xff] %vm3921_vm5, %v3915_v3  ;;  %6590 = vmatmul.msk.f32.gmra.mxu2 %vm3921_vm5, %v3944_v19  ;;  %6605 = vmatmul.msk.f32.gmra.mxu3 %vm3921_vm5, %v3944_v19  ;;  %v6722_v3 = vld [vmem:[%s11174_s5 + $0x240] sm:$0xff]  ;;  %v6723_v19 = vld [vmem:[%s11174_s5 + $0x248] sm:$0xff] }
 0x60b   : > { %6641 = vmatmul.msk.f32.gmra.mxu0 %vm3921_vm5, %v4178_v61  ;;  %6656 = vmatmul.msk.f32.gmra.mxu1 %vm3921_vm5, %v4178_v61  ;;  %v4409_v58 = vld [vmem:[#allocation3 + $0x32] sm:$0xff] }
 0x60c   : > { %4561 = vmatpush.msrb.mxu3 %v6667_v36  ;;  %4731 = vmatpush.msra.mxu0 %v6722_v3  ;;  %v6782_v36 = vld [vmem:[%s11174_s5 + $0x330] sm:$0xff]  ;;  %v6783_v3 = vld [vmem:[%s11174_s5 + $0x338] sm:$0xff] }
 0x60d   : > { %v3693_v12 = vpop.f32.mrf.mxu2 }
 0x60e   : > { %v3753_v49 = vadd.f32 %v3752_v20, %v3693_v12  ;;  %v6725_v20 = vld [vmem:[%s11174_s5 + $0x258] sm:$0xff]  ;;  %v3761_v10 = vpop.f32.mrf.mxu3  ;;  %v6664_v12 = vld [vmem:[%s11174_s5 + $0x160] sm:$0xff]  ;;  %4732 = vmatpush.msra.mxu0 %v6720_v21 }
 0x60f   : > { %v3836_v38 = vpop.f32.mrf.mxu0  ;;  %4789 = vmatpush.msra.mxu1 %v6725_v20  ;;  %4503 = vmatpush.msrb.mxu2 %v6664_v12  ;;  %v6784_v20 = vld [vmem:[%s11174_s5 + $0x340] sm:$0xff]  ;;  %v6779_v21 = vld [vmem:[%s11174_s5 + $0x318] sm:$0xff] }
 0x610   : > { %v3916_v29 = vmax.f32 %v3753_v49, %v3893_v15  ;;  %v3896_v4 = vadd.f32 %v3895_v63, %v3836_v38  ;;  %v6665_v15 = vld [vmem:[%s11174_s5 + $0x168] sm:$0xff]  ;;  %v3904_v18 = vpop.f32.mrf.mxu1  ;;  %v6780_v12 = vld [vmem:[%s11174_s5 + $0x320] sm:$0xff] }
 0x611   : > { %v3945_v23 = vld [vmem:[#allocation3 + $0x40] sm:$0xff]  ;;  %4790 = vmatpush.msra.mxu1 %v6723_v19  ;;  %4562 = vmatpush.msrb.mxu3 %v6665_v15  ;;  %v6781_v15 = vld [vmem:[%s11174_s5 + $0x328] sm:$0xff] }
 0x612   : > { %v4179_v52 = vld [vmem:[#allocation3 + $0x39] sm:$0xff]  ;;  %3931 = vst.msk [vmem:[#allocation3 + $0x48] sm:$0xff] %vm3921_vm5, %v3916_v29  ;;  %6591 = vmatmul.msk.f32.gmra.mxu2 %vm3921_vm5, %v3945_v23  ;;  %6606 = vmatmul.msk.f32.gmra.mxu3 %vm3921_vm5, %v3945_v23 }
 0x613   : > { %6642 = vmatmul.msk.f32.gmra.mxu0 %vm3921_vm5, %v4179_v52  ;;  %6657 = vmatmul.msk.f32.gmra.mxu1 %vm3921_vm5, %v4179_v52  ;;  %v6716_v52 = vld [vmem:[%s11174_s5 + $0x210] sm:$0xff]  ;;  %v4410_v59 = vld [vmem:[#allocation3 + $0x3a] sm:$0xff] }
 0x614   : > { %4791 = vmatpush.msra.mxu1 %v6721_v26  ;;  %v4641_v2 = vld [vmem:[#allocation3 + $0x3b] sm:$0xff] }
 0x615   : > { %v3696_v16 = vpop.f32.mrf.mxu2 }
 0x616   : > { %v3756_v50 = vadd.f32 %v3755_v51, %v3696_v16  ;;  %v6718_v51 = vld [vmem:[%s11174_s5 + $0x220] sm:$0xff]  ;;  %4792 = vmatpush.msra.mxu1 %v6719_v0  ;;  %v3764_v41 = vpop.f32.mrf.mxu3 }
 0x617   : > { %v3839_v27 = vpop.f32.mrf.mxu0  ;;  %4733 = vmatpush.msra.mxu0 %v6718_v51 }
 0x618   : > { %v3917_v24 = vmax.f32 %v3756_v50, %v3896_v4  ;;  %v3899_v7 = vadd.f32 %v3898_v57, %v3839_v27  ;;  %4793 = vmatpush.msra.mxu1 %v6717_v14  ;;  %v4403_v50 = vld [vmem:[#allocation3 + $0x2] sm:$0xff]  ;;  %v4404_v27 = vld [vmem:[#allocation3 + $0xa] sm:$0xff]  ;;  %v6775_v14 = vld [vmem:[%s11174_s5 + $0x2f8] sm:$0xff] }
 0x619   : > { %v3946_v28 = vld [vmem:[#allocation3 + $0x48] sm:$0xff]  ;;  %4734 = vmatpush.msra.mxu0 %v6716_v52  ;;  %v6774_v52 = vld [vmem:[%s11174_s5 + $0x2f0] sm:$0xff] }
 0x61a   : > { %v4180_v34 = vld [vmem:[#allocation3 + $0x41] sm:$0xff]  ;;  %3932 = vst.msk [vmem:[#allocation3 + $0x50] sm:$0xff] %vm3921_vm5, %v3917_v24  ;;  %6592 = vmatmul.msk.f32.gmra.mxu2 %vm3921_vm5, %v3946_v28  ;;  %6607 = vmatmul.msk.f32.gmra.mxu3 %vm3921_vm5, %v3946_v28  ;;  %v4635_v24 = vld [vmem:[#allocation3 + $0xb] sm:$0xff] }
 0x61b   : > { %6643 = vmatmul.msk.f32.gmra.mxu0 %vm3921_vm5, %v4180_v34  ;;  %6658 = vmatmul.msk.f32.gmra.mxu1 %vm3921_vm5, %v4180_v34  ;;  %v4406_v28 = vld [vmem:[#allocation3 + $0x1a] sm:$0xff]  ;;  %v4411_v17 = vld [vmem:[#allocation3 + $0x42] sm:$0xff] }
 0x61c   : > { %v4636_v34 = vld [vmem:[#allocation3 + $0x13] sm:$0xff]  ;;  %v4642_v51 = vld [vmem:[#allocation3 + $0x43] sm:$0xff] }
 0x61d   : > { %v3699_v25 = vpop.f32.mrf.mxu2 }
 0x61e   : > { %v3759_v6 = vadd.f32 %v3758_v47, %v3699_v25  ;;  %v4638_v25 = vld [vmem:[#allocation3 + $0x23] sm:$0xff] }
 0x61f   : > { %v3842_v11 = vpop.f32.mrf.mxu0 }
 0x620   : > { %v3918_v35 = vmax.f32 %v3759_v6, %v3899_v7  ;;  %v3902_v49 = vadd.f32 %v3901_v55, %v3842_v11  ;;  %v4639_v7 = vld [vmem:[#allocation3 + $0x2b] sm:$0xff]  ;;  %v6787_v55 = vld [vmem:[%s11174_s5 + $0x358] sm:$0xff] }
 0x621   : > { %v3947_v42 = vld [vmem:[#allocation3 + $0x50] sm:$0xff] }
 0x622   : > { %v4181_v1 = vld [vmem:[#allocation3 + $0x49] sm:$0xff]  ;;  %3933 = vst.msk [vmem:[#allocation3 + $0x58] sm:$0xff] %vm3921_vm5, %v3918_v35  ;;  %6593 = vmatmul.msk.f32.gmra.mxu2 %vm3921_vm5, %v3947_v42  ;;  %6608 = vmatmul.msk.f32.gmra.mxu3 %vm3921_vm5, %v3947_v42  ;;  %v4640_v35 = vld [vmem:[#allocation3 + $0x33] sm:$0xff]  ;;  %v6788_v42 = vld [vmem:[%s11174_s5 + $0x360] sm:$0xf] }
 0x623   : > { %6644 = vmatmul.msk.f32.gmra.mxu0 %vm3921_vm5, %v4181_v1  ;;  %6659 = vmatmul.msk.f32.gmra.mxu1 %vm3921_vm5, %v4181_v1  ;;  %v6789_v1 = vld [vmem:[%s11174_s5 + $0x368] sm:$0xf] }
 0x624   : > { %6790 = vmatpush.msk.msra.mxu2 %vm3008_vm3, %v6788_v42  ;;  %6805 = vmatpush.msk.msra.mxu3 %vm3008_vm3, %v6789_v1 }
 0x625   : > { %v3702_v61 = vpop.f32.mrf.mxu2 }
 0x626   : > { %v3762_v63 = vadd.f32 %v3761_v10, %v3702_v61  ;;  %4956 = vmatpush.msra.mxu2 %v6786_v46  ;;  %5015 = vmatpush.msra.mxu3 %v6787_v55  ;;  %v6785_v10 = vld [vmem:[%s11174_s5 + $0x348] sm:$0xff] }
 0x627   : > { %v3845_v23 = vpop.f32.mrf.mxu0  ;;  %v4865_v46 = vld [vmem:[#allocation3 + $0x4] sm:$0xff] }
 0x628   : > { %v3919_v38 = vmax.f32 %v3762_v63, %v3902_v49  ;;  %v3905_v60 = vadd.f32 %v3904_v18, %v3845_v23  ;;  %4957 = vmatpush.msra.mxu2 %v6784_v20  ;;  %5016 = vmatpush.msra.mxu3 %v6785_v10  ;;  %v4412_v49 = vld [vmem:[#allocation3 + $0x4a] sm:$0xff] }
 0x629   : > { %v3948_v29 = vld [vmem:[#allocation3 + $0x58] sm:$0xff]  ;;  %v6778_v63 = vld [vmem:[%s11174_s5 + $0x310] sm:$0xff] }
 0x62a   : > { %v4182_v13 = vld [vmem:[#allocation3 + $0x51] sm:$0xff]  ;;  %3934 = vst.msk [vmem:[#allocation3 + $0x60] sm:$0xff] %vm3921_vm5, %v3919_v38  ;;  %6594 = vmatmul.msk.f32.gmra.mxu2 %vm3921_vm5, %v3948_v29  ;;  %6609 = vmatmul.msk.f32.gmra.mxu3 %vm3921_vm5, %v3948_v29  ;;  %v6776_v29 = vld [vmem:[%s11174_s5 + $0x300] sm:$0xff] }
 0x62b   : > { %6645 = vmatmul.msk.f32.gmra.mxu0 %vm3921_vm5, %v4182_v13  ;;  %6660 = vmatmul.msk.f32.gmra.mxu1 %vm3921_vm5, %v4182_v13  ;;  %v6777_v13 = vld [vmem:[%s11174_s5 + $0x308] sm:$0xff]  ;;  %v4413_v18 = vld [vmem:[#allocation3 + $0x52] sm:$0xff] }
 0x62c   : > { %4958 = vmatpush.msra.mxu2 %v6782_v36  ;;  %5017 = vmatpush.msra.mxu3 %v6783_v3  ;;  %v3936_v36 = vld [vmem:[%s11175_s6] sm:$0x3]  ;;  %v4866_v3 = vld [vmem:[#allocation3 + $0xc] sm:$0xff] }
 0x62d   : > { %v3705_v43 = vpop.f32.mrf.mxu2 }
 0x62e   : > { %v3765_v62 = vadd.f32 %v3764_v41, %v3705_v43  ;;  %4959 = vmatpush.msra.mxu2 %v6780_v12  ;;  %5018 = vmatpush.msra.mxu3 %v6781_v15  ;;  %v6772_v43 = vld [vmem:[%s11174_s5 + $0x2e0] sm:$0xff]  ;;  %v6773_v41 = vld [vmem:[%s11174_s5 + $0x2e8] sm:$0xff]  ;;  %v10352_v12 = vperm.slane %v3936_v36, 0  ;;  %v10354_v15 = vperm.slane %v3936_v36, 1 }
 0x630   : > { %v3920_v16 = vmax.f32 %v3765_v62, %v3905_v60  ;;  %4960 = vmatpush.msra.mxu2 %v6778_v63  ;;  %5019 = vmatpush.msra.mxu3 %v6779_v21  ;;  %v4643_v60 = vld [vmem:[#allocation3 + $0x4b] sm:$0xff] }
 0x631   : > { %v3949_v39 = vld [vmem:[#allocation3 + $0x60] sm:$0xff]  ;;  %v6770_v62 = vld [vmem:[%s11174_s5 + $0x2d0] sm:$0xff] }
 0x632   : > { %v4183_v5 = vld [vmem:[#allocation3 + $0x59] sm:$0xff]  ;;  %3935 = vst.msk [vmem:[#allocation3 + $0x68] sm:$0xff] %vm3921_vm5, %v3920_v16  ;;  %6595 = vmatmul.msk.f32.gmra.mxu2 %vm3921_vm5, %v3949_v39  ;;  %6610 = vmatmul.msk.f32.gmra.mxu3 %vm3921_vm5, %v3949_v39 }
 0x633   : > { %6646 = vmatmul.msk.f32.gmra.mxu0 %vm3921_vm5, %v4183_v5  ;;  %6661 = vmatmul.msk.f32.gmra.mxu1 %vm3921_vm5, %v4183_v5  ;;  %v6771_v16 = vld [vmem:[%s11174_s5 + $0x2d8] sm:$0xff] }
 0x634   : > { %4961 = vmatpush.msra.mxu2 %v6776_v29  ;;  %5020 = vmatpush.msra.mxu3 %v6777_v13 }
 0x636   : > { %4962 = vmatpush.msra.mxu2 %v6774_v52  ;;  %5021 = vmatpush.msra.mxu3 %v6775_v14  ;;  %v4867_v52 = vld [vmem:[#allocation3 + $0x14] sm:$0xff] }
 0x638   : > { %4963 = vmatpush.msra.mxu2 %v6772_v43  ;;  %5022 = vmatpush.msra.mxu3 %v6773_v41 }
 0x639   : > { %v3950_v53 = vld [vmem:[#allocation3 + $0x68] sm:$0xf] }
 0x63a   : > { %v4184_v4 = vld [vmem:[#allocation3 + $0x61] sm:$0xff]  ;;  %6596 = vmatmul.msk.f32.gmra.mxu2 %vm3921_vm5, %v3950_v53  ;;  %6611 = vmatmul.msk.f32.gmra.mxu3 %vm3921_vm5, %v3950_v53  ;;  %v4185_v32 = vld [vmem:[#allocation3 + $0x69] sm:$0xf] }
 0x63b   : > { %6647 = vmatmul.msk.f32.gmra.mxu0 %vm3921_vm5, %v4184_v4  ;;  %6662 = vmatmul.msk.f32.gmra.mxu1 %vm3921_vm5, %v4184_v4  ;;  %v4647_v20 = vld [vmem:[#allocation3 + $0x6b] sm:$0xf] }
 0x63c   : > { %4964 = vmatpush.msra.mxu2 %v6770_v62  ;;  %5023 = vmatpush.msra.mxu3 %v6771_v16 }
 0x642   : > { %6687 = vmatmul.msk.f32.vlgmr.msrb.gmra.mxu2 %vm3921_vm5, %v4403_v50  ;;  %6702 = vmatmul.msk.f32.vlgmr.msrb.gmra.mxu3 %vm3921_vm5, %v4403_v50  ;;  %v6768_v50 = vld [vmem:[%s11174_s5 + $0x2c0] sm:$0xff] }
 0x643   : > { %6648 = vmatmul.msk.f32.gmra.mxu0 %vm3921_vm5, %v4185_v32  ;;  %6663 = vmatmul.msk.f32.gmra.mxu1 %vm3921_vm5, %v4185_v32  ;;  %v6769_v32 = vld [vmem:[%s11174_s5 + $0x2c8] sm:$0xff] }
 0x644   : > { %4965 = vmatpush.msra.mxu2 %v6768_v50  ;;  %5024 = vmatpush.msra.mxu3 %v6769_v32  ;;  %v4868_v32 = vld [vmem:[#allocation3 + $0x1c] sm:$0xff] }
 0x64a   : > { %6688 = vmatmul.msk.f32.gmra.mxu2 %vm3921_vm5, %v4404_v27  ;;  %6703 = vmatmul.msk.f32.gmra.mxu3 %vm3921_vm5, %v4404_v27  ;;  %v4414_v27 = vld [vmem:[#allocation3 + $0x5a] sm:$0xff] }
 0x64b   : > { %6739 = vmatmul.msk.f32.vlgmr.msra.gmra.mxu0 %vm3921_vm5, %v4634_v8  ;;  %6754 = vmatmul.msk.f32.vlgmr.msra.gmra.mxu1 %vm3921_vm5, %v4634_v8  ;;  %v4644_v8 = vld [vmem:[#allocation3 + $0x53] sm:$0xff] }
 0x652   : > { %6689 = vmatmul.msk.f32.gmra.mxu2 %vm3921_vm5, %v4405_v45  ;;  %6704 = vmatmul.msk.f32.gmra.mxu3 %vm3921_vm5, %v4405_v45 }
 0x653   : > { %6740 = vmatmul.msk.f32.gmra.mxu0 %vm3921_vm5, %v4635_v24  ;;  %6755 = vmatmul.msk.f32.gmra.mxu1 %vm3921_vm5, %v4635_v24 }
 0x655   : > { %v10159_v57 = vpop.f32.mrf.mxu2  ;;  %v10161_v33 = vpop.f32.mrf.mxu3 }
 0x656   : > { %v4144_v29 = vadd.f32 %v10352_v12, %v10159_v57  ;;  %v4145_v13 = vadd.f32 %v10354_v15, %v10161_v33 }
 0x658   : > { %v10249_v26 = vpop.f32.mrf.mxu0  ;;  %v10251_v38 = vpop.f32.mrf.mxu1 }
 0x659   : > { %v4375_v14 = vadd.f32 %v10249_v26, %v4144_v29 }
 0x65a   : > { %6690 = vmatmul.msk.f32.gmra.mxu2 %vm3921_vm5, %v4406_v28  ;;  %6705 = vmatmul.msk.f32.gmra.mxu3 %vm3921_vm5, %v4406_v28 }
 0x65b   : > { %6741 = vmatmul.msk.f32.gmra.mxu0 %vm3921_vm5, %v4636_v34  ;;  %6756 = vmatmul.msk.f32.gmra.mxu1 %vm3921_vm5, %v4636_v34 }
 0x65d   : > { %v10167_v47 = vpop.f32.mrf.mxu2  ;;  %v10169_v54 = vpop.f32.mrf.mxu3 }
 0x65e   : > { %v4146_v33 = vadd.f32 %v10352_v12, %v10167_v47  ;;  %v4147_v50 = vadd.f32 %v10354_v15, %v10169_v54 }
 0x660   : > { %v10289_v39 = vpop.f32.mrf.mxu0  ;;  %v10291_v5 = vpop.f32.mrf.mxu1 }
 0x661   : > { %v4377_v26 = vadd.f32 %v10289_v39, %v4146_v33 }
 0x662   : > { %6691 = vmatmul.msk.f32.gmra.mxu2 %vm3921_vm5, %v4407_v40  ;;  %6706 = vmatmul.msk.f32.gmra.mxu3 %vm3921_vm5, %v4407_v40  ;;  %v4415_v40 = vld [vmem:[#allocation3 + $0x62] sm:$0xff] }
 0x663   : > { %6742 = vmatmul.msk.f32.gmra.mxu0 %vm3921_vm5, %v4637_v31  ;;  %6757 = vmatmul.msk.f32.gmra.mxu1 %vm3921_vm5, %v4637_v31  ;;  %v4645_v31 = vld [vmem:[#allocation3 + $0x5b] sm:$0xff] }
 0x665   : > { %v10175_v48 = vpop.f32.mrf.mxu2  ;;  %v10177_v30 = vpop.f32.mrf.mxu3 }
 0x666   : > { %v4148_v47 = vadd.f32 %v10352_v12, %v10175_v48  ;;  %v4149_v54 = vadd.f32 %v10354_v15, %v10177_v30 }
 0x668   : > { %v10311_v28 = vpop.f32.mrf.mxu0  ;;  %v10313_v34 = vpop.f32.mrf.mxu1 }
 0x669   : > { %v4379_v39 = vadd.f32 %v10311_v28, %v4148_v47  ;;  %v4873_v47 = vld [vmem:[#allocation3 + $0x44] sm:$0xff] }
 0x66a   : > { %6692 = vmatmul.msk.f32.gmra.mxu2 %vm3921_vm5, %v4408_v22  ;;  %6707 = vmatmul.msk.f32.gmra.mxu3 %vm3921_vm5, %v4408_v22 }
 0x66b   : > { %6743 = vmatmul.msk.f32.gmra.mxu0 %vm3921_vm5, %v4638_v25  ;;  %6758 = vmatmul.msk.f32.gmra.mxu1 %vm3921_vm5, %v4638_v25 }
 0x66d   : > { %v10183_v56 = vpop.f32.mrf.mxu2  ;;  %v10185_v9 = vpop.f32.mrf.mxu3 }
 0x66e   : > { %v4150_v30 = vadd.f32 %v10352_v12, %v10183_v56  ;;  %v4151_v29 = vadd.f32 %v10354_v15, %v10185_v9  ;;  %v4871_v9 = vld [vmem:[#allocation3 + $0x34] sm:$0xff] }
 0x672   : > { %6693 = vmatmul.msk.f32.gmra.mxu2 %vm3921_vm5, %v4409_v58  ;;  %6708 = vmatmul.msk.f32.gmra.mxu3 %vm3921_vm5, %v4409_v58  ;;  %v10323_v58 = vpop.f32.mrf.mxu0 }
 0x673   : > { %6744 = vmatmul.msk.f32.gmra.mxu0 %vm3921_vm5, %v4639_v7  ;;  %6759 = vmatmul.msk.f32.gmra.mxu1 %vm3921_vm5, %v4639_v7  ;;  %v10325_v7 = vpop.f32.mrf.mxu1  ;;  %v4381_v28 = vadd.f32 %v10323_v58, %v4150_v30 }
 0x675   : > { %v10191_v6 = vpop.f32.mrf.mxu2  ;;  %v10193_v37 = vpop.f32.mrf.mxu3 }
 0x67a   : > { %6694 = vmatmul.msk.f32.gmra.mxu2 %vm3921_vm5, %v4410_v59  ;;  %6709 = vmatmul.msk.f32.gmra.mxu3 %vm3921_vm5, %v4410_v59  ;;  %v4416_v59 = vld [vmem:[#allocation3 + $0x6a] sm:$0xf]  ;;  %v10335_v55 = vpop.f32.mrf.mxu0 }
 0x67b   : > { %6745 = vmatmul.msk.f32.gmra.mxu0 %vm3921_vm5, %v4640_v35  ;;  %6760 = vmatmul.msk.f32.gmra.mxu1 %vm3921_vm5, %v4640_v35  ;;  %v4646_v35 = vld [vmem:[#allocation3 + $0x63] sm:$0xff] }
 0x67d   : > { %v10199_v44 = vpop.f32.mrf.mxu2  ;;  %v10201_v11 = vpop.f32.mrf.mxu3 }
 0x682   : > { %6695 = vmatmul.msk.f32.gmra.mxu2 %vm3921_vm5, %v4411_v17  ;;  %6710 = vmatmul.msk.f32.gmra.mxu3 %vm3921_vm5, %v4411_v17  ;;  %v10337_v17 = vpop.f32.mrf.mxu1 }
 0x683   : > { %6746 = vmatmul.msk.f32.gmra.mxu0 %vm3921_vm5, %v4641_v2  ;;  %6761 = vmatmul.msk.f32.gmra.mxu1 %vm3921_vm5, %v4641_v2 }
 0x685   : > { %v10233_v19 = vpop.f32.mrf.mxu2  ;;  %v10235_v61 = vpop.f32.mrf.mxu3 }
 0x68a   : > { %6696 = vmatmul.msk.f32.gmra.mxu2 %vm3921_vm5, %v4412_v49  ;;  %6711 = vmatmul.msk.f32.gmra.mxu3 %vm3921_vm5, %v4412_v49  ;;  %v10356_v49 = vpop.f32.mrf.mxu0  ;;  %v10358_v63 = vpop.f32.mrf.mxu1 }
 0x68b   : > { %6747 = vmatmul.msk.f32.gmra.mxu0 %vm3921_vm5, %v4642_v51  ;;  %6762 = vmatmul.msk.f32.gmra.mxu1 %vm3921_vm5, %v4642_v51 }
 0x68d   : > { %v10263_v0 = vpop.f32.mrf.mxu2  ;;  %v10265_v23 = vpop.f32.mrf.mxu3 }
 0x692   : > { %6697 = vmatmul.msk.f32.gmra.mxu2 %vm3921_vm5, %v4413_v18  ;;  %6712 = vmatmul.msk.f32.gmra.mxu3 %vm3921_vm5, %v4413_v18  ;;  %v4376_v18 = vadd.f32 %v10251_v38, %v4145_v13  ;;  %v10374_v62 = vpop.f32.mrf.mxu1  ;;  %v4378_v38 = vadd.f32 %v10291_v5, %v4147_v50  ;;  %v4380_v5 = vadd.f32 %v10313_v34, %v4149_v54  ;;  %v4870_v13 = vld [vmem:[#allocation3 + $0x2c] sm:$0xff] }
 0x693   : > { %6748 = vmatmul.msk.f32.gmra.mxu0 %vm3921_vm5, %v4643_v60  ;;  %6763 = vmatmul.msk.f32.gmra.mxu1 %vm3921_vm5, %v4643_v60  ;;  %v10372_v60 = vpop.f32.mrf.mxu0  ;;  %v4382_v34 = vadd.f32 %v10325_v7, %v4151_v29  ;;  %v4872_v7 = vld [vmem:[#allocation3 + $0x3c] sm:$0xff]  ;;  %v4875_v29 = vld [vmem:[#allocation3 + $0x54] sm:$0xff] }
 0x695   : > { %v10293_v53 = vpop.f32.mrf.mxu2  ;;  %v10295_v4 = vpop.f32.mrf.mxu3 }
 0x69a   : > { %6698 = vmatmul.msk.f32.gmra.mxu2 %vm3921_vm5, %v4414_v27  ;;  %6713 = vmatmul.msk.f32.gmra.mxu3 %vm3921_vm5, %v4414_v27 }
 0x69b   : > { %6749 = vmatmul.msk.f32.gmra.mxu0 %vm3921_vm5, %v4644_v8  ;;  %6764 = vmatmul.msk.f32.gmra.mxu1 %vm3921_vm5, %v4644_v8 }
 0x69d   : > { %v10307_v45 = vpop.f32.mrf.mxu2  ;;  %v10309_v24 = vpop.f32.mrf.mxu3 }
 0x69e   : > { %11461 = vst [vmem:[#allocation15_spill] sm:$0xff] %v10307_v45 }
 0x69f   : > { %11462 = vst [vmem:[#allocation14_spill] sm:$0xff] %v10309_v24 }
 0x6a2   : > { %6699 = vmatmul.msk.f32.gmra.mxu2 %vm3921_vm5, %v4415_v40  ;;  %6714 = vmatmul.msk.f32.gmra.mxu3 %vm3921_vm5, %v4415_v40 }
 0x6a3   : > { %6750 = vmatmul.msk.f32.gmra.mxu0 %vm3921_vm5, %v4645_v31  ;;  %6765 = vmatmul.msk.f32.gmra.mxu1 %vm3921_vm5, %v4645_v31 }
 0x6a5   : > { %v10319_v22 = vpop.f32.mrf.mxu2  ;;  %v10321_v25 = vpop.f32.mrf.mxu3 }
 0x6a6   : > { %11463 = vst [vmem:[#allocation16_spill] sm:$0xff] %v10319_v22 }
 0x6a7   : > { %11464 = vst [vmem:[#allocation17_spill] sm:$0xff] %v10321_v25 }
 0x6aa   : > { %6700 = vmatmul.msk.f32.gmra.mxu2 %vm3921_vm5, %v4416_v59  ;;  %6715 = vmatmul.msk.f32.gmra.mxu3 %vm3921_vm5, %v4416_v59  ;;  %v10396_v59 = vpop.f32.mrf.mxu0 }
 0x6ab   : > { %6751 = vmatmul.msk.f32.gmra.mxu0 %vm3921_vm5, %v4646_v35  ;;  %6766 = vmatmul.msk.f32.gmra.mxu1 %vm3921_vm5, %v4646_v35  ;;  %v10398_v35 = vpop.f32.mrf.mxu1 }
 0x6ad   : > { %v10331_v42 = vpop.f32.mrf.mxu2  ;;  %v10333_v1 = vpop.f32.mrf.mxu3 }
 0x6ae   : > { %11465 = vst [vmem:[#allocation19_spill] sm:$0xff] %v10331_v42 }
 0x6af   : > { %11466 = vst [vmem:[#allocation18_spill] sm:$0xff] %v10333_v1  ;;  %v4878_v1 = vld [vmem:[#allocation3 + $0x6c] sm:$0xf] }
 0x6b2   : > { %6791 = vmatmul.msk.f32.vlgmr.msra.gmra.mxu2 %vm3921_vm5, %v4865_v46  ;;  %6806 = vmatmul.msk.f32.vlgmr.msra.gmra.mxu3 %vm3921_vm5, %v4865_v46  ;;  %v4869_v46 = vld [vmem:[#allocation3 + $0x24] sm:$0xff] }
 0x6b3   : > { %6752 = vmatmul.msk.f32.gmra.mxu0 %vm3921_vm5, %v4647_v20  ;;  %6767 = vmatmul.msk.f32.gmra.mxu1 %vm3921_vm5, %v4647_v20 }
 0x6b5   : > { %v10343_v10 = vpop.f32.mrf.mxu2  ;;  %v10345_v2 = vpop.f32.mrf.mxu3 }
 0x6b6   : > { %11467 = vst [vmem:[#allocation20_spill] sm:$0xff] %v10343_v10 }
 0x6ba   : > { %6792 = vmatmul.msk.f32.gmra.mxu2 %vm3921_vm5, %v4866_v3  ;;  %6807 = vmatmul.msk.f32.gmra.mxu3 %vm3921_vm5, %v4866_v3 }
 0x6bd   : > { %v10360_v21 = vpop.f32.mrf.mxu2  ;;  %v10362_v51 = vpop.f32.mrf.mxu3 }
 0x6c2   : > { %6793 = vmatmul.msk.f32.gmra.mxu2 %vm3921_vm5, %v4867_v52  ;;  %6808 = vmatmul.msk.f32.gmra.mxu3 %vm3921_vm5, %v4867_v52  ;;  %v10412_v52 = vpop.f32.mrf.mxu0 }
 0x6c5   : > { %v4505_v43 = vpop.f32.mrf.mxu2  ;;  %v4564_v41 = vpop.f32.mrf.mxu3 }
 0x6c6   : > { %v10376_v16 = vadd.f32 %v4505_v43, %v4375_v14  ;;  %v10378_v57 = vadd.f32 %v4564_v41, %v4376_v18  ;;  %v10414_v14 = vpop.f32.mrf.mxu1 }
 0x6ca   : > { %6794 = vmatmul.msk.f32.gmra.mxu2 %vm3921_vm5, %v4868_v32  ;;  %6809 = vmatmul.msk.f32.gmra.mxu3 %vm3921_vm5, %v4868_v32  ;;  %v10426_v33 = vpop.f32.mrf.mxu0 }
 0x6cb   : > { %11468 = vst [vmem:[#allocation21_spill] sm:$0xff] %v10426_v33 }
 0x6cd   : > { %v4508_v27 = vpop.f32.mrf.mxu2  ;;  %v4567_v8 = vpop.f32.mrf.mxu3 }
 0x6ce   : > { %v10388_v40 = vadd.f32 %v4508_v27, %v4377_v26  ;;  %v10390_v31 = vadd.f32 %v4567_v8, %v4378_v38  ;;  %v10428_v50 = vpop.f32.mrf.mxu1 }
 0x6cf   : > { %11469 = vst [vmem:[#allocation23_spill] sm:$0xff] %v10428_v50 }
 0x6d2   : > { %6795 = vmatmul.msk.f32.gmra.mxu2 %vm3921_vm5, %v4869_v46  ;;  %6810 = vmatmul.msk.f32.gmra.mxu3 %vm3921_vm5, %v4869_v46  ;;  %v10440_v27 = vpop.f32.mrf.mxu0 }
 0x6d3   : > { %11470 = vst [vmem:[#allocation22_spill] sm:$0xff] %v10440_v27 }
 0x6d5   : > { %v4511_v20 = vpop.f32.mrf.mxu2  ;;  %v4570_v36 = vpop.f32.mrf.mxu3 }
 0x6d6   : > { %v10404_v3 = vadd.f32 %v4511_v20, %v4379_v39  ;;  %v10406_v48 = vadd.f32 %v4570_v36, %v4380_v5  ;;  %v10442_v8 = vpop.f32.mrf.mxu1  ;;  %v4874_v20 = vld [vmem:[#allocation3 + $0x4c] sm:$0xff] }
 0x6d7   : > { %11471 = vst [vmem:[#allocation24_spill] sm:$0xff] %v10442_v8  ;;  %v4169_v8 = vadd.f32 %v10354_v15, %v10345_v2 }
 0x6da   : > { %6796 = vmatmul.msk.f32.gmra.mxu2 %vm3921_vm5, %v4870_v13  ;;  %6811 = vmatmul.msk.f32.gmra.mxu3 %vm3921_vm5, %v4870_v13  ;;  %v10450_v39 = vpop.f32.mrf.mxu0 }
 0x6db   : > { %11472 = vst [vmem:[#allocation25_spill] sm:$0xff] %v10450_v39 }
 0x6dd   : > { %v4514_v18 = vpop.f32.mrf.mxu2  ;;  %v4573_v43 = vpop.f32.mrf.mxu3 }
 0x6de   : > { %v10420_v41 = vadd.f32 %v4514_v18, %v4381_v28  ;;  %v10422_v56 = vadd.f32 %v4573_v43, %v4382_v34  ;;  %v10452_v5 = vpop.f32.mrf.mxu1  ;;  %v4876_v43 = vld [vmem:[#allocation3 + $0x5c] sm:$0xff] }
 0x6df   : > { %11473 = vst [vmem:[#allocation27_spill] sm:$0xff] %v10452_v5 }
 0x6e2   : > { %6797 = vmatmul.msk.f32.gmra.mxu2 %vm3921_vm5, %v4871_v9  ;;  %6812 = vmatmul.msk.f32.gmra.mxu3 %vm3921_vm5, %v4871_v9  ;;  %v10460_v13 = vpop.f32.mrf.mxu0 }
 0x6e3   : > { %11474 = vst [vmem:[#allocation26_spill] sm:$0xff] %v10460_v13  ;;  %v4877_v13 = vld [vmem:[#allocation3 + $0x64] sm:$0xff] }
 0x6e5   : > { %v10430_v32 = vpop.f32.mrf.mxu2  ;;  %v10432_v58 = vpop.f32.mrf.mxu3 }
 0x6e6   : > { %v4369_v28 = vpop.f32.mrf.mxu1 }
 0x6e7   : > { %v4400_v25 = vadd.f32 %v4369_v28, %v4169_v8 }
 0x6ea   : > { %6798 = vmatmul.msk.f32.gmra.mxu2 %vm3921_vm5, %v4872_v7  ;;  %6813 = vmatmul.msk.f32.gmra.mxu3 %vm3921_vm5, %v4872_v7  ;;  %v4313_v9 = vpop.f32.mrf.mxu0 }
 0x6ed   : > { %v10436_v26 = vpop.f32.mrf.mxu2  ;;  %v10438_v38 = vpop.f32.mrf.mxu3 }
 0x6ee   : > { %v4372_v7 = vpop.f32.mrf.mxu1 }
 0x6f2   : > { %6799 = vmatmul.msk.f32.gmra.mxu2 %vm3921_vm5, %v4873_v47  ;;  %6814 = vmatmul.msk.f32.gmra.mxu3 %vm3921_vm5, %v4873_v47  ;;  %v4736_v5 = vpop.f32.mrf.mxu0 }
 0x6f3   : > { %v4837_v28 = vadd.f32 %v4736_v5, %v10376_v16 }
 0x6f5   : > { %v10446_v54 = vpop.f32.mrf.mxu2  ;;  %v10448_v46 = vpop.f32.mrf.mxu3 }
 0x6f6   : > { %v4795_v39 = vpop.f32.mrf.mxu1 }
 0x6fa   : > { %6800 = vmatmul.msk.f32.gmra.mxu2 %vm3921_vm5, %v4874_v20  ;;  %6815 = vmatmul.msk.f32.gmra.mxu3 %vm3921_vm5, %v4874_v20  ;;  %v4739_v27 = vpop.f32.mrf.mxu0 }
 0x6fd   : > { %v10456_v36 = vpop.f32.mrf.mxu2  ;;  %v10458_v30 = vpop.f32.mrf.mxu3 }
 0x702   : > { %6801 = vmatmul.msk.f32.gmra.mxu2 %vm3921_vm5, %v4875_v29  ;;  %6816 = vmatmul.msk.f32.gmra.mxu3 %vm3921_vm5, %v4875_v29 }
 0x705   : > { %v10464_v34 = vpop.f32.mrf.mxu2  ;;  %v10466_v18 = vpop.f32.mrf.mxu3 }
 0x70a   : > { %6802 = vmatmul.msk.f32.gmra.mxu2 %vm3921_vm5, %v4876_v43  ;;  %6817 = vmatmul.msk.f32.gmra.mxu3 %vm3921_vm5, %v4876_v43 }
 0x70d   : > { %v10470_v47 = vpop.f32.mrf.mxu2  ;;  %v10472_v20 = vpop.f32.mrf.mxu3 }
 0x70e   : > { %11475 = vst [vmem:[#allocation28_spill] sm:$0xff] %v10470_v47 }
 0x70f   : > { %11476 = vst [vmem:[#allocation29_spill] sm:$0xff] %v10472_v20  ;;  %v4170_v20 = vadd.f32 %v10352_v12, %v10360_v21 }
 0x712   : > { %6803 = vmatmul.msk.f32.gmra.mxu2 %vm3921_vm5, %v4877_v13  ;;  %6818 = vmatmul.msk.f32.gmra.mxu3 %vm3921_vm5, %v4877_v13  ;;  %v4798_v13 = vpop.f32.mrf.mxu1 }
 0x715   : > { %v10476_v29 = vpop.f32.mrf.mxu2  ;;  %v10478_v10 = vpop.f32.mrf.mxu3 }
 0x716   : > { %11477 = vst [vmem:[#allocation31_spill] sm:$0xff] %v10476_v29 }
 0x717   : > { %11478 = vst [vmem:[#allocation30_spill] sm:$0xff] %v10478_v10 }
 0x71a   : > { %6804 = vmatmul.msk.f32.gmra.mxu2 %vm3921_vm5, %v4878_v1  ;;  %6819 = vmatmul.msk.f32.gmra.mxu3 %vm3921_vm5, %v4878_v1  ;;  %v4171_v1 = vadd.f32 %v10354_v15, %v10362_v51  ;;  %v4801_v47 = vpop.f32.mrf.mxu1 }
 0x71c   : > { %v4402_v50 = vadd.f32 %v4372_v7, %v4171_v1 }
 0x71d   : > { %v10482_v43 = vpop.f32.mrf.mxu2  ;;  %v10484_v42 = vpop.f32.mrf.mxu3 }
 0x71e   : > { %11479 = vst [vmem:[#allocation32_spill] sm:$0xff] %v10482_v43  ;;  %v4742_v43 = vpop.f32.mrf.mxu0 }
 0x71f   : > { %11480 = vst [vmem:[#allocation33_spill] sm:$0xff] %v10484_v42  ;;  %v4401_v42 = vadd.f32 %v4313_v9, %v4170_v20 }
 0x725   : > { %v10488_v29 = vpop.f32.mrf.mxu2  ;;  %v4600_v10 = vpop.f32.mrf.mxu3 }
 0x726   : > { %11481 = vst [vmem:[#allocation35_spill] sm:$0xff] %v10488_v29  ;;  %v10490_v22 = vadd.f32 %v4600_v10, %v4400_v25  ;;  %v4838_v25 = vadd.f32 %v4795_v39, %v10378_v57  ;;  %v4745_v10 = vpop.f32.mrf.mxu0 }
 0x728   : > { %11482 = vst [vmem:[#allocation34_spill] sm:$0xff] %v10490_v22  ;;  %v4804_v22 = vpop.f32.mrf.mxu1 }
 0x72d   : > { %v4544_v33 = vpop.f32.mrf.mxu2  ;;  %v4603_v2 = vpop.f32.mrf.mxu3 }
 0x72e   : > { %v10496_v24 = vadd.f32 %v4544_v33, %v4401_v42  ;;  %v10498_v8 = vadd.f32 %v4603_v2, %v4402_v50  ;;  %v4839_v42 = vadd.f32 %v4739_v27, %v10388_v40  ;;  %v4840_v33 = vadd.f32 %v4798_v13, %v10390_v31  ;;  %v4748_v57 = vpop.f32.mrf.mxu0 }
 0x72f   : > { %v4841_v2 = vadd.f32 %v4742_v43, %v10404_v3  ;;  %v4843_v3 = vadd.f32 %v4745_v10, %v10420_v41  ;;  %v4154_v41 = vadd.f32 %v10352_v12, %v10199_v44 }
 0x730   : > { %v4807_v39 = vpop.f32.mrf.mxu1 }
 0x735   : > { %v4967_v21 = vpop.f32.mrf.mxu2  ;;  %v5026_v29 = vpop.f32.mrf.mxu3 }
 0x736   : > { %v10502_v45 = vadd.f32 %v4967_v21, %v4837_v28  ;;  %v5069_v51 = vadd.f32 %v5026_v29, %v4838_v25  ;;  %v4842_v28 = vadd.f32 %v4801_v47, %v10406_v48  ;;  %v4751_v13 = vpop.f32.mrf.mxu0  ;;  %v4844_v48 = vadd.f32 %v4804_v22, %v10422_v56 }
 0x737   : > { %v4155_v22 = vadd.f32 %v10354_v15, %v10201_v11 }
 0x738   : > { %v5096_v9 = vmax.f32 %v10502_v45, 0.0  ;;  %v5097_v7 = vmax.f32 %v5069_v51, 0.0  ;;  %v4810_v21 = vpop.f32.mrf.mxu1  ;;  %v6833_v45 = vld [vmem:[%s11176_s7 + $0x30] sm:$0xff] }
 0x73a   : > { %5126 = vst.msk [vmem:[#allocation4 + $0x8] sm:$0xff] %vm5125_vm6, %v5097_v7 }
 0x73d   : > { %v4970_v16 = vpop.f32.mrf.mxu2  ;;  %v5029_v50 = vpop.f32.mrf.mxu3 }
 0x73e   : > { %v10508_v5 = vadd.f32 %v4970_v16, %v4839_v42  ;;  %v5071_v20 = vadd.f32 %v5029_v50, %v4840_v33  ;;  %v4152_v42 = vadd.f32 %v10352_v12, %v10191_v6  ;;  %v4153_v33 = vadd.f32 %v10354_v15, %v10193_v37  ;;  %v4754_v56 = vpop.f32.mrf.mxu0 }
 0x740   : > { %v5098_v1 = vmax.f32 %v10508_v5, 0.0  ;;  %v5099_v29 = vmax.f32 %v5071_v20, 0.0  ;;  %v4383_v16 = vadd.f32 %v10335_v55, %v4152_v42  ;;  %v4384_v50 = vadd.f32 %v10337_v17, %v4153_v33  ;;  %v4813_v55 = vpop.f32.mrf.mxu1  ;;  %v6835_v5 = vld [vmem:[%s11176_s7 + $0x40] sm:$0xff] }
 0x742   : > { %5128 = vst.msk [vmem:[#allocation4 + $0x18] sm:$0xff] %vm5125_vm6, %v5099_v29  ;;  %v4614_v6 = vadd.f32 %v10430_v32, %v4383_v16  ;;  %v4385_v32 = vadd.f32 %v10356_v49, %v4154_v41 }
 0x744   : > { %v4845_v17 = vadd.f32 %v4748_v57, %v4614_v6  ;;  %v4616_v44 = vadd.f32 %v10436_v26, %v4385_v32  ;;  %v4156_v57 = vadd.f32 %v10352_v12, %v10233_v19 }
 0x745   : > { %v4973_v25 = vpop.f32.mrf.mxu2  ;;  %v5032_v40 = vpop.f32.mrf.mxu3 }
 0x746   : > { %v10514_v27 = vadd.f32 %v4973_v25, %v4841_v2  ;;  %v5073_v31 = vadd.f32 %v5032_v40, %v4842_v28  ;;  %v4615_v2 = vadd.f32 %v10432_v58, %v4384_v50  ;;  %v4386_v58 = vadd.f32 %v10358_v63, %v4155_v22 }
 0x747   : > { %v4847_v49 = vadd.f32 %v4751_v13, %v4616_v44  ;;  %v4387_v26 = vadd.f32 %v10372_v60, %v4156_v57  ;;  %v4158_v13 = vadd.f32 %v10352_v12, %v10263_v0 }
 0x748   : > { %v5100_v51 = vmax.f32 %v10514_v27, 0.0  ;;  %v5101_v7 = vmax.f32 %v5073_v31, 0.0  ;;  %v4846_v10 = vadd.f32 %v4807_v39, %v4615_v2  ;;  %v4617_v42 = vadd.f32 %v10438_v38, %v4386_v58  ;;  %v6832_v27 = vld [vmem:[%s11176_s7 + $0x28] sm:$0xff] }
 0x749   : > { %v4157_v39 = vadd.f32 %v10354_v15, %v10235_v61  ;;  %v4618_v19 = vadd.f32 %v10446_v54, %v4387_v26  ;;  %v4389_v41 = vadd.f32 %v10396_v59, %v4158_v13  ;;  %v4161_v59 = vadd.f32 %v10354_v15, %v10295_v4  ;;  %v11488_v13 = vld [vmem:[#allocation29_spill] sm:$0xff] }
 0x74a   : > { %5130 = vst.msk [vmem:[#allocation4 + $0x28] sm:$0xff] %vm5125_vm6, %v5101_v7  ;;  %v4848_v63 = vadd.f32 %v4810_v21, %v4617_v42  ;;  %v4159_v21 = vadd.f32 %v10354_v15, %v10265_v23 }
 0x74b   : > { %v4388_v38 = vadd.f32 %v10374_v62, %v4157_v39  ;;  %v4849_v60 = vadd.f32 %v4754_v56, %v4618_v19  ;;  %v4620_v0 = vadd.f32 %v10456_v36, %v4389_v41  ;;  %v4160_v56 = vadd.f32 %v10352_v12, %v10293_v53  ;;  %v11490_v41 = vld [vmem:[#allocation17_spill] sm:$0xff] }
 0x74c   : > { %v4390_v54 = vadd.f32 %v10398_v35, %v4159_v21  ;;  %v4392_v36 = vadd.f32 %v10414_v14, %v4161_v59 }
 0x74d   : > { %v4976_v47 = vpop.f32.mrf.mxu2  ;;  %v5035_v43 = vpop.f32.mrf.mxu3 }
 0x74e   : > { %v10526_v20 = vadd.f32 %v4976_v47, %v4843_v3  ;;  %v5075_v29 = vadd.f32 %v5035_v43, %v4844_v48  ;;  %v4757_v3 = vpop.f32.mrf.mxu0  ;;  %v4816_v48 = vpop.f32.mrf.mxu1  ;;  %v4623_v53 = vadd.f32 %v10466_v18, %v4392_v36  ;;  %v11486_v18 = vld [vmem:[#allocation23_spill] sm:$0xff] }
 0x74f   : > { %v4851_v35 = vadd.f32 %v4757_v3, %v4620_v0  ;;  %v11484_v3 = vld [vmem:[#allocation14_spill] sm:$0xff] }
 0x750   : > { %v5102_v37 = vmax.f32 %v10526_v20, 0.0  ;;  %v5103_v28 = vmax.f32 %v5075_v29, 0.0  ;;  %v4619_v29 = vadd.f32 %v10448_v46, %v4388_v38  ;;  %v5186_v20 = vld [vmem:[%s11176_s7 + $0x20] sm:$0xff] }
 0x752   : > { %5132 = vst.msk [vmem:[#allocation4 + $0x38] sm:$0xff] %vm5125_vm6, %v5103_v28  ;;  %v4850_v62 = vadd.f32 %v4813_v55, %v4619_v29  ;;  %v11487_v29 = vld [vmem:[#allocation28_spill] sm:$0xff] }
 0x755   : > { %v4979_v25 = vpop.f32.mrf.mxu2  ;;  %v5038_v40 = vpop.f32.mrf.mxu3 }
 0x756   : > { %v10538_v31 = vadd.f32 %v4979_v25, %v4845_v17  ;;  %v5077_v7 = vadd.f32 %v5038_v40, %v4846_v10  ;;  %v4760_v46 = vpop.f32.mrf.mxu0  ;;  %v4819_v22 = vpop.f32.mrf.mxu1  ;;  %v4621_v25 = vadd.f32 %v10458_v30, %v4390_v54  ;;  %v4165_v54 = vadd.f32 %v10354_v15, %v11490_v41 }
 0x758   : > { %v5104_v11 = vmax.f32 %v10538_v31, 0.0  ;;  %v5105_v33 = vmax.f32 %v5077_v7, 0.0  ;;  %v4852_v55 = vadd.f32 %v4816_v48, %v4621_v25  ;;  %v4391_v7 = vadd.f32 %v10412_v52, %v4160_v56  ;;  %v11491_v56 = vld [vmem:[#allocation22_spill] sm:$0xff]  ;;  %v6867_v31 = vld [vmem:[%s11177_s8 + $0x108] sm:$0xff] }
 0x759   : > { %v4163_v52 = vadd.f32 %v10354_v15, %v11484_v3  ;;  %v4854_v48 = vadd.f32 %v4819_v22, %v4623_v53 }
 0x75a   : > { %5134 = vst.msk [vmem:[#allocation4 + $0x48] sm:$0xff] %vm5125_vm6, %v5105_v33  ;;  %v4622_v42 = vadd.f32 %v10464_v34, %v4391_v7  ;;  %v11485_v34 = vld [vmem:[#allocation21_spill] sm:$0xff]  ;;  %v11493_v7 = vld [vmem:[#allocation31_spill] sm:$0xff] }
 0x75b   : > { %v4394_v38 = vadd.f32 %v11486_v18, %v4163_v52  ;;  %v11498_v18 = vld [vmem:[#allocation27_spill] sm:$0xff] }
 0x75c   : > { %v4853_v14 = vadd.f32 %v4760_v46, %v4622_v42 }
 0x75d   : > { %v4982_v47 = vpop.f32.mrf.mxu2  ;;  %v5041_v43 = vpop.f32.mrf.mxu3  ;;  %v4625_v21 = vadd.f32 %v11488_v13, %v4394_v38 }
 0x75e   : > { %v10550_v16 = vadd.f32 %v4982_v47, %v4847_v49  ;;  %v5079_v50 = vadd.f32 %v5041_v43, %v4848_v63  ;;  %v4763_v33 = vpop.f32.mrf.mxu0  ;;  %v4822_v57 = vpop.f32.mrf.mxu1  ;;  %v11483_v49 = vld [vmem:[#allocation15_spill] sm:$0xff] }
 0x75f   : > { %v4162_v63 = vadd.f32 %v10352_v12, %v11483_v49  ;;  %v4856_v0 = vadd.f32 %v4822_v57, %v4625_v21  ;;  %v11495_v49 = vld [vmem:[#allocation19_spill] sm:$0xff]  ;;  %v11496_v57 = vld [vmem:[#allocation18_spill] sm:$0xff]  ;;  %v11500_v21 = vld [vmem:[#allocation33_spill] sm:$0xff] }
 0x760   : > { %v5106_v61 = vmax.f32 %v10550_v16, 0.0  ;;  %v5107_v6 = vmax.f32 %v5079_v50, 0.0  ;;  %v6866_v16 = vld [vmem:[%s11177_s8 + $0x100] sm:$0xff] }
 0x761   : > { %v4393_v26 = vadd.f32 %v11485_v34, %v4162_v63  ;;  %v4167_v63 = vadd.f32 %v10354_v15, %v11496_v57  ;;  %v11497_v34 = vld [vmem:[#allocation25_spill] sm:$0xff] }
 0x762   : > { %5136 = vst.msk [vmem:[#allocation4 + $0x58] sm:$0xff] %vm5125_vm6, %v5107_v6 }
 0x763   : > { %v4624_v6 = vadd.f32 %v11487_v29, %v4393_v26  ;;  %v4398_v38 = vadd.f32 %v11498_v18, %v4167_v63 }
 0x765   : > { %v4985_v2 = vpop.f32.mrf.mxu2  ;;  %v5044_v28 = vpop.f32.mrf.mxu3 }
 0x766   : > { %v10562_v17 = vadd.f32 %v4985_v2, %v4849_v60  ;;  %v5081_v10 = vadd.f32 %v5044_v28, %v4850_v62  ;;  %v11489_v2 = vld [vmem:[#allocation16_spill] sm:$0xff]  ;;  %v4766_v46 = vpop.f32.mrf.mxu0  ;;  %v4825_v22 = vpop.f32.mrf.mxu1 }
 0x767   : > { %v4164_v28 = vadd.f32 %v10352_v12, %v11489_v2 }
 0x768   : > { %v5108_v23 = vmax.f32 %v10562_v17, 0.0  ;;  %v5109_v40 = vmax.f32 %v5081_v10, 0.0  ;;  %v4855_v10 = vadd.f32 %v4763_v33, %v4624_v6  ;;  %v4166_v33 = vadd.f32 %v10352_v12, %v11495_v49  ;;  %v11499_v6 = vld [vmem:[#allocation32_spill] sm:$0xff]  ;;  %v5185_v17 = vld [vmem:[%s11176_s7 + $0x18] sm:$0xff] }
 0x769   : > { %v4395_v59 = vadd.f32 %v11491_v56, %v4164_v28  ;;  %v11501_v28 = vld [vmem:[#allocation20_spill] sm:$0xff] }
 0x76a   : > { %5138 = vst.msk [vmem:[#allocation4 + $0x68] sm:$0xff] %vm5125_vm6, %v5109_v40  ;;  %v4397_v26 = vadd.f32 %v11497_v34, %v4166_v33  ;;  %v4168_v41 = vadd.f32 %v10352_v12, %v11501_v28 }
 0x76b   : > { %v4626_v36 = vadd.f32 %v11493_v7, %v4395_v59 }
 0x76c   : > { %v4628_v13 = vadd.f32 %v11499_v6, %v4397_v26 }
 0x76d   : > { %v4988_v32 = vpop.f32.mrf.mxu2  ;;  %v5047_v58 = vpop.f32.mrf.mxu3  ;;  %v4857_v3 = vadd.f32 %v4766_v46, %v4626_v36 }
 0x76e   : > { %v10574_v30 = vadd.f32 %v4988_v32, %v4851_v35  ;;  %v5083_v44 = vadd.f32 %v5047_v58, %v4852_v55  ;;  %v11492_v35 = vld [vmem:[#allocation24_spill] sm:$0xff] }
 0x76f   : > { %v4396_v55 = vadd.f32 %v11492_v35, %v4165_v54 }
 0x770   : > { %v5110_v4 = vmax.f32 %v10574_v30, 0.0  ;;  %v5111_v39 = vmax.f32 %v5083_v44, 0.0  ;;  %v11494_v44 = vld [vmem:[#allocation30_spill] sm:$0xff]  ;;  %v5381_v30 = vld [vmem:[%s11177_s8 + $0x68] sm:$0xff] }
 0x771   : > { %v4627_v42 = vadd.f32 %v11494_v44, %v4396_v55  ;;  %v11503_v55 = vld [vmem:[#allocation35_spill] sm:$0xff]  ;;  %v11504_v44 = vld [vmem:[#allocation34_spill] sm:$0xff] }
 0x772   : > { %5140 = vst.msk [vmem:[#allocation4 + $0x78] sm:$0xff] %vm5125_vm6, %v5111_v39 }
 0x773   : > { %v4858_v52 = vadd.f32 %v4825_v22, %v4627_v42 }
 0x775   : > { %v4991_v47 = vpop.f32.mrf.mxu2  ;;  %v5050_v43 = vpop.f32.mrf.mxu3 }
 0x776   : > { %v10586_v50 = vadd.f32 %v4991_v47, %v4853_v14  ;;  %v5085_v19 = vadd.f32 %v5050_v43, %v4854_v48  ;;  %v4769_v14 = vpop.f32.mrf.mxu0  ;;  %v4828_v48 = vpop.f32.mrf.mxu1 }
 0x777   : > { %v4859_v54 = vadd.f32 %v4769_v14, %v4628_v13 }
 0x778   : > { %v5112_v60 = vmax.f32 %v10586_v50, 0.0  ;;  %v5113_v62 = vmax.f32 %v5085_v19, 0.0  ;;  %v5380_v50 = vld [vmem:[%s11177_s8 + $0x60] sm:$0xff] }
 0x779   : > { %v5169_v28 = vld [vmem:[#allocation4 + $0x78] sm:$0xff] }
 0x77a   : > { %5142 = vst.msk [vmem:[#allocation4 + $0x88] sm:$0xff] %vm5125_vm6, %v5113_v62  ;;  %v4629_v62 = vadd.f32 %v11500_v21, %v4398_v38 }
 0x77c   : > { %v4860_v46 = vadd.f32 %v4828_v48, %v4629_v62 }
 0x77d   : > { %v4994_v25 = vpop.f32.mrf.mxu2  ;;  %v5053_v40 = vpop.f32.mrf.mxu3 }
 0x77e   : > { %v10598_v32 = vadd.f32 %v4994_v25, %v4855_v10  ;;  %v5087_v58 = vadd.f32 %v5053_v40, %v4856_v0  ;;  %v11502_v0 = vld [vmem:[#allocation26_spill] sm:$0xff]  ;;  %v4772_v59 = vpop.f32.mrf.mxu0  ;;  %v4831_v35 = vpop.f32.mrf.mxu1 }
 0x77f   : > { %v4399_v25 = vadd.f32 %v11502_v0, %v4168_v41  ;;  %v4862_v42 = vadd.f32 %v4831_v35, %v11504_v44  ;;  %v5167_v41 = vld [vmem:[#allocation4 + $0x68] sm:$0xff]  ;;  %v5157_v0 = vld [vmem:[#allocation4 + $0x18] sm:$0xff] }
 0x780   : > { %v5114_v53 = vmax.f32 %v10598_v32, 0.0  ;;  %v5115_v39 = vmax.f32 %v5087_v58, 0.0  ;;  %v5379_v32 = vld [vmem:[%s11177_s8 + $0x58] sm:$0xff]  ;;  %v5377_v35 = vld [vmem:[%s11177_s8 + $0x48] sm:$0xff] }
 0x781   : > { %v4630_v58 = vadd.f32 %v11503_v55, %v4399_v25  ;;  %v5182_v25 = vld [vmem:[%s11176_s7] sm:$0xff]  ;;  %v6860_v55 = vld [vmem:[%s11177_s8 + $0xd0] sm:$0xff]  ;;  %v5375_v44 = vld [vmem:[%s11177_s8 + $0x38] sm:$0xff] }
 0x782   : > { %5144 = vst.msk [vmem:[#allocation4 + $0x98] sm:$0xff] %vm5125_vm6, %v5115_v39 }
 0x783   : > { %v4861_v12 = vadd.f32 %v4772_v59, %v4630_v58  ;;  %v5183_v59 = vld [vmem:[%s11176_s7 + $0x8] sm:$0xff]  ;;  %v5376_v58 = vld [vmem:[%s11177_s8 + $0x40] sm:$0xff] }
 0x785   : > { %v4997_v47 = vpop.f32.mrf.mxu2  ;;  %v5056_v43 = vpop.f32.mrf.mxu3 }
 0x786   : > { %v10610_v19 = vadd.f32 %v4997_v47, %v4857_v3  ;;  %v5089_v29 = vadd.f32 %v5056_v43, %v4858_v52  ;;  %v4775_v52 = vpop.f32.mrf.mxu0  ;;  %v4834_v14 = vpop.f32.mrf.mxu1 }
 0x787   : > { %v4863_v48 = vadd.f32 %v4775_v52, %v10496_v24  ;;  %v4864_v47 = vadd.f32 %v4834_v14, %v10498_v8  ;;  %v5372_v52 = vld [vmem:[%s11177_s8 + $0x20] sm:$0xff] }
 0x788   : > { %v5116_v15 = vmax.f32 %v10610_v19, 0.0  ;;  %v5117_v2 = vmax.f32 %v5089_v29, 0.0  ;;  %v5184_v19 = vld [vmem:[%s11176_s7 + $0x10] sm:$0xff] }
 0x789   : > { %v5173_v62 = vld [vmem:[#allocation4 + $0x98] sm:$0xff] }
 0x78a   : > { %5146 = vst.msk [vmem:[#allocation4 + $0xa8] sm:$0xff] %vm5125_vm6, %v5117_v2  ;;  %v5171_v2 = vld [vmem:[#allocation4 + $0x88] sm:$0xff] }
 0x78d   : > { %v5000_v22 = vpop.f32.mrf.mxu2  ;;  %v5059_v10 = vpop.f32.mrf.mxu3 }
 0x78e   : > { %v10619_v40 = vadd.f32 %v5000_v22, %v4859_v54  ;;  %v5091_v56 = vadd.f32 %v5059_v10, %v4860_v46  ;;  %v5165_v54 = vld [vmem:[#allocation4 + $0x58] sm:$0xff]  ;;  %v5163_v46 = vld [vmem:[#allocation4 + $0x48] sm:$0xff] }
 0x78f   : > { %v5161_v22 = vld [vmem:[#allocation4 + $0x38] sm:$0xff]  ;;  %v5159_v10 = vld [vmem:[#allocation4 + $0x28] sm:$0xff] }
 0x790   : > { %v5118_v7 = vmax.f32 %v10619_v40, 0.0  ;;  %v5119_v36 = vmax.f32 %v5091_v56, 0.0  ;;  %v5155_v56 = vld [vmem:[#allocation4 + $0x8] sm:$0xff] }
 0x791   : > { %v5175_v21 = vld [vmem:[#allocation4 + $0xa8] sm:$0xff] }
 0x792   : > { %5148 = vst.msk [vmem:[#allocation4 + $0xb8] sm:$0xff] %vm5125_vm6, %v5119_v36  ;;  %v6861_v40 = vld [vmem:[%s11177_s8 + $0xd8] sm:$0xff] }
 0x795   : > { %v5003_v39 = vpop.f32.mrf.mxu2  ;;  %v5062_v49 = vpop.f32.mrf.mxu3 }
 0x796   : > { %v10625_v33 = vadd.f32 %v5003_v39, %v4861_v12  ;;  %v5093_v57 = vadd.f32 %v5062_v49, %v4862_v42  ;;  %v6859_v12 = vld [vmem:[%s11177_s8 + $0xc8] sm:$0xff]  ;;  %v6858_v42 = vld [vmem:[%s11177_s8 + $0xc0] sm:$0xff]  ;;  %v5374_v39 = vld [vmem:[%s11177_s8 + $0x30] sm:$0xff] }
 0x797   : > { %v6873_v49 = vld [vmem:[%s11177_s8 + $0x138] sm:$0xff] }
 0x798   : > { %v5120_v63 = vmax.f32 %v10625_v33, 0.0  ;;  %v5121_v3 = vmax.f32 %v5093_v57, 0.0  ;;  %v6857_v33 = vld [vmem:[%s11177_s8 + $0xb8] sm:$0xff]  ;;  %5532 = vmatpush.msrb.mxu3 %v6873_v49  ;;  %v5373_v57 = vld [vmem:[%s11177_s8 + $0x28] sm:$0xff] }
 0x799   : > { %v5177_v8 = vld [vmem:[#allocation4 + $0xb8] sm:$0xff]  ;;  %v5585_v49 = vld [vmem:[%s11179_s10 + $0x18] sm:$0xff] }
 0x79a   : > { %5150 = vst.msk [vmem:[#allocation4 + $0xc8] sm:$0xff] %vm5125_vm6, %v5121_v3  ;;  %v6856_v3 = vld [vmem:[%s11177_s8 + $0xb0] sm:$0xff] }
 0x79d   : > { %v5006_v43 = vpop.f32.mrf.mxu2  ;;  %v5065_v34 = vpop.f32.mrf.mxu3 }
 0x79e   : > { %v5094_v26 = vadd.f32 %v5006_v43, %v4863_v48  ;;  %v5095_v18 = vadd.f32 %v5065_v34, %v4864_v47  ;;  %v5371_v47 = vld [vmem:[%s11177_s8 + $0x18] sm:$0xff]  ;;  %v6855_v34 = vld [vmem:[%s11177_s8 + $0xa8] sm:$0xff] }
 0x79f   : > { %v5387_v43 = vld [vmem:[%s11177_s8 + $0x98] sm:$0xff] }
 0x7a0   : > { %v5122_v38 = vmax.f32 %v5094_v26, 0.0  ;;  %v5123_v29 = vmax.f32 %v5095_v18, 0.0  ;;  %v6871_v26 = vld [vmem:[%s11177_s8 + $0x128] sm:$0xff]  ;;  %v6854_v18 = vld [vmem:[%s11177_s8 + $0xa0] sm:$0xff] }
 0x7a1   : > { %v5179_v24 = vld [vmem:[#allocation4 + $0xc8] sm:$0xff] }
 0x7a2   : > { %5151 = vst [vmem:[#allocation4 + $0xd0] sm:$0xf] %v5122_v38  ;;  %v6870_v38 = vld [vmem:[%s11177_s8 + $0x120] sm:$0xff] }
 0x7a3   : > { %5153 = vst.msk [vmem:[#allocation4 + $0xd8] sm:$0xf] %vm5152_vm7, %v5123_v29  ;;  %v5370_v29 = vld [vmem:[%s11177_s8 + $0x10] sm:$0xff] }
 0x7a9   : > { %v5180_v6 = vld [vmem:[#allocation4 + $0xd0] sm:$0xf] }
 0x7aa   : > { %6820 = vmatpush.msk.msrb.mxu0 %vm3008_vm3, %v5180_v6  ;;  %v5181_v13 = vld [vmem:[#allocation4 + $0xd8] sm:$0xf] }
 0x7ab   : > { %6826 = vmatpush.msk.msrb.mxu1 %vm3008_vm3, %v5181_v13 }
 0x7ac   : > { %5212 = vmatpush.msrb.mxu0 %v5120_v63 }
 0x7ad   : > { %5244 = vmatpush.msrb.mxu1 %v5179_v24 }
 0x7ae   : > { %5213 = vmatpush.msrb.mxu0 %v5118_v7 }
 0x7af   : > { %5245 = vmatpush.msrb.mxu1 %v5177_v8 }
 0x7b0   : > { %5214 = vmatpush.msrb.mxu0 %v5116_v15 }
 0x7b1   : > { %5246 = vmatpush.msrb.mxu1 %v5175_v21 }
 0x7b2   : > { %5215 = vmatpush.msrb.mxu0 %v5114_v53 }
 0x7b3   : > { %5247 = vmatpush.msrb.mxu1 %v5173_v62 }
 0x7b4   : > { %5216 = vmatpush.msrb.mxu0 %v5112_v60 }
 0x7b5   : > { %5248 = vmatpush.msrb.mxu1 %v5171_v2 }
 0x7b6   : > { %5217 = vmatpush.msrb.mxu0 %v5110_v4 }
 0x7b7   : > { %5249 = vmatpush.msrb.mxu1 %v5169_v28 }
 0x7b8   : > { %5218 = vmatpush.msrb.mxu0 %v5108_v23 }
 0x7b9   : > { %5250 = vmatpush.msrb.mxu1 %v5167_v41 }
 0x7ba   : > { %5219 = vmatpush.msrb.mxu0 %v5106_v61 }
 0x7bb   : > { %5251 = vmatpush.msrb.mxu1 %v5165_v54 }
 0x7bc   : > { %5220 = vmatpush.msrb.mxu0 %v5104_v11 }
 0x7bd   : > { %5252 = vmatpush.msrb.mxu1 %v5163_v46 }
 0x7be   : > { %5221 = vmatpush.msrb.mxu0 %v5102_v37 }
 0x7bf   : > { %5253 = vmatpush.msrb.mxu1 %v5161_v22 }
 0x7c0   : > { %5222 = vmatpush.msrb.mxu0 %v5100_v51 }
 0x7c1   : > { %5254 = vmatpush.msrb.mxu1 %v5159_v10 }
 0x7c2   : > { %5223 = vmatpush.msrb.mxu0 %v5098_v1 }
 0x7c3   : > { %5255 = vmatpush.msrb.mxu1 %v5157_v0 }
 0x7c4   : > { %5224 = vmatpush.msrb.mxu0 %v5096_v9 }
 0x7c5   : > { %5256 = vmatpush.msrb.mxu1 %v5155_v56  ;;  %6821 = vmatmul.msk.f32.vlgmr.msrb.gmra.mxu0 %vm5187_vm8, %v5182_v25 }
 0x7c6   : > { %6827 = vmatmul.msk.f32.vlgmr.msrb.gmra.mxu1 %vm5187_vm8, %v5182_v25  ;;  %6837 = vmatpush.msk.msra.mxu0 %vm3008_vm3, %v5180_v6  ;;  %v5386_v6 = vld [vmem:[%s11177_s8 + $0x90] sm:$0xff] }
 0x7c7   : > { %6843 = vmatpush.msk.msra.mxu1 %vm3008_vm3, %v5181_v13  ;;  %v5369_v13 = vld [vmem:[%s11177_s8 + $0x8] sm:$0xff] }
 0x7c8   : > { %5297 = vmatpush.msra.mxu0 %v5120_v63  ;;  %v6872_v63 = vld [vmem:[%s11177_s8 + $0x130] sm:$0xff] }
 0x7c9   : > { %5329 = vmatpush.msra.mxu1 %v5179_v24  ;;  %5533 = vmatpush.msrb.mxu3 %v6872_v63  ;;  %v5385_v24 = vld [vmem:[%s11177_s8 + $0x88] sm:$0xff]  ;;  %v6898_v63 = vld [vmem:[%s11179_s10 + $0xb0] sm:$0xff] }
 0x7ca   : > { %5298 = vmatpush.msra.mxu0 %v5118_v7 }
 0x7cb   : > { %5330 = vmatpush.msra.mxu1 %v5177_v8  ;;  %5534 = vmatpush.msrb.mxu3 %v6871_v26  ;;  %v5368_v8 = vld [vmem:[%s11177_s8] sm:$0xff] }
 0x7cc   : > { %5299 = vmatpush.msra.mxu0 %v5116_v15  ;;  %v5378_v15 = vld [vmem:[%s11177_s8 + $0x50] sm:$0xff] }
 0x7cd   : > { %5331 = vmatpush.msra.mxu1 %v5175_v21  ;;  %6822 = vmatmul.msk.f32.gmra.mxu0 %vm5187_vm8, %v5183_v59  ;;  %v5384_v21 = vld [vmem:[%s11177_s8 + $0x80] sm:$0xff] }
 0x7ce   : > { %6828 = vmatmul.msk.f32.gmra.mxu1 %vm5187_vm8, %v5183_v59  ;;  %5300 = vmatpush.msra.mxu0 %v5114_v53  ;;  %v6862_v53 = vld [vmem:[%s11177_s8 + $0xe0] sm:$0xff] }
 0x7cf   : > { %5332 = vmatpush.msra.mxu1 %v5173_v62  ;;  %5535 = vmatpush.msrb.mxu3 %v6870_v38 }
 0x7d0   : > { %5301 = vmatpush.msra.mxu0 %v5112_v60  ;;  %v6863_v60 = vld [vmem:[%s11177_s8 + $0xe8] sm:$0xff] }
 0x7d1   : > { %5333 = vmatpush.msra.mxu1 %v5171_v2 }
 0x7d2   : > { %5302 = vmatpush.msra.mxu0 %v5110_v4  ;;  %v6864_v4 = vld [vmem:[%s11177_s8 + $0xf0] sm:$0xff] }
 0x7d3   : > { %5334 = vmatpush.msra.mxu1 %v5169_v28 }
 0x7d4   : > { %5303 = vmatpush.msra.mxu0 %v5108_v23  ;;  %v6865_v23 = vld [vmem:[%s11177_s8 + $0xf8] sm:$0xff] }
 0x7d5   : > { %5335 = vmatpush.msra.mxu1 %v5167_v41  ;;  %6823 = vmatmul.msk.f32.gmra.mxu0 %vm5187_vm8, %v5184_v19 }
 0x7d6   : > { %6829 = vmatmul.msk.f32.gmra.mxu1 %vm5187_vm8, %v5184_v19  ;;  %5304 = vmatpush.msra.mxu0 %v5106_v61  ;;  %v5382_v61 = vld [vmem:[%s11177_s8 + $0x70] sm:$0xff] }
 0x7d7   : > { %5336 = vmatpush.msra.mxu1 %v5165_v54 }
 0x7d8   : > { %5305 = vmatpush.msra.mxu0 %v5104_v11  ;;  %v5383_v11 = vld [vmem:[%s11177_s8 + $0x78] sm:$0xff] }
 0x7d9   : > { %5337 = vmatpush.msra.mxu1 %v5163_v46 }
 0x7da   : > { %5306 = vmatpush.msra.mxu0 %v5102_v37  ;;  %v6868_v37 = vld [vmem:[%s11177_s8 + $0x110] sm:$0xff] }
 0x7db   : > { %5338 = vmatpush.msra.mxu1 %v5161_v22 }
 0x7dc   : > { %5307 = vmatpush.msra.mxu0 %v5100_v51  ;;  %v6869_v51 = vld [vmem:[%s11177_s8 + $0x118] sm:$0xff] }
 0x7dd   : > { %5339 = vmatpush.msra.mxu1 %v5159_v10  ;;  %6824 = vmatmul.msk.f32.gmra.mxu0 %vm5187_vm8, %v5185_v17 }
 0x7de   : > { %6830 = vmatmul.msk.f32.gmra.mxu1 %vm5187_vm8, %v5185_v17  ;;  %5308 = vmatpush.msra.mxu0 %v5098_v1  ;;  %v6836_v1 = vld [vmem:[%s11176_s7 + $0x48] sm:$0xff] }
 0x7df   : > { %5340 = vmatpush.msra.mxu1 %v5157_v0  ;;  %5488 = vmatpush.msrb.mxu2 %v6869_v51 }
 0x7e0   : > { %5309 = vmatpush.msra.mxu0 %v5096_v9  ;;  %v6834_v9 = vld [vmem:[%s11176_s7 + $0x38] sm:$0xff] }
 0x7e1   : > { %5341 = vmatpush.msra.mxu1 %v5155_v56  ;;  %5489 = vmatpush.msrb.mxu2 %v6868_v37 }
 0x7e2   : > { %5403 = vmatpush.msrb.mxu0 %v5383_v11 }
 0x7e3   : > { %5490 = vmatpush.msrb.mxu2 %v6867_v31  ;;  %5447 = vmatpush.msrb.mxu1 %v5387_v43  ;;  %v6896_v43 = vld [vmem:[%s11179_s10 + $0xa0] sm:$0xff] }
 0x7e4   : > { %5404 = vmatpush.msrb.mxu0 %v5382_v61 }
 0x7e5   : > { %6825 = vmatmul.msk.f32.gmra.mxu0 %vm5187_vm8, %v5186_v20  ;;  %5491 = vmatpush.msrb.mxu2 %v6866_v16 }
 0x7e6   : > { %6831 = vmatmul.msk.f32.gmra.mxu1 %vm5187_vm8, %v5186_v20  ;;  %5405 = vmatpush.msrb.mxu0 %v5381_v30  ;;  %v6905_v30 = vld [vmem:[%s11179_s10 + $0xe8] sm:$0xff] }
 0x7e7   : > { %5492 = vmatpush.msrb.mxu2 %v6865_v23  ;;  %5448 = vmatpush.msrb.mxu1 %v5386_v6  ;;  %v5591_v23 = vld [vmem:[%s11179_s10 + $0x48] sm:$0xff] }
 0x7e8   : > { %5406 = vmatpush.msrb.mxu0 %v5380_v50  ;;  %v6904_v50 = vld [vmem:[%s11179_s10 + $0xe0] sm:$0xff] }
 0x7e9   : > { %5493 = vmatpush.msrb.mxu2 %v6864_v4  ;;  %5449 = vmatpush.msrb.mxu1 %v5385_v24  ;;  %v5590_v4 = vld [vmem:[%s11179_s10 + $0x40] sm:$0xff] }
 0x7ea   : > { %5407 = vmatpush.msrb.mxu0 %v5379_v32 }
 0x7eb   : > { %5494 = vmatpush.msrb.mxu2 %v6863_v60  ;;  %5450 = vmatpush.msrb.mxu1 %v5384_v21 }
 0x7ec   : > { %5408 = vmatpush.msrb.mxu0 %v5378_v15  ;;  %v6903_v15 = vld [vmem:[%s11179_s10 + $0xd8] sm:$0xff] }
 0x7ed   : > { %6838 = vmatmul.msk.f32.vlgmr.msra.gmra.mxu0 %vm5187_vm8, %v6832_v27  ;;  %5495 = vmatpush.msrb.mxu2 %v6862_v53  ;;  %v5589_v53 = vld [vmem:[%s11179_s10 + $0x38] sm:$0xff] }
 0x7ee   : > { %6844 = vmatmul.msk.f32.vlgmr.msra.gmra.mxu1 %vm5187_vm8, %v6832_v27  ;;  %5409 = vmatpush.msrb.mxu0 %v5377_v35  ;;  %v6902_v35 = vld [vmem:[%s11179_s10 + $0xd0] sm:$0xff] }
 0x7ef   : > { %5496 = vmatpush.msrb.mxu2 %v6861_v40  ;;  %5725 = vmatpush.msra.mxu1 %v6905_v30  ;;  %v5588_v40 = vld [vmem:[%s11179_s10 + $0x30] sm:$0xff]  ;;  %v6885_v30 = vld [vmem:[%s11179_s10 + $0x60] sm:$0xff] }
 0x7f0   : > { %5410 = vmatpush.msrb.mxu0 %v5376_v58  ;;  %v6901_v58 = vld [vmem:[%s11179_s10 + $0xc8] sm:$0xff] }
 0x7f1   : > { %5497 = vmatpush.msrb.mxu2 %v6860_v55  ;;  %5726 = vmatpush.msra.mxu1 %v6904_v50  ;;  %v5587_v55 = vld [vmem:[%s11179_s10 + $0x28] sm:$0xff] }
 0x7f2   : > { %5411 = vmatpush.msrb.mxu0 %v5375_v44  ;;  %v6900_v44 = vld [vmem:[%s11179_s10 + $0xc0] sm:$0xff] }
 0x7f3   : > { %5498 = vmatpush.msrb.mxu2 %v6859_v12  ;;  %5727 = vmatpush.msra.mxu1 %v6903_v15  ;;  %v5586_v12 = vld [vmem:[%s11179_s10 + $0x20] sm:$0xff]  ;;  %v6881_v15 = vld [vmem:[%s11178_s9 + $0x8] sm:$0xff] }
 0x7f4   : > { %5412 = vmatpush.msrb.mxu0 %v5374_v39 }
 0x7f5   : > { %6839 = vmatmul.msk.f32.gmra.mxu0 %vm5187_vm8, %v6833_v45  ;;  %5499 = vmatpush.msrb.mxu2 %v6858_v42 }
 0x7f6   : > { %6845 = vmatmul.msk.f32.gmra.mxu1 %vm5187_vm8, %v6833_v45  ;;  %5413 = vmatpush.msrb.mxu0 %v5373_v57  ;;  %v5584_v57 = vld [vmem:[%s11179_s10 + $0x10] sm:$0xff] }
 0x7f7   : > { %5500 = vmatpush.msrb.mxu2 %v6857_v33  ;;  %5728 = vmatpush.msra.mxu1 %v6902_v35  ;;  %v6899_v33 = vld [vmem:[%s11179_s10 + $0xb8] sm:$0xff]  ;;  %v6917_v35 = vld [vmem:[%s11179_s10 + $0x130] sm:$0xff] }
 0x7f8   : > { %5414 = vmatpush.msrb.mxu0 %v5372_v52  ;;  %v6897_v52 = vld [vmem:[%s11179_s10 + $0xa8] sm:$0xff] }
 0x7f9   : > { %5501 = vmatpush.msrb.mxu2 %v6856_v3  ;;  %5729 = vmatpush.msra.mxu1 %v6901_v58  ;;  %v5583_v3 = vld [vmem:[%s11179_s10 + $0x8] sm:$0xff] }
 0x7fa   : > { %5415 = vmatpush.msrb.mxu0 %v5371_v47  ;;  %v5582_v47 = vld [vmem:[%s11179_s10] sm:$0xff]  ;;  %v6916_v58 = vld [vmem:[%s11179_s10 + $0x128] sm:$0xff] }
 0x7fb   : > { %5502 = vmatpush.msrb.mxu2 %v6855_v34  ;;  %5730 = vmatpush.msra.mxu1 %v6900_v44  ;;  %v6914_v44 = vld [vmem:[%s11179_s10 + $0x118] sm:$0xff] }
 0x7fc   : > { %5416 = vmatpush.msrb.mxu0 %v5370_v29 }
 0x7fd   : > { %6840 = vmatmul.msk.f32.gmra.mxu0 %vm5187_vm8, %v6834_v9  ;;  %5503 = vmatpush.msrb.mxu2 %v6854_v18 }
 0x7fe   : > { %6846 = vmatmul.msk.f32.gmra.mxu1 %vm5187_vm8, %v6834_v9  ;;  %5417 = vmatpush.msrb.mxu0 %v5369_v13 }
 0x7ff   : > { %5602 = vmatpush.msra.mxu2 %v5591_v23  ;;  %5731 = vmatpush.msra.mxu1 %v6899_v33  ;;  %v6886_v23 = vld [vmem:[%s11179_s10 + $0x68] sm:$0xff] }
 0x800   : > { %5418 = vmatpush.msrb.mxu0 %v5368_v8  ;;  %v6912_v33 = vld [vmem:[%s11179_s10 + $0x108] sm:$0xff] }
 0x801   : > { %5603 = vmatpush.msra.mxu2 %v5590_v4  ;;  %5732 = vmatpush.msra.mxu1 %v6898_v63  ;;  %v6884_v4 = vld [vmem:[%s11179_s10 + $0x58] sm:$0xff]  ;;  %v6911_v63 = vld [vmem:[%s11179_s10 + $0x100] sm:$0xff] }
 0x803   : > { %5604 = vmatpush.msra.mxu2 %v5589_v53  ;;  %5733 = vmatpush.msra.mxu1 %v6897_v52  ;;  %v6918_v53 = vld [vmem:[%s11179_s10 + $0x138] sm:$0xff] }
 0x804   : > { %v6910_v52 = vld [vmem:[%s11179_s10 + $0xf8] sm:$0xff] }
 0x805   : > { %6841 = vmatmul.msk.f32.gmra.mxu0 %vm5187_vm8, %v6835_v5  ;;  %5605 = vmatpush.msra.mxu2 %v5588_v40  ;;  %v6907_v40 = vld [vmem:[%s11178_s9 + $0x18] sm:$0xff] }
 0x806   : > { %6847 = vmatmul.msk.f32.gmra.mxu1 %vm5187_vm8, %v6835_v5 }
 0x807   : > { %5606 = vmatpush.msra.mxu2 %v5587_v55  ;;  %5734 = vmatpush.msra.mxu1 %v6896_v43  ;;  %v6931_v55 = vld [vmem:[%s11179_s10 + $0x188] sm:$0xff]  ;;  %v6922_v43 = vld [vmem:[%s11179_s10 + $0x140] sm:$0xff] }
 0x809   : > { %5607 = vmatpush.msra.mxu2 %v5586_v12  ;;  %v6929_v12 = vld [vmem:[%s11179_s10 + $0x178] sm:$0xff] }
 0x80b   : > { %5608 = vmatpush.msra.mxu2 %v5585_v49  ;;  %v6927_v49 = vld [vmem:[%s11179_s10 + $0x168] sm:$0xff] }
 0x80d   : > { %6842 = vmatmul.msk.f32.gmra.mxu0 %vm5187_vm8, %v6836_v1  ;;  %5609 = vmatpush.msra.mxu2 %v5584_v57  ;;  %v6926_v57 = vld [vmem:[%s11179_s10 + $0x160] sm:$0xff] }
 0x80e   : > { %6848 = vmatmul.msk.f32.gmra.mxu1 %vm5187_vm8, %v6836_v1 }
 0x80f   : > { %5610 = vmatpush.msra.mxu2 %v5583_v3  ;;  %v6925_v3 = vld [vmem:[%s11179_s10 + $0x158] sm:$0xff] }
 0x811   : > { %5611 = vmatpush.msra.mxu2 %v5582_v47  ;;  %v6923_v47 = vld [vmem:[%s11179_s10 + $0x148] sm:$0xff] }
 0x842   : > { %v5226_v7 = vpop.f32.mrf.mxu0 }
 0x843   : > { %v5258_v36 = vpop.f32.mrf.mxu1 }
 0x84a   : > { %v5229_v14 = vpop.f32.mrf.mxu0 }
 0x84b   : > { %v5261_v48 = vpop.f32.mrf.mxu1 }
 0x852   : > { %v5232_v62 = vpop.f32.mrf.mxu0 }
 0x853   : > { %v5264_v2 = vpop.f32.mrf.mxu1 }
 0x85a   : > { %v5235_v28 = vpop.f32.mrf.mxu0 }
 0x85b   : > { %v5267_v41 = vpop.f32.mrf.mxu1 }
 0x862   : > { %v5238_v54 = vpop.f32.mrf.mxu0 }
 0x863   : > { %v5270_v46 = vpop.f32.mrf.mxu1 }
 0x86a   : > { %v5311_v22 = vpop.f32.mrf.mxu0 }
 0x86b   : > { %v5358_v10 = vmax.f32 %v5226_v7, %v5311_v22  ;;  %v5343_v0 = vpop.f32.mrf.mxu1 }
 0x86c   : > { %v5359_v25 = vmax.f32 %v5258_v36, %v5343_v0 }
 0x86d   : > { %5504 = vmatmul.f32.vlgmr.msrb.gmra.mxu2 %v5358_v10  ;;  %5419 = vmatmul.f32.vlgmr.msrb.gmra.mxu0 %v5358_v10 }
 0x86e   : > { %6874 = vmatmul.msk.f32.vlgmr.msrb.gmra.mxu3 %vm5125_vm6, %v5359_v25  ;;  %6849 = vmatmul.msk.f32.vlgmr.msrb.gmra.mxu1 %vm5125_vm6, %v5359_v25 }
 0x872   : > { %v5314_v56 = vpop.f32.mrf.mxu0 }
 0x873   : > { %v5360_v59 = vmax.f32 %v5229_v14, %v5314_v56  ;;  %v5346_v19 = vpop.f32.mrf.mxu1 }
 0x874   : > { %v5361_v17 = vmax.f32 %v5261_v48, %v5346_v19 }
 0x875   : > { %5507 = vmatmul.f32.gmra.mxu2 %v5360_v59  ;;  %5422 = vmatmul.f32.gmra.mxu0 %v5360_v59 }
 0x876   : > { %6875 = vmatmul.msk.f32.gmra.mxu3 %vm5125_vm6, %v5361_v17  ;;  %6850 = vmatmul.msk.f32.gmra.mxu1 %vm5125_vm6, %v5361_v17 }
 0x87a   : > { %v5317_v20 = vpop.f32.mrf.mxu0 }
 0x87b   : > { %v5362_v27 = vmax.f32 %v5232_v62, %v5317_v20  ;;  %v5349_v45 = vpop.f32.mrf.mxu1 }
 0x87c   : > { %v5363_v9 = vmax.f32 %v5264_v2, %v5349_v45 }
 0x87d   : > { %5510 = vmatmul.f32.gmra.mxu2 %v5362_v27  ;;  %5425 = vmatmul.f32.gmra.mxu0 %v5362_v27 }
 0x87e   : > { %6876 = vmatmul.msk.f32.gmra.mxu3 %vm5125_vm6, %v5363_v9  ;;  %6851 = vmatmul.msk.f32.gmra.mxu1 %vm5125_vm6, %v5363_v9  ;;  %v5558_v9 = vld [vmem:[%s11178_s9] sm:$0xff] }
 0x882   : > { %v5320_v5 = vpop.f32.mrf.mxu0 }
 0x883   : > { %v5364_v1 = vmax.f32 %v5235_v28, %v5320_v5  ;;  %v5352_v51 = vpop.f32.mrf.mxu1  ;;  %v6894_v5 = vld [vmem:[%s11178_s9 + $0x10] sm:$0xff] }
 0x884   : > { %v5365_v37 = vmax.f32 %v5267_v41, %v5352_v51  ;;  %v6891_v51 = vld [vmem:[%s11179_s10 + $0x90] sm:$0xff] }
 0x885   : > { %5513 = vmatmul.f32.gmra.mxu2 %v5364_v1  ;;  %5428 = vmatmul.f32.gmra.mxu0 %v5364_v1  ;;  %v6892_v1 = vld [vmem:[%s11179_s10 + $0x98] sm:$0xff] }
 0x886   : > { %6877 = vmatmul.msk.f32.gmra.mxu3 %vm5125_vm6, %v5365_v37  ;;  %6852 = vmatmul.msk.f32.gmra.mxu1 %vm5125_vm6, %v5365_v37  ;;  %v6890_v37 = vld [vmem:[%s11179_s10 + $0x88] sm:$0xff] }
 0x88a   : > { %v5323_v31 = vpop.f32.mrf.mxu0 }
 0x88b   : > { %v5366_v11 = vmax.f32 %v5238_v54, %v5323_v31  ;;  %v5355_v16 = vpop.f32.mrf.mxu1  ;;  %v6889_v31 = vld [vmem:[%s11179_s10 + $0x80] sm:$0xff] }
 0x88c   : > { %v5367_v61 = vmax.f32 %v5270_v46, %v5355_v16  ;;  %v6887_v16 = vld [vmem:[%s11179_s10 + $0x70] sm:$0xff] }
 0x88d   : > { %5516 = vmatmul.f32.gmra.mxu2 %v5366_v11  ;;  %5431 = vmatmul.f32.gmra.mxu0 %v5366_v11  ;;  %v6888_v11 = vld [vmem:[%s11179_s10 + $0x78] sm:$0xff] }
 0x88e   : > { %6878 = vmatmul.msk.f32.gmra.mxu3 %vm5125_vm6, %v5367_v61  ;;  %6853 = vmatmul.msk.f32.gmra.mxu1 %vm5125_vm6, %v5367_v61 }
 0x8ea   : > { %v10879_v60 = vpop.f32.mrf.mxu0 }
 0x8eb   : > { %v10881_v32 = vpop.f32.mrf.mxu1 }
 0x8ec   : > { %v5453_v20 = vadd.f32 %v10881_v32, %v10879_v60  ;;  %v6920_v60 = vld [vmem:[%s11178_s9 + $0x20] sm:$0xff]  ;;  %v6883_v32 = vld [vmem:[%s11179_s10 + $0x50] sm:$0xff] }
 0x8f0   : > { %v5505_v7 = vpop.f32.mrf.mxu2 }
 0x8f1   : > { %v5537_v36 = vpop.f32.mrf.mxu3 }
 0x8f2   : > { %v5423_v42 = vpop.f32.mrf.mxu0  ;;  %v5538_v59 = vadd.f32 %v5537_v36, %v5505_v7  ;;  %v6930_v7 = vld [vmem:[%s11179_s10 + $0x180] sm:$0xff] }
 0x8f3   : > { %v5455_v39 = vpop.f32.mrf.mxu1  ;;  %v6915_v36 = vld [vmem:[%s11179_s10 + $0x120] sm:$0xff] }
 0x8f4   : > { %v5456_v19 = vadd.f32 %v5455_v39, %v5423_v42  ;;  %v5552_v45 = vmax.f32 %v5453_v20, %v5538_v59  ;;  %v6928_v42 = vld [vmem:[%s11179_s10 + $0x170] sm:$0xff]  ;;  %v5914_v59 = vld [vmem:[%s11183_s14 + $0x48] sm:$0xff] }
 0x8f5   : > { %v6913_v39 = vld [vmem:[%s11179_s10 + $0x110] sm:$0xff] }
 0x8f6   : > { %v5911_v20 = vld [vmem:[%s11183_s14 + $0x30] sm:$0xff] }
 0x8f8   : > { %v5508_v14 = vpop.f32.mrf.mxu2 }
 0x8f9   : > { %v5540_v48 = vpop.f32.mrf.mxu3 }
 0x8fa   : > { %v5426_v34 = vpop.f32.mrf.mxu0  ;;  %v5541_v0 = vadd.f32 %v5540_v48, %v5508_v14  ;;  %v6924_v14 = vld [vmem:[%s11179_s10 + $0x150] sm:$0xff] }
 0x8fb   : > { %v5458_v26 = vpop.f32.mrf.mxu1  ;;  %v6909_v48 = vld [vmem:[%s11179_s10 + $0xf0] sm:$0xff] }
 0x8fc   : > { %v5459_v25 = vadd.f32 %v5458_v26, %v5426_v34  ;;  %v5553_v27 = vmax.f32 %v5456_v19, %v5541_v0  ;;  %v5875_v34 = vld [vmem:[%s11181_s12 + $0x70] sm:$0xff]  ;;  %v5874_v26 = vld [vmem:[%s11181_s12 + $0x68] sm:$0xff]  ;;  %v5913_v19 = vld [vmem:[%s11183_s14 + $0x40] sm:$0xff] }
 0x8fd   : > { %v5862_v0 = vld [vmem:[%s11181_s12 + $0x8] sm:$0xff] }
 0x900   : > { %v5511_v18 = vpop.f32.mrf.mxu2 }
 0x901   : > { %v5543_v38 = vpop.f32.mrf.mxu3 }
 0x902   : > { %v5429_v29 = vpop.f32.mrf.mxu0  ;;  %v5544_v46 = vadd.f32 %v5543_v38, %v5511_v18  ;;  %v5873_v38 = vld [vmem:[%s11181_s12 + $0x60] sm:$0xff] }
 0x903   : > { %v5461_v6 = vpop.f32.mrf.mxu1 }
 0x904   : > { %v5462_v22 = vadd.f32 %v5461_v6, %v5429_v29  ;;  %v5554_v17 = vmax.f32 %v5459_v25, %v5544_v46  ;;  %v5872_v29 = vld [vmem:[%s11181_s12 + $0x58] sm:$0xff]  ;;  %v5871_v6 = vld [vmem:[%s11181_s12 + $0x50] sm:$0xff]  ;;  %v5865_v46 = vld [vmem:[%s11181_s12 + $0x20] sm:$0xff] }
 0x905   : > { %v5861_v25 = vld [vmem:[%s11181_s12] sm:$0xff] }
 0x908   : > { %v5514_v13 = vpop.f32.mrf.mxu2 }
 0x909   : > { %v5546_v24 = vpop.f32.mrf.mxu3 }
 0x90a   : > { %v5432_v8 = vpop.f32.mrf.mxu0  ;;  %v5547_v28 = vadd.f32 %v5546_v24, %v5514_v13  ;;  %v5870_v13 = vld [vmem:[%s11181_s12 + $0x48] sm:$0xff] }
 0x90b   : > { %v5464_v21 = vpop.f32.mrf.mxu1 }
 0x90c   : > { %v5465_v41 = vadd.f32 %v5464_v21, %v5432_v8  ;;  %v5555_v56 = vmax.f32 %v5462_v22, %v5547_v28  ;;  %v5869_v8 = vld [vmem:[%s11181_s12 + $0x40] sm:$0xff]  ;;  %v5868_v28 = vld [vmem:[%s11181_s12 + $0x38] sm:$0xff] }
 0x90d   : > { %v5864_v22 = vld [vmem:[%s11181_s12 + $0x18] sm:$0xff] }
 0x910   : > { %v5517_v62 = vpop.f32.mrf.mxu2 }
 0x911   : > { %v5549_v2 = vpop.f32.mrf.mxu3 }
 0x912   : > { %v5550_v54 = vadd.f32 %v5549_v2, %v5517_v62 }
 0x914   : > { %v5556_v10 = vmax.f32 %v5465_v41, %v5550_v54  ;;  %v5867_v41 = vld [vmem:[%s11181_s12 + $0x30] sm:$0xff]  ;;  %v5866_v54 = vld [vmem:[%s11181_s12 + $0x28] sm:$0xff] }
 0x916   : > { %5573 = vmatpush.msra.mxu3 %v5556_v10  ;;  %5696 = vmatpush.msra.mxu0 %v5556_v10 }
 0x917   : > { %5636 = vmatpush.msrb.mxu2 %v5556_v10  ;;  %5816 = vmatpush.msrb.mxu1 %v5556_v10 }
 0x918   : > { %5574 = vmatpush.msra.mxu3 %v5555_v56  ;;  %5697 = vmatpush.msra.mxu0 %v5555_v56 }
 0x919   : > { %5637 = vmatpush.msrb.mxu2 %v5555_v56  ;;  %5817 = vmatpush.msrb.mxu1 %v5555_v56 }
 0x91a   : > { %5575 = vmatpush.msra.mxu3 %v5554_v17  ;;  %5698 = vmatpush.msra.mxu0 %v5554_v17 }
 0x91b   : > { %5638 = vmatpush.msrb.mxu2 %v5554_v17  ;;  %5818 = vmatpush.msrb.mxu1 %v5554_v17 }
 0x91c   : > { %5576 = vmatpush.msra.mxu3 %v5553_v27  ;;  %5699 = vmatpush.msra.mxu0 %v5553_v27 }
 0x91d   : > { %5639 = vmatpush.msrb.mxu2 %v5553_v27  ;;  %5819 = vmatpush.msrb.mxu1 %v5553_v27 }
 0x91e   : > { %5577 = vmatpush.msra.mxu3 %v5552_v45  ;;  %5700 = vmatpush.msra.mxu0 %v5552_v45 }
 0x91f   : > { %6879 = vmatmul.msk.f32.vlgmr.msra.gmra.mxu3 %vm2808_vm1, %v5558_v9  ;;  %6895 = vmatmul.msk.f32.vlgmr.msra.gmra.mxu0 %vm2808_vm1, %v6894_v5  ;;  %v5908_v9 = vld [vmem:[%s11183_s14 + $0x18] sm:$0xff]  ;;  %v6979_v5 = vld [vmem:[%s11180_s11] ss:$0 sm:$0xff] }
 0x920   : > { %5640 = vmatpush.msrb.mxu2 %v5552_v45  ;;  %5820 = vmatpush.msrb.mxu1 %v5552_v45 }
 0x921   : > { %5665 = vmatpush.msrb.mxu3 %v6892_v1  ;;  %5885 = vmatpush.msrb.mxu0 %v5875_v34 }
 0x923   : > { %5666 = vmatpush.msrb.mxu3 %v6891_v51  ;;  %5886 = vmatpush.msrb.mxu0 %v5874_v26 }
 0x925   : > { %5667 = vmatpush.msrb.mxu3 %v6890_v37  ;;  %5887 = vmatpush.msrb.mxu0 %v5873_v38 }
 0x927   : > { %5668 = vmatpush.msrb.mxu3 %v6889_v31  ;;  %5888 = vmatpush.msrb.mxu0 %v5872_v29 }
 0x929   : > { %5669 = vmatpush.msrb.mxu3 %v6888_v11  ;;  %5889 = vmatpush.msrb.mxu0 %v5871_v6 }
 0x92b   : > { %5670 = vmatpush.msrb.mxu3 %v6887_v16  ;;  %5890 = vmatpush.msrb.mxu0 %v5870_v13 }
 0x92d   : > { %5671 = vmatpush.msrb.mxu3 %v6886_v23  ;;  %5891 = vmatpush.msrb.mxu0 %v5869_v8 }
 0x92f   : > { %5672 = vmatpush.msrb.mxu3 %v6885_v30  ;;  %5892 = vmatpush.msrb.mxu0 %v5868_v28 }
 0x931   : > { %5673 = vmatpush.msrb.mxu3 %v6884_v4  ;;  %5893 = vmatpush.msrb.mxu0 %v5867_v41  ;;  %v5907_v4 = vld [vmem:[%s11183_s14 + $0x10] sm:$0xff] }
 0x933   : > { %5674 = vmatpush.msrb.mxu3 %v6883_v32  ;;  %5894 = vmatpush.msrb.mxu0 %v5866_v54  ;;  %v6980_v32 = vld [vmem:[%s11182_s13] ss:$0 sm:$0xff] }
 0x935   : > { %5785 = vmatpush.msra.mxu3 %v6918_v53  ;;  %5895 = vmatpush.msrb.mxu0 %v5865_v46 }
 0x937   : > { %5786 = vmatpush.msra.mxu3 %v6917_v35  ;;  %5896 = vmatpush.msrb.mxu0 %v5864_v22  ;;  %v6981_v35 = vld [vmem:[%s11184_s15] ss:$0 sm:$0xff] }
 0x939   : > { %5787 = vmatpush.msra.mxu3 %v6916_v58 }
 0x93b   : > { %5788 = vmatpush.msra.mxu3 %v6915_v36 }
 0x93d   : > { %5789 = vmatpush.msra.mxu3 %v6914_v44 }
 0x93f   : > { %5790 = vmatpush.msra.mxu3 %v6913_v39 }
 0x941   : > { %5791 = vmatpush.msra.mxu3 %v6912_v33 }
 0x943   : > { %5792 = vmatpush.msra.mxu3 %v6911_v63 }
 0x945   : > { %5793 = vmatpush.msra.mxu3 %v6910_v52 }
 0x947   : > { %5794 = vmatpush.msra.mxu3 %v6909_v48 }
 0x99c   : > { %v5702_v61 = vpop.f32.mrf.mxu0 }
 0x99d   : > { %6906 = vmatmul.msk.f32.vlgmr.msra.gmra.mxu1 %vm5592_vm9, %v5702_v61 }
 0x9a2   : > { %v5579_v50 = vpop.f32.mrf.mxu3 }
 0x9a3   : > { %6880 = vmatmul.msk.f32.vlgmr.msra.gmra.mxu2 %vm5592_vm9, %v5579_v50  ;;  %v5906_v50 = vld [vmem:[%s11183_s14 + $0x8] sm:$0xff] }
 0x9a4   : > { %5756 = vmatpush.msra.mxu2 %v5556_v10  ;;  %v5863_v10 = vld [vmem:[%s11181_s12 + $0x10] sm:$0xff] }
 0x9a5   : > { %6921 = vmatmul.msk.f32.vlgmr.msrb.gmra.mxu1 %vm2808_vm1, %v6920_v60  ;;  %5897 = vmatpush.msrb.mxu0 %v5863_v10  ;;  %v5905_v60 = vld [vmem:[%s11183_s14] sm:$0xff] }
 0x9a6   : > { %5757 = vmatpush.msra.mxu2 %v5555_v56  ;;  %v5915_v56 = vld [vmem:[%s11183_s14 + $0x50] sm:$0xf] }
 0x9a7   : > { %5898 = vmatpush.msrb.mxu0 %v5862_v0  ;;  %6934 = vmatpush.msk.msra.mxu1 %vm3008_vm3, %v5915_v56 }
 0x9a8   : > { %5758 = vmatpush.msra.mxu2 %v5554_v17  ;;  %v5912_v17 = vld [vmem:[%s11183_s14 + $0x38] sm:$0xff] }
 0x9a9   : > { %5899 = vmatpush.msrb.mxu0 %v5861_v25  ;;  %5932 = vmatpush.msra.mxu1 %v5914_v59 }
 0x9aa   : > { %5759 = vmatpush.msra.mxu2 %v5553_v27  ;;  %v5910_v27 = vld [vmem:[%s11183_s14 + $0x28] sm:$0xff] }
 0x9ab   : > { %6882 = vmatmul.msk.f32.vlgmr.msrb.gmra.mxu2 %vm2808_vm1, %v6881_v15  ;;  %5933 = vmatpush.msra.mxu1 %v5913_v19 }
 0x9ac   : > { %5760 = vmatpush.msra.mxu2 %v5552_v45  ;;  %v5909_v45 = vld [vmem:[%s11183_s14 + $0x20] sm:$0xff] }
 0x9ad   : > { %5934 = vmatpush.msra.mxu1 %v5912_v17 }
 0x9ae   : > { %5845 = vmatpush.msrb.mxu2 %v6931_v55 }
 0x9af   : > { %5935 = vmatpush.msra.mxu1 %v5911_v20 }
 0x9b0   : > { %5846 = vmatpush.msrb.mxu2 %v6930_v7 }
 0x9b1   : > { %5936 = vmatpush.msra.mxu1 %v5910_v27 }
 0x9b2   : > { %5847 = vmatpush.msrb.mxu2 %v6929_v12 }
 0x9b3   : > { %6908 = vmatmul.msk.f32.vlgmr.msra.gmra.mxu2 %vm2808_vm1, %v6907_v40  ;;  %5937 = vmatpush.msra.mxu1 %v5909_v45 }
 0x9b4   : > { %5848 = vmatpush.msrb.mxu2 %v6928_v42 }
 0x9b5   : > { %5938 = vmatpush.msra.mxu1 %v5908_v9 }
 0x9b6   : > { %5849 = vmatpush.msrb.mxu2 %v6927_v49 }
 0x9b7   : > { %5939 = vmatpush.msra.mxu1 %v5907_v4 }
 0x9b8   : > { %5850 = vmatpush.msrb.mxu2 %v6926_v57 }
 0x9b9   : > { %5940 = vmatpush.msra.mxu1 %v5906_v50 }
 0x9ba   : > { %5851 = vmatpush.msrb.mxu2 %v6925_v3 }
 0x9bb   : > { %5941 = vmatpush.msra.mxu1 %v5905_v60 }
 0x9bc   : > { %5852 = vmatpush.msrb.mxu2 %v6924_v14 }
 0x9be   : > { %5853 = vmatpush.msrb.mxu2 %v6923_v47 }
 0x9c0   : > { %5854 = vmatpush.msrb.mxu2 %v6922_v43 }
 0xa1a   : > { %v5736_v18 = vpop.f32.mrf.mxu1 }
 0xa22   : > { %v5822_v24 = vpop.f32.mrf.mxu1 }
 0xa23   : > { %6932 = vmatmul.msk.f32.vlgmr.msrb.gmra.mxu2 %vm5592_vm9, %v5822_v24 }
 0xa26   : > { %v5613_v21 = vpop.f32.mrf.mxu2 }
 0xa27   : > { %v5619_v51 = vadd.f32 %v6979_v5, %v5613_v21 }
 0xa2e   : > { %v5642_v62 = vpop.f32.mrf.mxu2 }
 0xa2f   : > { %6893 = vmatmul.msk.f32.vlgmr.msrb.gmra.mxu3 %vm5592_vm9, %v5642_v62 }
 0xa36   : > { %v5762_v2 = vpop.f32.mrf.mxu2 }
 0xa37   : > { %6919 = vmatmul.msk.f32.vlgmr.msra.gmra.mxu3 %vm5592_vm9, %v5762_v2 }
 0xaa6   : > { %v5856_v16 = vpop.f32.mrf.mxu2 }
 0xab2   : > { %v5676_v1 = vpop.f32.mrf.mxu3 }
 0xab3   : > { %v5679_v37 = vadd.f32 %v5676_v1, %v5619_v51 }
 0xab5   : > { %v5739_v31 = vadd.f32 %v5736_v18, %v5679_v37 }
 0xaba   : > { %v5796_v11 = vpop.f32.mrf.mxu3 }
 0xabb   : > { %v5799_v61 = vadd.f32 %v5796_v11, %v5739_v31 }
 0xabd   : > { %v5859_v23 = vadd.f32 %v5856_v16, %v5799_v61 }
 0xabf   : > { %v5860_v30 = vmax.f32 %v5859_v23, 0.0 }
 0xac1   : > { %6933 = vmatmul.msk.f32.vlgmr.msrb.gmra.mxu0 %vm5880_vm10, %v5860_v30 }
 0xb3e   : > { %v5901_v53 = vpop.f32.mrf.mxu0 }
 0xb3f   : > { %v5902_v15 = vadd.f32 %v6980_v32, %v5901_v53 }
 0xb41   : > { %v5904_v40 = vmax.f32 %v5902_v15, 0.0 }
 0xb43   : > { %6935 = vmatmul.msk.f32.vlgmr.msra.gmra.mxu1 %vm3921_vm5, %v5904_v40 }
 0xbc0   : > { %v5943_v55 = vpop.f32.mrf.mxu1 }
 0xbc1   : > { %v5944_v58 = vadd.f32 %v6981_v35, %v5943_v55 }
 0xbc3   : > { %5946 = vst [vmem:[%s515_s20] sm:$0xff] %v5944_v58 }
 0xbc4   : > { %7011 = shalt.err (!%p7008_p3)
}
 0xbc5   : > { %6940 = dma.vmem_to_hbm [thread:$0]  (%p7171_p5), %s5961_s18, 128, %s5963_s19, %s5948_s24  }
 0xbc6 PF: > { %s11505_s21 = sld [smem:[#allocation10_spill]] }
 0xbc7   : > { %s11506_s27 = sld [smem:[#allocation8_spill]] }
 0xbcc   : > { %p6946_p4 = scmp.ge.s32.totalorder %s11505_s21, 2 }
 0xbcd   : > { %s5974_s20 = sand.u32 1, %s11506_s27  }
 0xbce   : > { %p6943_p7 = pnand %p6946_p4, %p7175_p6  ;;  %s5975_s29 = scalar_lea.sflag [#allocation6], %s5974_s20 }
 0xbd0   : > { %p6944_p8 = pneg %p6943_p7 }
 0xbd2   : > { %7029 = dma.done.wait (%p6944_p8), %s5975_s29, 128  }
 0xbd3   : > { %7031 = vsyncadd (%p6944_p8), %s5975_s29, 4294967168  ;;  %s11508_s24 = sld [smem:[#allocation11_spill]]  ;;  %s11511_s21 = smov %s7038_s22 }
 0xbd4   : > { %s11509_s1 = sld [smem:[#allocation9_spill]] }
 0xbd5   : > { %s11510_s23 = sld [smem:[#allocation12_spill]] }
 0xbd9   : > { %p26_p9 = scmp.ge.s32.totalorder %s11508_s24, 4  }
 0xbda   : > { %s11512_s22 = smov %s11509_s1 }
 0xbdb   :  { %28 = sbr.rel (!%p26_p9) target bundleno = 6 (0x6), region = 139 }
 0xbe0   :  { %5981 = vsyncpa [#allocation6], 1 }
 0xbe1   :  { %5983 = vsyncpa [#allocation6 + $0x1], 1 }

</bundles_post_ra>
